<compile_context>
chip_gen: v5e
topology: v5e:2x2
jax: 0.10.0
libtpu: 0.0.40
codegen_flags: <defaults>
</compile_context>

<pallas_src>
import functools

import jax
import jax.numpy as jnp
from jax import lax
from jax.experimental import pallas as pl
from jax.experimental.pallas import tpu as pltpu


# Below v7x's 64 MiB physical VMEM, above v5e's 16 MiB default scoped limit.
_VMEM_LIMIT_BYTES = 48 * 1024 * 1024


def _round_up(x, m):
    return (x + m - 1) // m * m


# -----------------------------------------------------------------------------
# Fused Conv2d(valid, stride 1) + bias + ReLU + MaxPool2d(2, 2) kernel.
# Grid: (batch, pooled-row blocks). Each program computes rb pooled rows.
# Per kernel tap (ky, kx): one contiguous (2*rb, 2*wp_pad, cin) slice and one MXU
# matmul accumulated into a single VMEM f32 accumulator.  Pooling happens once after
# the tap loop; bias + ReLU commute with max-pool and run once on the pooled block.
# -----------------------------------------------------------------------------
def _conv_relu_pool_kernel(x_ref, w_ref, b_ref, o_ref, acc_ref, *,
                           kh, kw, rb, wp_pad, cin, cout):
    rb2 = 2 * rb                      # conv rows per block
    cols = 2 * wp_pad                 # conv cols per block
    row0 = pl.program_id(1) * rb2     # first conv row of this block

    for ky in range(kh):
        for kx in range(kw):
            wk = w_ref[ky, kx]                                          # (cin, cout)
            patch = x_ref[pl.ds(row0 + ky, rb2), pl.ds(kx, cols), :]    # (rb2, cols, cin)
            patch = patch.reshape(rb2 * cols, cin)
            contrib = jnp.dot(patch, wk, preferred_element_type=jnp.float32)
            if ky == 0 and kx == 0:
                acc_ref[...] = contrib        # first tap overwrites: re-init per block
            else:
                acc_ref[...] += contrib

    # vertical 2x pool: pure leading-dim regroup (layout preserving) + max
    acc = acc_ref[...].reshape(rb, 2, cols, cout)
    vmax = jnp.maximum(acc[:, 0], acc[:, 1])                  # (rb, cols, cout)
    # horizontal 2x pool: single even/odd sublane split on the halved array
    hm = vmax.reshape(rb, wp_pad, 2, cout)
    pooled = jnp.maximum(hm[:, :, 0, :], hm[:, :, 1, :])      # (rb, wp_pad, cout)
    # bias + ReLU once, after pooling (4x less data)
    out = jnp.maximum(pooled + b_ref[...], 0.0)
    o_ref[...] = out.astype(o_ref.dtype)


def conv_relu_pool(x_nhwc, w_hwio, b, *, rb_max=16):
    """x_nhwc may carry zero-padded channels beyond w_hwio's cin; output channels are
    zero-padded to 128 (lane-dense).  Returns (n, hp, wp, 128) (valid hp/wp rows/cols)."""
    n, h, w, cin = x_nhwc.shape
    kh, kw, cin_w, cout = w_hwio.shape
    assert cin_w <= cin
    ho, wo = h - kh + 1, w - kw + 1
    hp, wp = ho // 2, wo // 2

    rb = min(rb_max, hp)
    hp_pad = _round_up(hp, rb)
    wp_pad = _round_up(wp, 8)
    cout_pad = _round_up(cout, 128)
    h_pad = max(h, 2 * hp_pad + kh - 1)
    w_pad = max(w, 2 * wp_pad + kw - 1)

    # Zero-pad once in HBM: spatial padding keeps every in-kernel slice in-bounds,
    # channel padding of the output keeps the next layer lane-dense (zeros are exact).
    x_p = jnp.pad(x_nhwc, ((0, 0), (0, h_pad - h), (0, w_pad - w), (0, 0)))
    w_p = w_hwio
    if cin_w != cin:
        w_p = jnp.pad(w_p, ((0, 0), (0, 0), (0, cin - cin_w), (0, 0)))
    w_p = jnp.pad(w_p, ((0, 0), (0, 0), (0, 0), (0, cout_pad - cout)))
    b_p = jnp.pad(b.reshape(1, -1), ((0, 0), (0, cout_pad - cout)))

    kernel = functools.partial(_conv_relu_pool_kernel, kh=kh, kw=kw, rb=rb,
                               wp_pad=wp_pad, cin=cin, cout=cout_pad)
    out = pl.pallas_call(
        kernel,
        out_shape=jax.ShapeDtypeStruct((n, hp_pad, wp_pad, cout_pad), x_nhwc.dtype),
        grid_spec=pltpu.PrefetchScalarGridSpec(
            num_scalar_prefetch=0,
            grid=(n, hp_pad // rb),
            in_specs=[
                # full padded image, batch dim squeezed, resident across the row axis
                # TODO(synk): on v7x a halo-row manual DMA (memory_space=pl.ANY) would
                # halve the resident image VMEM; not needed at these sizes.
                pl.BlockSpec((None, h_pad, w_pad, cin), lambda b_, j: (b_, 0, 0, 0)),
                pl.BlockSpec((kh, kw, cin, cout_pad), lambda b_, j: (0, 0, 0, 0)),
                pl.BlockSpec((1, cout_pad), lambda b_, j: (0, 0)),
            ],
            out_specs=pl.BlockSpec((None, rb, wp_pad, cout_pad),
                                   lambda b_, j: (b_, j, 0, 0)),
            scratch_shapes=[pltpu.VMEM((2 * rb * 2 * wp_pad, cout_pad), jnp.float32)],
        ),
        compiler_params=pltpu.CompilerParams(
            dimension_semantics=("parallel", "parallel"),
            vmem_limit_bytes=_VMEM_LIMIT_BYTES),
    )(x_p, w_p, b_p)
    # drop padded pooled rows/cols; keep zero-padded channels (lane-dense next layer)
    return out[:, :hp, :wp, :]


# -----------------------------------------------------------------------------
# Linear (+ optional ReLU): K-tiled (reduction axis last), N-tiled (parallel axis so
# v7x's two TensorCores split the weight stream).  Weights streamed in bf16, f32
# accumulation directly into the resident output block; bias/ReLU on the last K step.
# -----------------------------------------------------------------------------
def _linear_kernel(x_ref, w_ref, b_ref, o_ref, *, apply_relu):
    kk = pl.program_id(1)
    contrib = jnp.dot(x_ref[...].astype(jnp.bfloat16), w_ref[...],
                      preferred_element_type=jnp.float32)

    @pl.when(kk == 0)
    def _():
        o_ref[...] = contrib

    @pl.when(kk > 0)
    def _():
        o_ref[...] += contrib

    @pl.when(kk == pl.num_programs(1) - 1)
    def _():
        y = o_ref[...] + b_ref[...]
        if apply_relu:
            y = jnp.maximum(y, 0.0)
        o_ref[...] = y


def _choose_tk(k128, cap=4096):
    """k128 is K rounded up to 128.  With bf16 weights a (tk<=4096, tn<=512) block is
    <=4 MB, double-buffered well inside the raised scoped-VMEM limit."""
    if k128 <= cap:
        return k128
    for tk in range(cap, 511, -128):
        if k128 % tk == 0:
            return tk
    return 2048  # ragged K handled by zero-padding up to a multiple of tk


def pallas_linear(x, w, b, *, apply_relu=False):
    n, k = x.shape
    k_w, m = w.shape
    assert k == k_w
    m_pad = _round_up(m, 128)
    tk = _choose_tk(_round_up(k, 128))
    k_pad = _round_up(k, tk)
    tn = min(512, m_pad)   # keep m_pad//tn >= 2 for fc1 so v7x can split the stream

    # Pad once so all tiles are lane/sublane dense (zero padding is exact).
    # TODO(synk): at the real 224x224 size, pre-pad + pre-cast the weights at init so
    # this pad isn't re-materialized per forward pass.
    if k_pad != k:
        x = jnp.pad(x, ((0, 0), (0, k_pad - k)))
    if k_pad != k or m_pad != m:
        w = jnp.pad(w, ((0, k_pad - k), (0, m_pad - m)))
    w = w.astype(jnp.bfloat16)   # no-op if already stored bf16; halves weight stream
    b2 = b.reshape(1, -1)
    if m_pad != m:
        b2 = jnp.pad(b2, ((0, 0), (0, m_pad - m)))

    # TODO(synk): on v7x an fp8 weight path (with per-channel scales) would cut fc1's
    # HBM stream another 2x; bf16 kept here for accuracy headroom on all generations.
    out = pl.pallas_call(
        functools.partial(_linear_kernel, apply_relu=apply_relu),
        out_shape=jax.ShapeDtypeStruct((n, m_pad), jnp.float32),
        grid_spec=pltpu.PrefetchScalarGridSpec(
            num_scalar_prefetch=0,
            grid=(m_pad // tn, k_pad // tk),
            in_specs=[
                pl.BlockSpec((n, tk), lambda mi, kk: (0, kk)),
                pl.BlockSpec((tk, tn), lambda mi, kk: (kk, mi)),
                pl.BlockSpec((1, tn), lambda mi, kk: (0, mi)),
            ],
            out_specs=pl.BlockSpec((n, tn), lambda mi, kk: (0, mi)),
        ),
        compiler_params=pltpu.CompilerParams(
            dimension_semantics=("parallel", "arbitrary"),
            vmem_limit_bytes=_VMEM_LIMIT_BYTES),
    )(x, w, b2)
    return out[:, :m]


# -----------------------------------------------------------------------------
# Full forward pass (glue in plain JAX, hot paths in Pallas).
# -----------------------------------------------------------------------------
@jax.jit
def cnn_forward(x_nchw, params):
    n = x_nchw.shape[0]
    x = jnp.transpose(x_nchw, (0, 2, 3, 1))                       # NCHW -> NHWC

    # layer1 via HBM-side im2col: (n,h,w,3) -> (n,ho,wo,27); the fused kernel then
    # runs it as a single-tap (1x1) conv with K=27 instead of nine K=3 matmuls.
    kh, kw, cin1, cout1 = params["w1"].shape
    h, w = x.shape[1], x.shape[2]
    ho1, wo1 = h - kh + 1, w - kw + 1
    patches = jnp.concatenate(
        [x[:, ky:ky + ho1, kx:kx + wo1, :] for ky in range(kh) for kx in range(kw)],
        axis=-1)                                                   # (n, ho1, wo1, 27)
    w1_flat = params["w1"].reshape(1, 1, kh * kw * cin1, cout1)

    x = conv_relu_pool(patches, w1_flat, params["b1"])             # (n, hp1, wp1, 128)
    x = conv_relu_pool(x, params["w2"], params["b2"])              # (n, hp2, wp2, 128)
    x = x[:, :, :, :params["w2"].shape[3]]                         # drop channel padding
    x = jnp.transpose(x, (0, 3, 1, 2)).reshape(n, -1)              # PyTorch flatten order
    # TODO(synk): nn.Dropout() train-mode masking not replicated; eval-mode identity
    # used for determinism (in-kernel dropout would use pltpu.prng_seed + random bits).
    x = pallas_linear(x, params["wf1"], params["bf1"], apply_relu=True)   # fc1 + ReLU
    x = pallas_linear(x, params["wf2"], params["bf2"], apply_relu=False)  # fc2
    return x


def init_params(key, num_classes, spatial):
    h = w = spatial
    hp1, wp1 = (h - 2) // 2, (w - 2) // 2
    hp2, wp2 = (hp1 - 2) // 2, (wp1 - 2) // 2
    feat = hp2 * wp2 * 64        # == 54*54*64 when spatial == 224
    ks = jax.random.split(key, 8)

    def winit(k, shape, fan_in):
        return jax.random.normal(k, shape, jnp.float32) / jnp.sqrt(float(fan_in))

    return {
        "w1": winit(ks[0], (3, 3, 3, 32), 3 * 3 * 3),
        "b1": 0.01 * jax.random.normal(ks[1], (1, 32), jnp.float32),
        "w2": winit(ks[2], (3, 3, 32, 64), 3 * 3 * 32),
        "b2": 0.01 * jax.random.normal(ks[3], (1, 64), jnp.float32),
        # fc weights stored bf16 in HBM: fc1 is pure weight streaming at the real size.
        "wf1": winit(ks[4], (feat, 1000), feat).astype(jnp.bfloat16),
        "bf1": 0.01 * jax.random.normal(ks[5], (1, 1000), jnp.float32),
        "wf2": winit(ks[6], (1000, num_classes), 1000).astype(jnp.bfloat16),
        "bf2": 0.01 * jax.random.normal(ks[7], (1, num_classes), jnp.float32),
    }


def reference_forward(x_nchw, params):
    n = x_nchw.shape[0]
    x = jnp.transpose(x_nchw, (0, 2, 3, 1))

    def block(x, w, b):
        y = lax.conv_general_dilated(x, w, window_strides=(1, 1), padding="VALID",
                                     dimension_numbers=("NHWC", "HWIO", "NHWC"))
        y = jnp.maximum(y + b.reshape(1, 1, 1, -1), 0.0)
        return lax.reduce_window(y, -jnp.inf, lax.max,
                                 (1, 2, 2, 1), (1, 2, 2, 1), "VALID")

    x = block(x, params["w1"], params["b1"])
    x = block(x, params["w2"], params["b2"])
    x = jnp.transpose(x, (0, 3, 1, 2)).reshape(n, -1)
    x = jnp.maximum(x @ params["wf1"] + params["bf1"], 0.0)
    return x @ params["wf2"] + params["bf2"]


if __name__ == "__main__":
    num_classes = 10
    batch, spatial = 2, 32

    key = jax.random.PRNGKey(0)
    kx, kp = jax.random.split(key)
    x = jax.random.normal(kx, (batch, 3, spatial, spatial), jnp.float32)  # NCHW input
    params = init_params(kp, num_classes, spatial)

    y = cnn_forward(x, params)
    y = jax.block_until_ready(y)

    y_ref = reference_forward(x, params)
    err = float(jnp.max(jnp.abs(y - y_ref)))
    scale = float(jnp.max(jnp.abs(y_ref)))
    assert y.shape == (batch, num_classes), y.shape
    assert err <= 5e-2 * max(1.0, scale), f"max abs error {err} (scale {scale})"
    print("KERNEL_OK")
</pallas_src>

<mosaic_0001>
module attributes {stable_mosaic.version = 11 : i64} {
  func.func @_conv_relu_pool_kernel(%arg0: i32, %arg1: i32, %arg2: memref<1x30x32x27xf32, #tpu.memory_space<vmem>>, %arg3: memref<1x1x27x128xf32, #tpu.memory_space<vmem>>, %arg4: memref<1x128xf32, #tpu.memory_space<vmem>>, %arg5: memref<1x15x16x128xf32, #tpu.memory_space<vmem>>, %arg6: memref<960x128xf32, #tpu.memory_space<vmem>>) attributes {dimension_semantics = [#tpu.dimension_semantics<parallel>, #tpu.dimension_semantics<parallel>], iteration_bounds = array<i64: 2, 1>, scalar_prefetch = 0 : i64, scratch_operands = 1 : i64, tpu.core_type = #tpu.core_type<tc>, window_params = [{transform_indices = @transform_0, window_bounds = array<i64: 1, 30, 32, 27>}, {pipeline_mode = #tpu.pipeline_mode<synchronous>, transform_indices = @transform_1, window_bounds = array<i64: 1, 1, 27, 128>}, {pipeline_mode = #tpu.pipeline_mode<synchronous>, transform_indices = @transform_2, window_bounds = array<i64: 1, 128>}, {transform_indices = @transform_3, window_bounds = array<i64: 1, 15, 16, 128>}]} {
    %c30_i32 = arith.constant 30 : i32
    %0 = arith.muli %arg1, %c30_i32 : i32
    %c0 = arith.constant 0 : index
    %c0_0 = arith.constant 0 : index
    %c0_1 = arith.constant 0 : index
    %c0_2 = arith.constant 0 : index
    %1 = vector.load %arg3[%c0, %c0_0, %c0_1, %c0_2] : memref<1x1x27x128xf32, #tpu.memory_space<vmem>>, vector<1x1x27x128xf32>
    %2 = vector.shape_cast %1 : vector<1x1x27x128xf32> to vector<27x128xf32>
    %c0_i32 = arith.constant 0 : i32
    %3 = arith.addi %0, %c0_i32 : i32
    %c0_3 = arith.constant 0 : index
    %4 = arith.index_cast %3 : i32 to index
    %c0_4 = arith.constant 0 : index
    %c0_5 = arith.constant 0 : index
    %5 = vector.load %arg2[%c0_3, %4, %c0_4, %c0_5] : memref<1x30x32x27xf32, #tpu.memory_space<vmem>>, vector<1x30x32x27xf32>
    %6 = vector.shape_cast %5 : vector<1x30x32x27xf32> to vector<30x32x27xf32>
    %7 = vector.shape_cast %6 : vector<30x32x27xf32> to vector<960x27xf32>
    %cst = arith.constant dense<0.000000e+00> : vector<960x128xf32>
    %8 = tpu.matmul %7, %2, %cst {dimension_numbers = #tpu.dot_dimension_numbers<[1], [0], [0], [1], [0, 0, 1, 1], [], []>} : vector<960x27xf32>, vector<27x128xf32>, vector<960x128xf32> -> vector<960x128xf32>
    %c0_6 = arith.constant 0 : index
    %c0_7 = arith.constant 0 : index
    %9 = vector.load %arg6[%c0_6, %c0_7] : memref<960x128xf32, #tpu.memory_space<vmem>>, vector<960x128xf32>
    tpu.vector_store %arg6[%c0_6, %c0_7], %8 {strides = array<i32>} : memref<960x128xf32, #tpu.memory_space<vmem>>, vector<960x128xf32>,
    %c0_8 = arith.constant 0 : index
    %c0_9 = arith.constant 0 : index
    %10 = vector.load %arg6[%c0_8, %c0_9] : memref<960x128xf32, #tpu.memory_space<vmem>>, vector<960x128xf32>
    %11 = vector.shape_cast %10 : vector<960x128xf32> to vector<15x2x32x128xf32>
    %12 = vector.extract_strided_slice %11 {offsets = [0, 0, 0, 0], sizes = [15, 1, 32, 128], strides = [1, 1, 1, 1]} : vector<15x2x32x128xf32> to vector<15x1x32x128xf32>
    %13 = vector.shape_cast %12 : vector<15x1x32x128xf32> to vector<15x32x128xf32>
    %14 = vector.extract_strided_slice %11 {offsets = [0, 1, 0, 0], sizes = [15, 1, 32, 128], strides = [1, 1, 1, 1]} : vector<15x2x32x128xf32> to vector<15x1x32x128xf32>
    %15 = vector.shape_cast %14 : vector<15x1x32x128xf32> to vector<15x32x128xf32>
    %16 = arith.maximumf %13, %15 : vector<15x32x128xf32>
    %17 = vector.shape_cast %16 : vector<15x32x128xf32> to vector<15x16x2x128xf32>
    %18 = vector.extract_strided_slice %17 {offsets = [0, 0, 0, 0], sizes = [15, 16, 1, 128], strides = [1, 1, 1, 1]} : vector<15x16x2x128xf32> to vector<15x16x1x128xf32>
    %19 = vector.shape_cast %18 : vector<15x16x1x128xf32> to vector<15x16x128xf32>
    %20 = vector.extract_strided_slice %17 {offsets = [0, 0, 1, 0], sizes = [15, 16, 1, 128], strides = [1, 1, 1, 1]} : vector<15x16x2x128xf32> to vector<15x16x1x128xf32>
    %21 = vector.shape_cast %20 : vector<15x16x1x128xf32> to vector<15x16x128xf32>
    %22 = arith.maximumf %19, %21 : vector<15x16x128xf32>
    %c0_10 = arith.constant 0 : index
    %c0_11 = arith.constant 0 : index
    %23 = vector.load %arg4[%c0_10, %c0_11] : memref<1x128xf32, #tpu.memory_space<vmem>>, vector<1x128xf32>
    %24 = vector.shape_cast %23 : vector<1x128xf32> to vector<1x1x128xf32>
    %25 = vector.broadcast %24 : vector<1x1x128xf32> to vector<15x16x128xf32>
    %26 = arith.addf %22, %25 : vector<15x16x128xf32>
    %cst_12 = arith.constant 0.000000e+00 : f32
    %27 = vector.broadcast %cst_12 : f32 to vector<15x16x128xf32>
    %28 = arith.maximumf %26, %27 : vector<15x16x128xf32>
    %c0_13 = arith.constant 0 : index
    %c0_14 = arith.constant 0 : index
    %c0_15 = arith.constant 0 : index
    %c0_16 = arith.constant 0 : index
    %29 = vector.load %arg5[%c0_13, %c0_14, %c0_15, %c0_16] : memref<1x15x16x128xf32, #tpu.memory_space<vmem>>, vector<1x15x16x128xf32>
    %30 = vector.shape_cast %29 : vector<1x15x16x128xf32> to vector<15x16x128xf32>
    %31 = vector.shape_cast %28 : vector<15x16x128xf32> to vector<1x15x16x128xf32>
    tpu.vector_store %arg5[%c0_13, %c0_14, %c0_15, %c0_16], %31 {strides = array<i32>} : memref<1x15x16x128xf32, #tpu.memory_space<vmem>>, vector<1x15x16x128xf32>,
    return
  }
  func.func @transform_0(%arg0: i32, %arg1: i32) -> (i32, i32, i32, i32) {
    %c0_i32 = arith.constant 0 : i32
    %c0_i32_0 = arith.constant 0 : i32
    %c0_i32_1 = arith.constant 0 : i32
    %c0_i32_2 = arith.constant 0 : i32
    return %arg0, %c0_i32, %c0_i32_0, %c0_i32_1 : i32, i32, i32, i32
  }
  func.func @transform_1(%arg0: i32, %arg1: i32) -> (i32, i32, i32, i32) {
    %c0_i32 = arith.constant 0 : i32
    %c0_i32_0 = arith.constant 0 : i32
    %c0_i32_1 = arith.constant 0 : i32
    %c0_i32_2 = arith.constant 0 : i32
    %c0_i32_3 = arith.constant 0 : i32
    return %c0_i32, %c0_i32_0, %c0_i32_1, %c0_i32_2 : i32, i32, i32, i32
  }
  func.func @transform_2(%arg0: i32, %arg1: i32) -> (i32, i32) {
    %c0_i32 = arith.constant 0 : i32
    %c0_i32_0 = arith.constant 0 : i32
    %c0_i32_1 = arith.constant 0 : i32
    return %c0_i32, %c0_i32_0 : i32, i32
  }
  func.func @transform_3(%arg0: i32, %arg1: i32) -> (i32, i32, i32, i32) {
    %c0_i32 = arith.constant 0 : i32
    %c0_i32_0 = arith.constant 0 : i32
    %c0_i32_1 = arith.constant 0 : i32
    return %arg0, %arg1, %c0_i32, %c0_i32_0 : i32, i32, i32, i32
  }
}

module attributes {stable_mosaic.version = 11 : i64} {
  func.func @_conv_relu_pool_kernel(%arg0: i32, %arg1: i32, %arg2: memref<1x15x18x128xf32, #tpu.memory_space<vmem>>, %arg3: memref<3x3x128x128xf32, #tpu.memory_space<vmem>>, %arg4: memref<1x128xf32, #tpu.memory_space<vmem>>, %arg5: memref<1x6x8x128xf32, #tpu.memory_space<vmem>>, %arg6: memref<192x128xf32, #tpu.memory_space<vmem>>) attributes {dimension_semantics = [#tpu.dimension_semantics<parallel>, #tpu.dimension_semantics<parallel>], iteration_bounds = array<i64: 2, 1>, scalar_prefetch = 0 : i64, scratch_operands = 1 : i64, tpu.core_type = #tpu.core_type<tc>, window_params = [{transform_indices = @transform_0, window_bounds = array<i64: 1, 15, 18, 128>}, {pipeline_mode = #tpu.pipeline_mode<synchronous>, transform_indices = @transform_1, window_bounds = array<i64: 3, 3, 128, 128>}, {pipeline_mode = #tpu.pipeline_mode<synchronous>, transform_indices = @transform_2, window_bounds = array<i64: 1, 128>}, {transform_indices = @transform_3, window_bounds = array<i64: 1, 6, 8, 128>}]} {
    %c12_i32 = arith.constant 12 : i32
    %0 = arith.muli %arg1, %c12_i32 : i32
    %c0 = arith.constant 0 : index
    %c0_0 = arith.constant 0 : index
    %c0_1 = arith.constant 0 : index
    %c0_2 = arith.constant 0 : index
    %1 = vector.load %arg3[%c0, %c0_0, %c0_1, %c0_2] : memref<3x3x128x128xf32, #tpu.memory_space<vmem>>, vector<1x1x128x128xf32>
    %2 = vector.shape_cast %1 : vector<1x1x128x128xf32> to vector<128x128xf32>
    %c0_i32 = arith.constant 0 : i32
    %3 = arith.addi %0, %c0_i32 : i32
    %c0_3 = arith.constant 0 : index
    %4 = arith.index_cast %3 : i32 to index
    %c0_4 = arith.constant 0 : index
    %c0_5 = arith.constant 0 : index
    %5 = vector.load %arg2[%c0_3, %4, %c0_4, %c0_5] : memref<1x15x18x128xf32, #tpu.memory_space<vmem>>, vector<1x12x16x128xf32>
    %6 = vector.shape_cast %5 : vector<1x12x16x128xf32> to vector<12x16x128xf32>
    %7 = vector.shape_cast %6 : vector<12x16x128xf32> to vector<192x128xf32>
    %cst = arith.constant dense<0.000000e+00> : vector<192x128xf32>
    %8 = tpu.matmul %7, %2, %cst {dimension_numbers = #tpu.dot_dimension_numbers<[1], [0], [0], [1], [0, 0, 1, 1], [], []>} : vector<192x128xf32>, vector<128x128xf32>, vector<192x128xf32> -> vector<192x128xf32>
    %c0_6 = arith.constant 0 : index
    %c0_7 = arith.constant 0 : index
    %9 = vector.load %arg6[%c0_6, %c0_7] : memref<192x128xf32, #tpu.memory_space<vmem>>, vector<192x128xf32>
    tpu.vector_store %arg6[%c0_6, %c0_7], %8 {strides = array<i32>} : memref<192x128xf32, #tpu.memory_space<vmem>>, vector<192x128xf32>,
    %c0_8 = arith.constant 0 : index
    %c1 = arith.constant 1 : index
    %c0_9 = arith.constant 0 : index
    %c0_10 = arith.constant 0 : index
    %10 = vector.load %arg3[%c0_8, %c1, %c0_9, %c0_10] : memref<3x3x128x128xf32, #tpu.memory_space<vmem>>, vector<1x1x128x128xf32>
    %11 = vector.shape_cast %10 : vector<1x1x128x128xf32> to vector<128x128xf32>
    %c0_i32_11 = arith.constant 0 : i32
    %12 = arith.addi %0, %c0_i32_11 : i32
    %c0_12 = arith.constant 0 : index
    %13 = arith.index_cast %12 : i32 to index
    %c1_13 = arith.constant 1 : index
    %c0_14 = arith.constant 0 : index
    %14 = vector.load %arg2[%c0_12, %13, %c1_13, %c0_14] : memref<1x15x18x128xf32, #tpu.memory_space<vmem>>, vector<1x12x16x128xf32>
    %15 = vector.shape_cast %14 : vector<1x12x16x128xf32> to vector<12x16x128xf32>
    %16 = vector.shape_cast %15 : vector<12x16x128xf32> to vector<192x128xf32>
    %cst_15 = arith.constant dense<0.000000e+00> : vector<192x128xf32>
    %17 = tpu.matmul %16, %11, %cst_15 {dimension_numbers = #tpu.dot_dimension_numbers<[1], [0], [0], [1], [0, 0, 1, 1], [], []>} : vector<192x128xf32>, vector<128x128xf32>, vector<192x128xf32> -> vector<192x128xf32>
    %c0_16 = arith.constant 0 : index
    %c0_17 = arith.constant 0 : index
    %18 = vector.load %arg6[%c0_16, %c0_17] : memref<192x128xf32, #tpu.memory_space<vmem>>, vector<192x128xf32>
    %19 = arith.addf %18, %17 : vector<192x128xf32>
    %c0_18 = arith.constant 0 : index
    %c0_19 = arith.constant 0 : index
    %20 = vector.load %arg6[%c0_18, %c0_19] : memref<192x128xf32, #tpu.memory_space<vmem>>, vector<192x128xf32>
    tpu.vector_store %arg6[%c0_18, %c0_19], %19 {strides = array<i32>} : memref<192x128xf32, #tpu.memory_space<vmem>>, vector<192x128xf32>,
    %c0_20 = arith.constant 0 : index
    %c2 = arith.constant 2 : index
    %c0_21 = arith.constant 0 : index
    %c0_22 = arith.constant 0 : index
    %21 = vector.load %arg3[%c0_20, %c2, %c0_21, %c0_22] : memref<3x3x128x128xf32, #tpu.memory_space<vmem>>, vector<1x1x128x128xf32>
    %22 = vector.shape_cast %21 : vector<1x1x128x128xf32> to vector<128x128xf32>
    %c0_i32_23 = arith.constant 0 : i32
    %23 = arith.addi %0, %c0_i32_23 : i32
    %c0_24 = arith.constant 0 : index
    %24 = arith.index_cast %23 : i32 to index
    %c2_25 = arith.constant 2 : index
    %c0_26 = arith.constant 0 : index
    %25 = vector.load %arg2[%c0_24, %24, %c2_25, %c0_26] : memref<1x15x18x128xf32, #tpu.memory_space<vmem>>, vector<1x12x16x128xf32>
    %26 = vector.shape_cast %25 : vector<1x12x16x128xf32> to vector<12x16x128xf32>
    %27 = vector.shape_cast %26 : vector<12x16x128xf32> to vector<192x128xf32>
    %cst_27 = arith.constant dense<0.000000e+00> : vector<192x128xf32>
    %28 = tpu.matmul %27, %22, %cst_27 {dimension_numbers = #tpu.dot_dimension_numbers<[1], [0], [0], [1], [0, 0, 1, 1], [], []>} : vector<192x128xf32>, vector<128x128xf32>, vector<192x128xf32> -> vector<192x128xf32>
    %c0_28 = arith.constant 0 : index
    %c0_29 = arith.constant 0 : index
    %29 = vector.load %arg6[%c0_28, %c0_29] : memref<192x128xf32, #tpu.memory_space<vmem>>, vector<192x128xf32>
    %30 = arith.addf %29, %28 : vector<192x128xf32>
    %c0_30 = arith.constant 0 : index
    %c0_31 = arith.constant 0 : index
    %31 = vector.load %arg6[%c0_30, %c0_31] : memref<192x128xf32, #tpu.memory_space<vmem>>, vector<192x128xf32>
    tpu.vector_store %arg6[%c0_30, %c0_31], %30 {strides = array<i32>} : memref<192x128xf32, #tpu.memory_space<vmem>>, vector<192x128xf32>,
    %c1_32 = arith.constant 1 : index
    %c0_33 = arith.constant 0 : index
    %c0_34 = arith.constant 0 : index
    %c0_35 = arith.constant 0 : index
    %32 = vector.load %arg3[%c1_32, %c0_33, %c0_34, %c0_35] : memref<3x3x128x128xf32, #tpu.memory_space<vmem>>, vector<1x1x128x128xf32>
    %33 = vector.shape_cast %32 : vector<1x1x128x128xf32> to vector<128x128xf32>
    %c1_i32 = arith.constant 1 : i32
    %34 = arith.addi %0, %c1_i32 : i32
    %c0_36 = arith.constant 0 : index
    %35 = arith.index_cast %34 : i32 to index
    %c0_37 = arith.constant 0 : index
    %c0_38 = arith.constant 0 : index
    %36 = vector.load %arg2[%c0_36, %35, %c0_37, %c0_38] : memref<1x15x18x128xf32, #tpu.memory_space<vmem>>, vector<1x12x16x128xf32>
    %37 = vector.shape_cast %36 : vector<1x12x16x128xf32> to vector<12x16x128xf32>
    %38 = vector.shape_cast %37 : vector<12x16x128xf32> to vector<192x128xf32>
    %cst_39 = arith.constant dense<0.000000e+00> : vector<192x128xf32>
    %39 = tpu.matmul %38, %33, %cst_39 {dimension_numbers = #tpu.dot_dimension_numbers<[1], [0], [0], [1], [0, 0, 1, 1], [], []>} : vector<192x128xf32>, vector<128x128xf32>, vector<192x128xf32> -> vector<192x128xf32>
    %c0_40 = arith.constant 0 : index
    %c0_41 = arith.constant 0 : index
    %40 = vector.load %arg6[%c0_40, %c0_41] : memref<192x128xf32, #tpu.memory_space<vmem>>, vector<192x128xf32>
    %41 = arith.addf %40, %39 : vector<192x128xf32>
    %c0_42 = arith.constant 0 : index
    %c0_43 = arith.constant 0 : index
    %42 = vector.load %arg6[%c0_42, %c0_43] : memref<192x128xf32, #tpu.memory_space<vmem>>, vector<192x128xf32>
    tpu.vector_store %arg6[%c0_42, %c0_43], %41 {strides = array<i32>} : memref<192x128xf32, #tpu.memory_space<vmem>>, vector<192x128xf32>,
    %c1_44 = arith.constant 1 : index
    %c1_45 = arith.constant 1 : index
    %c0_46 = arith.constant 0 : index
    %c0_47 = arith.constant 0 : index
    %43 = vector.load %arg3[%c1_44, %c1_45, %c0_46, %c0_47] : memref<3x3x128x128xf32, #tpu.memory_space<vmem>>, vector<1x1x128x128xf32>
    %44 = vector.shape_cast %43 : vector<1x1x128x128xf32> to vector<128x128xf32>
    %c1_i32_48 = arith.constant 1 : i32
    %45 = arith.addi %0, %c1_i32_48 : i32
    %c0_49 = arith.constant 0 : index
    %46 = arith.index_cast %45 : i32 to index
    %c1_50 = arith.constant 1 : index
    %c0_51 = arith.constant 0 : index
    %47 = vector.load %arg2[%c0_49, %46, %c1_50, %c0_51] : memref<1x15x18x128xf32, #tpu.memory_space<vmem>>, vector<1x12x16x128xf32>
    %48 = vector.shape_cast %47 : vector<1x12x16x128xf32> to vector<12x16x128xf32>
    %49 = vector.shape_cast %48 : vector<12x16x128xf32> to vector<192x128xf32>
    %cst_52 = arith.constant dense<0.000000e+00> : vector<192x128xf32>
    %50 = tpu.matmul %49, %44, %cst_52 {dimension_numbers = #tpu.dot_dimension_numbers<[1], [0], [0], [1], [0, 0, 1, 1], [], []>} : vector<192x128xf32>, vector<128x128xf32>, vector<192x128xf32> -> vector<192x128xf32>
    %c0_53 = arith.constant 0 : index
    %c0_54 = arith.constant 0 : index
    %51 = vector.load %arg6[%c0_53, %c0_54] : memref<192x128xf32, #tpu.memory_space<vmem>>, vector<192x128xf32>
    %52 = arith.addf %51, %50 : vector<192x128xf32>
    %c0_55 = arith.constant 0 : index
    %c0_56 = arith.constant 0 : index
    %53 = vector.load %arg6[%c0_55, %c0_56] : memref<192x128xf32, #tpu.memory_space<vmem>>, vector<192x128xf32>
    tpu.vector_store %arg6[%c0_55, %c0_56], %52 {strides = array<i32>} : memref<192x128xf32, #tpu.memory_space<vmem>>, vector<192x128xf32>,
    %c1_57 = arith.constant 1 : index
    %c2_58 = arith.constant 2 : index
    %c0_59 = arith.constant 0 : index
    %c0_60 = arith.constant 0 : index
    %54 = vector.load %arg3[%c1_57, %c2_58, %c0_59, %c0_60] : memref<3x3x128x128xf32, #tpu.memory_space<vmem>>, vector<1x1x128x128xf32>
    %55 = vector.shape_cast %54 : vector<1x1x128x128xf32> to vector<128x128xf32>
    %c1_i32_61 = arith.constant 1 : i32
    %56 = arith.addi %0, %c1_i32_61 : i32
    %c0_62 = arith.constant 0 : index
    %57 = arith.index_cast %56 : i32 to index
    %c2_63 = arith.constant 2 : index
    %c0_64 = arith.constant 0 : index
    %58 = vector.load %arg2[%c0_62, %57, %c2_63, %c0_64] : memref<1x15x18x128xf32, #tpu.memory_space<vmem>>, vector<1x12x16x128xf32>
    %59 = vector.shape_cast %58 : vector<1x12x16x128xf32> to vector<12x16x128xf32>
    %60 = vector.shape_cast %59 : vector<12x16x128xf32> to vector<192x128xf32>
    %cst_65 = arith.constant dense<0.000000e+00> : vector<192x128xf32>
    %61 = tpu.matmul %60, %55, %cst_65 {dimension_numbers = #tpu.dot_dimension_numbers<[1], [0], [0], [1], [0, 0, 1, 1], [], []>} : vector<192x128xf32>, vector<128x128xf32>, vector<192x128xf32> -> vector<192x128xf32>
    %c0_66 = arith.constant 0 : index
    %c0_67 = arith.constant 0 : index
    %62 = vector.load %arg6[%c0_66, %c0_67] : memref<192x128xf32, #tpu.memory_space<vmem>>, vector<192x128xf32>
    %63 = arith.addf %62, %61 : vector<192x128xf32>
    %c0_68 = arith.constant 0 : index
    %c0_69 = arith.constant 0 : index
    %64 = vector.load %arg6[%c0_68, %c0_69] : memref<192x128xf32, #tpu.memory_space<vmem>>, vector<192x128xf32>
    tpu.vector_store %arg6[%c0_68, %c0_69], %63 {strides = array<i32>} : memref<192x128xf32, #tpu.memory_space<vmem>>, vector<192x128xf32>,
    %c2_70 = arith.constant 2 : index
    %c0_71 = arith.constant 0 : index
    %c0_72 = arith.constant 0 : index
    %c0_73 = arith.constant 0 : index
    %65 = vector.load %arg3[%c2_70, %c0_71, %c0_72, %c0_73] : memref<3x3x128x128xf32, #tpu.memory_space<vmem>>, vector<1x1x128x128xf32>
    %66 = vector.shape_cast %65 : vector<1x1x128x128xf32> to vector<128x128xf32>
    %c2_i32 = arith.constant 2 : i32
    %67 = arith.addi %0, %c2_i32 : i32
    %c0_74 = arith.constant 0 : index
    %68 = arith.index_cast %67 : i32 to index
    %c0_75 = arith.constant 0 : index
    %c0_76 = arith.constant 0 : index
    %69 = vector.load %arg2[%c0_74, %68, %c0_75, %c0_76] : memref<1x15x18x128xf32, #tpu.memory_space<vmem>>, vector<1x12x16x128xf32>
    %70 = vector.shape_cast %69 : vector<1x12x16x128xf32> to vector<12x16x128xf32>
    %71 = vector.shape_cast %70 : vector<12x16x128xf32> to vector<192x128xf32>
    %cst_77 = arith.constant dense<0.000000e+00> : vector<192x128xf32>
    %72 = tpu.matmul %71, %66, %cst_77 {dimension_numbers = #tpu.dot_dimension_numbers<[1], [0], [0], [1], [0, 0, 1, 1], [], []>} : vector<192x128xf32>, vector<128x128xf32>, vector<192x128xf32> -> vector<192x128xf32>
    %c0_78 = arith.constant 0 : index
    %c0_79 = arith.constant 0 : index
    %73 = vector.load %arg6[%c0_78, %c0_79] : memref<192x128xf32, #tpu.memory_space<vmem>>, vector<192x128xf32>
    %74 = arith.addf %73, %72 : vector<192x128xf32>
    %c0_80 = arith.constant 0 : index
    %c0_81 = arith.constant 0 : index
    %75 = vector.load %arg6[%c0_80, %c0_81] : memref<192x128xf32, #tpu.memory_space<vmem>>, vector<192x128xf32>
    tpu.vector_store %arg6[%c0_80, %c0_81], %74 {strides = array<i32>} : memref<192x128xf32, #tpu.memory_space<vmem>>, vector<192x128xf32>,
    %c2_82 = arith.constant 2 : index
    %c1_83 = arith.constant 1 : index
    %c0_84 = arith.constant 0 : index
    %c0_85 = arith.constant 0 : index
    %76 = vector.load %arg3[%c2_82, %c1_83, %c0_84, %c0_85] : memref<3x3x128x128xf32, #tpu.memory_space<vmem>>, vector<1x1x128x128xf32>
    %77 = vector.shape_cast %76 : vector<1x1x128x128xf32> to vector<128x128xf32>
    %c2_i32_86 = arith.constant 2 : i32
    %78 = arith.addi %0, %c2_i32_86 : i32
    %c0_87 = arith.constant 0 : index
    %79 = arith.index_cast %78 : i32 to index
    %c1_88 = arith.constant 1 : index
    %c0_89 = arith.constant 0 : index
    %80 = vector.load %arg2[%c0_87, %79, %c1_88, %c0_89] : memref<1x15x18x128xf32, #tpu.memory_space<vmem>>, vector<1x12x16x128xf32>
    %81 = vector.shape_cast %80 : vector<1x12x16x128xf32> to vector<12x16x128xf32>
    %82 = vector.shape_cast %81 : vector<12x16x128xf32> to vector<192x128xf32>
    %cst_90 = arith.constant dense<0.000000e+00> : vector<192x128xf32>
    %83 = tpu.matmul %82, %77, %cst_90 {dimension_numbers = #tpu.dot_dimension_numbers<[1], [0], [0], [1], [0, 0, 1, 1], [], []>} : vector<192x128xf32>, vector<128x128xf32>, vector<192x128xf32> -> vector<192x128xf32>
    %c0_91 = arith.constant 0 : index
    %c0_92 = arith.constant 0 : index
    %84 = vector.load %arg6[%c0_91, %c0_92] : memref<192x128xf32, #tpu.memory_space<vmem>>, vector<192x128xf32>
    %85 = arith.addf %84, %83 : vector<192x128xf32>
    %c0_93 = arith.constant 0 : index
    %c0_94 = arith.constant 0 : index
    %86 = vector.load %arg6[%c0_93, %c0_94] : memref<192x128xf32, #tpu.memory_space<vmem>>, vector<192x128xf32>
    tpu.vector_store %arg6[%c0_93, %c0_94], %85 {strides = array<i32>} : memref<192x128xf32, #tpu.memory_space<vmem>>, vector<192x128xf32>,
    %c2_95 = arith.constant 2 : index
    %c2_96 = arith.constant 2 : index
    %c0_97 = arith.constant 0 : index
    %c0_98 = arith.constant 0 : index
    %87 = vector.load %arg3[%c2_95, %c2_96, %c0_97, %c0_98] : memref<3x3x128x128xf32, #tpu.memory_space<vmem>>, vector<1x1x128x128xf32>
    %88 = vector.shape_cast %87 : vector<1x1x128x128xf32> to vector<128x128xf32>
    %c2_i32_99 = arith.constant 2 : i32
    %89 = arith.addi %0, %c2_i32_99 : i32
    %c0_100 = arith.constant 0 : index
    %90 = arith.index_cast %89 : i32 to index
    %c2_101 = arith.constant 2 : index
    %c0_102 = arith.constant 0 : index
    %91 = vector.load %arg2[%c0_100, %90, %c2_101, %c0_102] : memref<1x15x18x128xf32, #tpu.memory_space<vmem>>, vector<1x12x16x128xf32>
    %92 = vector.shape_cast %91 : vector<1x12x16x128xf32> to vector<12x16x128xf32>
    %93 = vector.shape_cast %92 : vector<12x16x128xf32> to vector<192x128xf32>
    %cst_103 = arith.constant dense<0.000000e+00> : vector<192x128xf32>
    %94 = tpu.matmul %93, %88, %cst_103 {dimension_numbers = #tpu.dot_dimension_numbers<[1], [0], [0], [1], [0, 0, 1, 1], [], []>} : vector<192x128xf32>, vector<128x128xf32>, vector<192x128xf32> -> vector<192x128xf32>
    %c0_104 = arith.constant 0 : index
    %c0_105 = arith.constant 0 : index
    %95 = vector.load %arg6[%c0_104, %c0_105] : memref<192x128xf32, #tpu.memory_space<vmem>>, vector<192x128xf32>
    %96 = arith.addf %95, %94 : vector<192x128xf32>
    %c0_106 = arith.constant 0 : index
    %c0_107 = arith.constant 0 : index
    %97 = vector.load %arg6[%c0_106, %c0_107] : memref<192x128xf32, #tpu.memory_space<vmem>>, vector<192x128xf32>
    tpu.vector_store %arg6[%c0_106, %c0_107], %96 {strides = array<i32>} : memref<192x128xf32, #tpu.memory_space<vmem>>, vector<192x128xf32>,
    %c0_108 = arith.constant 0 : index
    %c0_109 = arith.constant 0 : index
    %98 = vector.load %arg6[%c0_108, %c0_109] : memref<192x128xf32, #tpu.memory_space<vmem>>, vector<192x128xf32>
    %99 = vector.shape_cast %98 : vector<192x128xf32> to vector<6x2x16x128xf32>
    %100 = vector.extract_strided_slice %99 {offsets = [0, 0, 0, 0], sizes = [6, 1, 16, 128], strides = [1, 1, 1, 1]} : vector<6x2x16x128xf32> to vector<6x1x16x128xf32>
    %101 = vector.shape_cast %100 : vector<6x1x16x128xf32> to vector<6x16x128xf32>
    %102 = vector.extract_strided_slice %99 {offsets = [0, 1, 0, 0], sizes = [6, 1, 16, 128], strides = [1, 1, 1, 1]} : vector<6x2x16x128xf32> to vector<6x1x16x128xf32>
    %103 = vector.shape_cast %102 : vector<6x1x16x128xf32> to vector<6x16x128xf32>
    %104 = arith.maximumf %101, %103 : vector<6x16x128xf32>
    %105 = vector.shape_cast %104 : vector<6x16x128xf32> to vector<6x8x2x128xf32>
    %106 = vector.extract_strided_slice %105 {offsets = [0, 0, 0, 0], sizes = [6, 8, 1, 128], strides = [1, 1, 1, 1]} : vector<6x8x2x128xf32> to vector<6x8x1x128xf32>
    %107 = vector.shape_cast %106 : vector<6x8x1x128xf32> to vector<6x8x128xf32>
    %108 = vector.extract_strided_slice %105 {offsets = [0, 0, 1, 0], sizes = [6, 8, 1, 128], strides = [1, 1, 1, 1]} : vector<6x8x2x128xf32> to vector<6x8x1x128xf32>
    %109 = vector.shape_cast %108 : vector<6x8x1x128xf32> to vector<6x8x128xf32>
    %110 = arith.maximumf %107, %109 : vector<6x8x128xf32>
    %c0_110 = arith.constant 0 : index
    %c0_111 = arith.constant 0 : index
    %111 = vector.load %arg4[%c0_110, %c0_111] : memref<1x128xf32, #tpu.memory_space<vmem>>, vector<1x128xf32>
    %112 = vector.shape_cast %111 : vector<1x128xf32> to vector<1x1x128xf32>
    %113 = vector.broadcast %112 : vector<1x1x128xf32> to vector<6x8x128xf32>
    %114 = arith.addf %110, %113 : vector<6x8x128xf32>
    %cst_112 = arith.constant 0.000000e+00 : f32
    %115 = vector.broadcast %cst_112 : f32 to vector<6x8x128xf32>
    %116 = arith.maximumf %114, %115 : vector<6x8x128xf32>
    %c0_113 = arith.constant 0 : index
    %c0_114 = arith.constant 0 : index
    %c0_115 = arith.constant 0 : index
    %c0_116 = arith.constant 0 : index
    %117 = vector.load %arg5[%c0_113, %c0_114, %c0_115, %c0_116] : memref<1x6x8x128xf32, #tpu.memory_space<vmem>>, vector<1x6x8x128xf32>
    %118 = vector.shape_cast %117 : vector<1x6x8x128xf32> to vector<6x8x128xf32>
    %119 = vector.shape_cast %116 : vector<6x8x128xf32> to vector<1x6x8x128xf32>
    tpu.vector_store %arg5[%c0_113, %c0_114, %c0_115, %c0_116], %119 {strides = array<i32>} : memref<1x6x8x128xf32, #tpu.memory_space<vmem>>, vector<1x6x8x128xf32>,
    return
  }
  func.func @transform_0(%arg0: i32, %arg1: i32) -> (i32, i32, i32, i32) {
    %c0_i32 = arith.constant 0 : i32
    %c0_i32_0 = arith.constant 0 : i32
    %c0_i32_1 = arith.constant 0 : i32
    %c0_i32_2 = arith.constant 0 : i32
    return %arg0, %c0_i32, %c0_i32_0, %c0_i32_1 : i32, i32, i32, i32
  }
  func.func @transform_1(%arg0: i32, %arg1: i32) -> (i32, i32, i32, i32) {
    %c0_i32 = arith.constant 0 : i32
    %c0_i32_0 = arith.constant 0 : i32
    %c0_i32_1 = arith.constant 0 : i32
    %c0_i32_2 = arith.constant 0 : i32
    %c0_i32_3 = arith.constant 0 : i32
    return %c0_i32, %c0_i32_0, %c0_i32_1, %c0_i32_2 : i32, i32, i32, i32
  }
  func.func @transform_2(%arg0: i32, %arg1: i32) -> (i32, i32) {
    %c0_i32 = arith.constant 0 : i32
    %c0_i32_0 = arith.constant 0 : i32
    %c0_i32_1 = arith.constant 0 : i32
    return %c0_i32, %c0_i32_0 : i32, i32
  }
  func.func @transform_3(%arg0: i32, %arg1: i32) -> (i32, i32, i32, i32) {
    %c0_i32 = arith.constant 0 : i32
    %c0_i32_0 = arith.constant 0 : i32
    %c0_i32_1 = arith.constant 0 : i32
    return %arg0, %arg1, %c0_i32, %c0_i32_0 : i32, i32, i32, i32
  }
}

module attributes {stable_mosaic.version = 11 : i64} {
  func.func @_linear_kernel(%arg0: i32, %arg1: i32, %arg2: memref<2x2304xf32, #tpu.memory_space<vmem>>, %arg3: memref<2304x512xbf16, #tpu.memory_space<vmem>>, %arg4: memref<1x512xf32, #tpu.memory_space<vmem>>, %arg5: memref<2x512xf32, #tpu.memory_space<vmem>>) attributes {dimension_semantics = [#tpu.dimension_semantics<parallel>, #tpu.dimension_semantics<arbitrary>], iteration_bounds = array<i64: 2, 1>, scalar_prefetch = 0 : i64, scratch_operands = 0 : i64, tpu.core_type = #tpu.core_type<tc>, window_params = [{transform_indices = @transform_0, window_bounds = array<i64: 2, 2304>}, {transform_indices = @transform_1, window_bounds = array<i64: 2304, 512>}, {transform_indices = @transform_2, window_bounds = array<i64: 1, 512>}, {transform_indices = @transform_3, window_bounds = array<i64: 2, 512>}]} {
    %c0 = arith.constant 0 : index
    %c0_0 = arith.constant 0 : index
    %0 = vector.load %arg2[%c0, %c0_0] : memref<2x2304xf32, #tpu.memory_space<vmem>>, vector<2x2304xf32>
    %1 = arith.truncf %0 : vector<2x2304xf32> to vector<2x2304xbf16>
    %c0_1 = arith.constant 0 : index
    %c0_2 = arith.constant 0 : index
    %2 = vector.load %arg3[%c0_1, %c0_2] : memref<2304x512xbf16, #tpu.memory_space<vmem>>, vector<2304x512xbf16>
    %cst = arith.constant dense<0.000000e+00> : vector<2x512xf32>
    %3 = tpu.matmul %1, %2, %cst {dimension_numbers = #tpu.dot_dimension_numbers<[1], [0], [0], [1], [0, 0, 1, 1], [], []>} : vector<2x2304xbf16>, vector<2304x512xbf16>, vector<2x512xf32> -> vector<2x512xf32>
    %c0_i32 = arith.constant 0 : i32
    %4 = arith.cmpi eq, %arg1, %c0_i32 : i32
    %5 = arith.extui %4 : i1 to i32
    %c0_i32_3 = arith.constant 0 : i32
    %6 = arith.cmpi ne, %5, %c0_i32_3 : i32
    scf.if %6 {
      %c0_8 = arith.constant 0 : index
      %c0_9 = arith.constant 0 : index
      %13 = vector.load %arg5[%c0_8, %c0_9] : memref<2x512xf32, #tpu.memory_space<vmem>>, vector<2x512xf32>
      tpu.vector_store %arg5[%c0_8, %c0_9], %3 {strides = array<i32>} : memref<2x512xf32, #tpu.memory_space<vmem>>, vector<2x512xf32>,
    } else {
    }
    %c0_i32_4 = arith.constant 0 : i32
    %7 = arith.cmpi sgt, %arg1, %c0_i32_4 : i32
    %8 = arith.extui %7 : i1 to i32
    %c0_i32_5 = arith.constant 0 : i32
    %9 = arith.cmpi ne, %8, %c0_i32_5 : i32
    scf.if %9 {
      %c0_8 = arith.constant 0 : index
      %c0_9 = arith.constant 0 : index
      %13 = vector.load %arg5[%c0_8, %c0_9] : memref<2x512xf32, #tpu.memory_space<vmem>>, vector<2x512xf32>
      %14 = arith.addf %13, %3 : vector<2x512xf32>
      %c0_10 = arith.constant 0 : index
      %c0_11 = arith.constant 0 : index
      %15 = vector.load %arg5[%c0_10, %c0_11] : memref<2x512xf32, #tpu.memory_space<vmem>>, vector<2x512xf32>
      tpu.vector_store %arg5[%c0_10, %c0_11], %14 {strides = array<i32>} : memref<2x512xf32, #tpu.memory_space<vmem>>, vector<2x512xf32>,
    } else {
    }
    %c0_i32_6 = arith.constant 0 : i32
    %10 = arith.cmpi eq, %arg1, %c0_i32_6 : i32
    %11 = arith.extui %10 : i1 to i32
    %c0_i32_7 = arith.constant 0 : i32
    %12 = arith.cmpi ne, %11, %c0_i32_7 : i32
    scf.if %12 {
      %c0_8 = arith.constant 0 : index
      %c0_9 = arith.constant 0 : index
      %13 = vector.load %arg5[%c0_8, %c0_9] : memref<2x512xf32, #tpu.memory_space<vmem>>, vector<2x512xf32>
      %c0_10 = arith.constant 0 : index
      %c0_11 = arith.constant 0 : index
      %14 = vector.load %arg4[%c0_10, %c0_11] : memref<1x512xf32, #tpu.memory_space<vmem>>, vector<1x512xf32>
      %15 = vector.broadcast %14 : vector<1x512xf32> to vector<2x512xf32>
      %16 = arith.addf %13, %15 : vector<2x512xf32>
      %cst_12 = arith.constant 0.000000e+00 : f32
      %17 = vector.broadcast %cst_12 : f32 to vector<2x512xf32>
      %18 = arith.maximumf %16, %17 : vector<2x512xf32>
      %c0_13 = arith.constant 0 : index
      %c0_14 = arith.constant 0 : index
      %19 = vector.load %arg5[%c0_13, %c0_14] : memref<2x512xf32, #tpu.memory_space<vmem>>, vector<2x512xf32>
      tpu.vector_store %arg5[%c0_13, %c0_14], %18 {strides = array<i32>} : memref<2x512xf32, #tpu.memory_space<vmem>>, vector<2x512xf32>,
    } else {
    }
    return
  }
  func.func @transform_0(%arg0: i32, %arg1: i32) -> (i32, i32) {
    %c0_i32 = arith.constant 0 : i32
    %c0_i32_0 = arith.constant 0 : i32
    return %c0_i32, %arg1 : i32, i32
  }
  func.func @transform_1(%arg0: i32, %arg1: i32) -> (i32, i32) {
    %c0_i32 = arith.constant 0 : i32
    return %arg1, %arg0 : i32, i32
  }
  func.func @transform_2(%arg0: i32, %arg1: i32) -> (i32, i32) {
    %c0_i32 = arith.constant 0 : i32
    %c0_i32_0 = arith.constant 0 : i32
    return %c0_i32, %arg0 : i32, i32
  }
  func.func @transform_3(%arg0: i32, %arg1: i32) -> (i32, i32) {
    %c0_i32 = arith.constant 0 : i32
    %c0_i32_0 = arith.constant 0 : i32
    return %c0_i32, %arg0 : i32, i32
  }
}

module attributes {stable_mosaic.version = 11 : i64} {
  func.func @_linear_kernel(%arg0: i32, %arg1: i32, %arg2: memref<2x1024xf32, #tpu.memory_space<vmem>>, %arg3: memref<1024x128xbf16, #tpu.memory_space<vmem>>, %arg4: memref<1x128xf32, #tpu.memory_space<vmem>>, %arg5: memref<2x128xf32, #tpu.memory_space<vmem>>) attributes {dimension_semantics = [#tpu.dimension_semantics<parallel>, #tpu.dimension_semantics<arbitrary>], iteration_bounds = array<i64: 1, 1>, scalar_prefetch = 0 : i64, scratch_operands = 0 : i64, tpu.core_type = #tpu.core_type<tc>, window_params = [{transform_indices = @transform_0, window_bounds = array<i64: 2, 1024>}, {transform_indices = @transform_1, window_bounds = array<i64: 1024, 128>}, {transform_indices = @transform_2, window_bounds = array<i64: 1, 128>}, {transform_indices = @transform_3, window_bounds = array<i64: 2, 128>}]} {
    %c0 = arith.constant 0 : index
    %c0_0 = arith.constant 0 : index
    %0 = vector.load %arg2[%c0, %c0_0] : memref<2x1024xf32, #tpu.memory_space<vmem>>, vector<2x1024xf32>
    %1 = arith.truncf %0 : vector<2x1024xf32> to vector<2x1024xbf16>
    %c0_1 = arith.constant 0 : index
    %c0_2 = arith.constant 0 : index
    %2 = vector.load %arg3[%c0_1, %c0_2] : memref<1024x128xbf16, #tpu.memory_space<vmem>>, vector<1024x128xbf16>
    %cst = arith.constant dense<0.000000e+00> : vector<2x128xf32>
    %3 = tpu.matmul %1, %2, %cst {dimension_numbers = #tpu.dot_dimension_numbers<[1], [0], [0], [1], [0, 0, 1, 1], [], []>} : vector<2x1024xbf16>, vector<1024x128xbf16>, vector<2x128xf32> -> vector<2x128xf32>
    %c0_i32 = arith.constant 0 : i32
    %4 = arith.cmpi eq, %arg1, %c0_i32 : i32
    %5 = arith.extui %4 : i1 to i32
    %c0_i32_3 = arith.constant 0 : i32
    %6 = arith.cmpi ne, %5, %c0_i32_3 : i32
    scf.if %6 {
      %c0_8 = arith.constant 0 : index
      %c0_9 = arith.constant 0 : index
      %13 = vector.load %arg5[%c0_8, %c0_9] : memref<2x128xf32, #tpu.memory_space<vmem>>, vector<2x128xf32>
      tpu.vector_store %arg5[%c0_8, %c0_9], %3 {strides = array<i32>} : memref<2x128xf32, #tpu.memory_space<vmem>>, vector<2x128xf32>,
    } else {
    }
    %c0_i32_4 = arith.constant 0 : i32
    %7 = arith.cmpi sgt, %arg1, %c0_i32_4 : i32
    %8 = arith.extui %7 : i1 to i32
    %c0_i32_5 = arith.constant 0 : i32
    %9 = arith.cmpi ne, %8, %c0_i32_5 : i32
    scf.if %9 {
      %c0_8 = arith.constant 0 : index
      %c0_9 = arith.constant 0 : index
      %13 = vector.load %arg5[%c0_8, %c0_9] : memref<2x128xf32, #tpu.memory_space<vmem>>, vector<2x128xf32>
      %14 = arith.addf %13, %3 : vector<2x128xf32>
      %c0_10 = arith.constant 0 : index
      %c0_11 = arith.constant 0 : index
      %15 = vector.load %arg5[%c0_10, %c0_11] : memref<2x128xf32, #tpu.memory_space<vmem>>, vector<2x128xf32>
      tpu.vector_store %arg5[%c0_10, %c0_11], %14 {strides = array<i32>} : memref<2x128xf32, #tpu.memory_space<vmem>>, vector<2x128xf32>,
    } else {
    }
    %c0_i32_6 = arith.constant 0 : i32
    %10 = arith.cmpi eq, %arg1, %c0_i32_6 : i32
    %11 = arith.extui %10 : i1 to i32
    %c0_i32_7 = arith.constant 0 : i32
    %12 = arith.cmpi ne, %11, %c0_i32_7 : i32
    scf.if %12 {
      %c0_8 = arith.constant 0 : index
      %c0_9 = arith.constant 0 : index
      %13 = vector.load %arg5[%c0_8, %c0_9] : memref<2x128xf32, #tpu.memory_space<vmem>>, vector<2x128xf32>
      %c0_10 = arith.constant 0 : index
      %c0_11 = arith.constant 0 : index
      %14 = vector.load %arg4[%c0_10, %c0_11] : memref<1x128xf32, #tpu.memory_space<vmem>>, vector<1x128xf32>
      %15 = vector.broadcast %14 : vector<1x128xf32> to vector<2x128xf32>
      %16 = arith.addf %13, %15 : vector<2x128xf32>
      %c0_12 = arith.constant 0 : index
      %c0_13 = arith.constant 0 : index
      %17 = vector.load %arg5[%c0_12, %c0_13] : memref<2x128xf32, #tpu.memory_space<vmem>>, vector<2x128xf32>
      tpu.vector_store %arg5[%c0_12, %c0_13], %16 {strides = array<i32>} : memref<2x128xf32, #tpu.memory_space<vmem>>, vector<2x128xf32>,
    } else {
    }
    return
  }
  func.func @transform_0(%arg0: i32, %arg1: i32) -> (i32, i32) {
    %c0_i32 = arith.constant 0 : i32
    %c0_i32_0 = arith.constant 0 : i32
    return %c0_i32, %arg1 : i32, i32
  }
  func.func @transform_1(%arg0: i32, %arg1: i32) -> (i32, i32) {
    %c0_i32 = arith.constant 0 : i32
    return %arg1, %arg0 : i32, i32
  }
  func.func @transform_2(%arg0: i32, %arg1: i32) -> (i32, i32) {
    %c0_i32 = arith.constant 0 : i32
    %c0_i32_0 = arith.constant 0 : i32
    return %c0_i32, %arg0 : i32, i32
  }
  func.func @transform_3(%arg0: i32, %arg1: i32) -> (i32, i32) {
    %c0_i32 = arith.constant 0 : i32
    %c0_i32_0 = arith.constant 0 : i32
    return %c0_i32, %arg0 : i32, i32
  }
}

</mosaic_0001>

<bundles_post_ra>
// kernel: cnn_forward.5
= control target key start
LH: loop header
LB: loop body
LE: loop exit
PB: predicated region body
PF: predicated region fallthrough
CT: control target
= control target key end

     0   :  { %s3094_s12 = smov 0   ;;  %s3096_s13 = smov 0   ;;  %s4268_s0 = inlined_call_operand.vmem [shape: f32[2,15,18,128], index: 0, kind: input, shape index: {}]   ;;  %s4269_s1 = inlined_call_operand.vmem [shape: f32[3,3,128,128], index: 1, kind: input, shape index: {}]   ;;  %s4270_s2 = inlined_call_operand.vmem [shape: f32[1,128], index: 2, kind: input, shape index: {}]   ;;  %s4271_s3 = inlined_call_operand.vmem [shape: f32[2,6,8,128], index: 3, kind: output, shape index: {}]  }
   0x1   :  { %s3098_s14 = smov 0  }
   0x2 LB: > { %s25_s15 = sadd.s32 1, %s3068_s13  ;;  %p2650_p0 = scmp.ge.s32.totalorder %s3072_s14, 1  ;;  %s3072_s14 = sphi %s3098_s14, %s13_s14   ;;  %s3068_s13 = sphi %s3096_s13, %s4326_s13   ;;  %s3064_s12 = sphi %s3094_s12, %s4325_s12  }
   0x3   : > { %p27_p1 = scmp.ge.s32.totalorder %s25_s15, 2  ;;  %p151_p2 = scmp.lt.s32.totalorder %s3072_s14, 3 }
   0x5   : > { %s4328_s15 = smov (%p27_p1, %s25_s15), 0  ;;  %p152_p3 = pnand %p2650_p0, %p151_p2 }
   0x7   : > { %155 = sbr.rel (%p152_p3) target bundleno = 626 (0x272), region = 32 }
   0xc   : > { %v210_v0 = vld [vmem:[%s4269_s1 + $0x78] sm:$0xff]  ;;  %v209_v1 = vld [vmem:[%s4269_s1 + $0x70] sm:$0xff]  ;;  %v208_v2 = vld [vmem:[%s4269_s1 + $0x68] sm:$0xff]  ;;  %p179_p4 = scmp.lt.s32.totalorder %s3064_s12, 1  ;;  %vm2494_vm0 = vcmask 1041409   ;;  %vm2496_vm1 = vcmask 1042434  }
   0xd   : > { %2975 = vmatpush.msra.mxu1 %v210_v0  ;;  %2976 = vmatpush.msra.mxu2 %v210_v0  ;;  %v207_v3 = vld [vmem:[%s4269_s1 + $0x60] sm:$0xff]  ;;  %v206_v4 = vld [vmem:[%s4269_s1 + $0x58] sm:$0xff]  ;;  %v205_v5 = vld [vmem:[%s4269_s1 + $0x50] sm:$0xff]  ;;  %vm2498_vm2 = vcmask 1043459   ;;  %vm2500_vm3 = vcmask 1044484   ;;  %vm2502_vm4 = vcmask 1045509  }
   0xe   : > { %2977 = vmatpush.msra.mxu3 %v210_v0  ;;  %237 = vmatpush.msra.mxu0 %v210_v0  ;;  %v204_v6 = vld [vmem:[%s4269_s1 + $0x48] sm:$0xff]  ;;  %v203_v7 = vld [vmem:[%s4269_s1 + $0x40] sm:$0xff]  ;;  %v202_v8 = vld [vmem:[%s4269_s1 + $0x38] sm:$0xff]  ;;  %s4330_s12 = smov (!%p179_p4, %s3064_s12), 1  ;;  %vm2504_vm5 = vcmask 1046534   ;;  %vm2506_vm6 = vcmask 1047559  }
   0xf   : > { %2978 = vmatpush.msra.mxu1 %v209_v1  ;;  %2979 = vmatpush.msra.mxu2 %v209_v1  ;;  %v201_v9 = vld [vmem:[%s4269_s1 + $0x30] sm:$0xff]  ;;  %v200_v10 = vld [vmem:[%s4269_s1 + $0x28] sm:$0xff]  ;;  %v199_v11 = vld [vmem:[%s4269_s1 + $0x20] sm:$0xff]  ;;  %s3023_s19 = smul.u32 360, %s4330_s12 }
  0x10   : > { %2980 = vmatpush.msra.mxu3 %v209_v1  ;;  %238 = vmatpush.msra.mxu0 %v209_v1  ;;  %v198_v12 = vld [vmem:[%s4269_s1 + $0x18] sm:$0xff]  ;;  %v197_v13 = vld [vmem:[%s4269_s1 + $0x10] sm:$0xff]  ;;  %v196_v14 = vld [vmem:[%s4269_s1 + $0x8] sm:$0xff]  ;;  %s3024_s22 = smul.u32 48, %s4330_s12 }
  0x11   : > { %2981 = vmatpush.msra.mxu1 %v208_v2  ;;  %2982 = vmatpush.msra.mxu2 %v208_v2  ;;  %s3167_s26 = scalar_lea.vmem %s4268_s0, %s3023_s19  ;;  %v195_v15 = vld [vmem:[%s4269_s1] sm:$0xff]  ;;  %v2684_v18 = vld [vmem:[%s4269_s1 + $0x178] sm:$0xff]  ;;  %v2683_v22 = vld [vmem:[%s4269_s1 + $0x170] sm:$0xff] }
  0x12   : > { %2983 = vmatpush.msra.mxu3 %v208_v2  ;;  %239 = vmatpush.msra.mxu0 %v208_v2  ;;  %v3173_v16 = vld [vmem:[%s3167_s26 + $0x48] sm:$0xff]  ;;  %v3176_v17 = vld [vmem:[%s3167_s26 + $0x90] sm:$0xff]  ;;  %v3182_v19 = vld [vmem:[%s3167_s26 + $0xd8] sm:$0xff]  ;;  %s4146_s24 = scalar_lea.vmem %s4271_s3, %s3024_s22 }
  0x13   : > { %2984 = vmatpush.msra.mxu1 %v207_v3  ;;  %2985 = vmatpush.msra.mxu2 %v207_v3  ;;  %v2668_v20 = vld [vmem:[%s4269_s1 + $0xf8] sm:$0xff]  ;;  %v2667_v23 = vld [vmem:[%s4269_s1 + $0xf0] sm:$0xff]  ;;  %v2682_v25 = vld [vmem:[%s4269_s1 + $0x168] sm:$0xff] }
  0x14   : > { %2986 = vmatpush.msra.mxu3 %v207_v3  ;;  %240 = vmatpush.msra.mxu0 %v207_v3  ;;  %v2700_v21 = vld [vmem:[%s4269_s1 + $0x1f8] sm:$0xff]  ;;  %v2699_v24 = vld [vmem:[%s4269_s1 + $0x1f0] sm:$0xff]  ;;  %v213_v26 = vld [vmem:[%s3167_s26] sm:$0xff] }
  0x15   : > { %2987 = vmatpush.msra.mxu1 %v206_v4  ;;  %2988 = vmatpush.msra.mxu2 %v206_v4  ;;  %v2666_v27 = vld [vmem:[%s4269_s1 + $0xe8] sm:$0xff]  ;;  %v2681_v29 = vld [vmem:[%s4269_s1 + $0x160] sm:$0xff]  ;;  %v3216_v30 = vld [vmem:[%s3167_s26 + $0x50] sm:$0xff] }
  0x16   : > { %2989 = vmatpush.msra.mxu3 %v206_v4  ;;  %241 = vmatpush.msra.mxu0 %v206_v4  ;;  %v2698_v28 = vld [vmem:[%s4269_s1 + $0x1e8] sm:$0xff]  ;;  %v3219_v31 = vld [vmem:[%s3167_s26 + $0x98] sm:$0xff]  ;;  %v2697_v33 = vld [vmem:[%s4269_s1 + $0x1e0] sm:$0xff] }
  0x17   : > { %2990 = vmatpush.msra.mxu1 %v205_v5  ;;  %2991 = vmatpush.msra.mxu2 %v205_v5  ;;  %v2740_v32 = vld [vmem:[%s4269_s1 + $0x278] sm:$0xff]  ;;  %v3228_v34 = vld [vmem:[%s3167_s26 + $0xe0] sm:$0xff]  ;;  %v2739_v37 = vld [vmem:[%s4269_s1 + $0x270] sm:$0xff] }
  0x18   : > { %2992 = vmatpush.msra.mxu3 %v205_v5  ;;  %242 = vmatpush.msra.mxu0 %v205_v5  ;;  %v2680_v35 = vld [vmem:[%s4269_s1 + $0x158] sm:$0xff]  ;;  %v2665_v36 = vld [vmem:[%s4269_s1 + $0xe0] sm:$0xff]  ;;  %v2679_v39 = vld [vmem:[%s4269_s1 + $0x150] sm:$0xff] }
  0x19   : > { %2993 = vmatpush.msra.mxu1 %v204_v6  ;;  %2994 = vmatpush.msra.mxu2 %v204_v6  ;;  %v2696_v38 = vld [vmem:[%s4269_s1 + $0x1d8] sm:$0xff]  ;;  %v2738_v41 = vld [vmem:[%s4269_s1 + $0x268] sm:$0xff]  ;;  %v2695_v42 = vld [vmem:[%s4269_s1 + $0x1d0] sm:$0xff] }
  0x1a   : > { %2995 = vmatpush.msra.mxu3 %v204_v6  ;;  %243 = vmatpush.msra.mxu0 %v204_v6  ;;  %v2664_v40 = vld [vmem:[%s4269_s1 + $0xd8] sm:$0xff]  ;;  %v214_v43 = vld [vmem:[%s3167_s26 + $0x8] sm:$0xff]  ;;  %v2663_v45 = vld [vmem:[%s4269_s1 + $0xd0] sm:$0xff] }
  0x1b   : > { %2996 = vmatpush.msra.mxu1 %v203_v7  ;;  %2997 = vmatpush.msra.mxu2 %v203_v7  ;;  %v2678_v44 = vld [vmem:[%s4269_s1 + $0x148] sm:$0xff]  ;;  %v3265_v46 = vld [vmem:[%s3167_s26 + $0x60] sm:$0xff]  ;;  %v3277_v50 = vld [vmem:[%s3167_s26 + $0xf0] sm:$0xff] }
  0x1c   : > { %2998 = vmatpush.msra.mxu3 %v203_v7  ;;  %244 = vmatpush.msra.mxu0 %v203_v7  ;;  %v3268_v47 = vld [vmem:[%s3167_s26 + $0xa8] sm:$0xff]  ;;  %v2737_v48 = vld [vmem:[%s4269_s1 + $0x260] sm:$0xff]  ;;  %v2736_v53 = vld [vmem:[%s4269_s1 + $0x258] sm:$0xff] }
  0x1d   : > { %2999 = vmatpush.msra.mxu1 %v202_v8  ;;  %3000 = vmatpush.msra.mxu2 %v202_v8  ;;  %v2694_v49 = vld [vmem:[%s4269_s1 + $0x1c8] sm:$0xff]  ;;  %v2677_v51 = vld [vmem:[%s4269_s1 + $0x140] sm:$0xff]  ;;  %v2676_v55 = vld [vmem:[%s4269_s1 + $0x138] sm:$0xff] }
  0x1e   : > { %3001 = vmatpush.msra.mxu3 %v202_v8  ;;  %245 = vmatpush.msra.mxu0 %v202_v8  ;;  %v2662_v52 = vld [vmem:[%s4269_s1 + $0xc8] sm:$0xff]  ;;  %v2693_v54 = vld [vmem:[%s4269_s1 + $0x1c0] sm:$0xff]  ;;  %v2735_v57 = vld [vmem:[%s4269_s1 + $0x250] sm:$0xff] }
  0x1f   : > { %3002 = vmatpush.msra.mxu1 %v201_v9  ;;  %3003 = vmatpush.msra.mxu2 %v201_v9  ;;  %v2661_v56 = vld [vmem:[%s4269_s1 + $0xc0] sm:$0xff]  ;;  %v3304_v58 = vld [vmem:[%s3167_s26 + $0x18] sm:$0xff]  ;;  %v2675_v60 = vld [vmem:[%s4269_s1 + $0x130] sm:$0xff] }
  0x20   : > { %3004 = vmatpush.msra.mxu3 %v201_v9  ;;  %246 = vmatpush.msra.mxu0 %v201_v9  ;;  %v2692_v59 = vld [vmem:[%s4269_s1 + $0x1b8] sm:$0xff]  ;;  %v3316_v62 = vld [vmem:[%s3167_s26 + $0x68] sm:$0xff]  ;;  %v3319_v63 = vld [vmem:[%s3167_s26 + $0xb0] sm:$0xff] }
  0x21   : > { %3005 = vmatpush.msra.mxu1 %v200_v10  ;;  %3006 = vmatpush.msra.mxu2 %v200_v10  ;;  %v2660_v61 = vld [vmem:[%s4269_s1 + $0xb8] sm:$0xff]  ;;  %v2734_v0 = vld [vmem:[%s4269_s1 + $0x248] sm:$0xff]  ;;  %v2691_v1 = vld [vmem:[%s4269_s1 + $0x1b0] sm:$0xff] }
  0x22   : > { %3007 = vmatpush.msra.mxu3 %v200_v10  ;;  %247 = vmatpush.msra.mxu0 %v200_v10  ;;  %v3329_v2 = vld [vmem:[%s3167_s26 + $0xf8] sm:$0xff]  ;;  %v2674_v3 = vld [vmem:[%s4269_s1 + $0x128] sm:$0xff]  ;;  %v2659_v4 = vld [vmem:[%s4269_s1 + $0xb0] sm:$0xff] }
  0x23   : > { %3008 = vmatpush.msra.mxu1 %v199_v11  ;;  %3009 = vmatpush.msra.mxu2 %v199_v11  ;;  %v2733_v5 = vld [vmem:[%s4269_s1 + $0x240] sm:$0xff]  ;;  %v2690_v6 = vld [vmem:[%s4269_s1 + $0x1a8] sm:$0xff]  ;;  %v2732_v9 = vld [vmem:[%s4269_s1 + $0x238] sm:$0xff] }
  0x24   : > { %3010 = vmatpush.msra.mxu3 %v199_v11  ;;  %248 = vmatpush.msra.mxu0 %v199_v11  ;;  %v2673_v7 = vld [vmem:[%s4269_s1 + $0x120] sm:$0xff]  ;;  %v2658_v8 = vld [vmem:[%s4269_s1 + $0xa8] sm:$0xff] }
  0x25   : > { %3011 = vmatpush.msra.mxu1 %v198_v12  ;;  %3012 = vmatpush.msra.mxu2 %v198_v12  ;;  %v3356_v10 = vld [vmem:[%s3167_s26 + $0x20] sm:$0xff] }
  0x26   : > { %3013 = vmatpush.msra.mxu3 %v198_v12  ;;  %249 = vmatpush.msra.mxu0 %v198_v12  ;;  %v2689_v11 = vld [vmem:[%s4269_s1 + $0x1a0] sm:$0xff]  ;;  %v2672_v12 = vld [vmem:[%s4269_s1 + $0x118] sm:$0xff] }
  0x27   : > { %3014 = vmatpush.msra.mxu1 %v197_v13  ;;  %3015 = vmatpush.msra.mxu2 %v197_v13 }
  0x28   : > { %3016 = vmatpush.msra.mxu3 %v197_v13  ;;  %250 = vmatpush.msra.mxu0 %v197_v13  ;;  %v2657_v13 = vld [vmem:[%s4269_s1 + $0xa0] sm:$0xff] }
  0x29   : > { %3017 = vmatpush.msra.mxu1 %v196_v14  ;;  %3018 = vmatpush.msra.mxu2 %v196_v14 }
  0x2a   : > { %3019 = vmatpush.msra.mxu3 %v196_v14  ;;  %251 = vmatpush.msra.mxu0 %v196_v14  ;;  %v3368_v14 = vld [vmem:[%s3167_s26 + $0x78] sm:$0xff] }
  0x2b   : > { %3020 = vmatpush.msra.mxu1 %v195_v15  ;;  %3021 = vmatpush.msra.mxu2 %v195_v15 }
  0x2c   : > { %271 = vmatmul.f32.vlgmr.msra.gmra.mxu1 %v3173_v16  ;;  %289 = vmatmul.f32.vlgmr.msra.gmra.mxu2 %v3176_v17 }
  0x2d   : > { %593 = vmatpush.msrb.mxu2 %v2684_v18  ;;  %3022 = vmatpush.msra.mxu3 %v195_v15  ;;  %v2731_v18 = vld [vmem:[%s4269_s1 + $0x230] sm:$0xff] }
  0x2e   : > { %307 = vmatmul.f32.vlgmr.msra.gmra.mxu3 %v3182_v19  ;;  %391 = vmatpush.msrb.mxu1 %v2668_v20  ;;  %v2688_v20 = vld [vmem:[%s4269_s1 + $0x198] sm:$0xff] }
  0x2f   : > { %798 = vmatpush.msrb.mxu3 %v2700_v21  ;;  %594 = vmatpush.msrb.mxu2 %v2683_v22  ;;  %v3381_v21 = vld [vmem:[%s3167_s26 + $0x108] sm:$0xff]  ;;  %v2671_v22 = vld [vmem:[%s4269_s1 + $0x110] sm:$0xff] }
  0x30   : > { %392 = vmatpush.msrb.mxu1 %v2667_v23  ;;  %252 = vmatpush.msra.mxu0 %v195_v15  ;;  %v3371_v15 = vld [vmem:[%s3167_s26 + $0xc0] sm:$0xff]  ;;  %v2656_v23 = vld [vmem:[%s4269_s1 + $0x98] sm:$0xff] }
  0x31   : > { %799 = vmatpush.msrb.mxu3 %v2699_v24  ;;  %595 = vmatpush.msrb.mxu2 %v2682_v25  ;;  %v2730_v24 = vld [vmem:[%s4269_s1 + $0x228] sm:$0xff]  ;;  %v2687_v25 = vld [vmem:[%s4269_s1 + $0x190] sm:$0xff] }
  0x32   : > { %253 = vmatmul.f32.vlgmr.msra.gmra.mxu0 %v213_v26  ;;  %393 = vmatpush.msrb.mxu1 %v2666_v27  ;;  %v2670_v26 = vld [vmem:[%s4269_s1 + $0x108] sm:$0xff]  ;;  %v2655_v27 = vld [vmem:[%s4269_s1 + $0x90] sm:$0xff] }
  0x33   : > { %800 = vmatpush.msrb.mxu3 %v2698_v28  ;;  %596 = vmatpush.msrb.mxu2 %v2681_v29  ;;  %v2729_v28 = vld [vmem:[%s4269_s1 + $0x220] sm:$0xff]  ;;  %v3408_v29 = vld [vmem:[%s3167_s26 + $0x30] sm:$0xff] }
  0x34   : > { %274 = vmatmul.f32.gmra.mxu1 %v3216_v30  ;;  %292 = vmatmul.f32.gmra.mxu2 %v3219_v31 }
  0x35   : > { %1000 = vmatpush.msrb.mxu0 %v2740_v32  ;;  %801 = vmatpush.msrb.mxu3 %v2697_v33  ;;  %v2686_v32 = vld [vmem:[%s4269_s1 + $0x188] sm:$0xff] }
  0x36   : > { %310 = vmatmul.f32.gmra.mxu3 %v3228_v34  ;;  %597 = vmatpush.msrb.mxu2 %v2680_v35  ;;  %v2654_v33 = vld [vmem:[%s4269_s1 + $0x88] sm:$0xff]  ;;  %v2669_v35 = vld [vmem:[%s4269_s1 + $0x100] sm:$0xff] }
  0x37   : > { %394 = vmatpush.msrb.mxu1 %v2665_v36  ;;  %1001 = vmatpush.msrb.mxu0 %v2739_v37  ;;  %v3420_v36 = vld [vmem:[%s3167_s26 + $0x80] sm:$0xff]  ;;  %v3423_v37 = vld [vmem:[%s3167_s26 + $0xc8] sm:$0xff] }
  0x38   : > { %802 = vmatpush.msrb.mxu3 %v2696_v38  ;;  %598 = vmatpush.msrb.mxu2 %v2679_v39  ;;  %v2728_v38 = vld [vmem:[%s4269_s1 + $0x218] sm:$0xff]  ;;  %v2653_v39 = vld [vmem:[%s4269_s1 + $0x80] sm:$0xff] }
  0x39   : > { %395 = vmatpush.msrb.mxu1 %v2664_v40  ;;  %1002 = vmatpush.msrb.mxu0 %v2738_v41  ;;  %v3433_v40 = vld [vmem:[%s3167_s26 + $0x110] sm:$0xff]  ;;  %v2820_v41 = vld [vmem:[%s4269_s1 + $0x378] sm:$0xff] }
  0x3a   : > { %803 = vmatpush.msrb.mxu3 %v2695_v42  ;;  %256 = vmatmul.f32.gmra.mxu0 %v214_v43  ;;  %v2685_v42 = vld [vmem:[%s4269_s1 + $0x180] sm:$0xff]  ;;  %v2727_v43 = vld [vmem:[%s4269_s1 + $0x210] sm:$0xff] }
  0x3b   : > { %599 = vmatpush.msrb.mxu2 %v2678_v44  ;;  %396 = vmatpush.msrb.mxu1 %v2663_v45  ;;  %v2860_v44 = vld [vmem:[%s4269_s1 + $0x3f8] sm:$0xff] }
  0x3c   : > { %277 = vmatmul.f32.gmra.mxu1 %v3265_v46  ;;  %295 = vmatmul.f32.gmra.mxu2 %v3268_v47  ;;  %v2780_v45 = vld [vmem:[%s4269_s1 + $0x2f8] sm:$0xff] }
  0x3d   : > { %1003 = vmatpush.msrb.mxu0 %v2737_v48  ;;  %804 = vmatpush.msrb.mxu3 %v2694_v49  ;;  %v2726_v48 = vld [vmem:[%s4269_s1 + $0x208] sm:$0xff]  ;;  %v2819_v49 = vld [vmem:[%s4269_s1 + $0x370] sm:$0xff] }
  0x3e   : > { %313 = vmatmul.f32.gmra.mxu3 %v3277_v50  ;;  %600 = vmatpush.msrb.mxu2 %v2677_v51  ;;  %v3460_v51 = vld [vmem:[%s3167_s26 + $0x38] sm:$0xff] }
  0x3f   : > { %397 = vmatpush.msrb.mxu1 %v2662_v52  ;;  %1004 = vmatpush.msrb.mxu0 %v2736_v53  ;;  %v2859_v52 = vld [vmem:[%s4269_s1 + $0x3f0] sm:$0xff]  ;;  %v2725_v53 = vld [vmem:[%s4269_s1 + $0x200] sm:$0xff] }
  0x40   : > { %805 = vmatpush.msrb.mxu3 %v2693_v54  ;;  %601 = vmatpush.msrb.mxu2 %v2676_v55  ;;  %v2779_v54 = vld [vmem:[%s4269_s1 + $0x2f0] sm:$0xff]  ;;  %v367_v55 = vld [vmem:[%s3167_s26 + $0x1] sm:$0xff] }
  0x41   : > { %398 = vmatpush.msrb.mxu1 %v2661_v56  ;;  %1005 = vmatpush.msrb.mxu0 %v2735_v57  ;;  %v569_v56 = vld [vmem:[%s3167_s26 + $0x2] sm:$0xff]  ;;  %v2900_v57 = vld [vmem:[%s4269_s1 + $0x478] sm:$0xff] }
  0x42   : > { %259 = vmatmul.f32.gmra.mxu0 %v3304_v58  ;;  %806 = vmatpush.msrb.mxu3 %v2692_v59  ;;  %v2818_v59 = vld [vmem:[%s4269_s1 + $0x368] sm:$0xff] }
  0x43   : > { %602 = vmatpush.msrb.mxu2 %v2675_v60  ;;  %399 = vmatpush.msrb.mxu1 %v2660_v61  ;;  %v2778_v60 = vld [vmem:[%s4269_s1 + $0x2e8] sm:$0xff]  ;;  %v2899_v61 = vld [vmem:[%s4269_s1 + $0x470] sm:$0xff] }
  0x44   : > { %280 = vmatmul.f32.gmra.mxu1 %v3316_v62  ;;  %298 = vmatmul.f32.gmra.mxu2 %v3319_v63 }
  0x45   : > { %1006 = vmatpush.msrb.mxu0 %v2734_v0  ;;  %807 = vmatpush.msrb.mxu3 %v2691_v1  ;;  %v2858_v0 = vld [vmem:[%s4269_s1 + $0x3e8] sm:$0xff] }
  0x46   : > { %316 = vmatmul.f32.gmra.mxu3 %v3329_v2  ;;  %603 = vmatpush.msrb.mxu2 %v2674_v3  ;;  %v2898_v1 = vld [vmem:[%s4269_s1 + $0x468] sm:$0xff]  ;;  %v2817_v3 = vld [vmem:[%s4269_s1 + $0x360] sm:$0xff] }
  0x47   : > { %400 = vmatpush.msrb.mxu1 %v2659_v4  ;;  %1007 = vmatpush.msrb.mxu0 %v2733_v5  ;;  %v2857_v4 = vld [vmem:[%s4269_s1 + $0x3e0] sm:$0xff] }
  0x48   : > { %808 = vmatpush.msrb.mxu3 %v2690_v6  ;;  %604 = vmatpush.msrb.mxu2 %v2673_v7  ;;  %v2741_v5 = vld [vmem:[%s3167_s26 + $0x19] sm:$0xff]  ;;  %v570_v6 = vld [vmem:[%s3167_s26 + $0xa] sm:$0xff] }
  0x49   : > { %401 = vmatpush.msrb.mxu1 %v2658_v8  ;;  %1008 = vmatpush.msrb.mxu0 %v2732_v9  ;;  %v2777_v7 = vld [vmem:[%s4269_s1 + $0x2e0] sm:$0xff] }
  0x4a   : > { %262 = vmatmul.f32.gmra.mxu0 %v3356_v10  ;;  %809 = vmatpush.msrb.mxu3 %v2689_v11  ;;  %v2897_v8 = vld [vmem:[%s4269_s1 + $0x460] sm:$0xff] }
  0x4b   : > { %605 = vmatpush.msrb.mxu2 %v2672_v12  ;;  %402 = vmatpush.msrb.mxu1 %v2657_v13  ;;  %v2742_v9 = vld [vmem:[%s3167_s26 + $0x21] sm:$0xff]  ;;  %v2816_v12 = vld [vmem:[%s4269_s1 + $0x358] sm:$0xff] }
  0x4c   : > { %283 = vmatmul.f32.gmra.mxu1 %v3368_v14  ;;  %301 = vmatmul.f32.gmra.mxu2 %v3371_v15  ;;  %v3511_v11 = vld [vmem:[%s3167_s26 + $0x1a] sm:$0xff] }
  0x4d   : > { %1009 = vmatpush.msrb.mxu0 %v2731_v18  ;;  %810 = vmatpush.msrb.mxu3 %v2688_v20  ;;  %v2776_v13 = vld [vmem:[%s4269_s1 + $0x2d8] sm:$0xff]  ;;  %v3528_v20 = vld [vmem:[%s3167_s26 + $0x22] sm:$0xff] }
  0x4e   : > { %319 = vmatmul.f32.gmra.mxu3 %v3381_v21  ;;  %606 = vmatpush.msrb.mxu2 %v2671_v22  ;;  %v3525_v18 = vld [vmem:[%s3167_s26 + $0x31] sm:$0xff] }
  0x4f   : > { %403 = vmatpush.msrb.mxu1 %v2656_v23  ;;  %1010 = vmatpush.msrb.mxu0 %v2730_v24  ;;  %v2896_v22 = vld [vmem:[%s4269_s1 + $0x458] sm:$0xff]  ;;  %v2815_v23 = vld [vmem:[%s4269_s1 + $0x350] sm:$0xff] }
  0x50   : > { %811 = vmatpush.msrb.mxu3 %v2687_v25  ;;  %607 = vmatpush.msrb.mxu2 %v2670_v26  ;;  %v2855_v24 = vld [vmem:[%s4269_s1 + $0x3d0] sm:$0xff]  ;;  %v3543_v25 = vld [vmem:[%s3167_s26 + $0x39] sm:$0xff] }
  0x51   : > { %404 = vmatpush.msrb.mxu1 %v2655_v27  ;;  %1011 = vmatpush.msrb.mxu0 %v2729_v28  ;;  %v3546_v26 = vld [vmem:[%s3167_s26 + $0x32] sm:$0xff] }
  0x52   : > { %265 = vmatmul.f32.gmra.mxu0 %v3408_v29  ;;  %812 = vmatpush.msrb.mxu3 %v2686_v32  ;;  %v2775_v27 = vld [vmem:[%s4269_s1 + $0x2d0] sm:$0xff] }
  0x53   : > { %405 = vmatpush.msrb.mxu1 %v2654_v33  ;;  %608 = vmatpush.msrb.mxu2 %v2669_v35  ;;  %v2895_v28 = vld [vmem:[%s4269_s1 + $0x450] sm:$0xff]  ;;  %v3562_v33 = vld [vmem:[%s3167_s26 + $0x3a] sm:$0xff]  ;;  %v2854_v35 = vld [vmem:[%s4269_s1 + $0x3c8] sm:$0xff] }
  0x54   : > { %286 = vmatmul.f32.gmra.mxu1 %v3420_v36  ;;  %304 = vmatmul.f32.gmra.mxu2 %v3423_v37  ;;  %v3559_v32 = vld [vmem:[%s3167_s26 + $0x49] sm:$0xff] }
  0x55   : > { %1012 = vmatpush.msrb.mxu0 %v2728_v38  ;;  %406 = vmatpush.msrb.mxu1 %v2653_v39  ;;  %v2774_v38 = vld [vmem:[%s4269_s1 + $0x2c8] sm:$0xff]  ;;  %v3578_v39 = vld [vmem:[%s3167_s26 + $0x51] sm:$0xff] }
  0x56   : > { %322 = vmatmul.f32.gmra.mxu3 %v3433_v40  ;;  %1407 = vmatpush.msra.mxu2 %v2820_v41  ;;  %v3581_v41 = vld [vmem:[%s3167_s26 + $0x4a] sm:$0xff] }
  0x57   : > { %813 = vmatpush.msrb.mxu3 %v2685_v42  ;;  %1013 = vmatpush.msrb.mxu0 %v2727_v43  ;;  %v3591_v42 = vld [vmem:[%s3167_s26 + $0x61] sm:$0xff] }
  0x58   : > { %1202 = vmatpush.msra.mxu1 %v2780_v45  ;;  %1408 = vmatpush.msra.mxu2 %v2819_v49  ;;  %v2813_v43 = vld [vmem:[%s4269_s1 + $0x340] sm:$0xff] }
  0x59   : > { %1609 = vmatpush.msra.mxu3 %v2860_v44  ;;  %1014 = vmatpush.msrb.mxu0 %v2726_v48  ;;  %v3597_v44 = vld [vmem:[%s3167_s26 + $0x52] sm:$0xff]  ;;  %v2853_v45 = vld [vmem:[%s4269_s1 + $0x3c0] sm:$0xff]  ;;  %v3610_v48 = vld [vmem:[%s3167_s26 + $0x69] sm:$0xff] }
  0x5a   : > { %268 = vmatmul.f32.gmra.mxu0 %v3460_v51  ;;  %1203 = vmatpush.msra.mxu1 %v2779_v54  ;;  %v3613_v49 = vld [vmem:[%s3167_s26 + $0x62] sm:$0xff]  ;;  %v3629_v54 = vld [vmem:[%s3167_s26 + $0x79] sm:$0xff] }
  0x5b   : > { %1610 = vmatpush.msra.mxu3 %v2859_v52  ;;  %1015 = vmatpush.msrb.mxu0 %v2725_v53  ;;  %v2893_v52 = vld [vmem:[%s4269_s1 + $0x440] sm:$0xff]  ;;  %v2852_v53 = vld [vmem:[%s4269_s1 + $0x3b8] sm:$0xff] }
  0x5c   : > { %407 = vmatmul.f32.vlgmr.msrb.gmra.mxu1 %v367_v55  ;;  %609 = vmatmul.f32.vlgmr.msrb.gmra.mxu2 %v569_v56  ;;  %v2772_v55 = vld [vmem:[%s4269_s1 + $0x2b8] sm:$0xff]  ;;  %v3635_v56 = vld [vmem:[%s3167_s26 + $0x6a] sm:$0xff] }
  0x5d   : > { %1811 = vmatpush.msra.mxu0 %v2900_v57  ;;  %1409 = vmatpush.msra.mxu2 %v2818_v59  ;;  %v3645_v57 = vld [vmem:[%s3167_s26 + $0x81] sm:$0xff]  ;;  %v2811_v59 = vld [vmem:[%s4269_s1 + $0x330] sm:$0xff] }
  0x5e   : > { %814 = vmatmul.f32.vlgmr.msrb.gmra.mxu3 %v3304_v58  ;;  %1204 = vmatpush.msra.mxu1 %v2778_v60  ;;  %v368_v58 = vld [vmem:[%s3167_s26 + $0x9] sm:$0xff] }
  0x5f   : > { %1812 = vmatpush.msra.mxu0 %v2899_v61  ;;  %1611 = vmatpush.msra.mxu3 %v2858_v0  ;;  %v3653_v61 = vld [vmem:[%s3167_s26 + $0x7a] sm:$0xff]  ;;  %v2771_v0 = vld [vmem:[%s4269_s1 + $0x2b0] sm:$0xff] }
  0x60   : > { %1410 = vmatpush.msra.mxu2 %v2817_v3  ;;  %1205 = vmatpush.msra.mxu1 %v2777_v7  ;;  %v2891_v7 = vld [vmem:[%s4269_s1 + $0x430] sm:$0xff] }
  0x61   : > { %1813 = vmatpush.msra.mxu0 %v2898_v1  ;;  %1612 = vmatpush.msra.mxu3 %v2857_v4  ;;  %v3670_v4 = vld [vmem:[%s3167_s26 + $0x91] sm:$0xff] }
  0x62   : > { %1016 = vmatmul.f32.vlgmr.msrb.gmra.mxu0 %v2741_v5  ;;  %1411 = vmatpush.msra.mxu2 %v2816_v12 }
  0x63   : > { %1814 = vmatpush.msra.mxu0 %v2897_v8  ;;  %1206 = vmatpush.msra.mxu1 %v2776_v13  ;;  %v2850_v8 = vld [vmem:[%s4269_s1 + $0x3a8] sm:$0xff] }
  0x64   : > { %410 = vmatmul.f32.gmra.mxu1 %v368_v58  ;;  %612 = vmatmul.f32.gmra.mxu2 %v570_v6  ;;  %v3677_v6 = vld [vmem:[%s3167_s26 + $0x82] sm:$0xff] }
  0x65   : > { %1815 = vmatpush.msra.mxu0 %v2896_v22  ;;  %1412 = vmatpush.msra.mxu2 %v2815_v23  ;;  %v2770_v13 = vld [vmem:[%s4269_s1 + $0x2a8] sm:$0xff]  ;;  %v3707_v23 = vld [vmem:[%s3167_s26 + $0x92] sm:$0xff] }
  0x66   : > { %817 = vmatmul.f32.gmra.mxu3 %v3356_v10  ;;  %v2856_v10 = vld [vmem:[%s4269_s1 + $0x3d8] sm:$0xff]  ;;  %1207 = vmatpush.msra.mxu1 %v2775_v27 }
  0x67   : > { %1613 = vmatpush.msra.mxu3 %v2856_v10  ;;  %1816 = vmatpush.msra.mxu0 %v2895_v28  ;;  %v3697_v10 = vld [vmem:[%s3167_s26 + $0x99] sm:$0xff] }
  0x68   : > { %1208 = vmatpush.msra.mxu1 %v2774_v38 }
  0x69   : > { %1614 = vmatpush.msra.mxu3 %v2855_v24  ;;  %v2890_v24 = vld [vmem:[%s4269_s1 + $0x428] sm:$0xff] }
  0x6a   : > { %1019 = vmatmul.f32.gmra.mxu0 %v2742_v9 }
  0x6b   : > { %1615 = vmatpush.msra.mxu3 %v2854_v35  ;;  %v2809_v35 = vld [vmem:[%s4269_s1 + $0x320] sm:$0xff] }
  0x6c   : > { %413 = vmatmul.f32.gmra.mxu1 %v2741_v5  ;;  %615 = vmatmul.f32.gmra.mxu2 %v3511_v11 }
  0x6d   : > { %1616 = vmatpush.msra.mxu3 %v2853_v45  ;;  %v2769_v45 = vld [vmem:[%s4269_s1 + $0x2a0] sm:$0xff] }
  0x6e   : > { %820 = vmatmul.f32.gmra.mxu3 %v3408_v29 }
  0x6f   : > { %1617 = vmatpush.msra.mxu3 %v2852_v53 }
  0x72   : > { %1022 = vmatmul.f32.gmra.mxu0 %v3525_v18 }
  0x74   : > { %416 = vmatmul.f32.gmra.mxu1 %v2742_v9  ;;  %618 = vmatmul.f32.gmra.mxu2 %v3528_v20 }
  0x76   : > { %823 = vmatmul.f32.gmra.mxu3 %v3460_v51 }
  0x7a   : > { %1025 = vmatmul.f32.gmra.mxu0 %v3543_v25 }
  0x7c   : > { %419 = vmatmul.f32.gmra.mxu1 %v3525_v18  ;;  %621 = vmatmul.f32.gmra.mxu2 %v3546_v26 }
  0x7e   : > { %826 = vmatmul.f32.gmra.mxu3 %v3173_v16  ;;  %v2814_v16 = vld [vmem:[%s4269_s1 + $0x348] sm:$0xff] }
  0x7f   : > { %1413 = vmatpush.msra.mxu2 %v2814_v16  ;;  %v3721_v16 = vld [vmem:[%s3167_s26 + $0xa9] sm:$0xff] }
  0x81   : > { %1414 = vmatpush.msra.mxu2 %v2813_v43  ;;  %v2849_v43 = vld [vmem:[%s4269_s1 + $0x3a0] sm:$0xff] }
  0x82   : > { %1028 = vmatmul.f32.gmra.mxu0 %v3559_v32 }
  0x84   : > { %422 = vmatmul.f32.gmra.mxu1 %v3543_v25  ;;  %624 = vmatmul.f32.gmra.mxu2 %v3562_v33 }
  0x86   : > { %829 = vmatmul.f32.gmra.mxu3 %v3216_v30  ;;  %v2894_v30 = vld [vmem:[%s4269_s1 + $0x448] sm:$0xff] }
  0x87   : > { %1817 = vmatpush.msra.mxu0 %v2894_v30 }
  0x89   : > { %1818 = vmatpush.msra.mxu0 %v2893_v52 }
  0x8a   : > { %1031 = vmatmul.f32.gmra.mxu0 %v3578_v39 }
  0x8c   : > { %425 = vmatmul.f32.gmra.mxu1 %v3559_v32  ;;  %627 = vmatmul.f32.gmra.mxu2 %v3581_v41 }
  0x8e   : > { %832 = vmatmul.f32.gmra.mxu3 %v3265_v46  ;;  %v2773_v46 = vld [vmem:[%s4269_s1 + $0x2c0] sm:$0xff] }
  0x8f   : > { %1209 = vmatpush.msra.mxu1 %v2773_v46 }
  0x91   : > { %1210 = vmatpush.msra.mxu1 %v2772_v55 }
  0x92   : > { %1034 = vmatmul.f32.gmra.mxu0 %v3591_v42 }
  0x93   : > { %1211 = vmatpush.msra.mxu1 %v2771_v0 }
  0x94   : > { %428 = vmatmul.f32.gmra.mxu1 %v3578_v39  ;;  %630 = vmatmul.f32.gmra.mxu2 %v3597_v44 }
  0x95   : > { %1212 = vmatpush.msra.mxu1 %v2770_v13 }
  0x96   : > { %835 = vmatmul.f32.gmra.mxu3 %v3316_v62  ;;  %v2812_v62 = vld [vmem:[%s4269_s1 + $0x338] sm:$0xff] }
  0x97   : > { %1415 = vmatpush.msra.mxu2 %v2812_v62  ;;  %1213 = vmatpush.msra.mxu1 %v2769_v45  ;;  %v3748_v62 = vld [vmem:[%s3167_s26 + $0xb1] sm:$0xff] }
  0x98   : > { %4286 = vst [vmem:[#allocation4_spill] sm:$0xff] %v3748_v62 }
  0x99   : > { %1416 = vmatpush.msra.mxu2 %v2811_v59  ;;  %v2808_v59 = vld [vmem:[%s4269_s1 + $0x318] sm:$0xff] }
  0x9a   : > { %1037 = vmatmul.f32.gmra.mxu0 %v3610_v48 }
  0x9c   : > { %431 = vmatmul.f32.gmra.mxu1 %v3591_v42  ;;  %633 = vmatmul.f32.gmra.mxu2 %v3613_v49 }
  0x9e   : > { %838 = vmatmul.f32.gmra.mxu3 %v3368_v14  ;;  %v2892_v14 = vld [vmem:[%s4269_s1 + $0x438] sm:$0xff] }
  0x9f   : > { %1819 = vmatpush.msra.mxu0 %v2892_v14  ;;  %v3755_v14 = vld [vmem:[%s3167_s26 + $0xaa] sm:$0xff] }
  0xa1   : > { %1820 = vmatpush.msra.mxu0 %v2891_v7 }
  0xa2   : > { %1040 = vmatmul.f32.gmra.mxu0 %v3629_v54 }
  0xa3   : > { %1821 = vmatpush.msra.mxu0 %v2890_v24  ;;  %v3785_v24 = vld [vmem:[%s3167_s26 + $0xb2] sm:$0xff] }
  0xa4   : > { %434 = vmatmul.f32.gmra.mxu1 %v3610_v48  ;;  %636 = vmatmul.f32.gmra.mxu2 %v3635_v56  ;;  %4290 = vst [vmem:[#allocation8_spill] sm:$0xff] %v3785_v24 }
  0xa6   : > { %841 = vmatmul.f32.gmra.mxu3 %v3420_v36  ;;  %v2851_v36 = vld [vmem:[%s4269_s1 + $0x3b0] sm:$0xff] }
  0xa7   : > { %1618 = vmatpush.msra.mxu3 %v2851_v36  ;;  %v2848_v36 = vld [vmem:[%s4269_s1 + $0x398] sm:$0xff] }
  0xa9   : > { %v3650_v60 = vpop.f32.mrf.mxu1  ;;  %1619 = vmatpush.msra.mxu3 %v2850_v8  ;;  %v2768_v8 = vld [vmem:[%s4269_s1 + $0x298] sm:$0xff] }
  0xaa   : > { %1043 = vmatmul.f32.gmra.mxu0 %v3645_v57  ;;  %1214 = vmatpush.msra.mxu1 %v2768_v8 }
  0xab   : > { %1620 = vmatpush.msra.mxu3 %v2849_v43 }
  0xac   : > { %437 = vmatmul.f32.gmra.mxu1 %v3629_v54  ;;  %639 = vmatmul.f32.gmra.mxu2 %v3653_v61 }
  0xad   : > { %1621 = vmatpush.msra.mxu3 %v2848_v36 }
  0xae   : > { %844 = vmatmul.f32.gmra.mxu3 %v3176_v17  ;;  %v2810_v17 = vld [vmem:[%s4269_s1 + $0x328] sm:$0xff] }
  0xaf   : > { %v3665_v1 = vpop.f32.mrf.mxu2  ;;  %v3667_v3 = vpop.f32.mrf.mxu0  ;;  %1417 = vmatpush.msra.mxu2 %v2810_v17  ;;  %v3775_v17 = vld [vmem:[%s3167_s26 + $0xc1] sm:$0xff] }
  0xb0   : > { %4288 = vst [vmem:[#allocation6_spill] sm:$0xff] %v3775_v17 }
  0xb1   : > { %v3672_v5 = vpop.f32.mrf.mxu1  ;;  %v3674_v58 = vpop.f32.mrf.mxu3  ;;  %1418 = vmatpush.msra.mxu2 %v2809_v35  ;;  %v2888_v35 = vld [vmem:[%s4269_s1 + $0x418] sm:$0xff] }
  0xb2   : > { %1046 = vmatmul.f32.gmra.mxu0 %v3670_v4 }
  0xb3   : > { %1419 = vmatpush.msra.mxu2 %v2808_v59  ;;  %v2807_v59 = vld [vmem:[%s4269_s1 + $0x310] sm:$0xff] }
  0xb4   : > { %440 = vmatmul.f32.gmra.mxu1 %v3645_v57  ;;  %642 = vmatmul.f32.gmra.mxu2 %v3677_v6 }
  0xb5   : > { %1420 = vmatpush.msra.mxu2 %v2807_v59 }
  0xb6   : > { %847 = vmatmul.f32.gmra.mxu3 %v3219_v31 }
  0xb7   : > { %v3692_v9 = vpop.f32.mrf.mxu2  ;;  %v3694_v12 = vpop.f32.mrf.mxu0 }
  0xb9   : > { %v3702_v22 = vpop.f32.mrf.mxu1  ;;  %v3704_v31 = vpop.f32.mrf.mxu3 }
  0xba   : > { %1049 = vmatmul.f32.gmra.mxu0 %v3697_v10 }
  0xbc   : > { %443 = vmatmul.f32.gmra.mxu1 %v3670_v4  ;;  %645 = vmatmul.f32.gmra.mxu2 %v3707_v23 }
  0xbe   : > { %850 = vmatmul.f32.gmra.mxu3 %v3268_v47  ;;  %v3731_v47 = vld [vmem:[%s3167_s26 + $0x9a] sm:$0xff] }
  0xbf   : > { %v3716_v27 = vpop.f32.mrf.mxu2  ;;  %v3718_v28 = vpop.f32.mrf.mxu0 }
  0xc1   : > { %v3726_v38 = vpop.f32.mrf.mxu1  ;;  %v3728_v30 = vpop.f32.mrf.mxu3 }
  0xc2   : > { %4285 = vst [vmem:[#allocation3_spill] sm:$0xff] %v3728_v30  ;;  %1052 = vmatmul.f32.gmra.mxu0 %v3721_v16  ;;  %v3821_v30 = vld [vmem:[%s3167_s26 + $0xd9] sm:$0xff] }
  0xc4   : > { %446 = vmatmul.f32.gmra.mxu1 %v3697_v10  ;;  %648 = vmatmul.f32.gmra.mxu2 %v3731_v47 }
  0xc6   : > { %853 = vmatmul.f32.gmra.mxu3 %v3319_v63  ;;  %v2889_v63 = vld [vmem:[%s4269_s1 + $0x420] sm:$0xff] }
  0xc7   : > { %v3743_v46 = vpop.f32.mrf.mxu2  ;;  %v3745_v52 = vpop.f32.mrf.mxu0  ;;  %1822 = vmatpush.msra.mxu0 %v2889_v63  ;;  %v3799_v63 = vld [vmem:[%s3167_s26 + $0xc9] sm:$0xff] }
  0xc9   : > { %v3750_v53 = vpop.f32.mrf.mxu1  ;;  %v3752_v55 = vpop.f32.mrf.mxu3  ;;  %1823 = vmatpush.msra.mxu0 %v2888_v35  ;;  %v2767_v35 = vld [vmem:[%s4269_s1 + $0x290] sm:$0xff] }
  0xca   : > { %4287 = vst [vmem:[#allocation5_spill] sm:$0xff] %v3752_v55  ;;  %1055 = vmatmul.f32.gmra.mxu0 %v3748_v62  ;;  %1215 = vmatpush.msra.mxu1 %v2767_v35  ;;  %v2887_v35 = vld [vmem:[%s4269_s1 + $0x410] sm:$0xff] }
  0xcb   : > { %1824 = vmatpush.msra.mxu0 %v2887_v35 }
  0xcc   : > { %449 = vmatmul.f32.gmra.mxu1 %v3721_v16  ;;  %651 = vmatmul.f32.gmra.mxu2 %v3755_v14 }
  0xce   : > { %856 = vmatmul.f32.gmra.mxu3 %v3371_v15 }
  0xcf   : > { %v3770_v0 = vpop.f32.mrf.mxu2  ;;  %v3772_v7 = vpop.f32.mrf.mxu0 }
  0xd1   : > { %v3780_v13 = vpop.f32.mrf.mxu1  ;;  %v3782_v15 = vpop.f32.mrf.mxu3 }
  0xd2   : > { %4289 = vst [vmem:[#allocation7_spill] sm:$0xff] %v3782_v15  ;;  %1058 = vmatmul.f32.gmra.mxu0 %v3775_v17  ;;  %v2847_v15 = vld [vmem:[%s4269_s1 + $0x390] sm:$0xff] }
  0xd3   : > { %1622 = vmatpush.msra.mxu3 %v2847_v15 }
  0xd4   : > { %452 = vmatmul.f32.gmra.mxu1 %v3748_v62  ;;  %654 = vmatmul.f32.gmra.mxu2 %v3785_v24 }
  0xd6   : > { %859 = vmatmul.f32.gmra.mxu3 %v3423_v37  ;;  %v3807_v37 = vld [vmem:[%s3167_s26 + $0xc2] sm:$0xff] }
  0xd7   : > { %v3794_v43 = vpop.f32.mrf.mxu2  ;;  %v3796_v45 = vpop.f32.mrf.mxu0  ;;  %4292 = vst [vmem:[#allocation10_spill] sm:$0xff] %v3807_v37 }
  0xd9   : > { %v3804_v36 = vpop.f32.mrf.mxu3  ;;  %v408_v8 = vpop.f32.mrf.mxu1 }
  0xda   : > { %4291 = vst [vmem:[#allocation9_spill] sm:$0xff] %v3804_v36  ;;  %1061 = vmatmul.f32.gmra.mxu0 %v3799_v63  ;;  %v504_v36 = vadd.f32 %v408_v8, %v3667_v3 }
  0xdc   : > { %455 = vmatmul.f32.gmra.mxu1 %v3775_v17  ;;  %657 = vmatmul.f32.gmra.mxu2 %v3807_v37  ;;  %v3824_v17 = vld [vmem:[%s3167_s26 + $0xca] sm:$0xff] }
  0xde   : > { %862 = vmatmul.f32.gmra.mxu3 %v3182_v19  ;;  %v2806_v19 = vld [vmem:[%s4269_s1 + $0x308] sm:$0xff] }
  0xdf   : > { %v610_v59 = vpop.f32.mrf.mxu2  ;;  %v1017_v55 = vpop.f32.mrf.mxu0  ;;  %1421 = vmatpush.msra.mxu2 %v2806_v19 }
  0xe0   : > { %v706_v24 = vadd.f32 %v610_v59, %v504_v36  ;;  %v2846_v36 = vld [vmem:[%s4269_s1 + $0x388] sm:$0xff] }
  0xe1   : > { %v411_v62 = vpop.f32.mrf.mxu1  ;;  %v815_v15 = vpop.f32.mrf.mxu3  ;;  %1623 = vmatpush.msra.mxu3 %v2846_v36  ;;  %v2886_v36 = vld [vmem:[%s4269_s1 + $0x408] sm:$0xff] }
  0xe2   : > { %v911_v37 = vadd.f32 %v815_v15, %v706_v24  ;;  %1064 = vmatmul.f32.gmra.mxu0 %v3821_v30  ;;  %v505_v24 = vadd.f32 %v411_v62, %v3694_v12  ;;  %v2766_v15 = vld [vmem:[%s4269_s1 + $0x288] sm:$0xff]  ;;  %v3849_v12 = vld [vmem:[%s3167_s26 + $0xda] sm:$0xff] }
  0xe3   : > { %1216 = vmatpush.msra.mxu1 %v2766_v15  ;;  %1825 = vmatpush.msra.mxu0 %v2886_v36  ;;  %v2765_v36 = vld [vmem:[%s4269_s1 + $0x280] sm:$0xff] }
  0xe4   : > { %v3830_v3 = vadd.f32 %v1017_v55, %v911_v37  ;;  %458 = vmatmul.f32.gmra.mxu1 %v3799_v63  ;;  %660 = vmatmul.f32.gmra.mxu2 %v3824_v17  ;;  %v3843_v37 = vld [vmem:[%s3167_s26 + $0xe1] sm:$0xff] }
  0xe5   : > { %1217 = vmatpush.msra.mxu1 %v2765_v36 }
  0xe6   : > { %4293 = vst [vmem:[#allocation11_spill] sm:$0xff] %v3830_v3  ;;  %865 = vmatmul.f32.gmra.mxu3 %v3228_v34 }
  0xe7   : > { %v613_v55 = vpop.f32.mrf.mxu2  ;;  %v1020_v8 = vpop.f32.mrf.mxu0 }
  0xe8   : > { %v707_v59 = vadd.f32 %v613_v55, %v505_v24 }
  0xe9   : > { %v414_v35 = vpop.f32.mrf.mxu1  ;;  %v818_v19 = vpop.f32.mrf.mxu3 }
  0xea   : > { %v912_v34 = vadd.f32 %v818_v19, %v707_v59  ;;  %1067 = vmatmul.f32.gmra.mxu0 %v3843_v37  ;;  %v506_v24 = vadd.f32 %v414_v35, %v3718_v28  ;;  %v3862_v59 = vld [vmem:[%s3167_s26 + $0xf1] sm:$0xff]  ;;  %v3868_v28 = vld [vmem:[%s3167_s26 + $0xe2] sm:$0xff] }
  0xeb   : > { %4295 = vst [vmem:[#allocation13_spill] sm:$0xff] %v3868_v28  ;;  %v2845_v35 = vld [vmem:[%s4269_s1 + $0x380] sm:$0xff] }
  0xec   : > { %v3852_v62 = vadd.f32 %v1020_v8, %v912_v34  ;;  %461 = vmatmul.f32.gmra.mxu1 %v3821_v30  ;;  %663 = vmatmul.f32.gmra.mxu2 %v3849_v12  ;;  %v2805_v8 = vld [vmem:[%s4269_s1 + $0x300] sm:$0xff] }
  0xed   : > { %1422 = vmatpush.msra.mxu2 %v2805_v8  ;;  %1624 = vmatpush.msra.mxu3 %v2845_v35  ;;  %v3884_v8 = vld [vmem:[%s3167_s26 + $0xf9] sm:$0xff] }
  0xee   : > { %4294 = vst [vmem:[#allocation12_spill] sm:$0xff] %v3852_v62  ;;  %868 = vmatmul.f32.gmra.mxu3 %v3277_v50 }
  0xef   : > { %v616_v55 = vpop.f32.mrf.mxu2  ;;  %v1023_v15 = vpop.f32.mrf.mxu0 }
  0xf0   : > { %v708_v19 = vadd.f32 %v616_v55, %v506_v24 }
  0xf1   : > { %v417_v34 = vpop.f32.mrf.mxu1  ;;  %v821_v62 = vpop.f32.mrf.mxu3 }
  0xf2   : > { %v913_v50 = vadd.f32 %v821_v62, %v708_v19  ;;  %1070 = vmatmul.f32.gmra.mxu0 %v3862_v59  ;;  %v507_v62 = vadd.f32 %v417_v34, %v3745_v52  ;;  %v2885_v52 = vld [vmem:[%s4269_s1 + $0x400] sm:$0xff] }
  0xf3   : > { %1826 = vmatpush.msra.mxu0 %v2885_v52  ;;  %v3903_v52 = vld [vmem:[%s3167_s26 + $0xfa] sm:$0xff] }
  0xf4   : > { %v3874_v24 = vadd.f32 %v1023_v15, %v913_v50  ;;  %464 = vmatmul.f32.gmra.mxu1 %v3843_v37  ;;  %666 = vmatmul.f32.gmra.mxu2 %v3868_v28  ;;  %4298 = vst [vmem:[#allocation16_spill] sm:$0xff] %v3903_v52 }
  0xf6   : > { %4296 = vst [vmem:[#allocation14_spill] sm:$0xff] %v3874_v24  ;;  %871 = vmatmul.f32.gmra.mxu3 %v3329_v2  ;;  %v3887_v24 = vld [vmem:[%s3167_s26 + $0xf2] sm:$0xff] }
  0xf7   : > { %v619_v55 = vpop.f32.mrf.mxu2  ;;  %v1026_v19 = vpop.f32.mrf.mxu0 }
  0xf8   : > { %v709_v15 = vadd.f32 %v619_v55, %v507_v62  ;;  %v3900_v55 = vld [vmem:[%s3167_s26 + $0x109] sm:$0xff] }
  0xf9   : > { %v420_v50 = vpop.f32.mrf.mxu1  ;;  %v824_v35 = vpop.f32.mrf.mxu3 }
  0xfa   : > { %v914_v3 = vadd.f32 %v824_v35, %v709_v15  ;;  %1073 = vmatmul.f32.gmra.mxu0 %v3884_v8  ;;  %v508_v34 = vadd.f32 %v420_v50, %v3772_v7 }
  0xfc   : > { %v3893_v2 = vadd.f32 %v1026_v19, %v914_v3  ;;  %467 = vmatmul.f32.gmra.mxu1 %v3862_v59  ;;  %669 = vmatmul.f32.gmra.mxu2 %v3887_v24 }
  0xfe   : > { %4297 = vst [vmem:[#allocation15_spill] sm:$0xff] %v3893_v2  ;;  %874 = vmatmul.f32.gmra.mxu3 %v3381_v21  ;;  %v3916_v2 = vld [vmem:[%s3167_s26 + $0x10a] sm:$0xff] }
  0xff   : > { %v622_v36 = vpop.f32.mrf.mxu2  ;;  %v1029_v62 = vpop.f32.mrf.mxu0 }
 0x100   : > { %v710_v15 = vadd.f32 %v622_v36, %v508_v34  ;;  %v3913_v34 = vld [vmem:[%s3167_s26 + $0x111] sm:$0xff] }
 0x101   : > { %v423_v35 = vpop.f32.mrf.mxu1  ;;  %v827_v28 = vpop.f32.mrf.mxu3 }
 0x102   : > { %v915_v3 = vadd.f32 %v827_v28, %v710_v15  ;;  %1076 = vmatmul.f32.gmra.mxu0 %v3900_v55  ;;  %v509_v21 = vadd.f32 %v423_v35, %v3796_v45 }
 0x104   : > { %v3906_v19 = vadd.f32 %v1029_v62, %v915_v3  ;;  %470 = vmatmul.f32.gmra.mxu1 %v3884_v8  ;;  %672 = vmatmul.f32.gmra.mxu2 %v3903_v52  ;;  %v3920_v3 = vld [vmem:[%s3167_s26 + $0x120] sm:$0xff]  ;;  %v3932_v52 = vld [vmem:[%s3167_s26 + $0x112] sm:$0xff] }
 0x105   : > { %4300 = vst [vmem:[#allocation18_spill] sm:$0xff] %v3920_v3 }
 0x106   : > { %4299 = vst [vmem:[#allocation17_spill] sm:$0xff] %v3906_v19  ;;  %877 = vmatmul.f32.gmra.mxu3 %v3433_v40 }
 0x107   : > { %v625_v7 = vpop.f32.mrf.mxu2  ;;  %v1032_v50 = vpop.f32.mrf.mxu0 }
 0x108   : > { %v711_v36 = vadd.f32 %v625_v7, %v509_v21  ;;  %v3929_v7 = vld [vmem:[%s3167_s26 + $0x121] sm:$0xff] }
 0x109   : > { %v426_v28 = vpop.f32.mrf.mxu1  ;;  %v830_v15 = vpop.f32.mrf.mxu3  ;;  %4302 = vst [vmem:[#allocation20_spill] sm:$0xff] %v3929_v7 }
 0x10a   : > { %v916_v62 = vadd.f32 %v830_v15, %v711_v36  ;;  %1079 = vmatmul.f32.gmra.mxu0 %v3913_v34  ;;  %v510_v40 = vadd.f32 %v426_v28, %v3650_v60 }
 0x10c   : > { %v3922_v45 = vadd.f32 %v1032_v50, %v916_v62  ;;  %473 = vmatmul.f32.gmra.mxu1 %v3900_v55  ;;  %675 = vmatmul.f32.gmra.mxu2 %v3916_v2  ;;  %v3936_v62 = vld [vmem:[%s3167_s26 + $0x128] sm:$0xff] }
 0x10d   : > { %4303 = vst [vmem:[#allocation21_spill] sm:$0xff] %v3936_v62 }
 0x10e   : > { %4301 = vst [vmem:[#allocation19_spill] sm:$0xff] %v3922_v45  ;;  %880 = vmatmul.f32.gmra.mxu3 %v3920_v3 }
 0x10f   : > { %v628_v35 = vpop.f32.mrf.mxu2  ;;  %v1035_v21 = vpop.f32.mrf.mxu0 }
 0x110   : > { %v712_v36 = vadd.f32 %v628_v35, %v510_v40  ;;  %v3945_v35 = vld [vmem:[%s3167_s26 + $0x129] sm:$0xff] }
 0x111   : > { %v429_v15 = vpop.f32.mrf.mxu1  ;;  %v833_v19 = vpop.f32.mrf.mxu3 }
 0x112   : > { %v917_v50 = vadd.f32 %v833_v19, %v712_v36  ;;  %1082 = vmatmul.f32.gmra.mxu0 %v3929_v7  ;;  %v511_v60 = vadd.f32 %v429_v15, %v3672_v5 }
 0x114   : > { %v3938_v45 = vadd.f32 %v1035_v21, %v917_v50  ;;  %476 = vmatmul.f32.gmra.mxu1 %v3913_v34  ;;  %678 = vmatmul.f32.gmra.mxu2 %v3932_v52 }
 0x116   : > { %4304 = vst [vmem:[#allocation22_spill] sm:$0xff] %v3938_v45  ;;  %883 = vmatmul.f32.gmra.mxu3 %v3936_v62 }
 0x117   : > { %v631_v28 = vpop.f32.mrf.mxu2  ;;  %v1038_v40 = vpop.f32.mrf.mxu0 }
 0x118   : > { %v713_v3 = vadd.f32 %v631_v28, %v511_v60 }
 0x119   : > { %v432_v19 = vpop.f32.mrf.mxu1  ;;  %v836_v36 = vpop.f32.mrf.mxu3 }
 0x11a   : > { %v918_v7 = vadd.f32 %v836_v36, %v713_v3  ;;  %1085 = vmatmul.f32.gmra.mxu0 %v3945_v35  ;;  %v512_v5 = vadd.f32 %v432_v19, %v3702_v22  ;;  %v2823_v19 = vld [vmem:[%s3167_s26 + $0x48] sm:$0xff] }
 0x11c   : > { %v3948_v21 = vadd.f32 %v1038_v40, %v918_v7  ;;  %1218 = vmatmul.f32.vlgmr.msra.gmra.mxu1 %v3511_v11  ;;  %1423 = vmatmul.f32.vlgmr.msra.gmra.mxu2 %v3408_v29 }
 0x11e   : > { %1625 = vmatmul.f32.vlgmr.msra.gmra.mxu3 %v3525_v18 }
 0x11f   : > { %v634_v15 = vpop.f32.mrf.mxu2  ;;  %v1041_v50 = vpop.f32.mrf.mxu0 }
 0x120   : > { %v714_v45 = vadd.f32 %v634_v15, %v512_v5  ;;  %v2824_v15 = vld [vmem:[%s3167_s26 + $0x50] sm:$0xff] }
 0x121   : > { %v435_v60 = vpop.f32.mrf.mxu1  ;;  %v839_v28 = vpop.f32.mrf.mxu3 }
 0x122   : > { %v919_v62 = vadd.f32 %v839_v28, %v714_v45  ;;  %1827 = vmatmul.f32.vlgmr.msra.gmra.mxu0 %v3546_v26  ;;  %v513_v29 = vadd.f32 %v435_v60, %v3726_v38 }
 0x124   : > { %v3955_v3 = vadd.f32 %v1041_v50, %v919_v62  ;;  %1221 = vmatmul.f32.gmra.mxu1 %v3528_v20  ;;  %1426 = vmatmul.f32.gmra.mxu2 %v3460_v51 }
 0x126   : > { %1628 = vmatmul.f32.gmra.mxu3 %v3543_v25 }
 0x127   : > { %v637_v11 = vpop.f32.mrf.mxu2  ;;  %v1044_v18 = vpop.f32.mrf.mxu0 }
 0x128   : > { %v715_v22 = vadd.f32 %v637_v11, %v513_v29 }
 0x129   : > { %v438_v7 = vpop.f32.mrf.mxu1  ;;  %v842_v40 = vpop.f32.mrf.mxu3 }
 0x12a   : > { %v920_v45 = vadd.f32 %v842_v40, %v715_v22  ;;  %1830 = vmatmul.f32.gmra.mxu0 %v3562_v33  ;;  %v514_v51 = vadd.f32 %v438_v7, %v3750_v53 }
 0x12c   : > { %v3963_v62 = vadd.f32 %v1044_v18, %v920_v45  ;;  %1224 = vmatmul.f32.gmra.mxu1 %v3546_v26  ;;  %1429 = vmatmul.f32.gmra.mxu2 %v2823_v19  ;;  %v2825_v18 = vld [vmem:[%s3167_s26 + $0x60] sm:$0xff] }
 0x12e   : > { %1631 = vmatmul.f32.gmra.mxu3 %v3559_v32 }
 0x12f   : > { %v640_v20 = vpop.f32.mrf.mxu2  ;;  %v1047_v25 = vpop.f32.mrf.mxu0 }
 0x130   : > { %v716_v38 = vadd.f32 %v640_v20, %v514_v51  ;;  %v2826_v51 = vld [vmem:[%s3167_s26 + $0x68] sm:$0xff] }
 0x131   : > { %v441_v36 = vpop.f32.mrf.mxu1  ;;  %v845_v5 = vpop.f32.mrf.mxu3 }
 0x132   : > { %v921_v50 = vadd.f32 %v845_v5, %v716_v38  ;;  %1833 = vmatmul.f32.gmra.mxu0 %v3581_v41  ;;  %v515_v26 = vadd.f32 %v441_v36, %v3780_v13 }
 0x134   : > { %v3970_v60 = vadd.f32 %v1047_v25, %v921_v50  ;;  %1227 = vmatmul.f32.gmra.mxu1 %v3562_v33  ;;  %1432 = vmatmul.f32.gmra.mxu2 %v2824_v15  ;;  %v2827_v15 = vld [vmem:[%s3167_s26 + $0x78] sm:$0xff] }
 0x136   : > { %1634 = vmatmul.f32.gmra.mxu3 %v3578_v39 }
 0x137   : > { %v643_v32 = vpop.f32.mrf.mxu2  ;;  %v1050_v53 = vpop.f32.mrf.mxu0 }
 0x138   : > { %v717_v28 = vadd.f32 %v643_v32, %v515_v26 }
 0x139   : > { %v444_v29 = vpop.f32.mrf.mxu1  ;;  %v848_v11 = vpop.f32.mrf.mxu3 }
 0x13a   : > { %v922_v22 = vadd.f32 %v848_v11, %v717_v28  ;;  %1836 = vmatmul.f32.gmra.mxu0 %v3597_v44  ;;  %v516_v33 = vadd.f32 %v444_v29, %v3665_v1  ;;  %v2828_v29 = vld [vmem:[%s3167_s26 + $0x80] sm:$0xff] }
 0x13c   : > { %v3977_v7 = vadd.f32 %v1050_v53, %v922_v22  ;;  %1230 = vmatmul.f32.gmra.mxu1 %v3581_v41  ;;  %1435 = vmatmul.f32.gmra.mxu2 %v2825_v18 }
 0x13e   : > { %1637 = vmatmul.f32.gmra.mxu3 %v3591_v42 }
 0x13f   : > { %v646_v39 = vpop.f32.mrf.mxu2  ;;  %v1053_v13 = vpop.f32.mrf.mxu0 }
 0x140   : > { %v718_v40 = vadd.f32 %v646_v39, %v516_v33 }
 0x141   : > { %v447_v19 = vpop.f32.mrf.mxu1  ;;  %v851_v45 = vpop.f32.mrf.mxu3 }
 0x142   : > { %v923_v20 = vadd.f32 %v851_v45, %v718_v40  ;;  %1839 = vmatmul.f32.gmra.mxu0 %v3613_v49  ;;  %v517_v41 = vadd.f32 %v447_v19, %v3692_v9 }
 0x144   : > { %v3984_v25 = vadd.f32 %v1053_v13, %v923_v20  ;;  %1233 = vmatmul.f32.gmra.mxu1 %v3597_v44  ;;  %1438 = vmatmul.f32.gmra.mxu2 %v2826_v51  ;;  %v2829_v13 = vld [vmem:[%s3167_s26 + $0x90] sm:$0xff] }
 0x146   : > { %1640 = vmatmul.f32.gmra.mxu3 %v3610_v48 }
 0x147   : > { %v649_v42 = vpop.f32.mrf.mxu2  ;;  %v1056_v1 = vpop.f32.mrf.mxu0 }
 0x148   : > { %v719_v38 = vadd.f32 %v649_v42, %v517_v41  ;;  %v2830_v41 = vld [vmem:[%s3167_s26 + $0x98] sm:$0xff] }
 0x149   : > { %v450_v36 = vpop.f32.mrf.mxu1  ;;  %v854_v5 = vpop.f32.mrf.mxu3 }
 0x14a   : > { %v924_v50 = vadd.f32 %v854_v5, %v719_v38  ;;  %1842 = vmatmul.f32.gmra.mxu0 %v3635_v56  ;;  %v518_v44 = vadd.f32 %v450_v36, %v3716_v27 }
 0x14c   : > { %v3991_v26 = vadd.f32 %v1056_v1, %v924_v50  ;;  %1236 = vmatmul.f32.gmra.mxu1 %v3613_v49  ;;  %1441 = vmatmul.f32.gmra.mxu2 %v2827_v15  ;;  %v2831_v15 = vld [vmem:[%s3167_s26 + $0xa8] sm:$0xff] }
 0x14e   : > { %1643 = vmatmul.f32.gmra.mxu3 %v3629_v54 }
 0x14f   : > { %v652_v48 = vpop.f32.mrf.mxu2  ;;  %v1059_v9 = vpop.f32.mrf.mxu0 }
 0x150   : > { %v720_v32 = vadd.f32 %v652_v48, %v518_v44 }
 0x151   : > { %v453_v53 = vpop.f32.mrf.mxu1  ;;  %v857_v28 = vpop.f32.mrf.mxu3 }
 0x152   : > { %v925_v11 = vadd.f32 %v857_v28, %v720_v32  ;;  %1845 = vmatmul.f32.gmra.mxu0 %v3653_v61  ;;  %v519_v49 = vadd.f32 %v453_v53, %v3743_v46  ;;  %v2832_v53 = vld [vmem:[%s3167_s26 + $0xb0] sm:$0xff] }
 0x154   : > { %v3998_v18 = vadd.f32 %v1059_v9, %v925_v11  ;;  %1239 = vmatmul.f32.gmra.mxu1 %v3635_v56  ;;  %1444 = vmatmul.f32.gmra.mxu2 %v2828_v29 }
 0x156   : > { %1646 = vmatmul.f32.gmra.mxu3 %v3645_v57 }
 0x157   : > { %v655_v54 = vpop.f32.mrf.mxu2  ;;  %v1062_v27 = vpop.f32.mrf.mxu0 }
 0x158   : > { %v721_v22 = vadd.f32 %v655_v54, %v519_v49 }
 0x159   : > { %v456_v33 = vpop.f32.mrf.mxu1  ;;  %v860_v39 = vpop.f32.mrf.mxu3 }
 0x15a   : > { %v926_v40 = vadd.f32 %v860_v39, %v721_v22  ;;  %1848 = vmatmul.f32.gmra.mxu0 %v3677_v6  ;;  %v520_v56 = vadd.f32 %v456_v33, %v3770_v0  ;;  %v2833_v22 = vld [vmem:[%s3167_s26 + $0xc0] sm:$0xff]  ;;  %v4306_v39 = vld [vmem:[#allocation8_spill] sm:$0xff] }
 0x15c   : > { %v4005_v19 = vadd.f32 %v1062_v27, %v926_v40  ;;  %1242 = vmatmul.f32.gmra.mxu1 %v3653_v61  ;;  %1447 = vmatmul.f32.gmra.mxu2 %v2829_v13 }
 0x15e   : > { %1649 = vmatmul.f32.gmra.mxu3 %v3670_v4 }
 0x15f   : > { %v658_v57 = vpop.f32.mrf.mxu2  ;;  %v1065_v46 = vpop.f32.mrf.mxu0 }
 0x160   : > { %v722_v45 = vadd.f32 %v658_v57, %v520_v56 }
 0x161   : > { %v459_v51 = vpop.f32.mrf.mxu1  ;;  %v863_v20 = vpop.f32.mrf.mxu3 }
 0x162   : > { %v927_v42 = vadd.f32 %v863_v20, %v722_v45  ;;  %1851 = vmatmul.f32.gmra.mxu0 %v3707_v23  ;;  %v521_v61 = vadd.f32 %v459_v51, %v3794_v43  ;;  %v2834_v20 = vld [vmem:[%s3167_s26 + $0xc8] sm:$0xff] }
 0x164   : > { %v4012_v1 = vadd.f32 %v1065_v46, %v927_v42  ;;  %1245 = vmatmul.f32.gmra.mxu1 %v3677_v6  ;;  %1450 = vmatmul.f32.gmra.mxu2 %v2830_v41  ;;  %v4309_v42 = vld [vmem:[#allocation10_spill] sm:$0xff] }
 0x166   : > { %1652 = vmatmul.f32.gmra.mxu3 %v3697_v10 }
 0x167   : > { %v661_v4 = vpop.f32.mrf.mxu2  ;;  %v1068_v0 = vpop.f32.mrf.mxu0 }
 0x168   : > { %v723_v38 = vadd.f32 %v661_v4, %v521_v61 }
 0x169   : > { %v462_v36 = vpop.f32.mrf.mxu1  ;;  %v866_v5 = vpop.f32.mrf.mxu3 }
 0x16a   : > { %v928_v50 = vadd.f32 %v866_v5, %v723_v38  ;;  %1854 = vmatmul.f32.gmra.mxu0 %v3731_v47  ;;  %v522_v6 = vadd.f32 %v462_v36, %v3674_v58  ;;  %v4305_v58 = vld [vmem:[#allocation4_spill] sm:$0xff] }
 0x16c   : > { %v4019_v44 = vadd.f32 %v1068_v0, %v928_v50  ;;  %1248 = vmatmul.f32.gmra.mxu1 %v3707_v23  ;;  %1453 = vmatmul.f32.gmra.mxu2 %v2831_v15  ;;  %v2835_v50 = vld [vmem:[%s3167_s26 + $0xd8] sm:$0xff] }
 0x16e   : > { %1655 = vmatmul.f32.gmra.mxu3 %v3721_v16 }
 0x16f   : > { %v664_v10 = vpop.f32.mrf.mxu2  ;;  %v1071_v43 = vpop.f32.mrf.mxu0 }
 0x170   : > { %v724_v48 = vadd.f32 %v664_v10, %v522_v6 }
 0x171   : > { %v465_v9 = vpop.f32.mrf.mxu1  ;;  %v869_v32 = vpop.f32.mrf.mxu3 }
 0x172   : > { %v929_v28 = vadd.f32 %v869_v32, %v724_v48  ;;  %1857 = vmatmul.f32.gmra.mxu0 %v3755_v14  ;;  %v523_v23 = vadd.f32 %v465_v9, %v3704_v31  ;;  %v4308_v31 = vld [vmem:[#allocation6_spill] sm:$0xff] }
 0x174   : > { %v4026_v29 = vadd.f32 %v1071_v43, %v929_v28  ;;  %1251 = vmatmul.f32.gmra.mxu1 %v3731_v47  ;;  %1456 = vmatmul.f32.gmra.mxu2 %v2832_v53  ;;  %v4307_v47 = vld [vmem:[#allocation3_spill] sm:$0xff] }
 0x175   : > { %v4311_v43 = vld [vmem:[#allocation7_spill] sm:$0xff] }
 0x176   : > { %1658 = vmatmul.f32.gmra.mxu3 %v4305_v58 }
 0x177   : > { %v667_v16 = vpop.f32.mrf.mxu2  ;;  %v1074_v11 = vpop.f32.mrf.mxu0 }
 0x178   : > { %v725_v49 = vadd.f32 %v667_v16, %v523_v23  ;;  %v2836_v23 = vld [vmem:[%s3167_s26 + $0xe0] sm:$0xff] }
 0x179   : > { %v468_v54 = vpop.f32.mrf.mxu1  ;;  %v872_v27 = vpop.f32.mrf.mxu3 }
 0x17a   : > { %v930_v33 = vadd.f32 %v872_v27, %v725_v49  ;;  %1860 = vmatmul.f32.gmra.mxu0 %v4306_v39  ;;  %v524_v40 = vadd.f32 %v468_v54, %v4307_v47 }
 0x17c   : > { %v4033_v13 = vadd.f32 %v1074_v11, %v930_v33  ;;  %1254 = vmatmul.f32.gmra.mxu1 %v3755_v14  ;;  %1459 = vmatmul.f32.gmra.mxu2 %v2833_v22  ;;  %v4310_v14 = vld [vmem:[#allocation5_spill] sm:$0xff] }
 0x17d   : > { %v4312_v11 = vld [vmem:[#allocation9_spill] sm:$0xff] }
 0x17e   : > { %1661 = vmatmul.f32.gmra.mxu3 %v4308_v31 }
 0x17f   : > { %v670_v56 = vpop.f32.mrf.mxu2  ;;  %v1077_v57 = vpop.f32.mrf.mxu0 }
 0x180   : > { %v726_v46 = vadd.f32 %v670_v56, %v524_v40  ;;  %v4313_v40 = vld [vmem:[#allocation13_spill] sm:$0xff] }
 0x181   : > { %v471_v45 = vpop.f32.mrf.mxu1  ;;  %v875_v51 = vpop.f32.mrf.mxu3 }
 0x182   : > { %v931_v41 = vadd.f32 %v875_v51, %v726_v46  ;;  %1863 = vmatmul.f32.gmra.mxu0 %v4309_v42  ;;  %v525_v4 = vadd.f32 %v471_v45, %v4310_v14  ;;  %v2838_v46 = vld [vmem:[%s3167_s26 + $0xf8] sm:$0xff]  ;;  %v4315_v14 = vld [vmem:[#allocation16_spill] sm:$0xff] }
 0x184   : > { %v4040_v61 = vadd.f32 %v1077_v57, %v931_v41  ;;  %1257 = vmatmul.f32.gmra.mxu1 %v4306_v39  ;;  %1462 = vmatmul.f32.gmra.mxu2 %v2834_v20  ;;  %v2837_v39 = vld [vmem:[%s3167_s26 + $0xf0] sm:$0xff]  ;;  %v2839_v41 = vld [vmem:[%s3167_s26 + $0x108] sm:$0xff] }
 0x186   : > { %1664 = vmatmul.f32.gmra.mxu3 %v3799_v63 }
 0x187   : > { %v673_v0 = vpop.f32.mrf.mxu2  ;;  %v1080_v38 = vpop.f32.mrf.mxu0 }
 0x188   : > { %v727_v36 = vadd.f32 %v673_v0, %v525_v4  ;;  %v4316_v0 = vld [vmem:[#allocation14_spill] sm:$0xff] }
 0x189   : > { %v474_v5 = vpop.f32.mrf.mxu1  ;;  %v878_v15 = vpop.f32.mrf.mxu3 }
 0x18a   : > { %v932_v6 = vadd.f32 %v878_v15, %v727_v36  ;;  %1866 = vmatmul.f32.gmra.mxu0 %v3824_v17  ;;  %v526_v48 = vadd.f32 %v474_v5, %v4311_v43  ;;  %v2840_v43 = vld [vmem:[%s3167_s26 + $0x110] sm:$0xff] }
 0x18c   : > { %v4047_v10 = vadd.f32 %v1080_v38, %v932_v6  ;;  %1260 = vmatmul.f32.gmra.mxu1 %v4309_v42  ;;  %1465 = vmatmul.f32.gmra.mxu2 %v2835_v50  ;;  %v4314_v42 = vld [vmem:[#allocation11_spill] sm:$0xff] }
 0x18e   : > { %1667 = vmatmul.f32.gmra.mxu3 %v3821_v30 }
 0x18f   : > { %v676_v63 = vpop.f32.mrf.mxu2  ;;  %v1083_v9 = vpop.f32.mrf.mxu0 }
 0x190   : > { %v728_v32 = vadd.f32 %v676_v63, %v526_v48  ;;  %v4317_v63 = vld [vmem:[#allocation12_spill] sm:$0xff] }
 0x191   : > { %v477_v53 = vpop.f32.mrf.mxu1  ;;  %v881_v28 = vpop.f32.mrf.mxu3 }
 0x192   : > { %v933_v58 = vadd.f32 %v881_v28, %v728_v32  ;;  %1869 = vmatmul.f32.gmra.mxu0 %v3849_v12  ;;  %v527_v49 = vadd.f32 %v477_v53, %v4312_v11 }
 0x194   : > { %v4054_v16 = vadd.f32 %v1083_v9, %v933_v58  ;;  %1263 = vmatmul.f32.gmra.mxu1 %v3824_v17  ;;  %1468 = vmatmul.f32.gmra.mxu2 %v2836_v23  ;;  %v4318_v23 = vld [vmem:[#allocation15_spill] sm:$0xff] }
 0x196   : > { %1670 = vmatmul.f32.gmra.mxu3 %v3843_v37 }
 0x197   : > { %v679_v30 = vpop.f32.mrf.mxu2  ;;  %v1086_v54 = vpop.f32.mrf.mxu0 }
 0x198   : > { %v729_v27 = vadd.f32 %v679_v30, %v527_v49 }
 0x199   : > { %v884_v22 = vpop.f32.mrf.mxu3  ;;  %v1219_v33 = vpop.f32.mrf.mxu1 }
 0x19a   : > { %v934_v47 = vadd.f32 %v884_v22, %v729_v27  ;;  %1872 = vmatmul.f32.gmra.mxu0 %v4313_v40 }
 0x19c   : > { %v4061_v31 = vadd.f32 %v1086_v54, %v934_v47  ;;  %1266 = vmatmul.f32.gmra.mxu1 %v3849_v12  ;;  %1471 = vmatmul.f32.gmra.mxu2 %v2837_v39 }
 0x19e   : > { %1673 = vmatmul.f32.gmra.mxu3 %v3862_v59  ;;  %v1315_v59 = vadd.f32 %v1219_v33, %v4314_v42 }
 0x19f   : > { %v1424_v17 = vpop.f32.mrf.mxu2  ;;  %v1828_v37 = vpop.f32.mrf.mxu0 }
 0x1a0   : > { %v1520_v4 = vadd.f32 %v1424_v17, %v1315_v59 }
 0x1a1   : > { %v1222_v56 = vpop.f32.mrf.mxu1  ;;  %v1626_v57 = vpop.f32.mrf.mxu3 }
 0x1a2   : > { %1875 = vmatmul.f32.gmra.mxu0 %v3887_v24  ;;  %v1722_v5 = vadd.f32 %v1626_v57, %v1520_v4  ;;  %v1316_v9 = vadd.f32 %v1222_v56, %v4317_v63 }
 0x1a4   : > { %1269 = vmatmul.f32.gmra.mxu1 %v4313_v40  ;;  %1474 = vmatmul.f32.gmra.mxu2 %v2838_v46  ;;  %v1924_v32 = vadd.f32 %v1828_v37, %v1722_v5 }
 0x1a6   : > { %1676 = vmatmul.f32.gmra.mxu3 %v3884_v8 }
 0x1a7   : > { %v1427_v45 = vpop.f32.mrf.mxu2  ;;  %v1831_v51 = vpop.f32.mrf.mxu0 }
 0x1a9   : > { %v1225_v20 = vpop.f32.mrf.mxu1  ;;  %v1629_v12 = vpop.f32.mrf.mxu3 }
 0x1aa   : > { %1878 = vmatmul.f32.gmra.mxu0 %v4315_v14  ;;  %v1317_v38 = vadd.f32 %v1225_v20, %v4316_v0 }
 0x1ac   : > { %1272 = vmatmul.f32.gmra.mxu1 %v3887_v24  ;;  %1477 = vmatmul.f32.gmra.mxu2 %v2839_v41  ;;  %v4081_v24 = vld [vmem:[%s4270_s2] ss:$0 sm:$0xff] }
 0x1ad   : > { %v4087_v11 = vrot.slane %v4081_v24, 2  ;;  %v4090_v47 = vrot.slane %v4081_v24, 1  ;;  %v4101_v0 = vrot.slane %v4081_v24, 4 }
 0x1ae   : > { %1679 = vmatmul.f32.gmra.mxu3 %v3900_v55  ;;  %v1521_v55 = vadd.f32 %v1427_v45, %v1316_v9 }
 0x1af   : > { %v1430_v36 = vpop.f32.mrf.mxu2  ;;  %v1834_v8 = vpop.f32.mrf.mxu0  ;;  %v4096_v45 = vrot.slane %v4087_v11, 1 }
 0x1b0   : > { %v1522_v15 = vadd.f32 %v1430_v36, %v1317_v38  ;;  %v1723_v39 = vadd.f32 %v1629_v12, %v1521_v55  ;;  %v4319_v38 = vld [vmem:[#allocation18_spill] sm:$0xff] }
 0x1b1   : > { %v1228_v50 = vpop.f32.mrf.mxu1  ;;  %v1632_v6 = vpop.f32.mrf.mxu3 }
 0x1b2   : > { %v1724_v48 = vadd.f32 %v1632_v6, %v1522_v15  ;;  %1881 = vmatmul.f32.gmra.mxu0 %v3916_v2  ;;  %v1318_v58 = vadd.f32 %v1228_v50, %v4318_v23  ;;  %v4107_v15 = vrot.slane %v4081_v24, 6  ;;  %v4320_v50 = vld [vmem:[#allocation20_spill] sm:$0xff] }
 0x1b4   : > { %v1926_v53 = vadd.f32 %v1834_v8, %v1724_v48  ;;  %1275 = vmatmul.f32.gmra.mxu1 %v4315_v14  ;;  %1480 = vmatmul.f32.gmra.mxu2 %v2840_v43  ;;  %v1925_v14 = vadd.f32 %v1831_v51, %v1723_v39  ;;  %v2921_v51 = vld [vmem:[%s3167_s26 + $0x122] sm:$0xff] }
 0x1b6   : > { %v1996_v28 = vmax.f32 %v1924_v32, %v1926_v53  ;;  %1682 = vmatmul.f32.gmra.mxu3 %v3913_v34 }
 0x1b7   : > { %v1433_v49 = vpop.f32.mrf.mxu2  ;;  %v1837_v30 = vpop.f32.mrf.mxu0 }
 0x1b8   : > { %v2020_v54 = vrot.slane %v1996_v28, 2  ;;  %v2021_v27 = vrot.slane %v1996_v28, 4  ;;  %v2022_v22 = vrot.slane %v1996_v28, 6  ;;  %v2925_v33 = vrot.slane %v1996_v28, 9 }
 0x1b9   : > { %v1523_v40 = vadd.f32 %v1433_v49, %v1318_v58  ;;  %v4092_v17 = vpop.f32.mrf.mxu1  ;;  %v1635_v37 = vpop.f32.mrf.mxu3 }
 0x1ba   : > { %v2926_v34 = vrot.slane %v2020_v54, 9  ;;  %v2927_v56 = vrot.slane %v2021_v27, 9  ;;  %v2928_v57 = vrot.slane %v2022_v22, 9  ;;  %v2236_v46 = vmax.f32 %v1996_v28, %v2925_v33  ;;  %1884 = vmatmul.f32.gmra.mxu0 %v3932_v52 }
 0x1bb   : > { %v1725_v20 = vadd.f32 %v1635_v37, %v1523_v40 }
 0x1bc   : > { %v2237_v41 = vmax.f32 %v2020_v54, %v2926_v34  ;;  %v2238_v42 = vmax.f32 %v2021_v27, %v2927_v56  ;;  %v2239_v12 = vmax.f32 %v2022_v22, %v2928_v57  ;;  %v2302_v59 = vadd.f32 %v4081_v24, %v2236_v46  ;;  %1278 = vmatmul.f32.gmra.mxu1 %v3916_v2 }
 0x1bd   : > { %v1927_v4 = vadd.f32 %v1837_v30, %v1725_v20  ;;  %1483 = vmatmul.f32.gmra.mxu2 %v4319_v38  ;;  %v4119_v54 = vrot.slane %v4101_v0, 1  ;;  %v4122_v27 = vrot.slane %v4107_v15, 1  ;;  %v2922_v38 = vld [vmem:[%s3167_s26 + $0x12a] sm:$0xff] }
 0x1be   : > { %v2303_v36 = vadd.f32 %v4090_v47, %v2237_v41  ;;  %v2304_v8 = vadd.f32 %v4087_v11, %v2238_v42  ;;  %v2350_v5 = vmax.f32 %v2302_v59, 0.0  ;;  %1685 = vmatmul.f32.gmra.mxu3 %v4320_v50  ;;  %v2305_v48 = vadd.f32 %v4096_v45, %v2239_v12  ;;  %v4321_v41 = vld [vmem:[#allocation21_spill] sm:$0xff] }
 0x1bf   : > { %v1997_v6 = vmax.f32 %v1925_v14, %v1927_v4  ;;  %v1436_v43 = vpop.f32.mrf.mxu2  ;;  %v4110_v2 = vpop.f32.mrf.mxu0 }
 0x1c0   : > { %v2351_v63 = vmax.f32 %v2303_v36, 0.0  ;;  %v2352_v9 = vmax.f32 %v2304_v8, 0.0  ;;  %v2446_v49 = vperm.slane %v2350_v5, 0  ;;  %v2353_v37 = vmax.f32 %v2305_v48, 0.0 }
 0x1c1   : > { %v2023_v32 = vrot.slane %v1997_v6, 2  ;;  %v2024_v53 = vrot.slane %v1997_v6, 4  ;;  %v2025_v55 = vrot.slane %v1997_v6, 6  ;;  %v2929_v28 = vrot.slane %v1997_v6, 9  ;;  %v4114_v23 = vpop.f32.mrf.mxu1  ;;  %v4116_v58 = vpop.f32.mrf.mxu3 }
 0x1c2   : > { %v2447_v30 = vperm.slane %v2351_v63, 0  ;;  %1887 = vmatmul.f32.gmra.mxu0 %v2921_v51  ;;  %v2448_v34 = vperm.slane %v2352_v9, 0  ;;  %v2449_v5 = vperm.slane %v2353_v37, 0  ;;  %v4322_v9 = vld [vmem:[#allocation17_spill] sm:$0xff] }
 0x1c3   : > { %v2930_v22 = vrot.slane %v2023_v32, 9  ;;  %v2931_v33 = vrot.slane %v2024_v53, 9  ;;  %v2932_v39 = vrot.slane %v2025_v55, 9  ;;  %v2240_v40 = vmax.f32 %v1997_v6, %v2929_v28 }
 0x1c4   : > { %1281 = vmatmul.f32.gmra.mxu1 %v3932_v52  ;;  %v2495_v56 = vsel %vm2494_vm0, %v2447_v30, %v2446_v49 }
 0x1c5   : > { %v2241_v57 = vmax.f32 %v2023_v32, %v2930_v22  ;;  %v2242_v46 = vmax.f32 %v2024_v53, %v2931_v33  ;;  %v2243_v20 = vmax.f32 %v2025_v55, %v2932_v39  ;;  %1486 = vmatmul.f32.gmra.mxu2 %v4321_v41  ;;  %v2306_v42 = vadd.f32 %v4101_v0, %v2240_v40  ;;  %v2843_v55 = vld [vmem:[%s3167_s26 + $0x138] sm:$0xff] }
 0x1c6   : > { %1688 = vmatmul.f32.gmra.mxu3 %v3945_v35  ;;  %v2497_v36 = vsel %vm2496_vm1, %v2448_v34, %v2495_v56  ;;  %v1319_v32 = vadd.f32 %v4092_v17, %v4322_v9  ;;  %v2883_v22 = vld [vmem:[%s3167_s26 + $0x139] sm:$0xff] }
 0x1c7   : > { %v2307_v12 = vadd.f32 %v4119_v54, %v2241_v57  ;;  %v2308_v59 = vadd.f32 %v4107_v15, %v2242_v46  ;;  %v2309_v14 = vadd.f32 %v4122_v27, %v2243_v20  ;;  %v1439_v4 = vpop.f32.mrf.mxu2  ;;  %v4132_v52 = vpop.f32.mrf.mxu0  ;;  %v2354_v8 = vmax.f32 %v2306_v42, 0.0  ;;  %v4323_v34 = vld [vmem:[#allocation22_spill] sm:$0xff] }
 0x1c8   : > { %v2499_v28 = vsel %vm2498_vm2, %v2449_v5, %v2497_v36  ;;  %v1524_v39 = vadd.f32 %v1436_v43, %v1319_v32  ;;  %v2923_v46 = vld [vmem:[%s3167_s26 + $0x13a] sm:$0xff] }
 0x1c9   : > { %v2355_v35 = vmax.f32 %v2307_v12, 0.0  ;;  %v2356_v50 = vmax.f32 %v2308_v59, 0.0  ;;  %v2357_v6 = vmax.f32 %v2309_v14, 0.0  ;;  %v1237_v48 = vpop.f32.mrf.mxu1  ;;  %v1641_v63 = vpop.f32.mrf.mxu3  ;;  %v2450_v53 = vperm.slane %v2354_v8, 0  ;;  %v2844_v14 = vld [vmem:[%s3167_s26 + $0x140] sm:$0xff] }
 0x1ca   : > { %1890 = vmatmul.f32.gmra.mxu0 %v2922_v38  ;;  %v1321_v56 = vadd.f32 %v1237_v48, %v4323_v34  ;;  %v1726_v20 = vadd.f32 %v4116_v58, %v1524_v39  ;;  %v4324_v36 = vld [vmem:[#allocation19_spill] sm:$0xff] }
 0x1cb   : > { %v2451_v49 = vperm.slane %v2355_v35, 0  ;;  %v2452_v30 = vperm.slane %v2356_v50, 0  ;;  %v2501_v33 = vsel %vm2500_vm3, %v2450_v53, %v2499_v28  ;;  %v2453_v17 = vperm.slane %v2357_v6, 0  ;;  %v2884_v5 = vld [vmem:[%s3167_s26 + $0x141] sm:$0xff] }
 0x1cc   : > { %1284 = vmatmul.f32.gmra.mxu1 %v2921_v51  ;;  %v1320_v8 = vadd.f32 %v4114_v23, %v4324_v36  ;;  %v1928_v35 = vadd.f32 %v4110_v2, %v1726_v20  ;;  %v2924_v53 = vld [vmem:[%s3167_s26 + $0x142] sm:$0xff] }
 0x1cd   : > { %v2503_v40 = vsel %vm2502_vm4, %v2451_v49, %v2501_v33  ;;  %1489 = vmatmul.f32.gmra.mxu2 %v2843_v55 }
 0x1ce   : > { %v2505_v37 = vsel %vm2504_vm5, %v2452_v30, %v2503_v40  ;;  %1691 = vmatmul.f32.gmra.mxu3 %v2883_v22  ;;  %v1525_v6 = vadd.f32 %v1439_v4, %v1320_v8 }
 0x1cf   : > { %v2507_v43 = vsel %vm2506_vm6, %v2453_v17, %v2505_v37  ;;  %v1442_v51 = vpop.f32.mrf.mxu2  ;;  %v1846_v57 = vpop.f32.mrf.mxu0 }
 0x1d0   : > { %2549 = vst [vmem:[%s4146_s24] sm:$0xff] %v2507_v43  ;;  %v1526_v41 = vadd.f32 %v1442_v51, %v1321_v56  ;;  %v1727_v22 = vadd.f32 %v1641_v63, %v1525_v6 }
 0x1d1   : > { %v1240_v42 = vpop.f32.mrf.mxu1  ;;  %v1644_v12 = vpop.f32.mrf.mxu3 }
 0x1d2   : > { %v1728_v59 = vadd.f32 %v1644_v12, %v1526_v41  ;;  %1893 = vmatmul.f32.gmra.mxu0 %v2923_v46  ;;  %v1322_v58 = vadd.f32 %v1240_v42, %v3948_v21  ;;  %v1929_v43 = vadd.f32 %v4132_v52, %v1727_v22 }
 0x1d4   : > { %v1930_v50 = vadd.f32 %v1846_v57, %v1728_v59  ;;  %1287 = vmatmul.f32.gmra.mxu1 %v2922_v38 }
 0x1d5   : > { %1492 = vmatmul.f32.gmra.mxu2 %v2844_v14 }
 0x1d6   : > { %v1998_v48 = vmax.f32 %v1928_v35, %v1930_v50  ;;  %1694 = vmatmul.f32.gmra.mxu3 %v2884_v5 }
 0x1d7   : > { %v1445_v9 = vpop.f32.mrf.mxu2  ;;  %v1849_v32 = vpop.f32.mrf.mxu0 }
 0x1d8   : > { %v2026_v55 = vrot.slane %v1998_v48, 2  ;;  %v2027_v28 = vrot.slane %v1998_v48, 4  ;;  %v2028_v49 = vrot.slane %v1998_v48, 6  ;;  %v2933_v30 = vrot.slane %v1998_v48, 9 }
 0x1d9   : > { %v1527_v23 = vadd.f32 %v1445_v9, %v1322_v58  ;;  %v1243_v33 = vpop.f32.mrf.mxu1  ;;  %v1647_v39 = vpop.f32.mrf.mxu3 }
 0x1da   : > { %v2934_v2 = vrot.slane %v2026_v55, 9  ;;  %v2935_v17 = vrot.slane %v2027_v28, 9  ;;  %v2936_v38 = vrot.slane %v2028_v49, 9  ;;  %v2244_v4 = vmax.f32 %v1998_v48, %v2933_v30  ;;  %1896 = vmatmul.f32.gmra.mxu0 %v2924_v53 }
 0x1db   : > { %v1729_v40 = vadd.f32 %v1647_v39, %v1527_v23 }
 0x1dc   : > { %v2245_v37 = vmax.f32 %v2026_v55, %v2934_v2  ;;  %v2246_v34 = vmax.f32 %v2027_v28, %v2935_v17  ;;  %v2247_v21 = vmax.f32 %v2028_v49, %v2936_v38  ;;  %v2310_v56 = vadd.f32 %v4081_v24, %v2244_v4 }
 0x1dd   : > { %v1931_v51 = vadd.f32 %v1849_v32, %v1729_v40 }
 0x1de   : > { %v2311_v57 = vadd.f32 %v4090_v47, %v2245_v37  ;;  %v2312_v63 = vadd.f32 %v4087_v11, %v2246_v34  ;;  %v2358_v46 = vmax.f32 %v2310_v56, 0.0  ;;  %v2313_v12 = vadd.f32 %v4096_v45, %v2247_v21 }
 0x1df   : > { %v1999_v20 = vmax.f32 %v1929_v43, %v1931_v51  ;;  %v1448_v41 = vpop.f32.mrf.mxu2  ;;  %v1852_v42 = vpop.f32.mrf.mxu0 }
 0x1e0   : > { %v2359_v59 = vmax.f32 %v2311_v57, 0.0  ;;  %v2360_v14 = vmax.f32 %v2312_v63, 0.0  ;;  %v2454_v52 = vperm.slane %v2358_v46, 0  ;;  %v2361_v55 = vmax.f32 %v2313_v12, 0.0 }
 0x1e1   : > { %v2029_v36 = vrot.slane %v1999_v20, 2  ;;  %v2030_v8 = vrot.slane %v1999_v20, 4  ;;  %v2031_v5 = vrot.slane %v1999_v20, 6  ;;  %v2937_v35 = vrot.slane %v1999_v20, 9  ;;  %v1246_v50 = vpop.f32.mrf.mxu1  ;;  %v1650_v6 = vpop.f32.mrf.mxu3 }
 0x1e2   : > { %v2455_v48 = vperm.slane %v2359_v59, 0  ;;  %v2456_v28 = vperm.slane %v2360_v14, 0  ;;  %v2457_v21 = vperm.slane %v2361_v55, 0  ;;  %v1323_v46 = vadd.f32 %v1243_v33, %v3955_v3 }
 0x1e3   : > { %v2938_v58 = vrot.slane %v2029_v36, 9  ;;  %v2939_v9 = vrot.slane %v2030_v8, 9  ;;  %v2940_v32 = vrot.slane %v2031_v5, 9  ;;  %v2248_v53 = vmax.f32 %v1999_v20, %v2937_v35 }
 0x1e4   : > { %v2508_v49 = vsel %vm2494_vm0, %v2455_v48, %v2454_v52 }
 0x1e5   : > { %v2249_v30 = vmax.f32 %v2029_v36, %v2938_v58  ;;  %v2250_v22 = vmax.f32 %v2030_v8, %v2939_v9  ;;  %v2251_v23 = vmax.f32 %v2031_v5, %v2940_v32  ;;  %v2314_v39 = vadd.f32 %v4101_v0, %v2248_v53 }
 0x1e6   : > { %v2509_v37 = vsel %vm2496_vm1, %v2456_v28, %v2508_v49  ;;  %v1528_v8 = vadd.f32 %v1448_v41, %v1323_v46  ;;  %v1324_v49 = vadd.f32 %v1246_v50, %v3963_v62 }
 0x1e7   : > { %v2315_v2 = vadd.f32 %v4119_v54, %v2249_v30  ;;  %v2316_v17 = vadd.f32 %v4107_v15, %v2250_v22  ;;  %v2317_v38 = vadd.f32 %v4122_v27, %v2251_v23  ;;  %v1451_v4 = vpop.f32.mrf.mxu2  ;;  %v1855_v40 = vpop.f32.mrf.mxu0  ;;  %v2362_v34 = vmax.f32 %v2314_v39, 0.0 }
 0x1e8   : > { %v2510_v12 = vsel %vm2498_vm2, %v2457_v21, %v2509_v37  ;;  %v1730_v3 = vadd.f32 %v1650_v6, %v1528_v8  ;;  %v1529_v22 = vadd.f32 %v1451_v4, %v1324_v49 }
 0x1e9   : > { %v2363_v56 = vmax.f32 %v2315_v2, 0.0  ;;  %v2364_v43 = vmax.f32 %v2316_v17, 0.0  ;;  %v2365_v51 = vmax.f32 %v2317_v38, 0.0  ;;  %v1249_v57 = vpop.f32.mrf.mxu1  ;;  %v1653_v63 = vpop.f32.mrf.mxu3  ;;  %v2458_v20 = vperm.slane %v2362_v34, 0 }
 0x1ea   : > { %v1325_v48 = vadd.f32 %v1249_v57, %v3970_v60  ;;  %v1932_v41 = vadd.f32 %v1852_v42, %v1730_v3  ;;  %v1731_v21 = vadd.f32 %v1653_v63, %v1529_v22 }
 0x1eb   : > { %v2459_v59 = vperm.slane %v2363_v56, 0  ;;  %v2460_v14 = vperm.slane %v2364_v43, 0  ;;  %v2511_v36 = vsel %vm2500_vm3, %v2458_v20, %v2510_v12  ;;  %v2461_v5 = vperm.slane %v2365_v51, 0 }
 0x1ec   : > { %v1933_v12 = vadd.f32 %v1855_v40, %v1731_v21 }
 0x1ed   : > { %v2512_v35 = vsel %vm2502_vm4, %v2459_v59, %v2511_v36 }
 0x1ee   : > { %v2513_v52 = vsel %vm2504_vm5, %v2460_v14, %v2512_v35 }
 0x1ef   : > { %v2514_v58 = vsel %vm2506_vm6, %v2461_v5, %v2513_v52  ;;  %v1454_v9 = vpop.f32.mrf.mxu2  ;;  %v1858_v32 = vpop.f32.mrf.mxu0 }
 0x1f0   : > { %2550 = vst [vmem:[%s4146_s24 + $0x8] sm:$0xff] %v2514_v58  ;;  %v1530_v33 = vadd.f32 %v1454_v9, %v1325_v48 }
 0x1f1   : > { %v1252_v53 = vpop.f32.mrf.mxu1  ;;  %v1656_v55 = vpop.f32.mrf.mxu3 }
 0x1f2   : > { %v1732_v28 = vadd.f32 %v1656_v55, %v1530_v33  ;;  %v1326_v39 = vadd.f32 %v1252_v53, %v3977_v7 }
 0x1f4   : > { %v1934_v30 = vadd.f32 %v1858_v32, %v1732_v28 }
 0x1f6   : > { %v2000_v23 = vmax.f32 %v1932_v41, %v1934_v30 }
 0x1f7   : > { %v1457_v2 = vpop.f32.mrf.mxu2  ;;  %v1861_v60 = vpop.f32.mrf.mxu0 }
 0x1f8   : > { %v2032_v17 = vrot.slane %v2000_v23, 2  ;;  %v2033_v38 = vrot.slane %v2000_v23, 4  ;;  %v2034_v37 = vrot.slane %v2000_v23, 6  ;;  %v2941_v34 = vrot.slane %v2000_v23, 9 }
 0x1f9   : > { %v1531_v6 = vadd.f32 %v1457_v2, %v1326_v39  ;;  %v1255_v56 = vpop.f32.mrf.mxu1  ;;  %v1659_v43 = vpop.f32.mrf.mxu3 }
 0x1fa   : > { %v2942_v51 = vrot.slane %v2032_v17, 9  ;;  %v2943_v57 = vrot.slane %v2033_v38, 9  ;;  %v2944_v46 = vrot.slane %v2034_v37, 9  ;;  %v2252_v62 = vmax.f32 %v2000_v23, %v2941_v34 }
 0x1fb   : > { %v1733_v42 = vadd.f32 %v1659_v43, %v1531_v6 }
 0x1fc   : > { %v2253_v50 = vmax.f32 %v2032_v17, %v2942_v51  ;;  %v2254_v4 = vmax.f32 %v2033_v38, %v2943_v57  ;;  %v2255_v20 = vmax.f32 %v2034_v37, %v2944_v46  ;;  %v2318_v7 = vadd.f32 %v4081_v24, %v2252_v62 }
 0x1fd   : > { %v1935_v59 = vadd.f32 %v1861_v60, %v1733_v42 }
 0x1fe   : > { %v2319_v14 = vadd.f32 %v4090_v47, %v2253_v50  ;;  %v2320_v36 = vadd.f32 %v4087_v11, %v2254_v4  ;;  %v2366_v63 = vmax.f32 %v2318_v7, 0.0  ;;  %v2321_v52 = vadd.f32 %v4096_v45, %v2255_v20 }
 0x1ff   : > { %v2001_v8 = vmax.f32 %v1933_v12, %v1935_v59  ;;  %v1460_v5 = vpop.f32.mrf.mxu2  ;;  %v1864_v35 = vpop.f32.mrf.mxu0  ;;  %v1327_v12 = vadd.f32 %v1255_v56, %v3984_v25 }
 0x200   : > { %v2367_v48 = vmax.f32 %v2319_v14, 0.0  ;;  %v2368_v58 = vmax.f32 %v2320_v36, 0.0  ;;  %v2462_v40 = vperm.slane %v2366_v63, 0  ;;  %v2369_v23 = vmax.f32 %v2321_v52, 0.0 }
 0x201   : > { %v2035_v9 = vrot.slane %v2001_v8, 2  ;;  %v2036_v32 = vrot.slane %v2001_v8, 4  ;;  %v2037_v3 = vrot.slane %v2001_v8, 6  ;;  %v2945_v33 = vrot.slane %v2001_v8, 9  ;;  %v1258_v53 = vpop.f32.mrf.mxu1  ;;  %v1662_v55 = vpop.f32.mrf.mxu3 }
 0x202   : > { %v2463_v28 = vperm.slane %v2367_v48, 0  ;;  %v2464_v39 = vperm.slane %v2368_v58, 0  ;;  %v2465_v62 = vperm.slane %v2369_v23, 0  ;;  %v1532_v52 = vadd.f32 %v1460_v5, %v1327_v12 }
 0x203   : > { %v2946_v49 = vrot.slane %v2035_v9, 9  ;;  %v2947_v41 = vrot.slane %v2036_v32, 9  ;;  %v2948_v30 = vrot.slane %v2037_v3, 9  ;;  %v2256_v22 = vmax.f32 %v2001_v8, %v2945_v33 }
 0x204   : > { %v2515_v2 = vsel %vm2494_vm0, %v2463_v28, %v2462_v40  ;;  %v1734_v25 = vadd.f32 %v1662_v55, %v1532_v52 }
 0x205   : > { %v2257_v60 = vmax.f32 %v2035_v9, %v2946_v49  ;;  %v2258_v17 = vmax.f32 %v2036_v32, %v2947_v41  ;;  %v2259_v38 = vmax.f32 %v2037_v3, %v2948_v30  ;;  %v2322_v37 = vadd.f32 %v4101_v0, %v2256_v22 }
 0x206   : > { %v2516_v57 = vsel %vm2496_vm1, %v2464_v39, %v2515_v2  ;;  %v1328_v30 = vadd.f32 %v1258_v53, %v3991_v26  ;;  %v1936_v5 = vadd.f32 %v1864_v35, %v1734_v25 }
 0x207   : > { %v2323_v34 = vadd.f32 %v4119_v54, %v2257_v60  ;;  %v2324_v21 = vadd.f32 %v4107_v15, %v2258_v17  ;;  %v2325_v6 = vadd.f32 %v4122_v27, %v2259_v38  ;;  %v1463_v43 = vpop.f32.mrf.mxu2  ;;  %v1867_v51 = vpop.f32.mrf.mxu0  ;;  %v2370_v46 = vmax.f32 %v2322_v37, 0.0 }
 0x208   : > { %v2517_v14 = vsel %vm2498_vm2, %v2465_v62, %v2516_v57  ;;  %v1533_v23 = vadd.f32 %v1463_v43, %v1328_v30 }
 0x209   : > { %v2371_v42 = vmax.f32 %v2323_v34, 0.0  ;;  %v2372_v50 = vmax.f32 %v2324_v21, 0.0  ;;  %v2373_v4 = vmax.f32 %v2325_v6, 0.0  ;;  %v1261_v20 = vpop.f32.mrf.mxu1  ;;  %v1665_v7 = vpop.f32.mrf.mxu3  ;;  %v2466_v59 = vperm.slane %v2370_v46, 0 }
 0x20a   : > { %v1329_v32 = vadd.f32 %v1261_v20, %v3998_v18  ;;  %v1735_v21 = vadd.f32 %v1665_v7, %v1533_v23 }
 0x20b   : > { %v2467_v36 = vperm.slane %v2371_v42, 0  ;;  %v2468_v63 = vperm.slane %v2372_v50, 0  ;;  %v2518_v8 = vsel %vm2500_vm3, %v2466_v59, %v2517_v14  ;;  %v2469_v48 = vperm.slane %v2373_v4, 0 }
 0x20c   : > { %v1937_v4 = vadd.f32 %v1867_v51, %v1735_v21 }
 0x20d   : > { %v2519_v58 = vsel %vm2502_vm4, %v2467_v36, %v2518_v8 }
 0x20e   : > { %v2520_v9 = vsel %vm2504_vm5, %v2468_v63, %v2519_v58 }
 0x20f   : > { %v2521_v3 = vsel %vm2506_vm6, %v2469_v48, %v2520_v9  ;;  %v1466_v33 = vpop.f32.mrf.mxu2  ;;  %v1870_v40 = vpop.f32.mrf.mxu0 }
 0x210   : > { %2551 = vst [vmem:[%s4146_s24 + $0x10] sm:$0xff] %v2521_v3  ;;  %v1534_v56 = vadd.f32 %v1466_v33, %v1329_v32 }
 0x211   : > { %v1264_v28 = vpop.f32.mrf.mxu1  ;;  %v1668_v49 = vpop.f32.mrf.mxu3 }
 0x212   : > { %v1736_v41 = vadd.f32 %v1668_v49, %v1534_v56  ;;  %v1330_v2 = vadd.f32 %v1264_v28, %v4005_v19 }
 0x214   : > { %v1938_v22 = vadd.f32 %v1870_v40, %v1736_v41 }
 0x216   : > { %v2002_v39 = vmax.f32 %v1936_v5, %v1938_v22 }
 0x217   : > { %v1469_v60 = vpop.f32.mrf.mxu2  ;;  %v1873_v18 = vpop.f32.mrf.mxu0 }
 0x218   : > { %v2038_v17 = vrot.slane %v2002_v39, 2  ;;  %v2039_v38 = vrot.slane %v2002_v39, 4  ;;  %v2040_v37 = vrot.slane %v2002_v39, 6  ;;  %v2949_v34 = vrot.slane %v2002_v39, 9 }
 0x219   : > { %v1535_v55 = vadd.f32 %v1469_v60, %v1330_v2  ;;  %v1267_v6 = vpop.f32.mrf.mxu1  ;;  %v1671_v57 = vpop.f32.mrf.mxu3 }
 0x21a   : > { %v2950_v46 = vrot.slane %v2038_v17, 9  ;;  %v2951_v62 = vrot.slane %v2039_v38, 9  ;;  %v2952_v42 = vrot.slane %v2040_v37, 9  ;;  %v2260_v26 = vmax.f32 %v2002_v39, %v2949_v34 }
 0x21b   : > { %v1737_v35 = vadd.f32 %v1671_v57, %v1535_v55 }
 0x21c   : > { %v2261_v53 = vmax.f32 %v2038_v17, %v2950_v46  ;;  %v2262_v43 = vmax.f32 %v2039_v38, %v2951_v62  ;;  %v2263_v50 = vmax.f32 %v2040_v37, %v2952_v42  ;;  %v2326_v19 = vadd.f32 %v4081_v24, %v2260_v26 }
 0x21d   : > { %v1939_v20 = vadd.f32 %v1873_v18, %v1737_v35 }
 0x21e   : > { %v2327_v12 = vadd.f32 %v4090_v47, %v2261_v53  ;;  %v2328_v59 = vadd.f32 %v4087_v11, %v2262_v43  ;;  %v2374_v7 = vmax.f32 %v2326_v19, 0.0  ;;  %v2329_v8 = vadd.f32 %v4096_v45, %v2263_v50 }
 0x21f   : > { %v2003_v14 = vmax.f32 %v1937_v4, %v1939_v20  ;;  %v1472_v36 = vpop.f32.mrf.mxu2  ;;  %v1876_v63 = vpop.f32.mrf.mxu0  ;;  %v1331_v53 = vadd.f32 %v1267_v6, %v4012_v1 }
 0x220   : > { %v2375_v52 = vmax.f32 %v2327_v12, 0.0  ;;  %v2376_v48 = vmax.f32 %v2328_v59, 0.0  ;;  %v2470_v51 = vperm.slane %v2374_v7, 0  ;;  %v2377_v30 = vmax.f32 %v2329_v8, 0.0 }
 0x221   : > { %v2041_v58 = vrot.slane %v2003_v14, 2  ;;  %v2042_v9 = vrot.slane %v2003_v14, 4  ;;  %v2043_v32 = vrot.slane %v2003_v14, 6  ;;  %v2953_v3 = vrot.slane %v2003_v14, 9  ;;  %v1270_v33 = vpop.f32.mrf.mxu1  ;;  %v1674_v40 = vpop.f32.mrf.mxu3 }
 0x222   : > { %v2471_v25 = vperm.slane %v2375_v52, 0  ;;  %v2472_v5 = vperm.slane %v2376_v48, 0  ;;  %v2473_v57 = vperm.slane %v2377_v30, 0  ;;  %v1536_v12 = vadd.f32 %v1472_v36, %v1331_v53 }
 0x223   : > { %v2954_v56 = vrot.slane %v2041_v58, 9  ;;  %v2955_v28 = vrot.slane %v2042_v9, 9  ;;  %v2956_v49 = vrot.slane %v2043_v32, 9  ;;  %v2264_v41 = vmax.f32 %v2003_v14, %v2953_v3 }
 0x224   : > { %v2522_v22 = vsel %vm2494_vm0, %v2471_v25, %v2470_v51  ;;  %v1738_v1 = vadd.f32 %v1674_v40, %v1536_v12  ;;  %v1332_v51 = vadd.f32 %v1270_v33, %v4019_v44 }
 0x225   : > { %v2265_v23 = vmax.f32 %v2041_v58, %v2954_v56  ;;  %v2266_v39 = vmax.f32 %v2042_v9, %v2955_v28  ;;  %v2267_v2 = vmax.f32 %v2043_v32, %v2956_v49  ;;  %v2330_v60 = vadd.f32 %v4101_v0, %v2264_v41 }
 0x226   : > { %v2523_v21 = vsel %vm2496_vm1, %v2472_v5, %v2522_v22  ;;  %v1940_v36 = vadd.f32 %v1876_v63, %v1738_v1 }
 0x227   : > { %v2331_v18 = vadd.f32 %v4119_v54, %v2265_v23  ;;  %v2332_v17 = vadd.f32 %v4107_v15, %v2266_v39  ;;  %v2333_v38 = vadd.f32 %v4122_v27, %v2267_v2  ;;  %v1475_v37 = vpop.f32.mrf.mxu2  ;;  %v1879_v34 = vpop.f32.mrf.mxu0  ;;  %v2378_v55 = vmax.f32 %v2330_v60, 0.0 }
 0x228   : > { %v2524_v50 = vsel %vm2498_vm2, %v2473_v57, %v2523_v21  ;;  %v1537_v56 = vadd.f32 %v1475_v37, %v1332_v51 }
 0x229   : > { %v2379_v46 = vmax.f32 %v2331_v18, 0.0  ;;  %v2380_v62 = vmax.f32 %v2332_v17, 0.0  ;;  %v2381_v42 = vmax.f32 %v2333_v38, 0.0  ;;  %v1273_v26 = vpop.f32.mrf.mxu1  ;;  %v1677_v35 = vpop.f32.mrf.mxu3  ;;  %v2474_v43 = vperm.slane %v2378_v55, 0 }
 0x22a   : > { %v1333_v8 = vadd.f32 %v1273_v26, %v4026_v29  ;;  %v1739_v39 = vadd.f32 %v1677_v35, %v1537_v56 }
 0x22b   : > { %v2475_v19 = vperm.slane %v2379_v46, 0  ;;  %v2476_v4 = vperm.slane %v2380_v62, 0  ;;  %v2525_v20 = vsel %vm2500_vm3, %v2474_v43, %v2524_v50  ;;  %v2477_v59 = vperm.slane %v2381_v42, 0 }
 0x22c   : > { %v1941_v55 = vadd.f32 %v1879_v34, %v1739_v39 }
 0x22d   : > { %v2526_v7 = vsel %vm2502_vm4, %v2475_v19, %v2525_v20 }
 0x22e   : > { %v2527_v14 = vsel %vm2504_vm5, %v2476_v4, %v2526_v7 }
 0x22f   : > { %v2528_v52 = vsel %vm2506_vm6, %v2477_v59, %v2527_v14  ;;  %v1478_v48 = vpop.f32.mrf.mxu2  ;;  %v1882_v58 = vpop.f32.mrf.mxu0 }
 0x230   : > { %2552 = vst [vmem:[%s4146_s24 + $0x18] sm:$0xff] %v2528_v52  ;;  %v1538_v6 = vadd.f32 %v1478_v48, %v1333_v8 }
 0x231   : > { %v1276_v9 = vpop.f32.mrf.mxu1  ;;  %v1680_v32 = vpop.f32.mrf.mxu3 }
 0x232   : > { %v1740_v3 = vadd.f32 %v1680_v32, %v1538_v6  ;;  %v1334_v49 = vadd.f32 %v1276_v9, %v4033_v13 }
 0x234   : > { %v1942_v25 = vadd.f32 %v1882_v58, %v1740_v3 }
 0x236   : > { %v2004_v28 = vmax.f32 %v1940_v36, %v1942_v25 }
 0x237   : > { %v1481_v41 = vpop.f32.mrf.mxu2  ;;  %v1885_v29 = vpop.f32.mrf.mxu0 }
 0x238   : > { %v2044_v30 = vrot.slane %v2004_v28, 2  ;;  %v2045_v5 = vrot.slane %v2004_v28, 4  ;;  %v2046_v22 = vrot.slane %v2004_v28, 6  ;;  %v2957_v23 = vrot.slane %v2004_v28, 9 }
 0x239   : > { %v1539_v40 = vadd.f32 %v1481_v41, %v1334_v49  ;;  %v1279_v2 = vpop.f32.mrf.mxu1  ;;  %v1683_v60 = vpop.f32.mrf.mxu3 }
 0x23a   : > { %v2958_v18 = vrot.slane %v2044_v30, 9  ;;  %v2959_v17 = vrot.slane %v2045_v5, 9  ;;  %v2960_v38 = vrot.slane %v2046_v22, 9  ;;  %v2268_v44 = vmax.f32 %v2004_v28, %v2957_v23 }
 0x23b   : > { %v1741_v63 = vadd.f32 %v1683_v60, %v1539_v40 }
 0x23c   : > { %v2269_v33 = vmax.f32 %v2044_v30, %v2958_v18  ;;  %v2270_v37 = vmax.f32 %v2045_v5, %v2959_v17  ;;  %v2271_v21 = vmax.f32 %v2046_v22, %v2960_v38  ;;  %v2334_v13 = vadd.f32 %v4081_v24, %v2268_v44 }
 0x23d   : > { %v1943_v57 = vadd.f32 %v1885_v29, %v1741_v63  ;;  %v1335_v38 = vadd.f32 %v1279_v2, %v4040_v61 }
 0x23e   : > { %v2335_v46 = vadd.f32 %v4090_v47, %v2269_v33  ;;  %v2336_v62 = vadd.f32 %v4087_v11, %v2270_v37  ;;  %v2382_v42 = vmax.f32 %v2334_v13, 0.0  ;;  %v2337_v53 = vadd.f32 %v4096_v45, %v2271_v21 }
 0x23f   : > { %v2005_v26 = vmax.f32 %v1941_v55, %v1943_v57  ;;  %v1888_v35 = vpop.f32.mrf.mxu0 }
 0x240   : > { %v2383_v43 = vmax.f32 %v2335_v46, 0.0  ;;  %v2384_v50 = vmax.f32 %v2336_v62, 0.0  ;;  %v1484_v19 = vpop.f32.mrf.mxu2  ;;  %v2478_v34 = vperm.slane %v2382_v42, 0  ;;  %v2385_v6 = vmax.f32 %v2337_v53, 0.0 }
 0x241   : > { %v2047_v4 = vrot.slane %v2005_v26, 2  ;;  %v2048_v20 = vrot.slane %v2005_v26, 4  ;;  %v2049_v12 = vrot.slane %v2005_v26, 6  ;;  %v2961_v59 = vrot.slane %v2005_v26, 9  ;;  %v1282_v7 = vpop.f32.mrf.mxu1  ;;  %v1686_v14 = vpop.f32.mrf.mxu3 }
 0x242   : > { %v2479_v8 = vperm.slane %v2383_v43, 0  ;;  %v2480_v9 = vperm.slane %v2384_v50, 0  ;;  %v2481_v22 = vperm.slane %v2385_v6, 0  ;;  %v1540_v55 = vadd.f32 %v1484_v19, %v1335_v38 }
 0x243   : > { %v2962_v52 = vrot.slane %v2047_v4, 9  ;;  %v2963_v48 = vrot.slane %v2048_v20, 9  ;;  %v2964_v58 = vrot.slane %v2049_v12, 9  ;;  %v2272_v1 = vmax.f32 %v2005_v26, %v2961_v59 }
 0x244   : > { %v2529_v32 = vsel %vm2494_vm0, %v2479_v8, %v2478_v34  ;;  %v1742_v26 = vadd.f32 %v1686_v14, %v1540_v55  ;;  %v1336_v50 = vadd.f32 %v1282_v7, %v4047_v10 }
 0x245   : > { %v2273_v3 = vmax.f32 %v2047_v4, %v2962_v52  ;;  %v2274_v51 = vmax.f32 %v2048_v20, %v2963_v48  ;;  %v2275_v36 = vmax.f32 %v2049_v12, %v2964_v58  ;;  %v2338_v25 = vadd.f32 %v4101_v0, %v2272_v1 }
 0x246   : > { %v2530_v29 = vsel %vm2496_vm1, %v2480_v9, %v2529_v32  ;;  %v1944_v4 = vadd.f32 %v1888_v35, %v1742_v26 }
 0x247   : > { %v2339_v56 = vadd.f32 %v4119_v54, %v2273_v3  ;;  %v2340_v28 = vadd.f32 %v4107_v15, %v2274_v51  ;;  %v2341_v49 = vadd.f32 %v4122_v27, %v2275_v36  ;;  %v1891_v41 = vpop.f32.mrf.mxu0  ;;  %v2386_v30 = vmax.f32 %v2338_v25, 0.0 }
 0x248   : > { %v1487_v5 = vpop.f32.mrf.mxu2  ;;  %v2531_v17 = vsel %vm2498_vm2, %v2481_v22, %v2530_v29 }
 0x249   : > { %v2387_v23 = vmax.f32 %v2339_v56, 0.0  ;;  %v2388_v39 = vmax.f32 %v2340_v28, 0.0  ;;  %v2389_v40 = vmax.f32 %v2341_v49, 0.0  ;;  %v1689_v60 = vpop.f32.mrf.mxu3  ;;  %v2482_v18 = vperm.slane %v2386_v30, 0  ;;  %v1285_v33 = vpop.f32.mrf.mxu1 }
 0x24a   : > { %v1337_v62 = vadd.f32 %v1285_v33, %v4054_v16  ;;  %v1541_v59 = vadd.f32 %v1487_v5, %v1336_v50 }
 0x24b   : > { %v2483_v44 = vperm.slane %v2387_v23, 0  ;;  %v2484_v63 = vperm.slane %v2388_v39, 0  ;;  %v2532_v37 = vsel %vm2500_vm3, %v2482_v18, %v2531_v17  ;;  %v2485_v21 = vperm.slane %v2389_v40, 0 }
 0x24c   : > { %v1743_v14 = vadd.f32 %v1689_v60, %v1541_v59 }
 0x24d   : > { %v2533_v13 = vsel %vm2502_vm4, %v2483_v44, %v2532_v37 }
 0x24e   : > { %v2534_v57 = vsel %vm2504_vm5, %v2484_v63, %v2533_v13 }
 0x24f   : > { %v2535_v46 = vsel %vm2506_vm6, %v2485_v21, %v2534_v57  ;;  %v1894_v2 = vpop.f32.mrf.mxu0 }
 0x250   : > { %2553 = vst [vmem:[%s4146_s24 + $0x20] sm:$0xff] %v2535_v46  ;;  %v1490_v42 = vpop.f32.mrf.mxu2 }
 0x251   : > { %v1542_v53 = vadd.f32 %v1490_v42, %v1337_v62  ;;  %v1692_v61 = vpop.f32.mrf.mxu3  ;;  %v1288_v20 = vpop.f32.mrf.mxu1 }
 0x252   : > { %v1338_v34 = vadd.f32 %v1288_v20, %v4061_v31  ;;  %v1945_v31 = vadd.f32 %v1891_v41, %v1743_v14 }
 0x253   : > { %v1744_v43 = vadd.f32 %v1692_v61, %v1542_v53 }
 0x255   : > { %v1946_v12 = vadd.f32 %v1894_v2, %v1744_v43 }
 0x257   : > { %v2006_v19 = vmax.f32 %v1944_v4, %v1946_v12  ;;  %v1897_v10 = vpop.f32.mrf.mxu0 }
 0x258   : > { %v1493_v8 = vpop.f32.mrf.mxu2 }
 0x259   : > { %v2050_v52 = vrot.slane %v2006_v19, 2  ;;  %v2051_v48 = vrot.slane %v2006_v19, 4  ;;  %v2052_v16 = vrot.slane %v2006_v19, 6  ;;  %v2965_v58 = vrot.slane %v2006_v19, 9  ;;  %v1695_v1 = vpop.f32.mrf.mxu3 }
 0x25a   : > { %v1543_v6 = vadd.f32 %v1493_v8, %v1338_v34 }
 0x25b   : > { %v2966_v9 = vrot.slane %v2050_v52, 9  ;;  %v2967_v32 = vrot.slane %v2051_v48, 9  ;;  %v2968_v3 = vrot.slane %v2052_v16, 9  ;;  %v2276_v51 = vmax.f32 %v2006_v19, %v2965_v58 }
 0x25c   : > { %v1745_v35 = vadd.f32 %v1695_v1, %v1543_v6 }
 0x25d   : > { %v2277_v7 = vmax.f32 %v2050_v52, %v2966_v9  ;;  %v2278_v36 = vmax.f32 %v2051_v48, %v2967_v32  ;;  %v2279_v25 = vmax.f32 %v2052_v16, %v2968_v3  ;;  %v2342_v56 = vadd.f32 %v4081_v24, %v2276_v51 }
 0x25e   : > { %v1947_v28 = vadd.f32 %v1897_v10, %v1745_v35 }
 0x25f   : > { %v2343_v49 = vadd.f32 %v4090_v47, %v2277_v7  ;;  %v2344_v29 = vadd.f32 %v4087_v11, %v2278_v36  ;;  %v2390_v30 = vmax.f32 %v2342_v56, 0.0  ;;  %v2345_v22 = vadd.f32 %v4096_v45, %v2279_v25 }
 0x260   : > { %v2007_v5 = vmax.f32 %v1945_v31, %v1947_v28 }
 0x261   : > { %v2391_v23 = vmax.f32 %v2343_v49, 0.0  ;;  %v2392_v39 = vmax.f32 %v2344_v29, 0.0  ;;  %v2486_v38 = vperm.slane %v2390_v30, 0  ;;  %v2393_v37 = vmax.f32 %v2345_v22, 0.0 }
 0x262   : > { %v2053_v40 = vrot.slane %v2007_v5, 2  ;;  %v2054_v60 = vrot.slane %v2007_v5, 4  ;;  %v2055_v18 = vrot.slane %v2007_v5, 6  ;;  %v2969_v17 = vrot.slane %v2007_v5, 9 }
 0x263   : > { %v2487_v44 = vperm.slane %v2391_v23, 0  ;;  %v2488_v47 = vperm.slane %v2392_v39, 0  ;;  %v2489_v53 = vperm.slane %v2393_v37, 0 }
 0x264   : > { %v2970_v63 = vrot.slane %v2053_v40, 9  ;;  %v2971_v24 = vrot.slane %v2054_v60, 9  ;;  %v2972_v41 = vrot.slane %v2055_v18, 9  ;;  %v2280_v33 = vmax.f32 %v2007_v5, %v2969_v17 }
 0x265   : > { %v2536_v11 = vsel %vm2494_vm0, %v2487_v44, %v2486_v38 }
 0x266   : > { %v2281_v21 = vmax.f32 %v2053_v40, %v2970_v63  ;;  %v2282_v13 = vmax.f32 %v2054_v60, %v2971_v24  ;;  %v2283_v55 = vmax.f32 %v2055_v18, %v2972_v41  ;;  %v2346_v45 = vadd.f32 %v4101_v0, %v2280_v33 }
 0x267   : > { %v2537_v42 = vsel %vm2496_vm1, %v2488_v47, %v2536_v11 }
 0x268   : > { %v2347_v57 = vadd.f32 %v4119_v54, %v2281_v21  ;;  %v2348_v46 = vadd.f32 %v4107_v15, %v2282_v13  ;;  %v2349_v62 = vadd.f32 %v4122_v27, %v2283_v55  ;;  %v2394_v26 = vmax.f32 %v2346_v45, 0.0 }
 0x269   : > { %v2538_v4 = vsel %vm2498_vm2, %v2489_v53, %v2537_v42 }
 0x26a   : > { %v2395_v61 = vmax.f32 %v2347_v57, 0.0  ;;  %v2396_v2 = vmax.f32 %v2348_v46, 0.0  ;;  %v2397_v43 = vmax.f32 %v2349_v62, 0.0  ;;  %v2490_v50 = vperm.slane %v2394_v26, 0 }
 0x26c   : > { %v2491_v20 = vperm.slane %v2395_v61, 0  ;;  %v2492_v12 = vperm.slane %v2396_v2, 0  ;;  %v2539_v0 = vsel %vm2500_vm3, %v2490_v50, %v2538_v4  ;;  %v2493_v54 = vperm.slane %v2397_v43, 0 }
 0x26e   : > { %v2540_v15 = vsel %vm2502_vm4, %v2491_v20, %v2539_v0 }
 0x26f   : > { %v2541_v27 = vsel %vm2504_vm5, %v2492_v12, %v2540_v15 }
 0x270   : > { %v2542_v59 = vsel %vm2506_vm6, %v2493_v54, %v2541_v27 }
 0x271   : > { %2554 = vst [vmem:[%s4146_s24 + $0x28] sm:$0xff] %v2542_v59 }
 0x272 PF: > { %s13_s14 = sadd.s32 1, %s3072_s14   ;;  %s4325_s12 = smov %s3068_s13 }
 0x273   : > { %p10_p5 = scmp.ge.s32.totalorder %s13_s14, 4   ;;  %s4326_s13 = smov %s4328_s15 }
 0x275   :  { %12 = sbr.rel (!%p10_p5) target bundleno = 2 (0x2), region = 73 }

// kernel: cnn_forward.4
= control target key start
LH: loop header
LB: loop body
LE: loop exit
PB: predicated region body
PF: predicated region fallthrough
CT: control target
= control target key end

     0   :  { %s4545_s12 = smov 0   ;;  %s4547_s13 = smov 0   ;;  %s5666_s0 = inlined_call_operand.vmem [shape: f32[2,30,32,27], index: 0, kind: input, shape index: {}]   ;;  %s5667_s1 = inlined_call_operand.vmem [shape: f32[1,1,27,128], index: 1, kind: input, shape index: {}]   ;;  %s5668_s2 = inlined_call_operand.vmem [shape: f32[1,128], index: 2, kind: input, shape index: {}]   ;;  %s5669_s3 = inlined_call_operand.vmem [shape: f32[2,15,16,128], index: 3, kind: output, shape index: {}]  }
   0x1   :  { %s4549_s14 = smov 0  }
   0x2 LB: > { %s25_s15 = sadd.s32 1, %s4519_s13  ;;  %p4093_p0 = scmp.ge.s32.totalorder %s4523_s14, 1  ;;  %s4523_s14 = sphi %s4549_s14, %s13_s14   ;;  %s4519_s13 = sphi %s4547_s13, %s5671_s13   ;;  %s4515_s12 = sphi %s4545_s12, %s5670_s12  }
   0x3   : > { %p27_p1 = scmp.ge.s32.totalorder %s25_s15, 2  ;;  %p151_p2 = scmp.lt.s32.totalorder %s4523_s14, 3 }
   0x5   : > { %s5673_s15 = smov (%p27_p1, %s25_s15), 0  ;;  %p152_p3 = pnand %p4093_p0, %p151_p2 }
   0x6   : > { %p180_p4 = scmp.lt.s32.totalorder (!%p152_p3), %s4515_s12, 1 }
   0x7   : > { %155 = sbr.rel (%p152_p3) target bundleno = 602 (0x25a), region = 32 }
   0xc   : > { %v200_v0 = vld [vmem:[%s5667_s1 + $0x18] sm:$0x7]  ;;  %vm684_vm0 = vcmask 1042432   ;;  %v199_v1 = vld [vmem:[%s5667_s1 + $0x10] sm:$0xff]  ;;  %v198_v2 = vld [vmem:[%s5667_s1 + $0x8] sm:$0xff]  ;;  %s5675_s12 = smov (!%p180_p4, %s4515_s12), 1 }
   0xd   : > { %4096 = vmatpush.msk.msra.mxu0 %vm684_vm0, %v200_v0  ;;  %4459 = vmatpush.msk.msra.mxu1 %vm684_vm0, %v200_v0  ;;  %v197_v3 = vld [vmem:[%s5667_s1] sm:$0xff]  ;;  %s4471_s24 = smul.u32 960, %s5675_s12  ;;  %vm323_vm1 = vcmask 220160   ;;  %vm3723_vm2 = vcmask 1041409   ;;  %vm3725_vm3 = vcmask 1042434   ;;  %vm3727_vm4 = vcmask 1043459  }
   0xe   : > { %4460 = vmatpush.msk.msra.mxu2 %vm684_vm0, %v200_v0  ;;  %4461 = vmatpush.msk.msra.mxu3 %vm684_vm0, %v200_v0  ;;  %vm3729_vm5 = vcmask 1044484   ;;  %vm3731_vm6 = vcmask 1045509   ;;  %vm3733_vm7 = vcmask 1046534   ;;  %vm3735_vm8 = vcmask 1047559   ;;  %s4472_s30 = smul.u32 240, %s5675_s12 }
   0xf   : > { %701 = vmatpush.msra.mxu0 %v199_v1  ;;  %4462 = vmatpush.msra.mxu1 %v199_v1  ;;  %s4581_s27 = scalar_lea.vmem %s5666_s0, %s4471_s24 }
  0x10   : > { %4463 = vmatpush.msra.mxu2 %v199_v1  ;;  %4464 = vmatpush.msra.mxu3 %v199_v1  ;;  %v203_v4 = vld [vmem:[%s4581_s27] sm:$0xff]  ;;  %v233_v5 = vld [vmem:[%s4581_s27 + $0xf0] sm:$0xff]  ;;  %v204_v8 = vld [vmem:[%s4581_s27 + $0x8] sm:$0xff]  ;;  %s4872_s6 = scalar_lea.vmem %s5669_s3, %s4472_s30 }
  0x11   : > { %702 = vmatpush.msra.mxu0 %v198_v2  ;;  %4465 = vmatpush.msra.mxu1 %v198_v2  ;;  %v263_v6 = vld [vmem:[%s4581_s27 + $0x1e0] sm:$0xff]  ;;  %v293_v7 = vld [vmem:[%s4581_s27 + $0x2d0] sm:$0xff]  ;;  %v234_v9 = vld [vmem:[%s4581_s27 + $0xf8] sm:$0xff] }
  0x12   : > { %4466 = vmatpush.msra.mxu2 %v198_v2  ;;  %4467 = vmatpush.msra.mxu3 %v198_v2  ;;  %v264_v10 = vld [vmem:[%s4581_s27 + $0x1e8] sm:$0xff]  ;;  %v294_v11 = vld [vmem:[%s4581_s27 + $0x2d8] sm:$0xff]  ;;  %v205_v12 = vld [vmem:[%s4581_s27 + $0x10] sm:$0xff] }
  0x13   : > { %703 = vmatpush.msra.mxu0 %v197_v3  ;;  %4468 = vmatpush.msra.mxu1 %v197_v3  ;;  %v235_v13 = vld [vmem:[%s4581_s27 + $0x100] sm:$0xff]  ;;  %v265_v14 = vld [vmem:[%s4581_s27 + $0x1f0] sm:$0xff]  ;;  %v206_v16 = vld [vmem:[%s4581_s27 + $0x18] sm:$0xff] }
  0x14   : > { %4469 = vmatpush.msra.mxu2 %v197_v3  ;;  %4470 = vmatpush.msra.mxu3 %v197_v3  ;;  %v295_v15 = vld [vmem:[%s4581_s27 + $0x2e0] sm:$0xff]  ;;  %v236_v17 = vld [vmem:[%s4581_s27 + $0x108] sm:$0xff]  ;;  %v266_v18 = vld [vmem:[%s4581_s27 + $0x1f8] sm:$0xff] }
  0x15   : > { %4097 = vmatmul.msk.f32.vlgmr.msra.gmra.mxu0 %vm323_vm1, %v203_v4  ;;  %4127 = vmatmul.msk.f32.vlgmr.msra.gmra.mxu1 %vm323_vm1, %v233_v5  ;;  %v296_v19 = vld [vmem:[%s4581_s27 + $0x2e8] sm:$0xff]  ;;  %v207_v20 = vld [vmem:[%s4581_s27 + $0x20] sm:$0xff]  ;;  %v237_v21 = vld [vmem:[%s4581_s27 + $0x110] sm:$0xff] }
  0x16   : > { %4157 = vmatmul.msk.f32.vlgmr.msra.gmra.mxu2 %vm323_vm1, %v263_v6  ;;  %4187 = vmatmul.msk.f32.vlgmr.msra.gmra.mxu3 %vm323_vm1, %v293_v7  ;;  %v267_v22 = vld [vmem:[%s4581_s27 + $0x200] sm:$0xff]  ;;  %v297_v23 = vld [vmem:[%s4581_s27 + $0x2f0] sm:$0xff]  ;;  %v208_v24 = vld [vmem:[%s4581_s27 + $0x28] sm:$0xff] }
  0x17   : > { %v238_v25 = vld [vmem:[%s4581_s27 + $0x118] sm:$0xff]  ;;  %v268_v26 = vld [vmem:[%s4581_s27 + $0x208] sm:$0xff]  ;;  %v209_v28 = vld [vmem:[%s4581_s27 + $0x30] sm:$0xff] }
  0x18   : > { %v298_v27 = vld [vmem:[%s4581_s27 + $0x2f8] sm:$0xff]  ;;  %v239_v29 = vld [vmem:[%s4581_s27 + $0x120] sm:$0xff]  ;;  %v269_v30 = vld [vmem:[%s4581_s27 + $0x210] sm:$0xff] }
  0x19   : > { %v299_v31 = vld [vmem:[%s4581_s27 + $0x300] sm:$0xff]  ;;  %v210_v32 = vld [vmem:[%s4581_s27 + $0x38] sm:$0xff]  ;;  %v240_v33 = vld [vmem:[%s4581_s27 + $0x128] sm:$0xff] }
  0x1a   : > { %v270_v34 = vld [vmem:[%s4581_s27 + $0x218] sm:$0xff]  ;;  %v300_v35 = vld [vmem:[%s4581_s27 + $0x308] sm:$0xff]  ;;  %v211_v36 = vld [vmem:[%s4581_s27 + $0x40] sm:$0xff] }
  0x1b   : > { %v241_v37 = vld [vmem:[%s4581_s27 + $0x130] sm:$0xff]  ;;  %v271_v38 = vld [vmem:[%s4581_s27 + $0x220] sm:$0xff]  ;;  %v212_v40 = vld [vmem:[%s4581_s27 + $0x48] sm:$0xff] }
  0x1c   : > { %v301_v39 = vld [vmem:[%s4581_s27 + $0x310] sm:$0xff]  ;;  %v242_v41 = vld [vmem:[%s4581_s27 + $0x138] sm:$0xff]  ;;  %v272_v42 = vld [vmem:[%s4581_s27 + $0x228] sm:$0xff] }
  0x1d   : > { %4098 = vmatmul.msk.f32.gmra.mxu0 %vm323_vm1, %v204_v8  ;;  %4128 = vmatmul.msk.f32.gmra.mxu1 %vm323_vm1, %v234_v9  ;;  %v302_v43 = vld [vmem:[%s4581_s27 + $0x318] sm:$0xff]  ;;  %v213_v44 = vld [vmem:[%s4581_s27 + $0x50] sm:$0xff]  ;;  %v243_v45 = vld [vmem:[%s4581_s27 + $0x140] sm:$0xff] }
  0x1e   : > { %4158 = vmatmul.msk.f32.gmra.mxu2 %vm323_vm1, %v264_v10  ;;  %4188 = vmatmul.msk.f32.gmra.mxu3 %vm323_vm1, %v294_v11  ;;  %v273_v46 = vld [vmem:[%s4581_s27 + $0x230] sm:$0xff]  ;;  %v303_v47 = vld [vmem:[%s4581_s27 + $0x320] sm:$0xff]  ;;  %v214_v48 = vld [vmem:[%s4581_s27 + $0x58] sm:$0xff] }
  0x1f   : > { %v244_v49 = vld [vmem:[%s4581_s27 + $0x148] sm:$0xff]  ;;  %v274_v50 = vld [vmem:[%s4581_s27 + $0x238] sm:$0xff]  ;;  %v215_v52 = vld [vmem:[%s4581_s27 + $0x60] sm:$0xff] }
  0x20   : > { %v304_v51 = vld [vmem:[%s4581_s27 + $0x328] sm:$0xff]  ;;  %v245_v53 = vld [vmem:[%s4581_s27 + $0x150] sm:$0xff]  ;;  %v275_v54 = vld [vmem:[%s4581_s27 + $0x240] sm:$0xff] }
  0x21   : > { %v305_v55 = vld [vmem:[%s4581_s27 + $0x330] sm:$0xff]  ;;  %v216_v56 = vld [vmem:[%s4581_s27 + $0x68] sm:$0xff]  ;;  %v246_v57 = vld [vmem:[%s4581_s27 + $0x158] sm:$0xff] }
  0x22   : > { %v276_v58 = vld [vmem:[%s4581_s27 + $0x248] sm:$0xff]  ;;  %v306_v59 = vld [vmem:[%s4581_s27 + $0x338] sm:$0xff]  ;;  %v217_v60 = vld [vmem:[%s4581_s27 + $0x70] sm:$0xff] }
  0x23   : > { %v247_v61 = vld [vmem:[%s4581_s27 + $0x160] sm:$0xff]  ;;  %v277_v62 = vld [vmem:[%s4581_s27 + $0x250] sm:$0xff]  ;;  %v218_v0 = vld [vmem:[%s4581_s27 + $0x78] sm:$0xff] }
  0x24   : > { %v307_v63 = vld [vmem:[%s4581_s27 + $0x340] sm:$0xff]  ;;  %v248_v1 = vld [vmem:[%s4581_s27 + $0x168] sm:$0xff]  ;;  %v278_v2 = vld [vmem:[%s4581_s27 + $0x258] sm:$0xff] }
  0x25   : > { %4099 = vmatmul.msk.f32.gmra.mxu0 %vm323_vm1, %v205_v12  ;;  %4129 = vmatmul.msk.f32.gmra.mxu1 %vm323_vm1, %v235_v13  ;;  %v308_v3 = vld [vmem:[%s4581_s27 + $0x348] sm:$0xff]  ;;  %v219_v6 = vld [vmem:[%s4581_s27 + $0x80] sm:$0xff]  ;;  %v249_v7 = vld [vmem:[%s4581_s27 + $0x170] sm:$0xff] }
  0x26   : > { %4159 = vmatmul.msk.f32.gmra.mxu2 %vm323_vm1, %v265_v14  ;;  %4189 = vmatmul.msk.f32.gmra.mxu3 %vm323_vm1, %v295_v15  ;;  %v279_v8 = vld [vmem:[%s4581_s27 + $0x260] sm:$0xff]  ;;  %v309_v9 = vld [vmem:[%s4581_s27 + $0x350] sm:$0xff]  ;;  %v220_v14 = vld [vmem:[%s4581_s27 + $0x88] sm:$0xff] }
  0x27   : > { %v250_v15 = vld [vmem:[%s4581_s27 + $0x178] sm:$0xff] }
  0x2d   : > { %4100 = vmatmul.msk.f32.gmra.mxu0 %vm323_vm1, %v206_v16  ;;  %4130 = vmatmul.msk.f32.gmra.mxu1 %vm323_vm1, %v236_v17  ;;  %v280_v16 = vld [vmem:[%s4581_s27 + $0x268] sm:$0xff]  ;;  %v310_v17 = vld [vmem:[%s4581_s27 + $0x358] sm:$0xff] }
  0x2e   : > { %4160 = vmatmul.msk.f32.gmra.mxu2 %vm323_vm1, %v266_v18  ;;  %4190 = vmatmul.msk.f32.gmra.mxu3 %vm323_vm1, %v296_v19 }
  0x35   : > { %4101 = vmatmul.msk.f32.gmra.mxu0 %vm323_vm1, %v207_v20  ;;  %4131 = vmatmul.msk.f32.gmra.mxu1 %vm323_vm1, %v237_v21 }
  0x36   : > { %4161 = vmatmul.msk.f32.gmra.mxu2 %vm323_vm1, %v267_v22  ;;  %4191 = vmatmul.msk.f32.gmra.mxu3 %vm323_vm1, %v297_v23  ;;  %v221_v22 = vld [vmem:[%s4581_s27 + $0x90] sm:$0xff]  ;;  %v251_v23 = vld [vmem:[%s4581_s27 + $0x180] sm:$0xff] }
  0x3d   : > { %4102 = vmatmul.msk.f32.gmra.mxu0 %vm323_vm1, %v208_v24  ;;  %4132 = vmatmul.msk.f32.gmra.mxu1 %vm323_vm1, %v238_v25  ;;  %v281_v24 = vld [vmem:[%s4581_s27 + $0x270] sm:$0xff]  ;;  %v311_v25 = vld [vmem:[%s4581_s27 + $0x360] sm:$0xff] }
  0x3e   : > { %4162 = vmatmul.msk.f32.gmra.mxu2 %vm323_vm1, %v268_v26  ;;  %4192 = vmatmul.msk.f32.gmra.mxu3 %vm323_vm1, %v298_v27 }
  0x45   : > { %4103 = vmatmul.msk.f32.gmra.mxu0 %vm323_vm1, %v209_v28  ;;  %4133 = vmatmul.msk.f32.gmra.mxu1 %vm323_vm1, %v239_v29 }
  0x46   : > { %4163 = vmatmul.msk.f32.gmra.mxu2 %vm323_vm1, %v269_v30  ;;  %4193 = vmatmul.msk.f32.gmra.mxu3 %vm323_vm1, %v299_v31  ;;  %v222_v30 = vld [vmem:[%s4581_s27 + $0x98] sm:$0xff]  ;;  %v252_v31 = vld [vmem:[%s4581_s27 + $0x188] sm:$0xff] }
  0x4d   : > { %4104 = vmatmul.msk.f32.gmra.mxu0 %vm323_vm1, %v210_v32  ;;  %4134 = vmatmul.msk.f32.gmra.mxu1 %vm323_vm1, %v240_v33  ;;  %v282_v32 = vld [vmem:[%s4581_s27 + $0x278] sm:$0xff]  ;;  %v312_v33 = vld [vmem:[%s4581_s27 + $0x368] sm:$0xff] }
  0x4e   : > { %4164 = vmatmul.msk.f32.gmra.mxu2 %vm323_vm1, %v270_v34  ;;  %4194 = vmatmul.msk.f32.gmra.mxu3 %vm323_vm1, %v300_v35  ;;  %v4772_v34 = vld [vmem:[%s5668_s2] ss:$0 sm:$0xff] }
  0x55   : > { %4105 = vmatmul.msk.f32.gmra.mxu0 %vm323_vm1, %v211_v36  ;;  %4135 = vmatmul.msk.f32.gmra.mxu1 %vm323_vm1, %v241_v37  ;;  %v4777_v37 = vrot.slane %v4772_v34, 2 }
  0x56   : > { %4165 = vmatmul.msk.f32.gmra.mxu2 %vm323_vm1, %v271_v38  ;;  %4195 = vmatmul.msk.f32.gmra.mxu3 %vm323_vm1, %v301_v39  ;;  %v223_v39 = vld [vmem:[%s4581_s27 + $0xa0] sm:$0xff] }
  0x5d   : > { %4106 = vmatmul.msk.f32.gmra.mxu0 %vm323_vm1, %v212_v40  ;;  %4136 = vmatmul.msk.f32.gmra.mxu1 %vm323_vm1, %v242_v41  ;;  %v253_v40 = vld [vmem:[%s4581_s27 + $0x190] sm:$0xff] }
  0x5e   : > { %4166 = vmatmul.msk.f32.gmra.mxu2 %vm323_vm1, %v272_v42  ;;  %4196 = vmatmul.msk.f32.gmra.mxu3 %vm323_vm1, %v302_v43  ;;  %v283_v42 = vld [vmem:[%s4581_s27 + $0x280] sm:$0xff]  ;;  %v313_v43 = vld [vmem:[%s4581_s27 + $0x370] sm:$0xff] }
  0x65   : > { %4107 = vmatmul.msk.f32.gmra.mxu0 %vm323_vm1, %v213_v44  ;;  %4137 = vmatmul.msk.f32.gmra.mxu1 %vm323_vm1, %v243_v45 }
  0x66   : > { %4167 = vmatmul.msk.f32.gmra.mxu2 %vm323_vm1, %v273_v46  ;;  %4197 = vmatmul.msk.f32.gmra.mxu3 %vm323_vm1, %v303_v47 }
  0x6d   : > { %4108 = vmatmul.msk.f32.gmra.mxu0 %vm323_vm1, %v214_v48  ;;  %4138 = vmatmul.msk.f32.gmra.mxu1 %vm323_vm1, %v244_v49  ;;  %v4790_v49 = vrot.slane %v4772_v34, 1 }
  0x6e   : > { %4168 = vmatmul.msk.f32.gmra.mxu2 %vm323_vm1, %v274_v50  ;;  %4198 = vmatmul.msk.f32.gmra.mxu3 %vm323_vm1, %v304_v51  ;;  %v4793_v50 = vrot.slane %v4777_v37, 1  ;;  %v4798_v51 = vrot.slane %v4772_v34, 4 }
  0x75   : > { %4109 = vmatmul.msk.f32.gmra.mxu0 %vm323_vm1, %v215_v52  ;;  %4139 = vmatmul.msk.f32.gmra.mxu1 %vm323_vm1, %v245_v53  ;;  %v4801_v52 = vrot.slane %v4772_v34, 6 }
  0x76   : > { %4169 = vmatmul.msk.f32.gmra.mxu2 %vm323_vm1, %v275_v54  ;;  %4199 = vmatmul.msk.f32.gmra.mxu3 %vm323_vm1, %v305_v55 }
  0x7d   : > { %4110 = vmatmul.msk.f32.gmra.mxu0 %vm323_vm1, %v216_v56  ;;  %4140 = vmatmul.msk.f32.gmra.mxu1 %vm323_vm1, %v246_v57 }
  0x7e   : > { %4170 = vmatmul.msk.f32.gmra.mxu2 %vm323_vm1, %v276_v58  ;;  %4200 = vmatmul.msk.f32.gmra.mxu3 %vm323_vm1, %v306_v59 }
  0x85   : > { %4111 = vmatmul.msk.f32.gmra.mxu0 %vm323_vm1, %v217_v60  ;;  %4141 = vmatmul.msk.f32.gmra.mxu1 %vm323_vm1, %v247_v61 }
  0x86   : > { %4171 = vmatmul.msk.f32.gmra.mxu2 %vm323_vm1, %v277_v62  ;;  %4201 = vmatmul.msk.f32.gmra.mxu3 %vm323_vm1, %v307_v63  ;;  %v4806_v63 = vrot.slane %v4798_v51, 1 }
  0x8d   : > { %4112 = vmatmul.msk.f32.gmra.mxu0 %vm323_vm1, %v218_v0  ;;  %4142 = vmatmul.msk.f32.gmra.mxu1 %vm323_vm1, %v248_v1  ;;  %v4809_v0 = vrot.slane %v4801_v52, 1  ;;  %v224_v1 = vld [vmem:[%s4581_s27 + $0xa8] sm:$0xff] }
  0x8e   : > { %4172 = vmatmul.msk.f32.gmra.mxu2 %vm323_vm1, %v278_v2  ;;  %4202 = vmatmul.msk.f32.gmra.mxu3 %vm323_vm1, %v308_v3  ;;  %v254_v2 = vld [vmem:[%s4581_s27 + $0x198] sm:$0xff] }
  0x92   : > { %v705_v4 = vpop.f32.mrf.mxu0  ;;  %v4711_v5 = vpop.f32.mrf.mxu1 }
  0x95   : > { %4113 = vmatmul.msk.f32.gmra.mxu0 %vm323_vm1, %v219_v6  ;;  %4143 = vmatmul.msk.f32.gmra.mxu1 %vm323_vm1, %v249_v7 }
  0x96   : > { %4173 = vmatmul.msk.f32.gmra.mxu2 %vm323_vm1, %v279_v8  ;;  %4203 = vmatmul.msk.f32.gmra.mxu3 %vm323_vm1, %v309_v9 }
  0x99   : > { %v4721_v10 = vpop.f32.mrf.mxu2  ;;  %v4723_v11 = vpop.f32.mrf.mxu3 }
  0x9a   : > { %v4725_v12 = vpop.f32.mrf.mxu0  ;;  %v4727_v13 = vpop.f32.mrf.mxu1 }
  0x9d   : > { %4114 = vmatmul.msk.f32.gmra.mxu0 %vm323_vm1, %v220_v14  ;;  %4144 = vmatmul.msk.f32.gmra.mxu1 %vm323_vm1, %v250_v15  ;;  %v284_v14 = vld [vmem:[%s4581_s27 + $0x288] sm:$0xff] }
  0x9e   : > { %4174 = vmatmul.msk.f32.gmra.mxu2 %vm323_vm1, %v280_v16  ;;  %4204 = vmatmul.msk.f32.gmra.mxu3 %vm323_vm1, %v310_v17 }
  0xa1   : > { %v4737_v18 = vpop.f32.mrf.mxu2  ;;  %v4739_v19 = vpop.f32.mrf.mxu3 }
  0xa2   : > { %v4741_v20 = vpop.f32.mrf.mxu0  ;;  %v4743_v21 = vpop.f32.mrf.mxu1 }
  0xa5   : > { %4115 = vmatmul.msk.f32.gmra.mxu0 %vm323_vm1, %v221_v22  ;;  %4145 = vmatmul.msk.f32.gmra.mxu1 %vm323_vm1, %v251_v23 }
  0xa6   : > { %4175 = vmatmul.msk.f32.gmra.mxu2 %vm323_vm1, %v281_v24  ;;  %4205 = vmatmul.msk.f32.gmra.mxu3 %vm323_vm1, %v311_v25 }
  0xa9   : > { %v4753_v26 = vpop.f32.mrf.mxu2  ;;  %v4755_v27 = vpop.f32.mrf.mxu3 }
  0xaa   : > { %v4757_v28 = vpop.f32.mrf.mxu0  ;;  %v4759_v29 = vpop.f32.mrf.mxu1 }
  0xad   : > { %4116 = vmatmul.msk.f32.gmra.mxu0 %vm323_vm1, %v222_v30  ;;  %4146 = vmatmul.msk.f32.gmra.mxu1 %vm323_vm1, %v252_v31 }
  0xae   : > { %4176 = vmatmul.msk.f32.gmra.mxu2 %vm323_vm1, %v282_v32  ;;  %4206 = vmatmul.msk.f32.gmra.mxu3 %vm323_vm1, %v312_v33 }
  0xb1   : > { %v4774_v35 = vpop.f32.mrf.mxu3  ;;  %v4785_v44 = vpop.f32.mrf.mxu2 }
  0xb2   : > { %v717_v36 = vpop.f32.mrf.mxu0  ;;  %v4779_v38 = vpop.f32.mrf.mxu1 }
  0xb3   : > { %v1305_v41 = vmax.f32 %v705_v4, %v717_v36 }
  0xb5   : > { %v1425_v45 = vrot.slane %v1305_v41, 2  ;;  %v1426_v46 = vrot.slane %v1305_v41, 4  ;;  %v1427_v47 = vrot.slane %v1305_v41, 6  ;;  %v4217_v48 = vrot.slane %v1305_v41, 9  ;;  %4117 = vmatmul.msk.f32.gmra.mxu0 %vm323_vm1, %v223_v39  ;;  %4147 = vmatmul.msk.f32.gmra.mxu1 %vm323_vm1, %v253_v40 }
  0xb6   : > { %4177 = vmatmul.msk.f32.gmra.mxu2 %vm323_vm1, %v283_v42  ;;  %4207 = vmatmul.msk.f32.gmra.mxu3 %vm323_vm1, %v313_v43 }
  0xb7   : > { %v4218_v53 = vrot.slane %v1425_v45, 9  ;;  %v4219_v54 = vrot.slane %v1426_v46, 9  ;;  %v4220_v55 = vrot.slane %v1427_v47, 9  ;;  %v2505_v56 = vmax.f32 %v1305_v41, %v4217_v48 }
  0xb9   : > { %v2506_v57 = vmax.f32 %v1425_v45, %v4218_v53  ;;  %v2507_v58 = vmax.f32 %v1426_v46, %v4219_v54  ;;  %v2508_v59 = vmax.f32 %v1427_v47, %v4220_v55  ;;  %v2763_v60 = vadd.f32 %v4772_v34, %v2505_v56  ;;  %v987_v61 = vpop.f32.mrf.mxu3  ;;  %v4822_v31 = vpop.f32.mrf.mxu2 }
  0xba   : > { %v1351_v62 = vmax.f32 %v4723_v11, %v987_v61  ;;  %v720_v8 = vpop.f32.mrf.mxu0  ;;  %v4816_v9 = vpop.f32.mrf.mxu1  ;;  %v314_v11 = vld [vmem:[%s4581_s27 + $0x378] sm:$0xff]  ;;  %v255_v61 = vld [vmem:[%s4581_s27 + $0x1a0] sm:$0xff] }
  0xbb   : > { %v2764_v3 = vadd.f32 %v4790_v49, %v2506_v57  ;;  %v2765_v4 = vadd.f32 %v4777_v37, %v2507_v58  ;;  %v2766_v6 = vadd.f32 %v4793_v50, %v2508_v59  ;;  %v3003_v7 = vmax.f32 %v2763_v60, 0.0  ;;  %v225_v60 = vld [vmem:[%s4581_s27 + $0xb0] sm:$0xff] }
  0xbc   : > { %v1563_v15 = vrot.slane %v1351_v62, 2  ;;  %v1564_v16 = vrot.slane %v1351_v62, 4  ;;  %v1565_v17 = vrot.slane %v1351_v62, 6  ;;  %v4401_v22 = vrot.slane %v1351_v62, 9 }
  0xbd   : > { %v3004_v23 = vmax.f32 %v2764_v3, 0.0  ;;  %v3005_v24 = vmax.f32 %v2765_v4, 0.0  ;;  %v3006_v25 = vmax.f32 %v2766_v6, 0.0  ;;  %v3483_v30 = vperm.slane %v3003_v7, 0  ;;  %4118 = vmatmul.msk.f32.gmra.mxu0 %vm323_vm1, %v224_v1  ;;  %4148 = vmatmul.msk.f32.gmra.mxu1 %vm323_vm1, %v254_v2  ;;  %v285_v4 = vld [vmem:[%s4581_s27 + $0x290] sm:$0xff]  ;;  %v315_v6 = vld [vmem:[%s4581_s27 + $0x380] sm:$0xff] }
  0xbe   : > { %v4402_v32 = vrot.slane %v1563_v15, 9  ;;  %v4403_v33 = vrot.slane %v1564_v16, 9  ;;  %v4404_v36 = vrot.slane %v1565_v17, 9  ;;  %v2689_v39 = vmax.f32 %v1351_v62, %v4401_v22  ;;  %4178 = vmatmul.msk.f32.gmra.mxu2 %vm323_vm1, %v284_v14  ;;  %4208 = vmatmul.msk.f32.gmra.mxu3 %vm323_vm1, %v314_v11 }
  0xbf   : > { %v3484_v40 = vperm.slane %v3004_v23, 0  ;;  %v3485_v41 = vperm.slane %v3005_v24, 0  ;;  %v3486_v42 = vperm.slane %v3006_v25, 0  ;;  %v1306_v43 = vmax.f32 %v4725_v12, %v720_v8 }
  0xc0   : > { %v2690_v45 = vmax.f32 %v1563_v15, %v4402_v32  ;;  %v2691_v46 = vmax.f32 %v1564_v16, %v4403_v33  ;;  %v2692_v47 = vmax.f32 %v1565_v17, %v4404_v36  ;;  %v2947_v48 = vadd.f32 %v4772_v34, %v2689_v39 }
  0xc1   : > { %v3724_v53 = vsel %vm3723_vm2, %v3484_v40, %v3483_v30  ;;  %v1428_v54 = vrot.slane %v1306_v43, 2  ;;  %v1429_v55 = vrot.slane %v1306_v43, 4  ;;  %v1430_v56 = vrot.slane %v1306_v43, 6  ;;  %v990_v15 = vpop.f32.mrf.mxu3 }
  0xc2   : > { %v3726_v57 = vsel %vm3725_vm3, %v3485_v41, %v3724_v53  ;;  %v2948_v58 = vadd.f32 %v4790_v49, %v2690_v45  ;;  %v2949_v59 = vadd.f32 %v4777_v37, %v2691_v46  ;;  %v2950_v12 = vadd.f32 %v4793_v50, %v2692_v47  ;;  %v723_v24 = vpop.f32.mrf.mxu0  ;;  %v813_v25 = vpop.f32.mrf.mxu1 }
  0xc3   : > { %v3728_v62 = vsel %vm3727_vm4, %v3486_v42, %v3726_v57  ;;  %v3187_v1 = vmax.f32 %v2947_v48, 0.0  ;;  %v4221_v2 = vrot.slane %v1306_v43, 9  ;;  %v4222_v3 = vrot.slane %v1428_v54, 9  ;;  %v4847_v46 = vpop.f32.mrf.mxu2 }
  0xc4   : > { %v3188_v7 = vmax.f32 %v2948_v58, 0.0  ;;  %v3189_v8 = vmax.f32 %v2949_v59, 0.0  ;;  %v3190_v14 = vmax.f32 %v2950_v12, 0.0  ;;  %v4223_v11 = vrot.slane %v1429_v55, 9  ;;  %v256_v12 = vld [vmem:[%s4581_s27 + $0x1a8] sm:$0xff] }
  0xc5   : > { %v3667_v16 = vperm.slane %v3187_v1, 0  ;;  %v4224_v17 = vrot.slane %v1430_v56, 9  ;;  %v2509_v22 = vmax.f32 %v1306_v43, %v4221_v2  ;;  %v2510_v23 = vmax.f32 %v1428_v54, %v4222_v3  ;;  %4119 = vmatmul.msk.f32.gmra.mxu0 %vm323_vm1, %v225_v60  ;;  %4149 = vmatmul.msk.f32.gmra.mxu1 %vm323_vm1, %v255_v61  ;;  %v286_v2 = vld [vmem:[%s4581_s27 + $0x298] sm:$0xff] }
  0xc6   : > { %v3668_v30 = vperm.slane %v3188_v7, 0  ;;  %v3669_v32 = vperm.slane %v3189_v8, 0  ;;  %v3670_v33 = vperm.slane %v3190_v14, 0  ;;  %v2511_v36 = vmax.f32 %v1429_v55, %v4223_v11  ;;  %4179 = vmatmul.msk.f32.gmra.mxu2 %vm323_vm1, %v285_v4  ;;  %4209 = vmatmul.msk.f32.gmra.mxu3 %vm323_vm1, %v315_v6  ;;  %v316_v8 = vld [vmem:[%s4581_s27 + $0x388] sm:$0xff] }
  0xc7   : > { %v2512_v39 = vmax.f32 %v1430_v56, %v4224_v17  ;;  %v2767_v40 = vadd.f32 %v4798_v51, %v2509_v22  ;;  %v2768_v41 = vadd.f32 %v4806_v63, %v2510_v23  ;;  %v1352_v42 = vmax.f32 %v4739_v19, %v990_v15 }
  0xc8   : > { %v3891_v43 = vsel %vm3723_vm2, %v3668_v30, %v3667_v16  ;;  %v2769_v45 = vadd.f32 %v4801_v52, %v2511_v36  ;;  %v4850_v47 = vmax.f32 %v4741_v20, %v723_v24  ;;  %v4853_v48 = vmax.f32 %v4743_v21, %v813_v25  ;;  %v226_v20 = vld [vmem:[%s4581_s27 + $0xb8] sm:$0xff] }
  0xc9   : > { %v3892_v53 = vsel %vm3725_vm3, %v3669_v32, %v3891_v43  ;;  %v2770_v54 = vadd.f32 %v4809_v0, %v2512_v39  ;;  %v3007_v55 = vmax.f32 %v2767_v40, 0.0  ;;  %v3008_v19 = vmax.f32 %v2768_v41, 0.0 }
  0xca   : > { %v4858_v56 = vsel %vm3727_vm4, %v3670_v33, %v3892_v53  ;;  %v3009_v57 = vmax.f32 %v2769_v45, 0.0  ;;  %v1566_v58 = vrot.slane %v1352_v42, 2  ;;  %v1567_v59 = vrot.slane %v1352_v42, 4 }
  0xcb   : > { %v3010_v60 = vmax.f32 %v2770_v54, 0.0  ;;  %v3487_v21 = vperm.slane %v3007_v55, 0  ;;  %v3488_v61 = vperm.slane %v3008_v19, 0  ;;  %v1568_v1 = vrot.slane %v1352_v42, 6 }
  0xcc   : > { %v3489_v3 = vperm.slane %v3009_v57, 0  ;;  %v4405_v4 = vrot.slane %v1352_v42, 9  ;;  %v4406_v6 = vrot.slane %v1566_v58, 9  ;;  %v4407_v7 = vrot.slane %v1567_v59, 9  ;;  %v4887_v57 = vpop.f32.mrf.mxu2 }
  0xcd   : > { %v3490_v14 = vperm.slane %v3010_v60, 0  ;;  %v3730_v11 = vsel %vm3729_vm5, %v3487_v21, %v3728_v62  ;;  %v4408_v15 = vrot.slane %v1568_v1, 9  ;;  %v1431_v16 = vrot.slane %v4850_v47, 2  ;;  %4120 = vmatmul.msk.f32.gmra.mxu0 %vm323_vm1, %v226_v20  ;;  %4150 = vmatmul.msk.f32.gmra.mxu1 %vm323_vm1, %v256_v12 }
  0xce   : > { %v3732_v17 = vsel %vm3731_vm6, %v3488_v61, %v3730_v11  ;;  %v2693_v22 = vmax.f32 %v1352_v42, %v4405_v4  ;;  %v2694_v23 = vmax.f32 %v1566_v58, %v4406_v6  ;;  %v2695_v24 = vmax.f32 %v1567_v59, %v4407_v7  ;;  %4180 = vmatmul.msk.f32.gmra.mxu2 %vm323_vm1, %v286_v2  ;;  %v227_v58 = vld [vmem:[%s4581_s27 + $0xc0] sm:$0xff]  ;;  %v257_v59 = vld [vmem:[%s4581_s27 + $0x1b0] sm:$0xff] }
  0xcf   : > { %v3734_v62 = vsel %vm3733_vm7, %v3489_v3, %v3732_v17  ;;  %v2696_v25 = vmax.f32 %v1568_v1, %v4408_v15  ;;  %v1432_v30 = vrot.slane %v4850_v47, 4  ;;  %v1433_v32 = vrot.slane %v4850_v47, 6  ;;  %4210 = vmatmul.msk.f32.gmra.mxu3 %vm323_vm1, %v316_v8  ;;  %v287_v61 = vld [vmem:[%s4581_s27 + $0x2a0] sm:$0xff]  ;;  %v317_v6 = vld [vmem:[%s4581_s27 + $0x390] sm:$0xff] }
  0xd0   : > { %v3736_v33 = vsel %vm3735_vm8, %v3490_v14, %v3734_v62  ;;  %v2951_v36 = vadd.f32 %v4798_v51, %v2693_v22  ;;  %v2952_v39 = vadd.f32 %v4806_v63, %v2694_v23  ;;  %v2953_v40 = vadd.f32 %v4801_v52, %v2695_v24 }
  0xd1   : > { %3970 = vst [vmem:[%s4872_s6] sm:$0xff] %v3736_v33  ;;  %v2954_v41 = vadd.f32 %v4809_v0, %v2696_v25  ;;  %v4225_v42 = vrot.slane %v4850_v47, 9  ;;  %v4226_v43 = vrot.slane %v1431_v16, 9  ;;  %v4227_v45 = vrot.slane %v1432_v30, 9  ;;  %v726_v33 = vpop.f32.mrf.mxu0 }
  0xd2   : > { %v3191_v53 = vmax.f32 %v2951_v36, 0.0  ;;  %v3192_v54 = vmax.f32 %v2952_v39, 0.0  ;;  %v3193_v55 = vmax.f32 %v2953_v40, 0.0  ;;  %v4228_v19 = vrot.slane %v1433_v32, 9  ;;  %v816_v36 = vpop.f32.mrf.mxu1 }
  0xd3   : > { %v3194_v20 = vmax.f32 %v2954_v41, 0.0  ;;  %v2513_v12 = vmax.f32 %v4850_v47, %v4225_v42  ;;  %v2514_v60 = vmax.f32 %v1431_v16, %v4226_v43  ;;  %v2515_v21 = vmax.f32 %v1432_v30, %v4227_v45 }
  0xd4   : > { %v3671_v1 = vperm.slane %v3191_v53, 0  ;;  %v3672_v2 = vperm.slane %v3192_v54, 0  ;;  %v3673_v3 = vperm.slane %v3193_v55, 0  ;;  %v2516_v4 = vmax.f32 %v1433_v32, %v4228_v19  ;;  %v228_v55 = vld [vmem:[%s4581_s27 + $0xc8] sm:$0xff] }
  0xd5   : > { %v3674_v7 = vperm.slane %v3194_v20, 0  ;;  %v2771_v8 = vadd.f32 %v4772_v34, %v2513_v12  ;;  %v2772_v14 = vadd.f32 %v4790_v49, %v2514_v60  ;;  %v2773_v11 = vadd.f32 %v4777_v37, %v2515_v21  ;;  %4121 = vmatmul.msk.f32.gmra.mxu0 %vm323_vm1, %v227_v58  ;;  %4151 = vmatmul.msk.f32.gmra.mxu1 %vm323_vm1, %v257_v59  ;;  %v258_v12 = vld [vmem:[%s4581_s27 + $0x1b8] sm:$0xff]  ;;  %v288_v60 = vld [vmem:[%s4581_s27 + $0x2a8] sm:$0xff] }
  0xd6   : > { %v3894_v47 = vsel %vm3729_vm5, %v3671_v1, %v4858_v56  ;;  %v2774_v15 = vadd.f32 %v4793_v50, %v2516_v4  ;;  %v1473_v16 = vrot.slane %v4853_v48, 2  ;;  %v1474_v17 = vrot.slane %v4853_v48, 4  ;;  %4181 = vmatmul.msk.f32.gmra.mxu2 %vm323_vm1, %v287_v61  ;;  %v318_v4 = vld [vmem:[%s4581_s27 + $0x398] sm:$0xff] }
  0xd7   : > { %v3895_v22 = vsel %vm3731_vm6, %v3672_v2, %v3894_v47  ;;  %v3011_v23 = vmax.f32 %v2771_v8, 0.0  ;;  %v3012_v24 = vmax.f32 %v2772_v14, 0.0  ;;  %v3013_v62 = vmax.f32 %v2773_v11, 0.0  ;;  %4211 = vmatmul.msk.f32.gmra.mxu3 %vm323_vm1, %v317_v6 }
  0xd8   : > { %v3896_v25 = vsel %vm3733_vm7, %v3673_v3, %v3895_v22  ;;  %v3014_v56 = vmax.f32 %v2774_v15, 0.0  ;;  %v1475_v30 = vrot.slane %v4853_v48, 6  ;;  %v4281_v32 = vrot.slane %v4853_v48, 9  ;;  %v4922_v3 = vpop.f32.mrf.mxu2 }
  0xd9   : > { %v3897_v39 = vsel %vm3735_vm8, %v3674_v7, %v3896_v25  ;;  %v3491_v40 = vperm.slane %v3011_v23, 0  ;;  %v3492_v41 = vperm.slane %v3012_v24, 0  ;;  %v3493_v42 = vperm.slane %v3013_v62, 0 }
  0xda   : > { %3993 = vst [vmem:[%s4872_s6 + $0xb8] sm:$0xff] %v3897_v39  ;;  %v3494_v43 = vperm.slane %v3014_v56, 0  ;;  %v4282_v45 = vrot.slane %v1473_v16, 9  ;;  %v4283_v53 = vrot.slane %v1474_v17, 9  ;;  %v4284_v54 = vrot.slane %v1475_v30, 9  ;;  %v4936_v56 = vpop.f32.mrf.mxu3 }
  0xdb   : > { %v3737_v19 = vsel %vm3723_vm2, %v3492_v41, %v3491_v40  ;;  %v2569_v58 = vmax.f32 %v4853_v48, %v4281_v32  ;;  %v1308_v59 = vmax.f32 %v4757_v28, %v726_v33  ;;  %v4917_v20 = vmax.f32 %v4759_v29, %v816_v36 }
  0xdc   : > { %v3738_v21 = vsel %vm3725_vm3, %v3493_v42, %v3737_v19  ;;  %v2570_v61 = vmax.f32 %v1473_v16, %v4282_v45  ;;  %v2571_v1 = vmax.f32 %v1474_v17, %v4283_v53  ;;  %v2572_v2 = vmax.f32 %v1475_v30, %v4284_v54  ;;  %v229_v54 = vld [vmem:[%s4581_s27 + $0xd0] sm:$0xff] }
  0xdd   : > { %v4926_v6 = vsel %vm3727_vm4, %v3494_v43, %v3738_v21  ;;  %v2827_v48 = vadd.f32 %v4772_v34, %v2569_v58  ;;  %v1434_v7 = vrot.slane %v1308_v59, 2  ;;  %v1435_v28 = vrot.slane %v1308_v59, 4  ;;  %4122 = vmatmul.msk.f32.gmra.mxu0 %vm323_vm1, %v228_v55  ;;  %4152 = vmatmul.msk.f32.gmra.mxu1 %vm323_vm1, %v258_v12  ;;  %v259_v55 = vld [vmem:[%s4581_s27 + $0x1c0] sm:$0xff]  ;;  %v289_v19 = vld [vmem:[%s4581_s27 + $0x2b0] sm:$0xff] }
  0xde   : > { %v2828_v29 = vadd.f32 %v4790_v49, %v2570_v61  ;;  %v2829_v8 = vadd.f32 %v4777_v37, %v2571_v1  ;;  %v2830_v14 = vadd.f32 %v4793_v50, %v2572_v2  ;;  %v1436_v11 = vrot.slane %v1308_v59, 6  ;;  %4182 = vmatmul.msk.f32.gmra.mxu2 %vm323_vm1, %v288_v60  ;;  %v319_v21 = vld [vmem:[%s4581_s27 + $0x3a0] sm:$0xff] }
  0xdf   : > { %v3067_v47 = vmax.f32 %v2827_v48, 0.0  ;;  %v4229_v15 = vrot.slane %v1308_v59, 9  ;;  %v4230_v16 = vrot.slane %v1434_v7, 9  ;;  %v4231_v17 = vrot.slane %v1435_v28, 9  ;;  %4212 = vmatmul.msk.f32.gmra.mxu3 %vm323_vm1, %v318_v4 }
  0xe0   : > { %v3068_v22 = vmax.f32 %v2828_v29, 0.0  ;;  %v3069_v23 = vmax.f32 %v2829_v8, 0.0  ;;  %v3070_v24 = vmax.f32 %v2830_v14, 0.0  ;;  %v4232_v62 = vrot.slane %v1436_v11, 9  ;;  %v819_v8 = vpop.f32.mrf.mxu1  ;;  %v909_v14 = vpop.f32.mrf.mxu2 }
  0xe1   : > { %v3547_v25 = vperm.slane %v3067_v47, 0  ;;  %v2517_v30 = vmax.f32 %v1308_v59, %v4229_v15  ;;  %v2518_v32 = vmax.f32 %v1434_v7, %v4230_v16  ;;  %v2519_v33 = vmax.f32 %v1435_v28, %v4231_v17 }
  0xe2   : > { %v3548_v36 = vperm.slane %v3068_v22, 0  ;;  %v3549_v39 = vperm.slane %v3069_v23, 0  ;;  %v3550_v40 = vperm.slane %v3070_v24, 0  ;;  %v2520_v41 = vmax.f32 %v1436_v11, %v4232_v62 }
  0xe3   : > { %v2775_v42 = vadd.f32 %v4798_v51, %v2517_v30  ;;  %v2776_v43 = vadd.f32 %v4806_v63, %v2518_v32  ;;  %v2777_v45 = vadd.f32 %v4801_v52, %v2519_v33  ;;  %v1476_v53 = vrot.slane %v4917_v20, 2 }
  0xe4   : > { %v3786_v58 = vsel %vm3723_vm2, %v3548_v36, %v3547_v25  ;;  %v2778_v59 = vadd.f32 %v4809_v0, %v2520_v41  ;;  %v1477_v12 = vrot.slane %v4917_v20, 4  ;;  %v1478_v60 = vrot.slane %v4917_v20, 6 }
  0xe5   : > { %v3787_v61 = vsel %vm3725_vm3, %v3549_v39, %v3786_v58  ;;  %v3015_v1 = vmax.f32 %v2775_v42, 0.0  ;;  %v3016_v2 = vmax.f32 %v2776_v43, 0.0  ;;  %v3017_v4 = vmax.f32 %v2777_v45, 0.0  ;;  %4123 = vmatmul.msk.f32.gmra.mxu0 %vm323_vm1, %v229_v54  ;;  %4153 = vmatmul.msk.f32.gmra.mxu1 %vm323_vm1, %v259_v55  ;;  %v4969_v42 = vpop.f32.mrf.mxu3 }
  0xe6   : > { %v3788_v48 = vsel %vm3727_vm4, %v3550_v40, %v3787_v61  ;;  %v3018_v7 = vmax.f32 %v2778_v59, 0.0  ;;  %v4285_v28 = vrot.slane %v4917_v20, 9  ;;  %v4286_v29 = vrot.slane %v1476_v53, 9  ;;  %4183 = vmatmul.msk.f32.gmra.mxu2 %vm323_vm1, %v289_v19 }
  0xe7   : > { %v3495_v11 = vperm.slane %v3015_v1, 0  ;;  %v3496_v47 = vperm.slane %v3016_v2, 0  ;;  %v3497_v15 = vperm.slane %v3017_v4, 0  ;;  %v4287_v16 = vrot.slane %v1477_v12, 9  ;;  %4213 = vmatmul.msk.f32.gmra.mxu3 %vm323_vm1, %v319_v21 }
  0xe8   : > { %v3498_v17 = vperm.slane %v3018_v7, 0  ;;  %v4288_v22 = vrot.slane %v1478_v60, 9  ;;  %v2573_v23 = vmax.f32 %v4917_v20, %v4285_v28  ;;  %v2574_v24 = vmax.f32 %v1476_v53, %v4286_v29 }
  0xe9   : > { %v3740_v62 = vsel %vm3729_vm5, %v3495_v11, %v4926_v6  ;;  %v2575_v25 = vmax.f32 %v1477_v12, %v4287_v16  ;;  %v1323_v30 = vmax.f32 %v4779_v38, %v819_v8  ;;  %v4962_v32 = vmax.f32 %v4822_v31, %v909_v14  ;;  %v4979_v16 = vpop.f32.mrf.mxu2 }
  0xea   : > { %v3741_v33 = vsel %vm3731_vm6, %v3496_v47, %v3740_v62  ;;  %v2576_v36 = vmax.f32 %v1478_v60, %v4288_v22  ;;  %v2831_v39 = vadd.f32 %v4798_v51, %v2573_v23  ;;  %v2832_v40 = vadd.f32 %v4806_v63, %v2574_v24  ;;  %v260_v22 = vld [vmem:[%s4581_s27 + $0x1c8] sm:$0xff]  ;;  %v290_v23 = vld [vmem:[%s4581_s27 + $0x2b8] sm:$0xff] }
  0xeb   : > { %v3742_v20 = vsel %vm3733_vm7, %v3497_v15, %v3741_v33  ;;  %v2833_v41 = vadd.f32 %v4801_v52, %v2575_v25  ;;  %v1479_v6 = vrot.slane %v1323_v30, 2  ;;  %v1480_v43 = vrot.slane %v1323_v30, 4 }
  0xec   : > { %v3743_v38 = vsel %vm3735_vm8, %v3498_v17, %v3742_v20  ;;  %v2834_v31 = vadd.f32 %v4809_v0, %v2576_v36  ;;  %v3071_v45 = vmax.f32 %v2831_v39, 0.0  ;;  %v3072_v53 = vmax.f32 %v2832_v40, 0.0  ;;  %v230_v17 = vld [vmem:[%s4581_s27 + $0xd8] sm:$0xff]  ;;  %v4992_v36 = vpop.f32.mrf.mxu0 }
  0xed   : > { %3971 = vst [vmem:[%s4872_s6 + $0x8] sm:$0xff] %v3743_v38  ;;  %v3073_v54 = vmax.f32 %v2833_v41, 0.0  ;;  %v1481_v55 = vrot.slane %v1323_v30, 6  ;;  %v4289_v19 = vrot.slane %v1323_v30, 9  ;;  %v4290_v58 = vrot.slane %v1479_v6, 9  ;;  %4124 = vmatmul.msk.f32.gmra.mxu0 %vm323_vm1, %v230_v17  ;;  %4154 = vmatmul.msk.f32.gmra.mxu1 %vm323_vm1, %v260_v22 }
  0xee   : > { %v3074_v59 = vmax.f32 %v2834_v31, 0.0  ;;  %v3551_v12 = vperm.slane %v3071_v45, 0  ;;  %v3552_v60 = vperm.slane %v3072_v53, 0  ;;  %v4291_v21 = vrot.slane %v1480_v43, 9  ;;  %4184 = vmatmul.msk.f32.gmra.mxu2 %vm323_vm1, %v290_v23  ;;  %v822_v31 = vpop.f32.mrf.mxu1 }
  0xef   : > { %v3553_v61 = vperm.slane %v3073_v54, 0  ;;  %v4292_v1 = vrot.slane %v1481_v55, 9  ;;  %v2577_v2 = vmax.f32 %v1323_v30, %v4289_v19  ;;  %v2578_v4 = vmax.f32 %v1479_v6, %v4290_v58  ;;  %v320_v30 = vld [vmem:[%s4581_s27 + $0x3a8] sm:$0xff]  ;;  %v4999_v19 = vpop.f32.mrf.mxu3 }
  0xf0   : > { %v3554_v7 = vperm.slane %v3074_v59, 0  ;;  %v3789_v28 = vsel %vm3729_vm5, %v3551_v12, %v3788_v48  ;;  %v2579_v29 = vmax.f32 %v1480_v43, %v4291_v21  ;;  %v1521_v8 = vrot.slane %v4962_v32, 2  ;;  %4214 = vmatmul.msk.f32.gmra.mxu3 %vm323_vm1, %v320_v30 }
  0xf1   : > { %v3790_v14 = vsel %vm3731_vm6, %v3552_v60, %v3789_v28  ;;  %v2580_v11 = vmax.f32 %v1481_v55, %v4292_v1  ;;  %v2835_v47 = vadd.f32 %v4772_v34, %v2577_v2  ;;  %v2836_v15 = vadd.f32 %v4790_v49, %v2578_v4 }
  0xf2   : > { %v3791_v24 = vsel %vm3733_vm7, %v3553_v61, %v3790_v14  ;;  %v2837_v48 = vadd.f32 %v4777_v37, %v2579_v29  ;;  %v1522_v62 = vrot.slane %v4962_v32, 4  ;;  %v1523_v25 = vrot.slane %v4962_v32, 6 }
  0xf3   : > { %v3792_v33 = vsel %vm3735_vm8, %v3554_v7, %v3791_v24  ;;  %v2838_v39 = vadd.f32 %v4793_v50, %v2580_v11  ;;  %v3075_v40 = vmax.f32 %v2835_v47, 0.0  ;;  %v3076_v20 = vmax.f32 %v2836_v15, 0.0 }
  0xf4   : > { %3978 = vst [vmem:[%s4872_s6 + $0x40] sm:$0xff] %v3792_v33  ;;  %v3077_v41 = vmax.f32 %v2837_v48, 0.0  ;;  %v4345_v6 = vrot.slane %v4962_v32, 9  ;;  %v4346_v43 = vrot.slane %v1521_v8, 9  ;;  %v4347_v38 = vrot.slane %v1522_v62, 9 }
  0xf5   : > { %v3078_v45 = vmax.f32 %v2838_v39, 0.0  ;;  %v3555_v53 = vperm.slane %v3075_v40, 0  ;;  %v3556_v54 = vperm.slane %v3076_v20, 0  ;;  %v4348_v55 = vrot.slane %v1523_v25, 9  ;;  %v5010_v20 = vpop.f32.mrf.mxu0 }
  0xf6   : > { %v3557_v58 = vperm.slane %v3077_v41, 0  ;;  %v2633_v59 = vmax.f32 %v4962_v32, %v4345_v6  ;;  %v2634_v12 = vmax.f32 %v1521_v8, %v4346_v43  ;;  %v2635_v60 = vmax.f32 %v1522_v62, %v4347_v38  ;;  %v915_v62 = vpop.f32.mrf.mxu2 }
  0xf7   : > { %v3558_v21 = vperm.slane %v3078_v45, 0  ;;  %v3793_v61 = vsel %vm3723_vm2, %v3556_v54, %v3555_v53  ;;  %v2636_v1 = vmax.f32 %v1523_v25, %v4348_v55  ;;  %v1324_v2 = vmax.f32 %v4816_v9, %v822_v31 }
  0xf8   : > { %v3794_v4 = vsel %vm3725_vm3, %v3557_v58, %v3793_v61  ;;  %v2891_v7 = vadd.f32 %v4772_v34, %v2633_v59  ;;  %v2892_v28 = vadd.f32 %v4790_v49, %v2634_v12  ;;  %v2893_v29 = vadd.f32 %v4777_v37, %v2635_v60  ;;  %v5022_v12 = vpop.f32.mrf.mxu3 }
  0xf9   : > { %v3795_v14 = vsel %vm3727_vm4, %v3558_v21, %v3794_v4  ;;  %v2894_v32 = vadd.f32 %v4793_v50, %v2636_v1  ;;  %v1482_v8 = vrot.slane %v1324_v2, 2  ;;  %v1483_v11 = vrot.slane %v1324_v2, 4 }
  0xfa   : > { %v3131_v47 = vmax.f32 %v2891_v7, 0.0  ;;  %v3132_v15 = vmax.f32 %v2892_v28, 0.0  ;;  %v3133_v17 = vmax.f32 %v2893_v29, 0.0  ;;  %v1484_v22 = vrot.slane %v1324_v2, 6 }
  0xfb   : > { %v3134_v23 = vmax.f32 %v2894_v32, 0.0  ;;  %v4293_v9 = vrot.slane %v1324_v2, 9  ;;  %v4294_v24 = vrot.slane %v1482_v8, 9  ;;  %v4295_v48 = vrot.slane %v1483_v11, 9  ;;  %v231_v32 = vld [vmem:[%s4581_s27 + $0xe0] sm:$0xff] }
  0xfc   : > { %v3611_v25 = vperm.slane %v3131_v47, 0  ;;  %v3612_v30 = vperm.slane %v3132_v15, 0  ;;  %v3613_v33 = vperm.slane %v3133_v17, 0  ;;  %v4296_v39 = vrot.slane %v1484_v22, 9  ;;  %4125 = vmatmul.msk.f32.gmra.mxu0 %vm323_vm1, %v231_v32 }
  0xfd   : > { %v3614_v40 = vperm.slane %v3134_v23, 0  ;;  %v2581_v41 = vmax.f32 %v1324_v2, %v4293_v9  ;;  %v2582_v6 = vmax.f32 %v1482_v8, %v4294_v24  ;;  %v2583_v43 = vmax.f32 %v1483_v11, %v4295_v48  ;;  %v261_v8 = vld [vmem:[%s4581_s27 + $0x1d0] sm:$0xff] }
  0xfe   : > { %v3842_v38 = vsel %vm3723_vm2, %v3612_v30, %v3611_v25  ;;  %v2584_v31 = vmax.f32 %v1484_v22, %v4296_v39  ;;  %v1338_v45 = vmax.f32 %v4847_v46, %v4979_v16  ;;  %v5016_v53 = vmax.f32 %v4887_v57, %v915_v62  ;;  %4155 = vmatmul.msk.f32.gmra.mxu1 %vm323_vm1, %v261_v8  ;;  %v291_v22 = vld [vmem:[%s4581_s27 + $0x2c0] sm:$0xff]  ;;  %v321_v23 = vld [vmem:[%s4581_s27 + $0x3b0] sm:$0xff] }
  0xff   : > { %v3843_v54 = vsel %vm3725_vm3, %v3613_v33, %v3842_v38  ;;  %v2839_v55 = vadd.f32 %v4798_v51, %v2581_v41  ;;  %v2840_v58 = vadd.f32 %v4806_v63, %v2582_v6  ;;  %v2841_v59 = vadd.f32 %v4801_v52, %v2583_v43  ;;  %4185 = vmatmul.msk.f32.gmra.mxu2 %vm323_vm1, %v291_v22 }
 0x100   : > { %v3844_v60 = vsel %vm3727_vm4, %v3614_v40, %v3843_v54  ;;  %v2842_v21 = vadd.f32 %v4809_v0, %v2584_v31  ;;  %v1524_v46 = vrot.slane %v1338_v45, 2  ;;  %v1525_v16 = vrot.slane %v1338_v45, 4  ;;  %4215 = vmatmul.msk.f32.gmra.mxu3 %vm323_vm1, %v321_v23 }
 0x101   : > { %v3079_v57 = vmax.f32 %v2839_v55, 0.0  ;;  %v3080_v61 = vmax.f32 %v2840_v58, 0.0  ;;  %v3081_v1 = vmax.f32 %v2841_v59, 0.0  ;;  %v1526_v2 = vrot.slane %v1338_v45, 6 }
 0x102   : > { %v3082_v4 = vmax.f32 %v2842_v21, 0.0  ;;  %v4349_v7 = vrot.slane %v1338_v45, 9  ;;  %v4350_v28 = vrot.slane %v1524_v46, 9  ;;  %v4351_v29 = vrot.slane %v1525_v16, 9 }
 0x103   : > { %v3559_v11 = vperm.slane %v3079_v57, 0  ;;  %v3560_v47 = vperm.slane %v3080_v61, 0  ;;  %v3561_v15 = vperm.slane %v3081_v1, 0  ;;  %v4352_v17 = vrot.slane %v1526_v2, 9  ;;  %v1005_v1 = vpop.f32.mrf.mxu3 }
 0x104   : > { %v3562_v9 = vperm.slane %v3082_v4, 0  ;;  %v2637_v24 = vmax.f32 %v1338_v45, %v4349_v7  ;;  %v2638_v48 = vmax.f32 %v1524_v46, %v4350_v28  ;;  %v2639_v62 = vmax.f32 %v1525_v16, %v4351_v29  ;;  %v5043_v45 = vpop.f32.mrf.mxu0 }
 0x105   : > { %v3796_v25 = vsel %vm3729_vm5, %v3559_v11, %v3795_v14  ;;  %v2640_v30 = vmax.f32 %v1526_v2, %v4352_v17  ;;  %v1527_v33 = vrot.slane %v5016_v53, 2  ;;  %v1528_v39 = vrot.slane %v5016_v53, 4  ;;  %v918_v2 = vpop.f32.mrf.mxu2 }
 0x106   : > { %v3797_v40 = vsel %vm3731_vm6, %v3560_v47, %v3796_v25  ;;  %v2895_v41 = vadd.f32 %v4798_v51, %v2637_v24  ;;  %v2896_v6 = vadd.f32 %v4806_v63, %v2638_v48  ;;  %v2897_v43 = vadd.f32 %v4801_v52, %v2639_v62 }
 0x107   : > { %v3798_v38 = vsel %vm3733_vm7, %v3561_v15, %v3797_v40  ;;  %v2898_v31 = vadd.f32 %v4809_v0, %v2640_v30  ;;  %v1529_v14 = vrot.slane %v5016_v53, 6  ;;  %v4353_v54 = vrot.slane %v5016_v53, 9  ;;  %v232_v40 = vld [vmem:[%s4581_s27 + $0xe8] sm:$0xff] }
 0x108   : > { %v3799_v55 = vsel %vm3735_vm8, %v3562_v9, %v3798_v38  ;;  %v3135_v58 = vmax.f32 %v2895_v41, 0.0  ;;  %v3136_v59 = vmax.f32 %v2896_v6, 0.0  ;;  %v3137_v21 = vmax.f32 %v2897_v43, 0.0  ;;  %v262_v41 = vld [vmem:[%s4581_s27 + $0x1d8] sm:$0xff]  ;;  %v292_v6 = vld [vmem:[%s4581_s27 + $0x2c8] sm:$0xff]  ;;  %v5066_v43 = vpop.f32.mrf.mxu1  ;;  %4126 = vmatmul.msk.f32.gmra.mxu0 %vm323_vm1, %v232_v40 }
 0x109   : > { %3979 = vst [vmem:[%s4872_s6 + $0x48] sm:$0xff] %v3799_v55  ;;  %v3138_v46 = vmax.f32 %v2898_v31, 0.0  ;;  %v4354_v16 = vrot.slane %v1527_v33, 9  ;;  %v4355_v57 = vrot.slane %v1528_v39, 9  ;;  %v4356_v61 = vrot.slane %v1529_v14, 9  ;;  %4156 = vmatmul.msk.f32.gmra.mxu1 %vm323_vm1, %v262_v41  ;;  %v322_v55 = vld [vmem:[%s4581_s27 + $0x3b8] sm:$0xff]  ;;  %4186 = vmatmul.msk.f32.gmra.mxu2 %vm323_vm1, %v292_v6 }
 0x10a   : > { %v3615_v4 = vperm.slane %v3135_v58, 0  ;;  %v3616_v7 = vperm.slane %v3136_v59, 0  ;;  %v3617_v28 = vperm.slane %v3137_v21, 0  ;;  %v2641_v29 = vmax.f32 %v5016_v53, %v4353_v54  ;;  %4216 = vmatmul.msk.f32.gmra.mxu3 %vm323_vm1, %v322_v55 }
 0x10b   : > { %v3618_v32 = vperm.slane %v3138_v46, 0  ;;  %v2642_v8 = vmax.f32 %v1527_v33, %v4354_v16  ;;  %v2643_v11 = vmax.f32 %v1528_v39, %v4355_v57  ;;  %v2644_v47 = vmax.f32 %v1529_v14, %v4356_v61 }
 0x10c   : > { %v3845_v15 = vsel %vm3729_vm5, %v3615_v4, %v3844_v60  ;;  %v2899_v17 = vadd.f32 %v4772_v34, %v2641_v29  ;;  %v1353_v22 = vmax.f32 %v4936_v56, %v1005_v1  ;;  %v5054_v23 = vmax.f32 %v4922_v3, %v918_v2  ;;  %v5071_v16 = vpop.f32.mrf.mxu0 }
 0x10d   : > { %v3846_v9 = vsel %vm3731_vm6, %v3616_v7, %v3845_v15  ;;  %v2900_v53 = vadd.f32 %v4790_v49, %v2642_v8  ;;  %v2901_v24 = vadd.f32 %v4777_v37, %v2643_v11  ;;  %v2902_v48 = vadd.f32 %v4793_v50, %v2644_v47 }
 0x10e   : > { %v3847_v60 = vsel %vm3733_vm7, %v3617_v28, %v3846_v9  ;;  %v3139_v62 = vmax.f32 %v2899_v17, 0.0  ;;  %v1569_v25 = vrot.slane %v1353_v22, 2  ;;  %v1570_v30 = vrot.slane %v1353_v22, 4 }
 0x10f   : > { %v3848_v56 = vsel %vm3735_vm8, %v3618_v32, %v3847_v60  ;;  %v3140_v33 = vmax.f32 %v2900_v53, 0.0  ;;  %v3141_v3 = vmax.f32 %v2901_v24, 0.0  ;;  %v3142_v39 = vmax.f32 %v2902_v48, 0.0 }
 0x110   : > { %3986 = vst [vmem:[%s4872_s6 + $0x80] sm:$0xff] %v3848_v56  ;;  %v3619_v38 = vperm.slane %v3139_v62, 0  ;;  %v1571_v31 = vrot.slane %v1353_v22, 6  ;;  %v4409_v14 = vrot.slane %v1353_v22, 9  ;;  %v4410_v54 = vrot.slane %v1569_v25, 9  ;;  %v5090_v55 = vpop.f32.mrf.mxu1 }
 0x111   : > { %v3620_v58 = vperm.slane %v3140_v33, 0  ;;  %v3621_v59 = vperm.slane %v3141_v3, 0  ;;  %v3622_v21 = vperm.slane %v3142_v39, 0  ;;  %v4411_v46 = vrot.slane %v1570_v30, 9 }
 0x112   : > { %v4412_v57 = vrot.slane %v1571_v31, 9  ;;  %v2697_v61 = vmax.f32 %v1353_v22, %v4409_v14  ;;  %v2698_v1 = vmax.f32 %v1569_v25, %v4410_v54  ;;  %v1530_v2 = vrot.slane %v5054_v23, 2 }
 0x113   : > { %v3849_v4 = vsel %vm3723_vm2, %v3620_v58, %v3619_v38  ;;  %v2699_v7 = vmax.f32 %v1570_v30, %v4411_v46  ;;  %v1531_v28 = vrot.slane %v5054_v23, 4  ;;  %v1532_v29 = vrot.slane %v5054_v23, 6 }
 0x114   : > { %v3850_v32 = vsel %vm3725_vm3, %v3621_v59, %v3849_v4  ;;  %v2700_v8 = vmax.f32 %v1571_v31, %v4412_v57  ;;  %v2955_v11 = vadd.f32 %v4772_v34, %v2697_v61  ;;  %v2956_v47 = vadd.f32 %v4790_v49, %v2698_v1  ;;  %v1008_v34 = vpop.f32.mrf.mxu3  ;;  %v741_v61 = vpop.f32.mrf.mxu0 }
 0x115   : > { %v3851_v15 = vsel %vm3727_vm4, %v3622_v21, %v3850_v32  ;;  %v2957_v17 = vadd.f32 %v4777_v37, %v2699_v7  ;;  %v4357_v22 = vrot.slane %v5054_v23, 9  ;;  %v4358_v9 = vrot.slane %v1530_v2, 9 }
 0x116   : > { %v2958_v53 = vadd.f32 %v4793_v50, %v2700_v8  ;;  %v3195_v24 = vmax.f32 %v2955_v11, 0.0  ;;  %v3196_v48 = vmax.f32 %v2956_v47, 0.0  ;;  %v4359_v60 = vrot.slane %v1531_v28, 9 }
 0x117   : > { %v3197_v62 = vmax.f32 %v2957_v17, 0.0  ;;  %v4360_v25 = vrot.slane %v1532_v29, 9  ;;  %v2645_v30 = vmax.f32 %v5054_v23, %v4357_v22  ;;  %v2646_v56 = vmax.f32 %v1530_v2, %v4358_v9 }
 0x118   : > { %v3198_v33 = vmax.f32 %v2958_v53, 0.0  ;;  %v3675_v3 = vperm.slane %v3195_v24, 0  ;;  %v3676_v39 = vperm.slane %v3196_v48, 0  ;;  %v2647_v40 = vmax.f32 %v1531_v28, %v4359_v60 }
 0x119   : > { %v3677_v41 = vperm.slane %v3197_v62, 0  ;;  %v2648_v6 = vmax.f32 %v1532_v29, %v4360_v25  ;;  %v2903_v38 = vadd.f32 %v4798_v51, %v2645_v30  ;;  %v2904_v31 = vadd.f32 %v4806_v63, %v2646_v56 }
 0x11a   : > { %v3678_v14 = vperm.slane %v3198_v33, 0  ;;  %v3898_v54 = vsel %vm3723_vm2, %v3676_v39, %v3675_v3  ;;  %v2905_v58 = vadd.f32 %v4801_v52, %v2647_v40  ;;  %v1354_v23 = vmax.f32 %v4969_v42, %v1008_v34 }
 0x11b   : > { %v3899_v59 = vsel %vm3725_vm3, %v3677_v41, %v3898_v54  ;;  %v2906_v21 = vadd.f32 %v4809_v0, %v2648_v6  ;;  %v3143_v46 = vmax.f32 %v2903_v38, 0.0  ;;  %v3144_v57 = vmax.f32 %v2904_v31, 0.0 }
 0x11c   : > { %v3900_v1 = vsel %vm3727_vm4, %v3678_v14, %v3899_v59  ;;  %v3145_v2 = vmax.f32 %v2905_v58, 0.0  ;;  %v1572_v4 = vrot.slane %v1354_v23, 2  ;;  %v1573_v7 = vrot.slane %v1354_v23, 4 }
 0x11d   : > { %v3146_v28 = vmax.f32 %v2906_v21, 0.0  ;;  %v3623_v29 = vperm.slane %v3143_v46, 0  ;;  %v3624_v32 = vperm.slane %v3144_v57, 0  ;;  %v1574_v8 = vrot.slane %v1354_v23, 6 }
 0x11e   : > { %v3625_v11 = vperm.slane %v3145_v2, 0  ;;  %v4413_v47 = vrot.slane %v1354_v23, 9  ;;  %v4414_v17 = vrot.slane %v1572_v4, 9  ;;  %v4415_v42 = vrot.slane %v1573_v7, 9  ;;  %v744_v2 = vpop.f32.mrf.mxu0 }
 0x11f   : > { %v3626_v22 = vperm.slane %v3146_v28, 0  ;;  %v3852_v9 = vsel %vm3729_vm5, %v3623_v29, %v3851_v15  ;;  %v4416_v53 = vrot.slane %v1574_v8, 9  ;;  %v1309_v24 = vmax.f32 %v4992_v36, %v741_v61  ;;  %v1011_v61 = vpop.f32.mrf.mxu3 }
 0x120   : > { %v3853_v48 = vsel %vm3731_vm6, %v3624_v32, %v3852_v9  ;;  %v2701_v60 = vmax.f32 %v1354_v23, %v4413_v47  ;;  %v2702_v62 = vmax.f32 %v1572_v4, %v4414_v17  ;;  %v2703_v25 = vmax.f32 %v1573_v7, %v4415_v42  ;;  %v5107_v23 = vpop.f32.mrf.mxu1 }
 0x121   : > { %v3854_v30 = vsel %vm3733_vm7, %v3625_v11, %v3853_v48  ;;  %v2704_v56 = vmax.f32 %v1574_v8, %v4416_v53  ;;  %v1437_v34 = vrot.slane %v1309_v24, 2  ;;  %v1438_v33 = vrot.slane %v1309_v24, 4  ;;  %v5112_v11 = vld [vmem:[%s5668_s2] ss:$0 sm:$0xff] }
 0x122   : > { %v3855_v3 = vsel %vm3735_vm8, %v3626_v22, %v3854_v30  ;;  %v2959_v39 = vadd.f32 %v4798_v51, %v2701_v60  ;;  %v2960_v40 = vadd.f32 %v4806_v63, %v2702_v62  ;;  %v2961_v15 = vadd.f32 %v4801_v52, %v2703_v25 }
 0x123   : > { %3987 = vst [vmem:[%s4872_s6 + $0x88] sm:$0xff] %v3855_v3  ;;  %v2962_v36 = vadd.f32 %v4809_v0, %v2704_v56  ;;  %v1439_v41 = vrot.slane %v1309_v24, 6  ;;  %v4233_v6 = vrot.slane %v1309_v24, 9  ;;  %v4234_v38 = vrot.slane %v1437_v34, 9 }
 0x124   : > { %v3199_v31 = vmax.f32 %v2959_v39, 0.0  ;;  %v3200_v14 = vmax.f32 %v2960_v40, 0.0  ;;  %v3201_v54 = vmax.f32 %v2961_v15, 0.0  ;;  %v4235_v58 = vrot.slane %v1438_v33, 9  ;;  %v5125_v40 = vpop.f32.mrf.mxu2 }
 0x125   : > { %v3202_v59 = vmax.f32 %v2962_v36, 0.0  ;;  %v4236_v21 = vrot.slane %v1439_v41, 9  ;;  %v2521_v46 = vmax.f32 %v1309_v24, %v4233_v6  ;;  %v2522_v57 = vmax.f32 %v1437_v34, %v4234_v38 }
 0x126   : > { %v3679_v4 = vperm.slane %v3199_v31, 0  ;;  %v3680_v7 = vperm.slane %v3200_v14, 0  ;;  %v3681_v28 = vperm.slane %v3201_v54, 0  ;;  %v2523_v29 = vmax.f32 %v1438_v33, %v4235_v58 }
 0x127   : > { %v3682_v32 = vperm.slane %v3202_v59, 0  ;;  %v2524_v8 = vmax.f32 %v1439_v41, %v4236_v21  ;;  %v2779_v47 = vadd.f32 %v5112_v11, %v2521_v46  ;;  %v2780_v17 = vadd.f32 %v4790_v49, %v2522_v57 }
 0x128   : > { %v3901_v42 = vsel %vm3729_vm5, %v3679_v4, %v3900_v1  ;;  %v2781_v22 = vadd.f32 %v4777_v37, %v2523_v29  ;;  %v1355_v9 = vmax.f32 %v4999_v19, %v1011_v61  ;;  %v1310_v53 = vmax.f32 %v5010_v20, %v744_v2  ;;  %v5129_v21 = vpop.f32.mrf.mxu1 }
 0x129   : > { %v3902_v24 = vsel %vm3731_vm6, %v3680_v7, %v3901_v42  ;;  %v2782_v48 = vadd.f32 %v4793_v50, %v2524_v8  ;;  %v3019_v60 = vmax.f32 %v2779_v47, 0.0  ;;  %v3020_v62 = vmax.f32 %v2780_v17, 0.0 }
 0x12a   : > { %v3903_v25 = vsel %vm3733_vm7, %v3681_v28, %v3902_v24  ;;  %v3021_v30 = vmax.f32 %v2781_v22, 0.0  ;;  %v1575_v56 = vrot.slane %v1355_v9, 2  ;;  %v1576_v34 = vrot.slane %v1355_v9, 4 }
 0x12b   : > { %v3904_v1 = vsel %vm3735_vm8, %v3682_v32, %v3903_v25  ;;  %v3022_v33 = vmax.f32 %v2782_v48, 0.0  ;;  %v3499_v3 = vperm.slane %v3019_v60, 0  ;;  %v3500_v39 = vperm.slane %v3020_v62, 0 }
 0x12c   : > { %3994 = vst [vmem:[%s4872_s6 + $0xc0] sm:$0xff] %v3904_v1  ;;  %v3501_v19 = vperm.slane %v3021_v30, 0  ;;  %v1577_v20 = vrot.slane %v1355_v9, 6  ;;  %v4417_v15 = vrot.slane %v1355_v9, 9  ;;  %v4418_v36 = vrot.slane %v1575_v56, 9  ;;  %v1014_v30 = vpop.f32.mrf.mxu3 }
 0x12d   : > { %v3502_v41 = vperm.slane %v3022_v33, 0  ;;  %v3744_v6 = vsel %vm3723_vm2, %v3500_v39, %v3499_v3  ;;  %v4419_v38 = vrot.slane %v1576_v34, 9  ;;  %v1440_v31 = vrot.slane %v1310_v53, 2 }
 0x12e   : > { %v3745_v14 = vsel %vm3725_vm3, %v3501_v19, %v3744_v6  ;;  %v4420_v54 = vrot.slane %v1577_v20, 9  ;;  %v2705_v58 = vmax.f32 %v1355_v9, %v4417_v15  ;;  %v2706_v59 = vmax.f32 %v1575_v56, %v4418_v36 }
 0x12f   : > { %v3746_v46 = vsel %vm3727_vm4, %v3502_v41, %v3745_v14  ;;  %v2707_v57 = vmax.f32 %v1576_v34, %v4419_v38  ;;  %v1441_v61 = vrot.slane %v1310_v53, 4  ;;  %v1442_v2 = vrot.slane %v1310_v53, 6  ;;  %v5141_v41 = vpop.f32.mrf.mxu2 }
 0x130   : > { %v2708_v4 = vmax.f32 %v1577_v20, %v4420_v54  ;;  %v2963_v7 = vadd.f32 %v5112_v11, %v2705_v58  ;;  %v2964_v28 = vadd.f32 %v4790_v49, %v2706_v59  ;;  %v4237_v29 = vrot.slane %v1310_v53, 9 }
 0x131   : > { %v2965_v32 = vadd.f32 %v4777_v37, %v2707_v57  ;;  %v4238_v8 = vrot.slane %v1440_v31, 9  ;;  %v4239_v47 = vrot.slane %v1441_v61, 9  ;;  %v4240_v17 = vrot.slane %v1442_v2, 9 }
 0x132   : > { %v2966_v42 = vadd.f32 %v4793_v50, %v2708_v4  ;;  %v3203_v22 = vmax.f32 %v2963_v7, 0.0  ;;  %v3204_v9 = vmax.f32 %v2964_v28, 0.0  ;;  %v2525_v24 = vmax.f32 %v1310_v53, %v4237_v29  ;;  %v837_v4 = vpop.f32.mrf.mxu1 }
 0x133   : > { %v3205_v48 = vmax.f32 %v2965_v32, 0.0  ;;  %v2526_v60 = vmax.f32 %v1440_v31, %v4238_v8  ;;  %v2527_v62 = vmax.f32 %v1441_v61, %v4239_v47  ;;  %v2528_v25 = vmax.f32 %v1442_v2, %v4240_v17  ;;  %v747_v2 = vpop.f32.mrf.mxu0 }
 0x134   : > { %v3206_v56 = vmax.f32 %v2966_v42, 0.0  ;;  %v3683_v34 = vperm.slane %v3203_v22, 0  ;;  %v3684_v1 = vperm.slane %v3204_v9, 0  ;;  %v2783_v33 = vadd.f32 %v4798_v51, %v2525_v24 }
 0x135   : > { %v3685_v3 = vperm.slane %v3205_v48, 0  ;;  %v2784_v39 = vadd.f32 %v4806_v63, %v2526_v60  ;;  %v2785_v19 = vadd.f32 %v4801_v52, %v2527_v62  ;;  %v2786_v20 = vadd.f32 %v4809_v0, %v2528_v25 }
 0x136   : > { %v3686_v15 = vperm.slane %v3206_v56, 0  ;;  %v3905_v53 = vsel %vm3723_vm2, %v3684_v1, %v3683_v34  ;;  %v3023_v36 = vmax.f32 %v2783_v33, 0.0  ;;  %v1356_v6 = vmax.f32 %v5022_v12, %v1014_v30 }
 0x137   : > { %v3906_v38 = vsel %vm3725_vm3, %v3685_v3, %v3905_v53  ;;  %v3024_v31 = vmax.f32 %v2784_v39, 0.0  ;;  %v3025_v14 = vmax.f32 %v2785_v19, 0.0  ;;  %v3026_v54 = vmax.f32 %v2786_v20, 0.0 }
 0x138   : > { %v3907_v58 = vsel %vm3727_vm4, %v3686_v15, %v3906_v38  ;;  %v3503_v59 = vperm.slane %v3023_v36, 0  ;;  %v1578_v57 = vrot.slane %v1356_v6, 2  ;;  %v1579_v61 = vrot.slane %v1356_v6, 4  ;;  %v5159_v38 = vpop.f32.mrf.mxu2 }
 0x139   : > { %v3504_v7 = vperm.slane %v3024_v31, 0  ;;  %v3505_v28 = vperm.slane %v3025_v14, 0  ;;  %v3506_v29 = vperm.slane %v3026_v54, 0  ;;  %v1580_v32 = vrot.slane %v1356_v6, 6 }
 0x13a   : > { %v3747_v8 = vsel %vm3729_vm5, %v3503_v59, %v3746_v46  ;;  %v4421_v12 = vrot.slane %v1356_v6, 9  ;;  %v4422_v47 = vrot.slane %v1578_v57, 9  ;;  %v4423_v17 = vrot.slane %v1579_v61, 9 }
 0x13b   : > { %v3748_v42 = vsel %vm3731_vm6, %v3504_v7, %v3747_v8  ;;  %v4424_v22 = vrot.slane %v1580_v32, 9  ;;  %v1311_v9 = vmax.f32 %v5043_v45, %v747_v2  ;;  %v5150_v24 = vmax.f32 %v5066_v43, %v837_v4 }
 0x13c   : > { %v3749_v48 = vsel %vm3733_vm7, %v3505_v28, %v3748_v42  ;;  %v2709_v60 = vmax.f32 %v1356_v6, %v4421_v12  ;;  %v2710_v62 = vmax.f32 %v1578_v57, %v4422_v47  ;;  %v2711_v25 = vmax.f32 %v1579_v61, %v4423_v17 }
 0x13d   : > { %v3750_v30 = vsel %vm3735_vm8, %v3506_v29, %v3749_v48  ;;  %v2712_v46 = vmax.f32 %v1580_v32, %v4424_v22  ;;  %v1443_v56 = vrot.slane %v1311_v9, 2  ;;  %v1444_v34 = vrot.slane %v1311_v9, 4 }
 0x13e   : > { %3972 = vst [vmem:[%s4872_s6 + $0x10] sm:$0xff] %v3750_v30  ;;  %v2967_v1 = vadd.f32 %v4798_v51, %v2709_v60  ;;  %v2968_v33 = vadd.f32 %v4806_v63, %v2710_v62  ;;  %v2969_v45 = vadd.f32 %v4801_v52, %v2711_v25  ;;  %v1445_v3 = vrot.slane %v1311_v9, 6 }
 0x13f   : > { %v2970_v43 = vadd.f32 %v4809_v0, %v2712_v46  ;;  %v4241_v39 = vrot.slane %v1311_v9, 9  ;;  %v4242_v19 = vrot.slane %v1443_v56, 9  ;;  %v4243_v20 = vrot.slane %v1444_v34, 9  ;;  %v840_v46 = vpop.f32.mrf.mxu1 }
 0x140   : > { %v3207_v15 = vmax.f32 %v2967_v1, 0.0  ;;  %v3208_v53 = vmax.f32 %v2968_v33, 0.0  ;;  %v3209_v36 = vmax.f32 %v2969_v45, 0.0  ;;  %v4244_v6 = vrot.slane %v1445_v3, 9 }
 0x141   : > { %v3210_v31 = vmax.f32 %v2970_v43, 0.0  ;;  %v2529_v14 = vmax.f32 %v1311_v9, %v4241_v39  ;;  %v2530_v54 = vmax.f32 %v1443_v56, %v4242_v19  ;;  %v2531_v59 = vmax.f32 %v1444_v34, %v4243_v20 }
 0x142   : > { %v3687_v57 = vperm.slane %v3207_v15, 0  ;;  %v3688_v61 = vperm.slane %v3208_v53, 0  ;;  %v3689_v2 = vperm.slane %v3209_v36, 0  ;;  %v2532_v4 = vmax.f32 %v1445_v3, %v4244_v6 }
 0x143   : > { %v3690_v7 = vperm.slane %v3210_v31, 0  ;;  %v2787_v28 = vadd.f32 %v5112_v11, %v2529_v14  ;;  %v2788_v29 = vadd.f32 %v4790_v49, %v2530_v54  ;;  %v2789_v32 = vadd.f32 %v4777_v37, %v2531_v59  ;;  %v5181_v54 = vpop.f32.mrf.mxu2 }
 0x144   : > { %v3908_v8 = vsel %vm3729_vm5, %v3687_v57, %v3907_v58  ;;  %v2790_v12 = vadd.f32 %v4793_v50, %v2532_v4  ;;  %v1485_v47 = vrot.slane %v5150_v24, 2  ;;  %v1486_v17 = vrot.slane %v5150_v24, 4  ;;  %v750_v58 = vpop.f32.mrf.mxu0 }
 0x145   : > { %v3909_v42 = vsel %vm3731_vm6, %v3688_v61, %v3908_v8  ;;  %v3027_v22 = vmax.f32 %v2787_v28, 0.0  ;;  %v3028_v9 = vmax.f32 %v2788_v29, 0.0  ;;  %v3029_v48 = vmax.f32 %v2789_v32, 0.0 }
 0x146   : > { %v3910_v60 = vsel %vm3733_vm7, %v3689_v2, %v3909_v42  ;;  %v3030_v62 = vmax.f32 %v2790_v12, 0.0  ;;  %v1487_v25 = vrot.slane %v5150_v24, 6  ;;  %v4297_v30 = vrot.slane %v5150_v24, 9 }
 0x147   : > { %v3911_v56 = vsel %vm3735_vm8, %v3690_v7, %v3910_v60  ;;  %v3507_v34 = vperm.slane %v3027_v22, 0  ;;  %v3508_v1 = vperm.slane %v3028_v9, 0  ;;  %v3509_v33 = vperm.slane %v3029_v48, 0  ;;  %v5188_v22 = vpop.f32.mrf.mxu3 }
 0x148   : > { %3995 = vst [vmem:[%s4872_s6 + $0xc8] sm:$0xff] %v3911_v56  ;;  %v3510_v45 = vperm.slane %v3030_v62, 0  ;;  %v4298_v3 = vrot.slane %v1485_v47, 9  ;;  %v4299_v43 = vrot.slane %v1486_v17, 9  ;;  %v4300_v39 = vrot.slane %v1487_v25, 9 }
 0x149   : > { %v3751_v19 = vsel %vm3723_vm2, %v3508_v1, %v3507_v34  ;;  %v2585_v20 = vmax.f32 %v5150_v24, %v4297_v30  ;;  %v1312_v15 = vmax.f32 %v5071_v16, %v750_v58  ;;  %v5178_v53 = vmax.f32 %v5090_v55, %v840_v46 }
 0x14a   : > { %v3752_v36 = vsel %vm3725_vm3, %v3509_v33, %v3751_v19  ;;  %v2586_v6 = vmax.f32 %v1485_v47, %v4298_v3  ;;  %v2587_v31 = vmax.f32 %v1486_v17, %v4299_v43  ;;  %v2588_v14 = vmax.f32 %v1487_v25, %v4300_v39 }
 0x14b   : > { %v3753_v59 = vsel %vm3727_vm4, %v3510_v45, %v3752_v36  ;;  %v2843_v57 = vadd.f32 %v5112_v11, %v2585_v20  ;;  %v1446_v61 = vrot.slane %v1312_v15, 2  ;;  %v1447_v2 = vrot.slane %v1312_v15, 4 }
 0x14c   : > { %v2844_v24 = vadd.f32 %v4790_v49, %v2586_v6  ;;  %v2845_v16 = vadd.f32 %v4777_v37, %v2587_v31  ;;  %v2846_v55 = vadd.f32 %v4793_v50, %v2588_v14  ;;  %v1448_v4 = vrot.slane %v1312_v15, 6 }
 0x14d   : > { %v3083_v7 = vmax.f32 %v2843_v57, 0.0  ;;  %v4245_v28 = vrot.slane %v1312_v15, 9  ;;  %v4246_v29 = vrot.slane %v1446_v61, 9  ;;  %v4247_v32 = vrot.slane %v1447_v2, 9  ;;  %v843_v57 = vpop.f32.mrf.mxu1 }
 0x14e   : > { %v3084_v8 = vmax.f32 %v2844_v24, 0.0  ;;  %v3085_v12 = vmax.f32 %v2845_v16, 0.0  ;;  %v3086_v47 = vmax.f32 %v2846_v55, 0.0  ;;  %v4248_v17 = vrot.slane %v1448_v4, 9 }
 0x14f   : > { %v3563_v42 = vperm.slane %v3083_v7, 0  ;;  %v2533_v9 = vmax.f32 %v1312_v15, %v4245_v28  ;;  %v2534_v48 = vmax.f32 %v1446_v61, %v4246_v29  ;;  %v2535_v60 = vmax.f32 %v1447_v2, %v4247_v32  ;;  %v933_v61 = vpop.f32.mrf.mxu2 }
 0x150   : > { %v3564_v62 = vperm.slane %v3084_v8, 0  ;;  %v3565_v25 = vperm.slane %v3085_v12, 0  ;;  %v3566_v30 = vperm.slane %v3086_v47, 0  ;;  %v2536_v58 = vmax.f32 %v1448_v4, %v4248_v17 }
 0x151   : > { %v2791_v46 = vadd.f32 %v4798_v51, %v2533_v9  ;;  %v2792_v56 = vadd.f32 %v4806_v63, %v2534_v48  ;;  %v2793_v34 = vadd.f32 %v4801_v52, %v2535_v60  ;;  %v1488_v1 = vrot.slane %v5178_v53, 2 }
 0x152   : > { %v3800_v33 = vsel %vm3723_vm2, %v3564_v62, %v3563_v42  ;;  %v2794_v45 = vadd.f32 %v4809_v0, %v2536_v58  ;;  %v1489_v3 = vrot.slane %v5178_v53, 4  ;;  %v1490_v43 = vrot.slane %v5178_v53, 6  ;;  %v5212_v62 = vpop.f32.mrf.mxu3 }
 0x153   : > { %v3801_v39 = vsel %vm3725_vm3, %v3565_v25, %v3800_v33  ;;  %v3031_v19 = vmax.f32 %v2791_v46, 0.0  ;;  %v3032_v20 = vmax.f32 %v2792_v56, 0.0  ;;  %v3033_v15 = vmax.f32 %v2793_v34, 0.0 }
 0x154   : > { %v3802_v36 = vsel %vm3727_vm4, %v3566_v30, %v3801_v39  ;;  %v3034_v6 = vmax.f32 %v2794_v45, 0.0  ;;  %v4301_v31 = vrot.slane %v5178_v53, 9  ;;  %v4302_v14 = vrot.slane %v1488_v1, 9 }
 0x155   : > { %v3511_v2 = vperm.slane %v3031_v19, 0  ;;  %v3512_v24 = vperm.slane %v3032_v20, 0  ;;  %v3513_v16 = vperm.slane %v3033_v15, 0  ;;  %v4303_v55 = vrot.slane %v1489_v3, 9 }
 0x156   : > { %v3514_v4 = vperm.slane %v3034_v6, 0  ;;  %v4304_v7 = vrot.slane %v1490_v43, 9  ;;  %v2589_v28 = vmax.f32 %v5178_v53, %v4301_v31  ;;  %v2590_v29 = vmax.f32 %v1488_v1, %v4302_v14 }
 0x157   : > { %v3754_v32 = vsel %vm3729_vm5, %v3511_v2, %v3753_v59  ;;  %v2591_v8 = vmax.f32 %v1489_v3, %v4303_v55  ;;  %v1327_v12 = vmax.f32 %v5107_v23, %v843_v57  ;;  %v5205_v47 = vmax.f32 %v5125_v40, %v933_v61  ;;  %v936_v55 = vpop.f32.mrf.mxu2 }
 0x158   : > { %v3755_v17 = vsel %vm3731_vm6, %v3512_v24, %v3754_v32  ;;  %v2592_v42 = vmax.f32 %v1490_v43, %v4304_v7  ;;  %v2847_v9 = vadd.f32 %v4798_v51, %v2589_v28  ;;  %v2848_v48 = vadd.f32 %v4806_v63, %v2590_v29  ;;  %v5227_v32 = vpop.f32.mrf.mxu0 }
 0x159   : > { %v3756_v60 = vsel %vm3733_vm7, %v3513_v16, %v3755_v17  ;;  %v2849_v53 = vadd.f32 %v4801_v52, %v2591_v8  ;;  %v1491_v59 = vrot.slane %v1327_v12, 2  ;;  %v1492_v25 = vrot.slane %v1327_v12, 4 }
 0x15a   : > { %v3757_v23 = vsel %vm3735_vm8, %v3514_v4, %v3756_v60  ;;  %v2850_v40 = vadd.f32 %v4809_v0, %v2592_v42  ;;  %v3087_v30 = vmax.f32 %v2847_v9, 0.0  ;;  %v3088_v58 = vmax.f32 %v2848_v48, 0.0 }
 0x15b   : > { %3973 = vst [vmem:[%s4872_s6 + $0x18] sm:$0xff] %v3757_v23  ;;  %v3089_v46 = vmax.f32 %v2849_v53, 0.0  ;;  %v1493_v56 = vrot.slane %v1327_v12, 6  ;;  %v4305_v34 = vrot.slane %v1327_v12, 9  ;;  %v4306_v1 = vrot.slane %v1491_v59, 9  ;;  %v846_v53 = vpop.f32.mrf.mxu1 }
 0x15c   : > { %v3090_v33 = vmax.f32 %v2850_v40, 0.0  ;;  %v3567_v45 = vperm.slane %v3087_v30, 0  ;;  %v3568_v3 = vperm.slane %v3088_v58, 0  ;;  %v4307_v43 = vrot.slane %v1492_v25, 9  ;;  %v5232_v30 = vpop.f32.mrf.mxu3 }
 0x15d   : > { %v3569_v39 = vperm.slane %v3089_v46, 0  ;;  %v4308_v19 = vrot.slane %v1493_v56, 9  ;;  %v2593_v20 = vmax.f32 %v1327_v12, %v4305_v34  ;;  %v2594_v15 = vmax.f32 %v1491_v59, %v4306_v1 }
 0x15e   : > { %v3570_v6 = vperm.slane %v3090_v33, 0  ;;  %v3803_v31 = vsel %vm3729_vm5, %v3567_v45, %v3802_v36  ;;  %v2595_v14 = vmax.f32 %v1492_v25, %v4307_v43  ;;  %v1533_v57 = vrot.slane %v5205_v47, 2 }
 0x15f   : > { %v3804_v61 = vsel %vm3731_vm6, %v3568_v3, %v3803_v31  ;;  %v2596_v2 = vmax.f32 %v1493_v56, %v4308_v19  ;;  %v2851_v24 = vadd.f32 %v5112_v11, %v2593_v20  ;;  %v2852_v16 = vadd.f32 %v4790_v49, %v2594_v15 }
 0x160   : > { %v3805_v4 = vsel %vm3733_vm7, %v3569_v39, %v3804_v61  ;;  %v2853_v7 = vadd.f32 %v4777_v37, %v2595_v14  ;;  %v1534_v28 = vrot.slane %v5205_v47, 4  ;;  %v1535_v36 = vrot.slane %v5205_v47, 6 }
 0x161   : > { %v3806_v29 = vsel %vm3735_vm8, %v3570_v6, %v3805_v4  ;;  %v2854_v8 = vadd.f32 %v4793_v50, %v2596_v2  ;;  %v3091_v12 = vmax.f32 %v2851_v24, 0.0  ;;  %v3092_v17 = vmax.f32 %v2852_v16, 0.0 }
 0x162   : > { %3980 = vst [vmem:[%s4872_s6 + $0x50] sm:$0xff] %v3806_v29  ;;  %v3093_v42 = vmax.f32 %v2853_v7, 0.0  ;;  %v4361_v9 = vrot.slane %v5205_v47, 9  ;;  %v4362_v48 = vrot.slane %v1533_v57, 9  ;;  %v4363_v60 = vrot.slane %v1534_v28, 9  ;;  %v939_v7 = vpop.f32.mrf.mxu2 }
 0x163   : > { %v3094_v59 = vmax.f32 %v2854_v8, 0.0  ;;  %v3571_v25 = vperm.slane %v3091_v12, 0  ;;  %v3572_v23 = vperm.slane %v3092_v17, 0  ;;  %v4364_v40 = vrot.slane %v1535_v36, 9  ;;  %v5243_v17 = vpop.f32.mrf.mxu0 }
 0x164   : > { %v3573_v58 = vperm.slane %v3093_v42, 0  ;;  %v2649_v46 = vmax.f32 %v5205_v47, %v4361_v9  ;;  %v2650_v56 = vmax.f32 %v1533_v57, %v4362_v48  ;;  %v2651_v34 = vmax.f32 %v1534_v28, %v4363_v60 }
 0x165   : > { %v3574_v1 = vperm.slane %v3094_v59, 0  ;;  %v3807_v33 = vsel %vm3723_vm2, %v3572_v23, %v3571_v25  ;;  %v2652_v45 = vmax.f32 %v1535_v36, %v4364_v40  ;;  %v1328_v3 = vmax.f32 %v5129_v21, %v846_v53 }
 0x166   : > { %v3808_v43 = vsel %vm3725_vm3, %v3573_v58, %v3807_v33  ;;  %v2907_v39 = vadd.f32 %v5112_v11, %v2649_v46  ;;  %v2908_v19 = vadd.f32 %v4790_v49, %v2650_v56  ;;  %v2909_v20 = vadd.f32 %v4777_v37, %v2651_v34  ;;  %v5252_v56 = vpop.f32.mrf.mxu3 }
 0x167   : > { %v3809_v15 = vsel %vm3727_vm4, %v3574_v1, %v3808_v43  ;;  %v2910_v47 = vadd.f32 %v4793_v50, %v2652_v45  ;;  %v1494_v6 = vrot.slane %v1328_v3, 2  ;;  %v1495_v31 = vrot.slane %v1328_v3, 4 }
 0x168   : > { %v3147_v14 = vmax.f32 %v2907_v39, 0.0  ;;  %v3148_v57 = vmax.f32 %v2908_v19, 0.0  ;;  %v3149_v61 = vmax.f32 %v2909_v20, 0.0  ;;  %v1496_v2 = vrot.slane %v1328_v3, 6 }
 0x169   : > { %v3150_v24 = vmax.f32 %v2910_v47, 0.0  ;;  %v4309_v21 = vrot.slane %v1328_v3, 9  ;;  %v4310_v16 = vrot.slane %v1494_v6, 9  ;;  %v4311_v4 = vrot.slane %v1495_v31, 9 }
 0x16a   : > { %v3627_v28 = vperm.slane %v3147_v14, 0  ;;  %v3628_v36 = vperm.slane %v3148_v57, 0  ;;  %v3629_v29 = vperm.slane %v3149_v61, 0  ;;  %v4312_v8 = vrot.slane %v1496_v2, 9 }
 0x16b   : > { %v3630_v12 = vperm.slane %v3150_v24, 0  ;;  %v2597_v42 = vmax.f32 %v1328_v3, %v4309_v21  ;;  %v2598_v9 = vmax.f32 %v1494_v6, %v4310_v16  ;;  %v2599_v48 = vmax.f32 %v1495_v31, %v4311_v4 }
 0x16c   : > { %v3856_v60 = vsel %vm3723_vm2, %v3628_v36, %v3627_v28  ;;  %v2600_v53 = vmax.f32 %v1496_v2, %v4312_v8  ;;  %v1342_v59 = vmax.f32 %v5141_v41, %v936_v55  ;;  %v1343_v25 = vmax.f32 %v5159_v38, %v939_v7 }
 0x16d   : > { %v3857_v23 = vsel %vm3725_vm3, %v3629_v29, %v3856_v60  ;;  %v2855_v40 = vadd.f32 %v4798_v51, %v2597_v42  ;;  %v2856_v58 = vadd.f32 %v4806_v63, %v2598_v9  ;;  %v2857_v46 = vadd.f32 %v4801_v52, %v2599_v48  ;;  %v5263_v9 = vpop.f32.mrf.mxu0 }
 0x16e   : > { %v3858_v34 = vsel %vm3727_vm4, %v3630_v12, %v3857_v23  ;;  %v2858_v1 = vadd.f32 %v4809_v0, %v2600_v53  ;;  %v1536_v33 = vrot.slane %v1342_v59, 2  ;;  %v1537_v45 = vrot.slane %v1342_v59, 4 }
 0x16f   : > { %v3095_v3 = vmax.f32 %v2855_v40, 0.0  ;;  %v3096_v41 = vmax.f32 %v2856_v58, 0.0  ;;  %v3097_v55 = vmax.f32 %v2857_v46, 0.0  ;;  %v1538_v38 = vrot.slane %v1342_v59, 6 }
 0x170   : > { %v3098_v43 = vmax.f32 %v2858_v1, 0.0  ;;  %v4365_v39 = vrot.slane %v1342_v59, 9  ;;  %v4366_v19 = vrot.slane %v1536_v33, 9  ;;  %v4367_v20 = vrot.slane %v1537_v45, 9 }
 0x171   : > { %v3575_v47 = vperm.slane %v3095_v3, 0  ;;  %v3576_v6 = vperm.slane %v3096_v41, 0  ;;  %v3577_v31 = vperm.slane %v3097_v55, 0  ;;  %v4368_v14 = vrot.slane %v1538_v38, 9 }
 0x172   : > { %v3578_v57 = vperm.slane %v3098_v43, 0  ;;  %v2653_v61 = vmax.f32 %v1342_v59, %v4365_v39  ;;  %v2654_v2 = vmax.f32 %v1536_v33, %v4366_v19  ;;  %v2655_v24 = vmax.f32 %v1537_v45, %v4367_v20  ;;  %v1029_v33 = vpop.f32.mrf.mxu3  ;;  %v942_v45 = vpop.f32.mrf.mxu2 }
 0x173   : > { %v3810_v21 = vsel %vm3729_vm5, %v3575_v47, %v3809_v15  ;;  %v2656_v16 = vmax.f32 %v1538_v38, %v4368_v14  ;;  %v1539_v4 = vrot.slane %v1343_v25, 2  ;;  %v1540_v7 = vrot.slane %v1343_v25, 4 }
 0x174   : > { %v3811_v28 = vsel %vm3731_vm6, %v3576_v6, %v3810_v21  ;;  %v2911_v36 = vadd.f32 %v4798_v51, %v2653_v61  ;;  %v2912_v29 = vadd.f32 %v4806_v63, %v2654_v2  ;;  %v2913_v8 = vadd.f32 %v4801_v52, %v2655_v24 }
 0x175   : > { %v3812_v12 = vsel %vm3733_vm7, %v3577_v31, %v3811_v28  ;;  %v2914_v42 = vadd.f32 %v4809_v0, %v2656_v16  ;;  %v1541_v48 = vrot.slane %v1343_v25, 6  ;;  %v4369_v15 = vrot.slane %v1343_v25, 9 }
 0x176   : > { %v3813_v60 = vsel %vm3735_vm8, %v3578_v57, %v3812_v12  ;;  %v3151_v53 = vmax.f32 %v2911_v36, 0.0  ;;  %v3152_v59 = vmax.f32 %v2912_v29, 0.0  ;;  %v3153_v23 = vmax.f32 %v2913_v8, 0.0 }
 0x177   : > { %3981 = vst [vmem:[%s4872_s6 + $0x58] sm:$0xff] %v3813_v60  ;;  %v3154_v40 = vmax.f32 %v2914_v42, 0.0  ;;  %v4370_v58 = vrot.slane %v1539_v4, 9  ;;  %v4371_v46 = vrot.slane %v1540_v7, 9  ;;  %v4372_v1 = vrot.slane %v1541_v48, 9 }
 0x178   : > { %v3631_v3 = vperm.slane %v3151_v53, 0  ;;  %v3632_v41 = vperm.slane %v3152_v59, 0  ;;  %v3633_v55 = vperm.slane %v3153_v23, 0  ;;  %v2657_v38 = vmax.f32 %v1343_v25, %v4369_v15  ;;  %v5280_v53 = vpop.f32.mrf.mxu0 }
 0x179   : > { %v3634_v43 = vperm.slane %v3154_v40, 0  ;;  %v2658_v39 = vmax.f32 %v1539_v4, %v4370_v58  ;;  %v2659_v19 = vmax.f32 %v1540_v7, %v4371_v46  ;;  %v2660_v20 = vmax.f32 %v1541_v48, %v4372_v1 }
 0x17a   : > { %v3859_v47 = vsel %vm3729_vm5, %v3631_v3, %v3858_v34  ;;  %v2915_v6 = vadd.f32 %v5112_v11, %v2657_v38  ;;  %v1357_v31 = vmax.f32 %v5188_v22, %v1029_v33  ;;  %v1344_v14 = vmax.f32 %v5181_v54, %v942_v45  ;;  %v5278_v54 = vpop.f32.mrf.mxu1 }
 0x17b   : > { %v3860_v57 = vsel %vm3731_vm6, %v3632_v41, %v3859_v47  ;;  %v2916_v61 = vadd.f32 %v4790_v49, %v2658_v39  ;;  %v2917_v2 = vadd.f32 %v4777_v37, %v2659_v19  ;;  %v2918_v25 = vadd.f32 %v4793_v50, %v2660_v20 }
 0x17c   : > { %v3861_v24 = vsel %vm3733_vm7, %v3633_v55, %v3860_v57  ;;  %v3155_v21 = vmax.f32 %v2915_v6, 0.0  ;;  %v1581_v16 = vrot.slane %v1357_v31, 2  ;;  %v1582_v34 = vrot.slane %v1357_v31, 4 }
 0x17d   : > { %v3862_v4 = vsel %vm3735_vm8, %v3634_v43, %v3861_v24  ;;  %v3156_v7 = vmax.f32 %v2916_v61, 0.0  ;;  %v3157_v28 = vmax.f32 %v2917_v2, 0.0  ;;  %v3158_v22 = vmax.f32 %v2918_v25, 0.0 }
 0x17e   : > { %3988 = vst [vmem:[%s4872_s6 + $0x90] sm:$0xff] %v3862_v4  ;;  %v3635_v36 = vperm.slane %v3155_v21, 0  ;;  %v1583_v29 = vrot.slane %v1357_v31, 6  ;;  %v4425_v8 = vrot.slane %v1357_v31, 9  ;;  %v4426_v12 = vrot.slane %v1581_v16, 9  ;;  %v1032_v21 = vpop.f32.mrf.mxu3 }
 0x17f   : > { %v3636_v42 = vperm.slane %v3156_v7, 0  ;;  %v3637_v48 = vperm.slane %v3157_v28, 0  ;;  %v3638_v15 = vperm.slane %v3158_v22, 0  ;;  %v4427_v60 = vrot.slane %v1582_v34, 9 }
 0x180   : > { %v4428_v59 = vrot.slane %v1583_v29, 9  ;;  %v2713_v23 = vmax.f32 %v1357_v31, %v4425_v8  ;;  %v2714_v40 = vmax.f32 %v1581_v16, %v4426_v12  ;;  %v1542_v58 = vrot.slane %v1344_v14, 2 }
 0x181   : > { %v3863_v46 = vsel %vm3723_vm2, %v3636_v42, %v3635_v36  ;;  %v2715_v1 = vmax.f32 %v1582_v34, %v4427_v60  ;;  %v1543_v33 = vrot.slane %v1344_v14, 4  ;;  %v1544_v45 = vrot.slane %v1344_v14, 6 }
 0x182   : > { %v3864_v3 = vsel %vm3725_vm3, %v3637_v48, %v3863_v46  ;;  %v2716_v41 = vmax.f32 %v1583_v29, %v4428_v59  ;;  %v2971_v55 = vadd.f32 %v5112_v11, %v2713_v23  ;;  %v2972_v38 = vadd.f32 %v4790_v49, %v2714_v40  ;;  %v5292_v42 = vpop.f32.mrf.mxu1  ;;  %v765_v40 = vpop.f32.mrf.mxu0 }
 0x183   : > { %v3865_v43 = vsel %vm3727_vm4, %v3638_v15, %v3864_v3  ;;  %v2973_v39 = vadd.f32 %v4777_v37, %v2715_v1  ;;  %v4373_v19 = vrot.slane %v1344_v14, 9  ;;  %v4374_v20 = vrot.slane %v1542_v58, 9 }
 0x184   : > { %v2974_v47 = vadd.f32 %v4793_v50, %v2716_v41  ;;  %v3211_v6 = vmax.f32 %v2971_v55, 0.0  ;;  %v3212_v31 = vmax.f32 %v2972_v38, 0.0  ;;  %v4375_v57 = vrot.slane %v1543_v33, 9 }
 0x185   : > { %v3213_v61 = vmax.f32 %v2973_v39, 0.0  ;;  %v4376_v2 = vrot.slane %v1544_v45, 9  ;;  %v2661_v25 = vmax.f32 %v1344_v14, %v4373_v19  ;;  %v2662_v24 = vmax.f32 %v1542_v58, %v4374_v20 }
 0x186   : > { %v3214_v16 = vmax.f32 %v2974_v47, 0.0  ;;  %v3691_v34 = vperm.slane %v3211_v6, 0  ;;  %v3692_v4 = vperm.slane %v3212_v31, 0  ;;  %v2663_v7 = vmax.f32 %v1543_v33, %v4375_v57 }
 0x187   : > { %v3693_v28 = vperm.slane %v3213_v61, 0  ;;  %v2664_v22 = vmax.f32 %v1544_v45, %v4376_v2  ;;  %v2919_v36 = vadd.f32 %v4798_v51, %v2661_v25  ;;  %v2920_v29 = vadd.f32 %v4806_v63, %v2662_v24 }
 0x188   : > { %v3694_v8 = vperm.slane %v3214_v16, 0  ;;  %v3912_v12 = vsel %vm3723_vm2, %v3692_v4, %v3691_v34  ;;  %v2921_v48 = vadd.f32 %v4801_v52, %v2663_v7  ;;  %v1358_v14 = vmax.f32 %v5212_v62, %v1032_v21 }
 0x189   : > { %v3913_v15 = vsel %vm3725_vm3, %v3693_v28, %v3912_v12  ;;  %v2922_v60 = vadd.f32 %v4809_v0, %v2664_v22  ;;  %v3159_v59 = vmax.f32 %v2919_v36, 0.0  ;;  %v3160_v23 = vmax.f32 %v2920_v29, 0.0 }
 0x18a   : > { %v3914_v58 = vsel %vm3727_vm4, %v3694_v8, %v3913_v15  ;;  %v3161_v46 = vmax.f32 %v2921_v48, 0.0  ;;  %v1584_v1 = vrot.slane %v1358_v14, 2  ;;  %v1585_v33 = vrot.slane %v1358_v14, 4  ;;  %v5309_v15 = vpop.f32.mrf.mxu1 }
 0x18b   : > { %v3162_v45 = vmax.f32 %v2922_v60, 0.0  ;;  %v3639_v3 = vperm.slane %v3159_v59, 0  ;;  %v3640_v41 = vperm.slane %v3160_v23, 0  ;;  %v1586_v55 = vrot.slane %v1358_v14, 6 }
 0x18c   : > { %v3641_v38 = vperm.slane %v3161_v46, 0  ;;  %v4429_v39 = vrot.slane %v1358_v14, 9  ;;  %v4430_v19 = vrot.slane %v1584_v1, 9  ;;  %v4431_v62 = vrot.slane %v1585_v33, 9  ;;  %v1035_v46 = vpop.f32.mrf.mxu3 }
 0x18d   : > { %v3642_v20 = vperm.slane %v3162_v45, 0  ;;  %v3866_v47 = vsel %vm3729_vm5, %v3639_v3, %v3865_v43  ;;  %v4432_v6 = vrot.slane %v1586_v55, 9  ;;  %v1313_v31 = vmax.f32 %v5227_v32, %v765_v40 }
 0x18e   : > { %v3867_v57 = vsel %vm3731_vm6, %v3640_v41, %v3866_v47  ;;  %v2717_v61 = vmax.f32 %v1358_v14, %v4429_v39  ;;  %v2718_v2 = vmax.f32 %v1584_v1, %v4430_v19  ;;  %v2719_v25 = vmax.f32 %v1585_v33, %v4431_v62  ;;  %v768_v1 = vpop.f32.mrf.mxu0 }
 0x18f   : > { %v3868_v24 = vsel %vm3733_vm7, %v3641_v38, %v3867_v57  ;;  %v2720_v21 = vmax.f32 %v1586_v55, %v4432_v6  ;;  %v1449_v16 = vrot.slane %v1313_v31, 2  ;;  %v1450_v34 = vrot.slane %v1313_v31, 4 }
 0x190   : > { %v3869_v4 = vsel %vm3735_vm8, %v3642_v20, %v3868_v24  ;;  %v2975_v7 = vadd.f32 %v4798_v51, %v2717_v61  ;;  %v2976_v28 = vadd.f32 %v4806_v63, %v2718_v2  ;;  %v2977_v43 = vadd.f32 %v4801_v52, %v2719_v25 }
 0x191   : > { %3989 = vst [vmem:[%s4872_s6 + $0x98] sm:$0xff] %v3869_v4  ;;  %v2978_v32 = vadd.f32 %v4809_v0, %v2720_v21  ;;  %v1451_v22 = vrot.slane %v1313_v31, 6  ;;  %v4249_v36 = vrot.slane %v1313_v31, 9  ;;  %v4250_v29 = vrot.slane %v1449_v16, 9 }
 0x192   : > { %v3215_v8 = vmax.f32 %v2975_v7, 0.0  ;;  %v3216_v12 = vmax.f32 %v2976_v28, 0.0  ;;  %v3217_v48 = vmax.f32 %v2977_v43, 0.0  ;;  %v4251_v14 = vrot.slane %v1450_v34, 9  ;;  %v5322_v7 = vpop.f32.mrf.mxu2 }
 0x193   : > { %v3218_v60 = vmax.f32 %v2978_v32, 0.0  ;;  %v4252_v59 = vrot.slane %v1451_v22, 9  ;;  %v2537_v23 = vmax.f32 %v1313_v31, %v4249_v36  ;;  %v2538_v40 = vmax.f32 %v1449_v16, %v4250_v29 }
 0x194   : > { %v3695_v33 = vperm.slane %v3215_v8, 0  ;;  %v3696_v45 = vperm.slane %v3216_v12, 0  ;;  %v3697_v3 = vperm.slane %v3217_v48, 0  ;;  %v2539_v41 = vmax.f32 %v1450_v34, %v4251_v14 }
 0x195   : > { %v3698_v55 = vperm.slane %v3218_v60, 0  ;;  %v2540_v38 = vmax.f32 %v1451_v22, %v4252_v59  ;;  %v2795_v39 = vadd.f32 %v5112_v11, %v2537_v23  ;;  %v2796_v19 = vadd.f32 %v4790_v49, %v2538_v40  ;;  %v5326_v60 = vpop.f32.mrf.mxu1 }
 0x196   : > { %v3915_v62 = vsel %vm3729_vm5, %v3695_v33, %v3914_v58  ;;  %v2797_v20 = vadd.f32 %v4777_v37, %v2539_v41  ;;  %v1359_v47 = vmax.f32 %v5232_v30, %v1035_v46  ;;  %v1314_v6 = vmax.f32 %v5243_v17, %v768_v1  ;;  %v5332_v33 = vld [vmem:[%s5668_s2] ss:$0 sm:$0xff] }
 0x197   : > { %v3916_v31 = vsel %vm3731_vm6, %v3696_v45, %v3915_v62  ;;  %v2798_v57 = vadd.f32 %v4793_v50, %v2540_v38  ;;  %v3035_v61 = vmax.f32 %v2795_v39, 0.0  ;;  %v3036_v2 = vmax.f32 %v2796_v19, 0.0 }
 0x198   : > { %v3917_v25 = vsel %vm3733_vm7, %v3697_v3, %v3916_v31  ;;  %v3037_v11 = vmax.f32 %v2797_v20, 0.0  ;;  %v1587_v24 = vrot.slane %v1359_v47, 2  ;;  %v1588_v21 = vrot.slane %v1359_v47, 4 }
 0x199   : > { %v3918_v58 = vsel %vm3735_vm8, %v3698_v55, %v3917_v25  ;;  %v3038_v16 = vmax.f32 %v2798_v57, 0.0  ;;  %v3515_v34 = vperm.slane %v3035_v61, 0  ;;  %v3516_v4 = vperm.slane %v3036_v2, 0 }
 0x19a   : > { %3996 = vst [vmem:[%s4872_s6 + $0xd0] sm:$0xff] %v3918_v58  ;;  %v3517_v30 = vperm.slane %v3037_v11, 0  ;;  %v1589_v17 = vrot.slane %v1359_v47, 6  ;;  %v4433_v28 = vrot.slane %v1359_v47, 9  ;;  %v4434_v43 = vrot.slane %v1587_v24, 9  ;;  %v1038_v11 = vpop.f32.mrf.mxu3 }
 0x19b   : > { %v3518_v32 = vperm.slane %v3038_v16, 0  ;;  %v3758_v22 = vsel %vm3723_vm2, %v3516_v4, %v3515_v34  ;;  %v4435_v36 = vrot.slane %v1588_v21, 9  ;;  %v1452_v29 = vrot.slane %v1314_v6, 2 }
 0x19c   : > { %v3759_v8 = vsel %vm3725_vm3, %v3517_v30, %v3758_v22  ;;  %v4436_v12 = vrot.slane %v1589_v17, 9  ;;  %v2721_v48 = vmax.f32 %v1359_v47, %v4433_v28  ;;  %v2722_v14 = vmax.f32 %v1587_v24, %v4434_v43 }
 0x19d   : > { %v3760_v59 = vsel %vm3727_vm4, %v3518_v32, %v3759_v8  ;;  %v2723_v23 = vmax.f32 %v1588_v21, %v4435_v36  ;;  %v1453_v40 = vrot.slane %v1314_v6, 4  ;;  %v1454_v46 = vrot.slane %v1314_v6, 6  ;;  %v5343_v32 = vpop.f32.mrf.mxu2 }
 0x19e   : > { %v2724_v1 = vmax.f32 %v1589_v17, %v4436_v12  ;;  %v2979_v45 = vadd.f32 %v5332_v33, %v2721_v48  ;;  %v2980_v3 = vadd.f32 %v4790_v49, %v2722_v14  ;;  %v4253_v41 = vrot.slane %v1314_v6, 9 }
 0x19f   : > { %v2981_v55 = vadd.f32 %v4777_v37, %v2723_v23  ;;  %v4254_v38 = vrot.slane %v1452_v29, 9  ;;  %v4255_v39 = vrot.slane %v1453_v40, 9  ;;  %v4256_v19 = vrot.slane %v1454_v46, 9 }
 0x1a0   : > { %v2982_v62 = vadd.f32 %v4793_v50, %v2724_v1  ;;  %v3219_v20 = vmax.f32 %v2979_v45, 0.0  ;;  %v3220_v47 = vmax.f32 %v2980_v3, 0.0  ;;  %v2541_v31 = vmax.f32 %v1314_v6, %v4253_v41  ;;  %v861_v1 = vpop.f32.mrf.mxu1 }
 0x1a1   : > { %v3221_v57 = vmax.f32 %v2981_v55, 0.0  ;;  %v2542_v61 = vmax.f32 %v1452_v29, %v4254_v38  ;;  %v2543_v2 = vmax.f32 %v1453_v40, %v4255_v39  ;;  %v2544_v25 = vmax.f32 %v1454_v46, %v4256_v19  ;;  %v771_v46 = vpop.f32.mrf.mxu0 }
 0x1a2   : > { %v3222_v24 = vmax.f32 %v2982_v62, 0.0  ;;  %v3699_v21 = vperm.slane %v3219_v20, 0  ;;  %v3700_v58 = vperm.slane %v3220_v47, 0  ;;  %v2799_v16 = vadd.f32 %v4798_v51, %v2541_v31 }
 0x1a3   : > { %v3701_v34 = vperm.slane %v3221_v57, 0  ;;  %v2800_v4 = vadd.f32 %v4806_v63, %v2542_v61  ;;  %v2801_v30 = vadd.f32 %v4801_v52, %v2543_v2  ;;  %v2802_v17 = vadd.f32 %v4809_v0, %v2544_v25 }
 0x1a4   : > { %v3702_v28 = vperm.slane %v3222_v24, 0  ;;  %v3919_v6 = vsel %vm3723_vm2, %v3700_v58, %v3699_v21  ;;  %v3039_v43 = vmax.f32 %v2799_v16, 0.0  ;;  %v1360_v22 = vmax.f32 %v5252_v56, %v1038_v11 }
 0x1a5   : > { %v3920_v36 = vsel %vm3725_vm3, %v3701_v34, %v3919_v6  ;;  %v3040_v29 = vmax.f32 %v2800_v4, 0.0  ;;  %v3041_v8 = vmax.f32 %v2801_v30, 0.0  ;;  %v3042_v12 = vmax.f32 %v2802_v17, 0.0 }
 0x1a6   : > { %v3921_v48 = vsel %vm3727_vm4, %v3702_v28, %v3920_v36  ;;  %v3519_v14 = vperm.slane %v3039_v43, 0  ;;  %v1590_v23 = vrot.slane %v1360_v22, 2  ;;  %v1591_v40 = vrot.slane %v1360_v22, 4  ;;  %v5361_v36 = vpop.f32.mrf.mxu2 }
 0x1a7   : > { %v3520_v45 = vperm.slane %v3040_v29, 0  ;;  %v3521_v3 = vperm.slane %v3041_v8, 0  ;;  %v3522_v41 = vperm.slane %v3042_v12, 0  ;;  %v1592_v55 = vrot.slane %v1360_v22, 6 }
 0x1a8   : > { %v3761_v38 = vsel %vm3729_vm5, %v3519_v14, %v3760_v59  ;;  %v4437_v56 = vrot.slane %v1360_v22, 9  ;;  %v4438_v39 = vrot.slane %v1590_v23, 9  ;;  %v4439_v19 = vrot.slane %v1591_v40, 9 }
 0x1a9   : > { %v3762_v62 = vsel %vm3731_vm6, %v3520_v45, %v3761_v38  ;;  %v4440_v20 = vrot.slane %v1592_v55, 9  ;;  %v1315_v47 = vmax.f32 %v5263_v9, %v771_v46  ;;  %v5352_v31 = vmax.f32 %v5278_v54, %v861_v1 }
 0x1aa   : > { %v3763_v57 = vsel %vm3733_vm7, %v3521_v3, %v3762_v62  ;;  %v2725_v61 = vmax.f32 %v1360_v22, %v4437_v56  ;;  %v2726_v2 = vmax.f32 %v1590_v23, %v4438_v39  ;;  %v2727_v25 = vmax.f32 %v1591_v40, %v4439_v19 }
 0x1ab   : > { %v3764_v11 = vsel %vm3735_vm8, %v3522_v41, %v3763_v57  ;;  %v2728_v59 = vmax.f32 %v1592_v55, %v4440_v20  ;;  %v1455_v24 = vrot.slane %v1315_v47, 2  ;;  %v1456_v21 = vrot.slane %v1315_v47, 4 }
 0x1ac   : > { %3974 = vst [vmem:[%s4872_s6 + $0x20] sm:$0xff] %v3764_v11  ;;  %v2983_v58 = vadd.f32 %v4798_v51, %v2725_v61  ;;  %v2984_v16 = vadd.f32 %v4806_v63, %v2726_v2  ;;  %v2985_v9 = vadd.f32 %v4801_v52, %v2727_v25  ;;  %v1457_v34 = vrot.slane %v1315_v47, 6 }
 0x1ad   : > { %v2986_v54 = vadd.f32 %v4809_v0, %v2728_v59  ;;  %v4257_v4 = vrot.slane %v1315_v47, 9  ;;  %v4258_v30 = vrot.slane %v1455_v24, 9  ;;  %v4259_v17 = vrot.slane %v1456_v21, 9  ;;  %v864_v59 = vpop.f32.mrf.mxu1 }
 0x1ae   : > { %v3223_v28 = vmax.f32 %v2983_v58, 0.0  ;;  %v3224_v6 = vmax.f32 %v2984_v16, 0.0  ;;  %v3225_v43 = vmax.f32 %v2985_v9, 0.0  ;;  %v4260_v22 = vrot.slane %v1457_v34, 9 }
 0x1af   : > { %v3226_v29 = vmax.f32 %v2986_v54, 0.0  ;;  %v2545_v8 = vmax.f32 %v1315_v47, %v4257_v4  ;;  %v2546_v12 = vmax.f32 %v1455_v24, %v4258_v30  ;;  %v2547_v14 = vmax.f32 %v1456_v21, %v4259_v17 }
 0x1b0   : > { %v3703_v23 = vperm.slane %v3223_v28, 0  ;;  %v3704_v40 = vperm.slane %v3224_v6, 0  ;;  %v3705_v46 = vperm.slane %v3225_v43, 0  ;;  %v2548_v1 = vmax.f32 %v1457_v34, %v4260_v22 }
 0x1b1   : > { %v3706_v45 = vperm.slane %v3226_v29, 0  ;;  %v2803_v3 = vadd.f32 %v5332_v33, %v2545_v8  ;;  %v2804_v41 = vadd.f32 %v4790_v49, %v2546_v12  ;;  %v2805_v55 = vadd.f32 %v4777_v37, %v2547_v14  ;;  %v5383_v12 = vpop.f32.mrf.mxu2 }
 0x1b2   : > { %v3922_v38 = vsel %vm3729_vm5, %v3703_v23, %v3921_v48  ;;  %v2806_v56 = vadd.f32 %v4793_v50, %v2548_v1  ;;  %v1497_v39 = vrot.slane %v5352_v31, 2  ;;  %v1498_v19 = vrot.slane %v5352_v31, 4  ;;  %v774_v48 = vpop.f32.mrf.mxu0 }
 0x1b3   : > { %v3923_v62 = vsel %vm3731_vm6, %v3704_v40, %v3922_v38  ;;  %v3043_v20 = vmax.f32 %v2803_v3, 0.0  ;;  %v3044_v47 = vmax.f32 %v2804_v41, 0.0  ;;  %v3045_v57 = vmax.f32 %v2805_v55, 0.0 }
 0x1b4   : > { %v3924_v61 = vsel %vm3733_vm7, %v3705_v46, %v3923_v62  ;;  %v3046_v2 = vmax.f32 %v2806_v56, 0.0  ;;  %v1499_v25 = vrot.slane %v5352_v31, 6  ;;  %v4313_v11 = vrot.slane %v5352_v31, 9 }
 0x1b5   : > { %v3925_v24 = vsel %vm3735_vm8, %v3706_v45, %v3924_v61  ;;  %v3523_v21 = vperm.slane %v3043_v20, 0  ;;  %v3524_v58 = vperm.slane %v3044_v47, 0  ;;  %v3525_v16 = vperm.slane %v3045_v57, 0 }
 0x1b6   : > { %3997 = vst [vmem:[%s4872_s6 + $0xd8] sm:$0xff] %v3925_v24  ;;  %v3526_v9 = vperm.slane %v3046_v2, 0  ;;  %v4314_v34 = vrot.slane %v1497_v39, 9  ;;  %v4315_v54 = vrot.slane %v1498_v19, 9  ;;  %v4316_v4 = vrot.slane %v1499_v25, 9 }
 0x1b7   : > { %v3765_v30 = vsel %vm3723_vm2, %v3524_v58, %v3523_v21  ;;  %v2601_v17 = vmax.f32 %v5352_v31, %v4313_v11  ;;  %v1316_v28 = vmax.f32 %v5280_v53, %v774_v48  ;;  %v5380_v6 = vmax.f32 %v5292_v42, %v864_v59 }
 0x1b8   : > { %v3766_v43 = vsel %vm3725_vm3, %v3525_v16, %v3765_v30  ;;  %v2602_v22 = vmax.f32 %v1497_v39, %v4314_v34  ;;  %v2603_v29 = vmax.f32 %v1498_v19, %v4315_v54  ;;  %v2604_v8 = vmax.f32 %v1499_v25, %v4316_v4 }
 0x1b9   : > { %v3767_v14 = vsel %vm3727_vm4, %v3526_v9, %v3766_v43  ;;  %v2859_v23 = vadd.f32 %v5332_v33, %v2601_v17  ;;  %v1458_v40 = vrot.slane %v1316_v28, 2  ;;  %v1459_v46 = vrot.slane %v1316_v28, 4 }
 0x1ba   : > { %v2860_v31 = vadd.f32 %v4790_v49, %v2602_v22  ;;  %v2861_v53 = vadd.f32 %v4777_v37, %v2603_v29  ;;  %v2862_v42 = vadd.f32 %v4793_v50, %v2604_v8  ;;  %v1460_v1 = vrot.slane %v1316_v28, 6  ;;  %v867_v8 = vpop.f32.mrf.mxu1 }
 0x1bb   : > { %v3099_v45 = vmax.f32 %v2859_v23, 0.0  ;;  %v4261_v3 = vrot.slane %v1316_v28, 9  ;;  %v4262_v41 = vrot.slane %v1458_v40, 9  ;;  %v4263_v55 = vrot.slane %v1459_v46, 9  ;;  %v957_v23 = vpop.f32.mrf.mxu2 }
 0x1bc   : > { %v3100_v38 = vmax.f32 %v2860_v31, 0.0  ;;  %v3101_v56 = vmax.f32 %v2861_v53, 0.0  ;;  %v3102_v39 = vmax.f32 %v2862_v42, 0.0  ;;  %v4264_v19 = vrot.slane %v1460_v1, 9  ;;  %v5401_v42 = vpop.f32.mrf.mxu0 }
 0x1bd   : > { %v3579_v62 = vperm.slane %v3099_v45, 0  ;;  %v2549_v20 = vmax.f32 %v1316_v28, %v4261_v3  ;;  %v2550_v47 = vmax.f32 %v1458_v40, %v4262_v41  ;;  %v2551_v57 = vmax.f32 %v1459_v46, %v4263_v55 }
 0x1be   : > { %v3580_v61 = vperm.slane %v3100_v38, 0  ;;  %v3581_v2 = vperm.slane %v3101_v56, 0  ;;  %v3582_v25 = vperm.slane %v3102_v39, 0  ;;  %v2552_v11 = vmax.f32 %v1460_v1, %v4264_v19 }
 0x1bf   : > { %v2807_v48 = vadd.f32 %v4798_v51, %v2549_v20  ;;  %v2808_v59 = vadd.f32 %v4806_v63, %v2550_v47  ;;  %v2809_v24 = vadd.f32 %v4801_v52, %v2551_v57  ;;  %v1500_v21 = vrot.slane %v5380_v6, 2 }
 0x1c0   : > { %v3814_v58 = vsel %vm3723_vm2, %v3580_v61, %v3579_v62  ;;  %v2810_v16 = vadd.f32 %v4809_v0, %v2552_v11  ;;  %v1501_v9 = vrot.slane %v5380_v6, 4  ;;  %v1502_v34 = vrot.slane %v5380_v6, 6 }
 0x1c1   : > { %v3815_v54 = vsel %vm3725_vm3, %v3581_v2, %v3814_v58  ;;  %v3047_v4 = vmax.f32 %v2807_v48, 0.0  ;;  %v3048_v30 = vmax.f32 %v2808_v59, 0.0  ;;  %v3049_v17 = vmax.f32 %v2809_v24, 0.0 }
 0x1c2   : > { %v3816_v28 = vsel %vm3727_vm4, %v3582_v25, %v3815_v54  ;;  %v3050_v43 = vmax.f32 %v2810_v16, 0.0  ;;  %v4317_v22 = vrot.slane %v5380_v6, 9  ;;  %v4318_v29 = vrot.slane %v1500_v21, 9 }
 0x1c3   : > { %v3527_v40 = vperm.slane %v3047_v4, 0  ;;  %v3528_v46 = vperm.slane %v3048_v30, 0  ;;  %v3529_v31 = vperm.slane %v3049_v17, 0  ;;  %v4319_v53 = vrot.slane %v1501_v9, 9 }
 0x1c4   : > { %v3530_v1 = vperm.slane %v3050_v43, 0  ;;  %v4320_v45 = vrot.slane %v1502_v34, 9  ;;  %v2605_v3 = vmax.f32 %v5380_v6, %v4317_v22  ;;  %v2606_v41 = vmax.f32 %v1500_v21, %v4318_v29 }
 0x1c5   : > { %v3768_v55 = vsel %vm3729_vm5, %v3527_v40, %v3767_v14  ;;  %v2607_v38 = vmax.f32 %v1501_v9, %v4319_v53  ;;  %v1331_v56 = vmax.f32 %v5309_v15, %v867_v8  ;;  %v1345_v39 = vmax.f32 %v5322_v7, %v957_v23  ;;  %v5421_v53 = vpop.f32.mrf.mxu0 }
 0x1c6   : > { %v3769_v19 = vsel %vm3731_vm6, %v3528_v46, %v3768_v55  ;;  %v2608_v62 = vmax.f32 %v1502_v34, %v4320_v45  ;;  %v2863_v20 = vadd.f32 %v4798_v51, %v2605_v3  ;;  %v2864_v47 = vadd.f32 %v4806_v63, %v2606_v41  ;;  %v5415_v34 = vpop.f32.mrf.mxu3 }
 0x1c7   : > { %v3770_v57 = vsel %vm3733_vm7, %v3529_v31, %v3769_v19  ;;  %v2865_v6 = vadd.f32 %v4801_v52, %v2607_v38  ;;  %v1503_v61 = vrot.slane %v1331_v56, 2  ;;  %v1504_v2 = vrot.slane %v1331_v56, 4 }
 0x1c8   : > { %v3771_v14 = vsel %vm3735_vm8, %v3530_v1, %v3770_v57  ;;  %v2866_v25 = vadd.f32 %v4809_v0, %v2608_v62  ;;  %v3103_v15 = vmax.f32 %v2863_v20, 0.0  ;;  %v3104_v11 = vmax.f32 %v2864_v47, 0.0  ;;  %v870_v57 = vpop.f32.mrf.mxu1 }
 0x1c9   : > { %3975 = vst [vmem:[%s4872_s6 + $0x28] sm:$0xff] %v3771_v14  ;;  %v3105_v7 = vmax.f32 %v2865_v6, 0.0  ;;  %v1505_v48 = vrot.slane %v1331_v56, 6  ;;  %v4321_v59 = vrot.slane %v1331_v56, 9  ;;  %v4322_v24 = vrot.slane %v1503_v61, 9 }
 0x1ca   : > { %v3106_v21 = vmax.f32 %v2866_v25, 0.0  ;;  %v3583_v58 = vperm.slane %v3103_v15, 0  ;;  %v3584_v16 = vperm.slane %v3104_v11, 0  ;;  %v4323_v9 = vrot.slane %v1504_v2, 9 }
 0x1cb   : > { %v3585_v54 = vperm.slane %v3105_v7, 0  ;;  %v4324_v4 = vrot.slane %v1505_v48, 9  ;;  %v2609_v30 = vmax.f32 %v1331_v56, %v4321_v59  ;;  %v2610_v17 = vmax.f32 %v1503_v61, %v4322_v24 }
 0x1cc   : > { %v3586_v43 = vperm.slane %v3106_v21, 0  ;;  %v3817_v22 = vsel %vm3729_vm5, %v3583_v58, %v3816_v28  ;;  %v2611_v29 = vmax.f32 %v1504_v2, %v4323_v9  ;;  %v1545_v8 = vrot.slane %v1345_v39, 2 }
 0x1cd   : > { %v3818_v23 = vsel %vm3731_vm6, %v3584_v16, %v3817_v22  ;;  %v2612_v40 = vmax.f32 %v1505_v48, %v4324_v4  ;;  %v2867_v46 = vadd.f32 %v5332_v33, %v2609_v30  ;;  %v2868_v31 = vadd.f32 %v4790_v49, %v2610_v17 }
 0x1ce   : > { %v3819_v1 = vsel %vm3733_vm7, %v3585_v54, %v3818_v23  ;;  %v2869_v45 = vadd.f32 %v4777_v37, %v2611_v29  ;;  %v1546_v3 = vrot.slane %v1345_v39, 4  ;;  %v1547_v41 = vrot.slane %v1345_v39, 6  ;;  %v5434_v4 = vpop.f32.mrf.mxu3 }
 0x1cf   : > { %v3820_v28 = vsel %vm3735_vm8, %v3586_v43, %v3819_v1  ;;  %v2870_v55 = vadd.f32 %v4793_v50, %v2612_v40  ;;  %v3107_v38 = vmax.f32 %v2867_v46, 0.0  ;;  %v3108_v56 = vmax.f32 %v2868_v31, 0.0  ;;  %v960_v1 = vpop.f32.mrf.mxu2 }
 0x1d0   : > { %3982 = vst [vmem:[%s4872_s6 + $0x60] sm:$0xff] %v3820_v28  ;;  %v3109_v19 = vmax.f32 %v2869_v45, 0.0  ;;  %v4377_v62 = vrot.slane %v1345_v39, 9  ;;  %v4378_v20 = vrot.slane %v1545_v8, 9  ;;  %v4379_v47 = vrot.slane %v1546_v3, 9  ;;  %v783_v45 = vpop.f32.mrf.mxu0 }
 0x1d1   : > { %v3110_v6 = vmax.f32 %v2870_v55, 0.0  ;;  %v3587_v61 = vperm.slane %v3107_v38, 0  ;;  %v3588_v2 = vperm.slane %v3108_v56, 0  ;;  %v4380_v14 = vrot.slane %v1547_v41, 9 }
 0x1d2   : > { %v3589_v25 = vperm.slane %v3109_v19, 0  ;;  %v2665_v15 = vmax.f32 %v1345_v39, %v4377_v62  ;;  %v2666_v11 = vmax.f32 %v1545_v8, %v4378_v20  ;;  %v2667_v7 = vmax.f32 %v1546_v3, %v4379_v47 }
 0x1d3   : > { %v3590_v48 = vperm.slane %v3110_v6, 0  ;;  %v3821_v59 = vsel %vm3723_vm2, %v3588_v2, %v3587_v61  ;;  %v2668_v24 = vmax.f32 %v1547_v41, %v4380_v14  ;;  %v1332_v21 = vmax.f32 %v5326_v60, %v870_v57 }
 0x1d4   : > { %v3822_v58 = vsel %vm3725_vm3, %v3589_v25, %v3821_v59  ;;  %v2923_v16 = vadd.f32 %v5332_v33, %v2665_v15  ;;  %v2924_v9 = vadd.f32 %v4790_v49, %v2666_v11  ;;  %v2925_v54 = vadd.f32 %v4777_v37, %v2667_v7 }
 0x1d5   : > { %v3823_v39 = vsel %vm3727_vm4, %v3590_v48, %v3822_v58  ;;  %v2926_v30 = vadd.f32 %v4793_v50, %v2668_v24  ;;  %v1506_v17 = vrot.slane %v1332_v21, 2  ;;  %v1507_v43 = vrot.slane %v1332_v21, 4 }
 0x1d6   : > { %v3163_v22 = vmax.f32 %v2923_v16, 0.0  ;;  %v3164_v29 = vmax.f32 %v2924_v9, 0.0  ;;  %v3165_v8 = vmax.f32 %v2925_v54, 0.0  ;;  %v1508_v60 = vrot.slane %v1332_v21, 6  ;;  %v5447_v54 = vpop.f32.mrf.mxu3 }
 0x1d7   : > { %v3166_v23 = vmax.f32 %v2926_v30, 0.0  ;;  %v4325_v40 = vrot.slane %v1332_v21, 9  ;;  %v4326_v46 = vrot.slane %v1506_v17, 9  ;;  %v4327_v31 = vrot.slane %v1507_v43, 9 }
 0x1d8   : > { %v3643_v3 = vperm.slane %v3163_v22, 0  ;;  %v3644_v41 = vperm.slane %v3164_v29, 0  ;;  %v3645_v28 = vperm.slane %v3165_v8, 0  ;;  %v4328_v55 = vrot.slane %v1508_v60, 9 }
 0x1d9   : > { %v3646_v38 = vperm.slane %v3166_v23, 0  ;;  %v2613_v56 = vmax.f32 %v1332_v21, %v4325_v40  ;;  %v2614_v19 = vmax.f32 %v1506_v17, %v4326_v46  ;;  %v2615_v62 = vmax.f32 %v1507_v43, %v4327_v31 }
 0x1da   : > { %v3870_v20 = vsel %vm3723_vm2, %v3644_v41, %v3643_v3  ;;  %v2616_v47 = vmax.f32 %v1508_v60, %v4328_v55  ;;  %v1346_v57 = vmax.f32 %v5343_v32, %v960_v1  ;;  %v1319_v6 = vmax.f32 %v783_v45, %v4711_v5 }
 0x1db   : > { %v3871_v61 = vsel %vm3725_vm3, %v3645_v28, %v3870_v20  ;;  %v2871_v2 = vadd.f32 %v4798_v51, %v2613_v56  ;;  %v2872_v14 = vadd.f32 %v4806_v63, %v2614_v19  ;;  %v2873_v25 = vadd.f32 %v4801_v52, %v2615_v62 }
 0x1dc   : > { %v3872_v15 = vsel %vm3727_vm4, %v3646_v38, %v3871_v61  ;;  %v2874_v11 = vadd.f32 %v4809_v0, %v2616_v47  ;;  %v1548_v7 = vrot.slane %v1346_v57, 2  ;;  %v1549_v48 = vrot.slane %v1346_v57, 4 }
 0x1dd   : > { %v3111_v59 = vmax.f32 %v2871_v2, 0.0  ;;  %v3112_v24 = vmax.f32 %v2872_v14, 0.0  ;;  %v3113_v21 = vmax.f32 %v2873_v25, 0.0  ;;  %v1550_v32 = vrot.slane %v1346_v57, 6  ;;  %v873_v25 = vpop.f32.mrf.mxu1 }
 0x1de   : > { %v3114_v58 = vmax.f32 %v2874_v11, 0.0  ;;  %v4381_v5 = vrot.slane %v1346_v57, 9  ;;  %v4382_v16 = vrot.slane %v1548_v7, 9  ;;  %v4383_v9 = vrot.slane %v1549_v48, 9  ;;  %v963_v11 = vpop.f32.mrf.mxu2 }
 0x1df   : > { %v3591_v30 = vperm.slane %v3111_v59, 0  ;;  %v3592_v17 = vperm.slane %v3112_v24, 0  ;;  %v3593_v43 = vperm.slane %v3113_v21, 0  ;;  %v4384_v22 = vrot.slane %v1550_v32, 9 }
 0x1e0   : > { %v3594_v29 = vperm.slane %v3114_v58, 0  ;;  %v2669_v8 = vmax.f32 %v1346_v57, %v4381_v5  ;;  %v2670_v60 = vmax.f32 %v1548_v7, %v4382_v16  ;;  %v2671_v23 = vmax.f32 %v1549_v48, %v4383_v9 }
 0x1e1   : > { %v3824_v40 = vsel %vm3729_vm5, %v3591_v30, %v3823_v39  ;;  %v2672_v46 = vmax.f32 %v1550_v32, %v4384_v22  ;;  %v1467_v31 = vrot.slane %v1319_v6, 2  ;;  %v1468_v1 = vrot.slane %v1319_v6, 4  ;;  %v5463_v22 = vpop.f32.mrf.mxu3 }
 0x1e2   : > { %v3825_v45 = vsel %vm3731_vm6, %v3592_v17, %v3824_v40  ;;  %v2927_v3 = vadd.f32 %v4798_v51, %v2669_v8  ;;  %v2928_v41 = vadd.f32 %v4806_v63, %v2670_v60  ;;  %v2929_v28 = vadd.f32 %v4801_v52, %v2671_v23 }
 0x1e3   : > { %v3826_v55 = vsel %vm3733_vm7, %v3593_v43, %v3825_v45  ;;  %v2930_v38 = vadd.f32 %v4809_v0, %v2672_v46  ;;  %v1469_v56 = vrot.slane %v1319_v6, 6  ;;  %v4273_v19 = vrot.slane %v1319_v6, 9 }
 0x1e4   : > { %v3827_v39 = vsel %vm3735_vm8, %v3594_v29, %v3826_v55  ;;  %v3167_v62 = vmax.f32 %v2927_v3, 0.0  ;;  %v3168_v20 = vmax.f32 %v2928_v41, 0.0  ;;  %v3169_v47 = vmax.f32 %v2929_v28, 0.0 }
 0x1e5   : > { %3983 = vst [vmem:[%s4872_s6 + $0x68] sm:$0xff] %v3827_v39  ;;  %v3170_v57 = vmax.f32 %v2930_v38, 0.0  ;;  %v4274_v61 = vrot.slane %v1467_v31, 9  ;;  %v4275_v2 = vrot.slane %v1468_v1, 9  ;;  %v4276_v14 = vrot.slane %v1469_v56, 9 }
 0x1e6   : > { %v3647_v7 = vperm.slane %v3167_v62, 0  ;;  %v3648_v48 = vperm.slane %v3168_v20, 0  ;;  %v3649_v59 = vperm.slane %v3169_v47, 0  ;;  %v2561_v24 = vmax.f32 %v1319_v6, %v4273_v19 }
 0x1e7   : > { %v3650_v21 = vperm.slane %v3170_v57, 0  ;;  %v2562_v32 = vmax.f32 %v1467_v31, %v4274_v61  ;;  %v2563_v58 = vmax.f32 %v1468_v1, %v4275_v2  ;;  %v2564_v5 = vmax.f32 %v1469_v56, %v4276_v14 }
 0x1e8   : > { %v3873_v16 = vsel %vm3729_vm5, %v3647_v7, %v3872_v15  ;;  %v2819_v9 = vadd.f32 %v5332_v33, %v2561_v24  ;;  %v1333_v30 = vmax.f32 %v873_v25, %v4721_v10  ;;  %v1347_v17 = vmax.f32 %v5361_v36, %v963_v11 }
 0x1e9   : > { %v3874_v43 = vsel %vm3731_vm6, %v3648_v48, %v3873_v16  ;;  %v2820_v29 = vadd.f32 %v4790_v49, %v2562_v32  ;;  %v2821_v6 = vadd.f32 %v4777_v37, %v2563_v58  ;;  %v2822_v8 = vadd.f32 %v4793_v50, %v2564_v5 }
 0x1ea   : > { %v3875_v60 = vsel %vm3733_vm7, %v3649_v59, %v3874_v43  ;;  %v3059_v15 = vmax.f32 %v2819_v9, 0.0  ;;  %v1509_v23 = vrot.slane %v1333_v30, 2  ;;  %v1510_v40 = vrot.slane %v1333_v30, 4 }
 0x1eb   : > { %v3876_v46 = vsel %vm3735_vm8, %v3650_v21, %v3875_v60  ;;  %v3060_v10 = vmax.f32 %v2820_v29, 0.0  ;;  %v3061_v31 = vmax.f32 %v2821_v6, 0.0  ;;  %v3062_v36 = vmax.f32 %v2822_v8, 0.0  ;;  %v1053_v29 = vpop.f32.mrf.mxu3 }
 0x1ec   : > { %3990 = vst [vmem:[%s4872_s6 + $0xa0] sm:$0xff] %v3876_v46  ;;  %v1511_v1 = vrot.slane %v1333_v30, 6  ;;  %v4329_v45 = vrot.slane %v1333_v30, 9  ;;  %v4330_v3 = vrot.slane %v1509_v23, 9  ;;  %v3539_v41 = vperm.slane %v3059_v15, 0 }
 0x1ed   : > { %v3540_v28 = vperm.slane %v3060_v10, 0  ;;  %v3541_v55 = vperm.slane %v3061_v31, 0  ;;  %v4331_v38 = vrot.slane %v1510_v40, 9  ;;  %v1551_v62 = vrot.slane %v1347_v17, 2 }
 0x1ee   : > { %v4332_v56 = vrot.slane %v1511_v1, 9  ;;  %v2617_v19 = vmax.f32 %v1333_v30, %v4329_v45  ;;  %v2618_v39 = vmax.f32 %v1509_v23, %v4330_v3  ;;  %v1552_v57 = vrot.slane %v1347_v17, 4 }
 0x1ef   : > { %v3779_v20 = vsel %vm3723_vm2, %v3540_v28, %v3539_v41  ;;  %v2619_v47 = vmax.f32 %v1510_v40, %v4331_v38  ;;  %v1553_v61 = vrot.slane %v1347_v17, 6  ;;  %v3542_v2 = vperm.slane %v3062_v36, 0 }
 0x1f0   : > { %v2620_v14 = vmax.f32 %v1511_v1, %v4332_v56  ;;  %v2875_v25 = vadd.f32 %v5332_v33, %v2617_v19  ;;  %v2876_v11 = vadd.f32 %v4790_v49, %v2618_v39  ;;  %v3780_v7 = vsel %vm3725_vm3, %v3541_v55, %v3779_v20  ;;  %v786_v39 = vpop.f32.mrf.mxu0 }
 0x1f1   : > { %v2877_v48 = vadd.f32 %v4777_v37, %v2619_v47  ;;  %v4385_v59 = vrot.slane %v1347_v17, 9  ;;  %v4386_v24 = vrot.slane %v1551_v62, 9  ;;  %v4387_v5 = vrot.slane %v1552_v57, 9 }
 0x1f2   : > { %v2878_v21 = vadd.f32 %v4793_v50, %v2620_v14  ;;  %v3115_v32 = vmax.f32 %v2875_v25, 0.0  ;;  %v3116_v58 = vmax.f32 %v2876_v11, 0.0  ;;  %v4388_v9 = vrot.slane %v1553_v61, 9 }
 0x1f3   : > { %v3117_v16 = vmax.f32 %v2877_v48, 0.0  ;;  %v2673_v30 = vmax.f32 %v1347_v17, %v4385_v59  ;;  %v2674_v43 = vmax.f32 %v1551_v62, %v4386_v24  ;;  %v2675_v15 = vmax.f32 %v1552_v57, %v4387_v5 }
 0x1f4   : > { %v3118_v6 = vmax.f32 %v2878_v21, 0.0  ;;  %v3595_v8 = vperm.slane %v3115_v32, 0  ;;  %v3596_v60 = vperm.slane %v3116_v58, 0  ;;  %v2676_v40 = vmax.f32 %v1553_v61, %v4388_v9 }
 0x1f5   : > { %v3597_v23 = vperm.slane %v3117_v16, 0  ;;  %v2931_v46 = vadd.f32 %v5332_v33, %v2673_v30  ;;  %v2932_v10 = vadd.f32 %v4790_v49, %v2674_v43  ;;  %v5480_v31 = vsel %vm3727_vm4, %v3542_v2, %v3780_v7 }
 0x1f6   : > { %v3828_v36 = vsel %vm3723_vm2, %v3596_v60, %v3595_v8  ;;  %v2933_v1 = vadd.f32 %v4777_v37, %v2675_v15  ;;  %v1361_v17 = vmax.f32 %v5415_v34, %v1053_v29  ;;  %v3598_v45 = vperm.slane %v3118_v6, 0 }
 0x1f7   : > { %v2934_v3 = vadd.f32 %v4793_v50, %v2676_v40  ;;  %v3171_v41 = vmax.f32 %v2931_v46, 0.0  ;;  %v3172_v28 = vmax.f32 %v2932_v10, 0.0  ;;  %v3829_v55 = vsel %vm3725_vm3, %v3597_v23, %v3828_v36 }
 0x1f8   : > { %v3173_v38 = vmax.f32 %v2933_v1, 0.0  ;;  %v1593_v56 = vrot.slane %v1361_v17, 2  ;;  %v1594_v19 = vrot.slane %v1361_v17, 4  ;;  %v1595_v57 = vrot.slane %v1361_v17, 6 }
 0x1f9   : > { %v3174_v62 = vmax.f32 %v2934_v3, 0.0  ;;  %v3651_v20 = vperm.slane %v3171_v41, 0  ;;  %v3652_v47 = vperm.slane %v3172_v28, 0  ;;  %v4441_v2 = vrot.slane %v1361_v17, 9  ;;  %v876_v3 = vpop.f32.mrf.mxu1 }
 0x1fa   : > { %v3653_v61 = vperm.slane %v3173_v38, 0  ;;  %v4442_v14 = vrot.slane %v1593_v56, 9  ;;  %v4443_v25 = vrot.slane %v1594_v19, 9  ;;  %v5488_v34 = vsel %vm3727_vm4, %v3598_v45, %v3829_v55  ;;  %v966_v38 = vpop.f32.mrf.mxu2 }
 0x1fb   : > { %v3877_v11 = vsel %vm3723_vm2, %v3652_v47, %v3651_v20  ;;  %v4444_v7 = vrot.slane %v1595_v57, 9  ;;  %v1320_v48 = vmax.f32 %v786_v39, %v4727_v13  ;;  %v3654_v59 = vperm.slane %v3174_v62, 0 }
 0x1fc   : > { %v2729_v24 = vmax.f32 %v1361_v17, %v4441_v2  ;;  %v2730_v21 = vmax.f32 %v1593_v56, %v4442_v14  ;;  %v2731_v32 = vmax.f32 %v1594_v19, %v4443_v25  ;;  %v3878_v58 = vsel %vm3725_vm3, %v3653_v61, %v3877_v11 }
 0x1fd   : > { %v2732_v5 = vmax.f32 %v1595_v57, %v4444_v7  ;;  %v1470_v16 = vrot.slane %v1320_v48, 2  ;;  %v1471_v9 = vrot.slane %v1320_v48, 4  ;;  %v1472_v6 = vrot.slane %v1320_v48, 6 }
 0x1fe   : > { %v2987_v30 = vadd.f32 %v5332_v33, %v2729_v24  ;;  %v2988_v43 = vadd.f32 %v4790_v49, %v2730_v21  ;;  %v2989_v29 = vadd.f32 %v4777_v37, %v2731_v32  ;;  %v4277_v60 = vrot.slane %v1320_v48, 9 }
 0x1ff   : > { %v2990_v8 = vadd.f32 %v4793_v50, %v2732_v5  ;;  %v4278_v13 = vrot.slane %v1470_v16, 9  ;;  %v4279_v15 = vrot.slane %v1471_v9, 9  ;;  %v4280_v10 = vrot.slane %v1472_v6, 9 }
 0x200   : > { %v3227_v23 = vmax.f32 %v2987_v30, 0.0  ;;  %v3228_v40 = vmax.f32 %v2988_v43, 0.0  ;;  %v3229_v46 = vmax.f32 %v2989_v29, 0.0  ;;  %v2565_v1 = vmax.f32 %v1320_v48, %v4277_v60 }
 0x201   : > { %v3230_v36 = vmax.f32 %v2990_v8, 0.0  ;;  %v2566_v17 = vmax.f32 %v1470_v16, %v4278_v13  ;;  %v2567_v45 = vmax.f32 %v1471_v9, %v4279_v15  ;;  %v2568_v55 = vmax.f32 %v1472_v6, %v4280_v10 }
 0x202   : > { %v3707_v33 = vperm.slane %v3227_v23, 0  ;;  %v3708_v41 = vperm.slane %v3228_v40, 0  ;;  %v3709_v28 = vperm.slane %v3229_v46, 0  ;;  %v5498_v56 = vsel %vm3727_vm4, %v3654_v59, %v3878_v58 }
 0x203   : > { %v2823_v19 = vadd.f32 %v4798_v51, %v2565_v1  ;;  %v2824_v39 = vadd.f32 %v4806_v63, %v2566_v17  ;;  %v2825_v62 = vadd.f32 %v4801_v52, %v2567_v45  ;;  %v5503_v20 = vperm.slane %v3230_v36, 0 }
 0x204   : > { %v3926_v47 = vsel %vm3723_vm2, %v3708_v41, %v3707_v33  ;;  %v2826_v57 = vadd.f32 %v4809_v0, %v2568_v55  ;;  %v1334_v61 = vmax.f32 %v876_v3, %v4737_v18  ;;  %v1348_v11 = vmax.f32 %v5383_v12, %v966_v38 }
 0x205   : > { %v3063_v2 = vmax.f32 %v2823_v19, 0.0  ;;  %v3064_v14 = vmax.f32 %v2824_v39, 0.0  ;;  %v3065_v25 = vmax.f32 %v2825_v62, 0.0  ;;  %v5510_v7 = vsel %vm3725_vm3, %v3709_v28, %v3926_v47 }
 0x206   : > { %v3066_v48 = vmax.f32 %v2826_v57, 0.0  ;;  %v1512_v59 = vrot.slane %v1334_v61, 2  ;;  %v1513_v24 = vrot.slane %v1334_v61, 4  ;;  %v1514_v5 = vrot.slane %v1334_v61, 6 }
 0x207   : > { %v3543_v21 = vperm.slane %v3063_v2, 0  ;;  %v3544_v32 = vperm.slane %v3064_v14, 0  ;;  %v3545_v58 = vperm.slane %v3065_v25, 0  ;;  %v4333_v9 = vrot.slane %v1334_v61, 9  ;;  %v789_v2 = vpop.f32.mrf.mxu0 }
 0x208   : > { %v3546_v16 = vperm.slane %v3066_v48, 0  ;;  %v4334_v30 = vrot.slane %v1512_v59, 9  ;;  %v4335_v43 = vrot.slane %v1513_v24, 9  ;;  %v4336_v29 = vrot.slane %v1514_v5, 9 }
 0x209   : > { %v3782_v18 = vsel %vm3729_vm5, %v3543_v21, %v5480_v31  ;;  %v1554_v12 = vrot.slane %v1348_v11, 2  ;;  %v1555_v6 = vrot.slane %v1348_v11, 4  ;;  %v2621_v60 = vmax.f32 %v1334_v61, %v4333_v9  ;;  %v1056_v61 = vpop.f32.mrf.mxu3 }
 0x20a   : > { %v3783_v8 = vsel %vm3731_vm6, %v3544_v32, %v3782_v18  ;;  %v2622_v13 = vmax.f32 %v1512_v59, %v4334_v30  ;;  %v2623_v15 = vmax.f32 %v1513_v24, %v4335_v43  ;;  %v2624_v40 = vmax.f32 %v1514_v5, %v4336_v29 }
 0x20b   : > { %v3784_v23 = vsel %vm3733_vm7, %v3545_v58, %v3783_v8  ;;  %v1556_v46 = vrot.slane %v1348_v11, 6  ;;  %v4389_v10 = vrot.slane %v1348_v11, 9  ;;  %v2879_v1 = vadd.f32 %v4798_v51, %v2621_v60 }
 0x20c   : > { %v3785_v36 = vsel %vm3735_vm8, %v3546_v16, %v3784_v23  ;;  %v2880_v31 = vadd.f32 %v4806_v63, %v2622_v13  ;;  %v2881_v17 = vadd.f32 %v4801_v52, %v2623_v15  ;;  %v2882_v45 = vadd.f32 %v4809_v0, %v2624_v40 }
 0x20d   : > { %3977 = vst [vmem:[%s4872_s6 + $0x38] sm:$0xff] %v3785_v36  ;;  %v4390_v3 = vrot.slane %v1554_v12, 9  ;;  %v4391_v33 = vrot.slane %v1555_v6, 9  ;;  %v4392_v41 = vrot.slane %v1556_v46, 9  ;;  %v3119_v28 = vmax.f32 %v2879_v1, 0.0 }
 0x20e   : > { %v3120_v55 = vmax.f32 %v2880_v31, 0.0  ;;  %v3121_v38 = vmax.f32 %v2881_v17, 0.0  ;;  %v2677_v19 = vmax.f32 %v1348_v11, %v4389_v10  ;;  %v3122_v39 = vmax.f32 %v2882_v45, 0.0 }
 0x20f   : > { %v2678_v62 = vmax.f32 %v1554_v12, %v4390_v3  ;;  %v2679_v47 = vmax.f32 %v1555_v6, %v4391_v33  ;;  %v2680_v57 = vmax.f32 %v1556_v46, %v4392_v41  ;;  %v3599_v14 = vperm.slane %v3119_v28, 0 }
 0x210   : > { %v3600_v25 = vperm.slane %v3120_v55, 0  ;;  %v3601_v48 = vperm.slane %v3121_v38, 0  ;;  %v2935_v59 = vadd.f32 %v4798_v51, %v2677_v19  ;;  %v3602_v24 = vperm.slane %v3122_v39, 0 }
 0x211   : > { %v2936_v21 = vadd.f32 %v4806_v63, %v2678_v62  ;;  %v2937_v32 = vadd.f32 %v4801_v52, %v2679_v47  ;;  %v2938_v58 = vadd.f32 %v4809_v0, %v2680_v57  ;;  %v3831_v11 = vsel %vm3729_vm5, %v3599_v14, %v5488_v34 }
 0x212   : > { %v3175_v5 = vmax.f32 %v2935_v59, 0.0  ;;  %v1362_v16 = vmax.f32 %v5434_v4, %v1056_v61  ;;  %v1317_v9 = vmax.f32 %v5401_v42, %v789_v2  ;;  %v3832_v30 = vsel %vm3731_vm6, %v3600_v25, %v3831_v11 }
 0x213   : > { %v3176_v43 = vmax.f32 %v2936_v21, 0.0  ;;  %v3177_v18 = vmax.f32 %v2937_v32, 0.0  ;;  %v3178_v29 = vmax.f32 %v2938_v58, 0.0  ;;  %v3833_v12 = vsel %vm3733_vm7, %v3601_v48, %v3832_v30  ;;  %v5547_v58 = vld [vmem:[%s5668_s2] ss:$0 sm:$0xff] }
 0x214   : > { %v3655_v6 = vperm.slane %v3175_v5, 0  ;;  %v1596_v8 = vrot.slane %v1362_v16, 2  ;;  %v1597_v60 = vrot.slane %v1362_v16, 4  ;;  %v3834_v13 = vsel %vm3735_vm8, %v3602_v24, %v3833_v12  ;;  %v879_v5 = vpop.f32.mrf.mxu1 }
 0x215   : > { %v3656_v15 = vperm.slane %v3176_v43, 0  ;;  %v3657_v34 = vperm.slane %v3177_v18, 0  ;;  %v3658_v23 = vperm.slane %v3178_v29, 0  ;;  %3984 = vst [vmem:[%s4872_s6 + $0x70] sm:$0xff] %v3834_v13  ;;  %v1598_v42 = vrot.slane %v1362_v16, 6 }
 0x216   : > { %v3880_v4 = vsel %vm3729_vm5, %v3655_v6, %v5498_v56  ;;  %v4445_v40 = vrot.slane %v1362_v16, 9  ;;  %v4446_v46 = vrot.slane %v1596_v8, 9  ;;  %v4447_v36 = vrot.slane %v1597_v60, 9 }
 0x217   : > { %v3881_v10 = vsel %vm3731_vm6, %v3656_v15, %v3880_v4  ;;  %v1461_v1 = vrot.slane %v1317_v9, 2  ;;  %v1462_v31 = vrot.slane %v1317_v9, 4  ;;  %v4448_v45 = vrot.slane %v1598_v42, 9 }
 0x218   : > { %v3882_v17 = vsel %vm3733_vm7, %v3657_v34, %v3881_v10  ;;  %v2733_v3 = vmax.f32 %v1362_v16, %v4445_v40  ;;  %v2734_v33 = vmax.f32 %v1596_v8, %v4446_v46  ;;  %v2735_v28 = vmax.f32 %v1597_v60, %v4447_v36  ;;  %v969_v46 = vpop.f32.mrf.mxu2 }
 0x219   : > { %v3883_v41 = vsel %vm3735_vm8, %v3658_v23, %v3882_v17  ;;  %v1463_v55 = vrot.slane %v1317_v9, 6  ;;  %v4265_v38 = vrot.slane %v1317_v9, 9  ;;  %v2736_v56 = vmax.f32 %v1598_v42, %v4448_v45 }
 0x21a   : > { %3991 = vst [vmem:[%s4872_s6 + $0xa8] sm:$0xff] %v3883_v41  ;;  %v2991_v19 = vadd.f32 %v4798_v51, %v2733_v3  ;;  %v2992_v39 = vadd.f32 %v4806_v63, %v2734_v33  ;;  %v4266_v62 = vrot.slane %v1461_v1, 9  ;;  %v2993_v47 = vadd.f32 %v4801_v52, %v2735_v28 }
 0x21b   : > { %v4267_v57 = vrot.slane %v1462_v31, 9  ;;  %v4268_v61 = vrot.slane %v1463_v55, 9  ;;  %v2553_v2 = vmax.f32 %v1317_v9, %v4265_v38  ;;  %v2994_v14 = vadd.f32 %v4809_v0, %v2736_v56 }
 0x21c   : > { %v3231_v25 = vmax.f32 %v2991_v19, 0.0  ;;  %v3232_v48 = vmax.f32 %v2992_v39, 0.0  ;;  %v2554_v59 = vmax.f32 %v1461_v1, %v4266_v62  ;;  %v3233_v24 = vmax.f32 %v2993_v47, 0.0  ;;  %v1059_v19 = vpop.f32.mrf.mxu3 }
 0x21d   : > { %v2555_v21 = vmax.f32 %v1462_v31, %v4267_v57  ;;  %v2556_v32 = vmax.f32 %v1463_v55, %v4268_v61  ;;  %v2811_v11 = vadd.f32 %v5547_v58, %v2553_v2  ;;  %v3234_v16 = vmax.f32 %v2994_v14, 0.0 }
 0x21e   : > { %v3711_v30 = vperm.slane %v3231_v25, 0  ;;  %v3712_v43 = vperm.slane %v3232_v48, 0  ;;  %v2812_v9 = vadd.f32 %v4790_v49, %v2554_v59  ;;  %v3928_v18 = vsel %vm3727_vm4, %v5503_v20, %v5510_v7 }
 0x21f   : > { %v3713_v29 = vperm.slane %v3233_v24, 0  ;;  %v2813_v12 = vadd.f32 %v4777_v37, %v2555_v21  ;;  %v3051_v8 = vmax.f32 %v2811_v11, 0.0  ;;  %v1335_v13 = vmax.f32 %v879_v5, %v4753_v26 }
 0x220   : > { %v3929_v6 = vsel %vm3729_vm5, %v3711_v30, %v3928_v18  ;;  %v3052_v60 = vmax.f32 %v2812_v9, 0.0  ;;  %v3714_v15 = vperm.slane %v3234_v16, 0  ;;  %v2814_v23 = vadd.f32 %v4793_v50, %v2556_v32 }
 0x221   : > { %v3930_v34 = vsel %vm3731_vm6, %v3712_v43, %v3929_v6  ;;  %v3053_v4 = vmax.f32 %v2813_v12, 0.0  ;;  %v1515_v20 = vrot.slane %v1335_v13, 2  ;;  %v1516_v7 = vrot.slane %v1335_v13, 4 }
 0x222   : > { %v3931_v42 = vsel %vm3733_vm7, %v3713_v29, %v3930_v34  ;;  %v3532_v40 = vperm.slane %v3052_v60, 0  ;;  %v1517_v36 = vrot.slane %v1335_v13, 6  ;;  %v3531_v1 = vperm.slane %v3051_v8, 0 }
 0x223   : > { %v3932_v10 = vsel %vm3735_vm8, %v3714_v15, %v3931_v42  ;;  %v4337_v31 = vrot.slane %v1335_v13, 9  ;;  %v4338_v17 = vrot.slane %v1515_v20, 9  ;;  %v4339_v26 = vrot.slane %v1516_v7, 9 }
 0x224   : > { %3998 = vst [vmem:[%s4872_s6 + $0xe0] sm:$0xff] %v3932_v10  ;;  %v3054_v45 = vmax.f32 %v2814_v23, 0.0  ;;  %v3533_v3 = vperm.slane %v3053_v4, 0  ;;  %v4340_v33 = vrot.slane %v1517_v36, 9  ;;  %v1349_v41 = vmax.f32 %v969_v46, %v4755_v27 }
 0x225   : > { %v3772_v28 = vsel %vm3723_vm2, %v3532_v40, %v3531_v1  ;;  %v2625_v55 = vmax.f32 %v1335_v13, %v4337_v31  ;;  %v2626_v38 = vmax.f32 %v1515_v20, %v4338_v17  ;;  %v2627_v56 = vmax.f32 %v1516_v7, %v4339_v26  ;;  %v792_v7 = vpop.f32.mrf.mxu0 }
 0x226   : > { %v2628_v39 = vmax.f32 %v1517_v36, %v4340_v33  ;;  %v1557_v62 = vrot.slane %v1349_v41, 2  ;;  %v1558_v47 = vrot.slane %v1349_v41, 4  ;;  %v1559_v57 = vrot.slane %v1349_v41, 6 }
 0x227   : > { %v2883_v61 = vadd.f32 %v5547_v58, %v2625_v55  ;;  %v2884_v2 = vadd.f32 %v4790_v49, %v2626_v38  ;;  %v2885_v14 = vadd.f32 %v4777_v37, %v2627_v56  ;;  %v4393_v25 = vrot.slane %v1349_v41, 9 }
 0x228   : > { %v4394_v48 = vrot.slane %v1557_v62, 9  ;;  %v4395_v59 = vrot.slane %v1558_v47, 9  ;;  %v4396_v27 = vrot.slane %v1559_v57, 9  ;;  %v1363_v24 = vmax.f32 %v5447_v54, %v1059_v19  ;;  %v882_v19 = vpop.f32.mrf.mxu1 }
 0x229   : > { %v3123_v21 = vmax.f32 %v2883_v61, 0.0  ;;  %v3124_v32 = vmax.f32 %v2884_v2, 0.0  ;;  %v3125_v11 = vmax.f32 %v2885_v14, 0.0  ;;  %v2681_v5 = vmax.f32 %v1349_v41, %v4393_v25 }
 0x22a   : > { %v2886_v16 = vadd.f32 %v4793_v50, %v2628_v39  ;;  %v2682_v30 = vmax.f32 %v1557_v62, %v4394_v48  ;;  %v2683_v43 = vmax.f32 %v1558_v47, %v4395_v59  ;;  %v2684_v9 = vmax.f32 %v1559_v57, %v4396_v27  ;;  %v972_v48 = vpop.f32.mrf.mxu2 }
 0x22b   : > { %v3603_v18 = vperm.slane %v3123_v21, 0  ;;  %v3604_v29 = vperm.slane %v3124_v32, 0  ;;  %v3605_v12 = vperm.slane %v3125_v11, 0  ;;  %v2939_v6 = vadd.f32 %v5547_v58, %v2681_v5 }
 0x22c   : > { %v3534_v8 = vperm.slane %v3054_v45, 0  ;;  %v2940_v60 = vadd.f32 %v4790_v49, %v2682_v30  ;;  %v2941_v13 = vadd.f32 %v4777_v37, %v2683_v43  ;;  %v1599_v34 = vrot.slane %v1363_v24, 2 }
 0x22d   : > { %v3835_v54 = vsel %vm3723_vm2, %v3604_v29, %v3603_v18  ;;  %v3179_v15 = vmax.f32 %v2939_v6, 0.0  ;;  %v1600_v23 = vrot.slane %v1363_v24, 4  ;;  %v3773_v4 = vsel %vm3725_vm3, %v3533_v3, %v3772_v28 }
 0x22e   : > { %v3126_v42 = vmax.f32 %v2886_v16, 0.0  ;;  %v3180_v40 = vmax.f32 %v2940_v60, 0.0  ;;  %v3181_v20 = vmax.f32 %v2941_v13, 0.0  ;;  %v3836_v46 = vsel %vm3725_vm3, %v3605_v12, %v3835_v54 }
 0x22f   : > { %v2942_v10 = vadd.f32 %v4793_v50, %v2684_v9  ;;  %v1601_v36 = vrot.slane %v1363_v24, 6  ;;  %v4449_v1 = vrot.slane %v1363_v24, 9  ;;  %v3659_v31 = vperm.slane %v3179_v15, 0 }
 0x230   : > { %v3660_v17 = vperm.slane %v3180_v40, 0  ;;  %v3661_v26 = vperm.slane %v3181_v20, 0  ;;  %v4450_v45 = vrot.slane %v1599_v34, 9  ;;  %v4451_v33 = vrot.slane %v1600_v23, 9 }
 0x231   : > { %v4452_v41 = vrot.slane %v1601_v36, 9  ;;  %v2737_v55 = vmax.f32 %v1363_v24, %v4449_v1  ;;  %v1318_v38 = vmax.f32 %v5421_v53, %v792_v7  ;;  %v3606_v3 = vperm.slane %v3126_v42, 0 }
 0x232   : > { %v3884_v28 = vsel %vm3723_vm2, %v3660_v17, %v3659_v31  ;;  %v2738_v56 = vmax.f32 %v1599_v34, %v4450_v45  ;;  %v3774_v39 = vsel %vm3727_vm4, %v3534_v8, %v3773_v4  ;;  %v3182_v62 = vmax.f32 %v2942_v10, 0.0 }
 0x233   : > { %v2739_v47 = vmax.f32 %v1600_v23, %v4451_v33  ;;  %v2740_v57 = vmax.f32 %v1601_v36, %v4452_v41  ;;  %v5580_v61 = vsel %vm3727_vm4, %v3606_v3, %v3836_v46  ;;  %v2995_v2 = vadd.f32 %v5547_v58, %v2737_v55 }
 0x234   : > { %v1464_v14 = vrot.slane %v1318_v38, 2  ;;  %v1465_v25 = vrot.slane %v1318_v38, 4  ;;  %v3885_v53 = vsel %vm3725_vm3, %v3661_v26, %v3884_v28  ;;  %v5585_v59 = vadd.f32 %v4790_v49, %v2738_v56 }
 0x235   : > { %v1466_v27 = vrot.slane %v1318_v38, 6  ;;  %v1336_v24 = vmax.f32 %v882_v19, %v4785_v44  ;;  %v5589_v21 = vadd.f32 %v4777_v37, %v2739_v47  ;;  %v4269_v32 = vrot.slane %v1318_v38, 9 }
 0x236   : > { %v4270_v11 = vrot.slane %v1464_v14, 9  ;;  %v4271_v5 = vrot.slane %v1465_v25, 9  ;;  %v3662_v16 = vperm.slane %v3182_v62, 0  ;;  %v5592_v58 = vadd.f32 %v4793_v50, %v2740_v57 }
 0x237   : > { %v4272_v30 = vrot.slane %v1466_v27, 9  ;;  %v5595_v43 = vmax.f32 %v972_v48, %v4774_v35  ;;  %v3235_v9 = vmax.f32 %v2995_v2, 0.0  ;;  %v2557_v49 = vmax.f32 %v1318_v38, %v4269_v32 }
 0x238   : > { %v2558_v18 = vmax.f32 %v1464_v14, %v4270_v11  ;;  %v2559_v29 = vmax.f32 %v1465_v25, %v4271_v5  ;;  %v5598_v44 = vsel %vm3727_vm4, %v3662_v16, %v3885_v53  ;;  %v3236_v37 = vmax.f32 %v5585_v59, 0.0  ;;  %v1062_v5 = vpop.f32.mrf.mxu3 }
 0x239   : > { %v2560_v12 = vmax.f32 %v1466_v27, %v4272_v30  ;;  %v1518_v6 = vrot.slane %v1336_v24, 2  ;;  %v3237_v8 = vmax.f32 %v5589_v21, 0.0  ;;  %v2815_v50 = vadd.f32 %v4798_v51, %v2557_v49 }
 0x23a   : > { %v2816_v60 = vadd.f32 %v4806_v63, %v2558_v18  ;;  %v2817_v35 = vadd.f32 %v4801_v52, %v2559_v29  ;;  %v3238_v13 = vmax.f32 %v5592_v58, 0.0  ;;  %v1519_v15 = vrot.slane %v1336_v24, 4 }
 0x23b   : > { %v2818_v54 = vadd.f32 %v4809_v0, %v2560_v12  ;;  %v1520_v34 = vrot.slane %v1336_v24, 6  ;;  %v5607_v23 = vperm.slane %v3235_v9, 0  ;;  %v3055_v4 = vmax.f32 %v2815_v50, 0.0 }
 0x23c   : > { %v3056_v42 = vmax.f32 %v2816_v60, 0.0  ;;  %v3057_v40 = vmax.f32 %v2817_v35, 0.0  ;;  %v4341_v7 = vrot.slane %v1336_v24, 9  ;;  %v4342_v46 = vrot.slane %v1518_v6, 9 }
 0x23d   : > { %v3058_v20 = vmax.f32 %v2818_v54, 0.0  ;;  %v4343_v10 = vrot.slane %v1519_v15, 9  ;;  %v3535_v36 = vperm.slane %v3055_v4, 0  ;;  %v4344_v17 = vrot.slane %v1520_v34, 9 }
 0x23e   : > { %v3536_v1 = vperm.slane %v3056_v42, 0  ;;  %v3537_v31 = vperm.slane %v3057_v40, 0  ;;  %v2629_v45 = vmax.f32 %v1336_v24, %v4341_v7  ;;  %v2630_v33 = vmax.f32 %v1518_v6, %v4342_v46 }
 0x23f   : > { %v3538_v26 = vperm.slane %v3058_v20, 0  ;;  %v2631_v41 = vmax.f32 %v1519_v15, %v4343_v10  ;;  %v3775_v55 = vsel %vm3729_vm5, %v3535_v36, %v3774_v39  ;;  %v2632_v38 = vmax.f32 %v1520_v34, %v4344_v17 }
 0x240   : > { %v1560_v3 = vrot.slane %v5595_v43, 2  ;;  %v1561_v28 = vrot.slane %v5595_v43, 4  ;;  %v3776_v56 = vsel %vm3731_vm6, %v3536_v1, %v3775_v55  ;;  %v2887_v19 = vadd.f32 %v4798_v51, %v2629_v45 }
 0x241   : > { %v2888_v62 = vadd.f32 %v4806_v63, %v2630_v33  ;;  %v2889_v47 = vadd.f32 %v4801_v52, %v2631_v41  ;;  %v3777_v57 = vsel %vm3733_vm7, %v3537_v31, %v3776_v56  ;;  %v2890_v2 = vadd.f32 %v4809_v0, %v2632_v38 }
 0x242   : > { %v1562_v39 = vrot.slane %v5595_v43, 6  ;;  %v4397_v14 = vrot.slane %v5595_v43, 9  ;;  %v3778_v25 = vsel %vm3735_vm8, %v3538_v26, %v3777_v57  ;;  %v3127_v48 = vmax.f32 %v2887_v19, 0.0 }
 0x243   : > { %v3128_v53 = vmax.f32 %v2888_v62, 0.0  ;;  %v3129_v59 = vmax.f32 %v2889_v47, 0.0  ;;  %3976 = vst [vmem:[%s4872_s6 + $0x30] sm:$0xff] %v3778_v25  ;;  %v3130_v27 = vmax.f32 %v2890_v2, 0.0  ;;  %v4398_v24 = vrot.slane %v1560_v3, 9 }
 0x244   : > { %v4399_v32 = vrot.slane %v1561_v28, 9  ;;  %v4400_v11 = vrot.slane %v1562_v39, 9  ;;  %v3607_v16 = vperm.slane %v3127_v48, 0  ;;  %v2685_v49 = vmax.f32 %v5595_v43, %v4397_v14 }
 0x245   : > { %v3608_v30 = vperm.slane %v3128_v53, 0  ;;  %v3609_v9 = vperm.slane %v3129_v59, 0  ;;  %v3716_v18 = vperm.slane %v3236_v37, 0  ;;  %v2686_v29 = vmax.f32 %v1560_v3, %v4398_v24 }
 0x246   : > { %v2687_v12 = vmax.f32 %v1561_v28, %v4399_v32  ;;  %v2688_v6 = vmax.f32 %v1562_v39, %v4400_v11  ;;  %v3610_v50 = vperm.slane %v3130_v27, 0  ;;  %v3838_v60 = vsel %vm3729_vm5, %v3607_v16, %v5580_v61 }
 0x247   : > { %v2943_v35 = vadd.f32 %v4798_v51, %v2685_v49  ;;  %v1364_v54 = vmax.f32 %v5463_v22, %v1062_v5  ;;  %v3839_v15 = vsel %vm3731_vm6, %v3608_v30, %v3838_v60  ;;  %v2944_v34 = vadd.f32 %v4806_v63, %v2686_v29 }
 0x248   : > { %v2945_v4 = vadd.f32 %v4801_v52, %v2687_v12  ;;  %v2946_v43 = vadd.f32 %v4809_v0, %v2688_v6  ;;  %v3840_v37 = vsel %vm3733_vm7, %v3609_v9, %v3839_v15  ;;  %v3717_v17 = vperm.slane %v3237_v8, 0 }
 0x249   : > { %v3183_v42 = vmax.f32 %v2943_v35, 0.0  ;;  %v1602_v40 = vrot.slane %v1364_v54, 2  ;;  %v1603_v20 = vrot.slane %v1364_v54, 4  ;;  %v3841_v7 = vsel %vm3735_vm8, %v3610_v50, %v3840_v37 }
 0x24a   : > { %v3184_v61 = vmax.f32 %v2944_v34, 0.0  ;;  %v3185_v46 = vmax.f32 %v2945_v4, 0.0  ;;  %v3186_v10 = vmax.f32 %v2946_v43, 0.0  ;;  %3985 = vst [vmem:[%s4872_s6 + $0x78] sm:$0xff] %v3841_v7  ;;  %v1604_v36 = vrot.slane %v1364_v54, 6 }
 0x24b   : > { %v3663_v22 = vperm.slane %v3183_v42, 0  ;;  %v4453_v1 = vrot.slane %v1364_v54, 9  ;;  %v4454_v31 = vrot.slane %v1602_v40, 9  ;;  %v4455_v33 = vrot.slane %v1603_v20, 9 }
 0x24c   : > { %v3664_v26 = vperm.slane %v3184_v61, 0  ;;  %v3665_v45 = vperm.slane %v3185_v46, 0  ;;  %v4456_v55 = vrot.slane %v1604_v36, 9  ;;  %v3933_v28 = vsel %vm3723_vm2, %v3716_v18, %v5607_v23 }
 0x24d   : > { %v3887_v41 = vsel %vm3729_vm5, %v3663_v22, %v5598_v44  ;;  %v2741_v38 = vmax.f32 %v1364_v54, %v4453_v1  ;;  %v2742_v3 = vmax.f32 %v1602_v40, %v4454_v31  ;;  %v3666_v56 = vperm.slane %v3186_v10, 0 }
 0x24e   : > { %v3888_v19 = vsel %vm3731_vm6, %v3664_v26, %v3887_v41  ;;  %v2743_v62 = vmax.f32 %v1603_v20, %v4455_v33  ;;  %v2744_v8 = vmax.f32 %v1604_v36, %v4456_v55  ;;  %v3934_v39 = vsel %vm3725_vm3, %v3717_v17, %v3933_v28 }
 0x24f   : > { %v3889_v21 = vsel %vm3733_vm7, %v3665_v45, %v3888_v19  ;;  %v2999_v47 = vadd.f32 %v4798_v51, %v2741_v38  ;;  %v3000_v57 = vadd.f32 %v4806_v63, %v2742_v3  ;;  %v3718_v48 = vperm.slane %v3238_v13, 0 }
 0x250   : > { %v3890_v2 = vsel %vm3735_vm8, %v3666_v56, %v3889_v21  ;;  %v3001_v44 = vadd.f32 %v4801_v52, %v2743_v62  ;;  %v3002_v23 = vadd.f32 %v4809_v0, %v2744_v8 }
 0x251   : > { %3992 = vst [vmem:[%s4872_s6 + $0xb0] sm:$0xff] %v3890_v2  ;;  %v3239_v14 = vmax.f32 %v2999_v47, 0.0  ;;  %v3240_v25 = vmax.f32 %v3000_v57, 0.0  ;;  %v3935_v63 = vsel %vm3727_vm4, %v3718_v48, %v3934_v39 }
 0x252   : > { %v3241_v53 = vmax.f32 %v3001_v44, 0.0  ;;  %v3242_v59 = vmax.f32 %v3002_v23, 0.0 }
 0x253   : > { %v3719_v51 = vperm.slane %v3239_v14, 0  ;;  %v3720_v27 = vperm.slane %v3240_v25, 0 }
 0x254   : > { %v3721_v24 = vperm.slane %v3241_v53, 0  ;;  %v3722_v32 = vperm.slane %v3242_v59, 0 }
 0x255   : > { %v3936_v52 = vsel %vm3729_vm5, %v3719_v51, %v3935_v63 }
 0x256   : > { %v3937_v11 = vsel %vm3731_vm6, %v3720_v27, %v3936_v52 }
 0x257   : > { %v3938_v5 = vsel %vm3733_vm7, %v3721_v24, %v3937_v11 }
 0x258   : > { %v3939_v0 = vsel %vm3735_vm8, %v3722_v32, %v3938_v5 }
 0x259   : > { %3999 = vst [vmem:[%s4872_s6 + $0xe8] sm:$0xff] %v3939_v0 }
 0x25a PF: > { %s13_s14 = sadd.s32 1, %s4523_s14   ;;  %s5670_s12 = smov %s4519_s13 }
 0x25b   : > { %p10_p5 = scmp.ge.s32.totalorder %s13_s14, 4   ;;  %s5671_s13 = smov %s5673_s15 }
 0x25d   :  { %12 = sbr.rel (!%p10_p5) target bundleno = 2 (0x2), region = 63 }

// kernel: cnn_forward.7
= control target key start
LH: loop header
LB: loop body
LE: loop exit
PB: predicated region body
PF: predicated region fallthrough
CT: control target
= control target key end

     0   :  { %s1273_s0 = inlined_call_operand.vmem [shape: f32[2,1024], index: 0, kind: input, shape index: {}]   ;;  %s1274_s1 = inlined_call_operand.vmem [shape: bf16[1024,128], index: 1, kind: input, shape index: {}]   ;;  %s1275_s2 = inlined_call_operand.vmem [shape: f32[1,128], index: 2, kind: input, shape index: {}]   ;;  %s1276_s3 = inlined_call_operand.hbm [shape: f32[2,128], index: 3, kind: output, shape index: {}]  }
   0x1   :  { %v963_v0 = vld [vmem:[%s1274_s1 + $0x38] sm:$0xff]  ;;  %v962_v4 = vld [vmem:[%s1274_s1 + $0x30] sm:$0xff]  ;;  %v961_v8 = vld [vmem:[%s1274_s1 + $0x28] sm:$0xff] }
   0x2   :  { %v971_v1 = vld [vmem:[%s1274_s1 + $0x78] sm:$0xff]  ;;  %558 = vmatpush.bf16.msra.mxu0 %v963_v0  ;;  %v970_v5 = vld [vmem:[%s1274_s1 + $0x70] sm:$0xff]  ;;  %v969_v9 = vld [vmem:[%s1274_s1 + $0x68] sm:$0xff] }
   0x3   :  { %v979_v2 = vld [vmem:[%s1274_s1 + $0xb8] sm:$0xff]  ;;  %571 = vmatpush.bf16.msra.mxu1 %v971_v1  ;;  %v978_v6 = vld [vmem:[%s1274_s1 + $0xb0] sm:$0xff]  ;;  %v977_v10 = vld [vmem:[%s1274_s1 + $0xa8] sm:$0xff] }
   0x4   :  { %v987_v3 = vld [vmem:[%s1274_s1 + $0xf8] sm:$0xff]  ;;  %584 = vmatpush.bf16.msra.mxu2 %v979_v2  ;;  %v986_v7 = vld [vmem:[%s1274_s1 + $0xf0] sm:$0xff]  ;;  %v985_v11 = vld [vmem:[%s1274_s1 + $0xe8] sm:$0xff] }
   0x5   :  { %597 = vmatpush.bf16.msra.mxu3 %v987_v3  ;;  %v960_v12 = vld [vmem:[%s1274_s1 + $0x20] sm:$0xff]  ;;  %v959_v17 = vld [vmem:[%s1274_s1 + $0x18] sm:$0xff]  ;;  %v958_v21 = vld [vmem:[%s1274_s1 + $0x10] sm:$0xff] }
   0x6   :  { %559 = vmatpush.bf16.msra.mxu0 %v962_v4  ;;  %v968_v13 = vld [vmem:[%s1274_s1 + $0x60] sm:$0xff]  ;;  %v967_v18 = vld [vmem:[%s1274_s1 + $0x58] sm:$0xff]  ;;  %v966_v22 = vld [vmem:[%s1274_s1 + $0x50] sm:$0xff] }
   0x7   :  { %572 = vmatpush.bf16.msra.mxu1 %v970_v5  ;;  %v976_v14 = vld [vmem:[%s1274_s1 + $0xa0] sm:$0xff]  ;;  %v975_v19 = vld [vmem:[%s1274_s1 + $0x98] sm:$0xff] }
   0x8   :  { %585 = vmatpush.bf16.msra.mxu2 %v978_v6  ;;  %v984_v15 = vld [vmem:[%s1274_s1 + $0xe0] sm:$0xff]  ;;  %v983_v20 = vld [vmem:[%s1274_s1 + $0xd8] sm:$0xff] }
   0x9   :  { %598 = vmatpush.bf16.msra.mxu3 %v986_v7  ;;  %v15_v16 = vld [vmem:[%s1273_s0] sm:$0xff] }
   0xa   :  { %560 = vmatpush.bf16.msra.mxu0 %v961_v8  ;;  %19 = vst [vmem:[#allocation1] ss:$4 sm:$0xff] %v15_v16 }
   0xb   :  { %573 = vmatpush.bf16.msra.mxu1 %v969_v9 }
   0xc   :  { %586 = vmatpush.bf16.msra.mxu2 %v977_v10 }
   0xd   :  { %599 = vmatpush.bf16.msra.mxu3 %v985_v11 }
   0xe   :  { %561 = vmatpush.bf16.msra.mxu0 %v960_v12 }
   0xf   :  { %574 = vmatpush.bf16.msra.mxu1 %v968_v13 }
  0x10   :  { %587 = vmatpush.bf16.msra.mxu2 %v976_v14 }
  0x11   :  { %600 = vmatpush.bf16.msra.mxu3 %v984_v15 }
  0x12   :  { %562 = vmatpush.bf16.msra.mxu0 %v959_v17 }
  0x13   :  { %575 = vmatpush.bf16.msra.mxu1 %v967_v18 }
  0x14   :  { %8 = vsyncpa [#allocation3], 0  ;;  %588 = vmatpush.bf16.msra.mxu2 %v975_v19  ;;  %v974_v23 = vld [vmem:[%s1274_s1 + $0x90] sm:$0xff]  ;;  %v957_v25 = vld [vmem:[%s1274_s1 + $0x8] sm:$0xff]  ;;  %s1048_s7 = smov [#allocation2]   ;;  %s691_s11 = sshll.u32 %s1276_s3, 4  ;;  %s692_s11 = int_to_ptr.hbm [resolvable:$true] %s691_s11 }
  0x15   :  { %601 = vmatpush.bf16.msra.mxu3 %v983_v20  ;;  %v982_v24 = vld [vmem:[%s1274_s1 + $0xd0] sm:$0xff]  ;;  %v965_v26 = vld [vmem:[%s1274_s1 + $0x48] sm:$0xff]  ;;  %v956_v30 = vld [vmem:[%s1274_s1] sm:$0xff]  ;;  %s689_s8 = sshll.u32 %s1048_s7, 4  ;;  %s690_s8 = int_to_ptr.vmem [resolvable:$true] %s689_s8 }
  0x16   :  { %563 = vmatpush.bf16.msra.mxu0 %v958_v21  ;;  %v973_v27 = vld [vmem:[%s1274_s1 + $0x88] sm:$0xff]  ;;  %v964_v31 = vld [vmem:[%s1274_s1 + $0x40] sm:$0xff]  ;;  %v995_v34 = vld [vmem:[%s1274_s1 + $0x138] sm:$0xff] }
  0x17   :  { %576 = vmatpush.bf16.msra.mxu1 %v966_v22  ;;  %v981_v28 = vld [vmem:[%s1274_s1 + $0xc8] sm:$0xff]  ;;  %v972_v32 = vld [vmem:[%s1274_s1 + $0x80] sm:$0xff]  ;;  %v1003_v35 = vld [vmem:[%s1274_s1 + $0x178] sm:$0xff] }
  0x18   :  { %589 = vmatpush.bf16.msra.mxu2 %v974_v23  ;;  %v16_v29 = vld [vmem:[%s1273_s0 + $0x8] sm:$0xff]  ;;  %v980_v33 = vld [vmem:[%s1274_s1 + $0xc0] sm:$0xff]  ;;  %v24_v36 = vld.sshfl [vmem:[#allocation1 + $0x10] sm:$0xff pattern:$0x73625140] }
  0x19   :  { %602 = vmatpush.bf16.msra.mxu3 %v982_v24  ;;  %21 = vst [vmem:[#allocation1 + $0x20] ss:$4 sm:$0xff] %v16_v29  ;;  %v22_v37 = vld.sshfl [vmem:[#allocation1] sm:$0xff pattern:$0x73625140]  ;;  %v1011_v40 = vld [vmem:[%s1274_s1 + $0x1b8] sm:$0xff]  ;;  %v40_v42 = vpack.c.bf16 %v24_v36, %v24_v36 }
  0x1a   :  { %564 = vmatpush.bf16.msra.mxu0 %v957_v25  ;;  %v25_v38 = vld.sshfl [vmem:[#allocation1 + $0x18] sm:$0xff pattern:$0x73625140]  ;;  %v23_v39 = vld.sshfl [vmem:[#allocation1 + $0x8] sm:$0xff pattern:$0x73625140]  ;;  %v38_v43 = vpack.c.bf16 %v22_v37, %v22_v37 }
  0x1b   :  { %577 = vmatpush.bf16.msra.mxu1 %v965_v26  ;;  %v1019_v41 = vld [vmem:[%s1274_s1 + $0x1f8] sm:$0xff]  ;;  %v41_v44 = vpack.c.bf16 %v25_v38, %v25_v38  ;;  %v39_v45 = vpack.c.bf16 %v23_v39, %v23_v39  ;;  %v994_v46 = vld [vmem:[%s1274_s1 + $0x130] sm:$0xff]  ;;  %v993_v50 = vld [vmem:[%s1274_s1 + $0x128] sm:$0xff] }
  0x1c   :  { %590 = vmatpush.bf16.msra.mxu2 %v973_v27  ;;  %v1002_v47 = vld [vmem:[%s1274_s1 + $0x170] sm:$0xff]  ;;  %v1001_v51 = vld [vmem:[%s1274_s1 + $0x168] sm:$0xff]  ;;  %v992_v54 = vld [vmem:[%s1274_s1 + $0x120] sm:$0xff] }
  0x1d   :  { %603 = vmatpush.bf16.msra.mxu3 %v981_v28  ;;  %v1010_v48 = vld [vmem:[%s1274_s1 + $0x1b0] sm:$0xff]  ;;  %v1009_v52 = vld [vmem:[%s1274_s1 + $0x1a8] sm:$0xff]  ;;  %v1000_v55 = vld [vmem:[%s1274_s1 + $0x160] sm:$0xff] }
  0x1e   :  { %565 = vmatpush.bf16.msra.mxu0 %v956_v30  ;;  %v1018_v49 = vld [vmem:[%s1274_s1 + $0x1f0] sm:$0xff]  ;;  %v1017_v53 = vld [vmem:[%s1274_s1 + $0x1e8] sm:$0xff]  ;;  %v1008_v56 = vld [vmem:[%s1274_s1 + $0x1a0] sm:$0xff] }
  0x1f   :  { %578 = vmatpush.bf16.msra.mxu1 %v964_v31  ;;  %v1016_v57 = vld [vmem:[%s1274_s1 + $0x1e0] sm:$0xff]  ;;  %v991_v58 = vld [vmem:[%s1274_s1 + $0x118] sm:$0xff]  ;;  %v990_v62 = vld [vmem:[%s1274_s1 + $0x110] sm:$0xff] }
  0x20   :  { %591 = vmatpush.bf16.msra.mxu2 %v972_v32  ;;  %v999_v59 = vld [vmem:[%s1274_s1 + $0x158] sm:$0xff]  ;;  %v998_v63 = vld [vmem:[%s1274_s1 + $0x150] sm:$0xff]  ;;  %v989_v2 = vld [vmem:[%s1274_s1 + $0x108] sm:$0xff] }
  0x21   :  { %604 = vmatpush.bf16.msra.mxu3 %v980_v33  ;;  %566 = vmatmul.bf16.vlgmr.msra.gmra.mxu0 %v38_v43  ;;  %v1007_v60 = vld [vmem:[%s1274_s1 + $0x198] sm:$0xff]  ;;  %v1006_v0 = vld [vmem:[%s1274_s1 + $0x190] sm:$0xff]  ;;  %v997_v3 = vld [vmem:[%s1274_s1 + $0x148] sm:$0xff] }
  0x22   :  { %610 = vmatpush.bf16.msrb.mxu0 %v995_v34  ;;  %579 = vmatmul.bf16.vlgmr.msra.gmra.mxu1 %v39_v45  ;;  %v1015_v61 = vld [vmem:[%s1274_s1 + $0x1d8] sm:$0xff]  ;;  %v1014_v1 = vld [vmem:[%s1274_s1 + $0x1d0] sm:$0xff]  ;;  %v1005_v4 = vld [vmem:[%s1274_s1 + $0x188] sm:$0xff] }
  0x23   :  { %623 = vmatpush.bf16.msrb.mxu1 %v1003_v35  ;;  %592 = vmatmul.bf16.vlgmr.msra.gmra.mxu2 %v40_v42  ;;  %v1013_v5 = vld [vmem:[%s1274_s1 + $0x1c8] sm:$0xff]  ;;  %v988_v6 = vld [vmem:[%s1274_s1 + $0x100] sm:$0xff]  ;;  %v28_v12 = vld.sshfl [vmem:[#allocation1 + $0x30] sm:$0xff pattern:$0x73625140] }
  0x24   :  { %636 = vmatpush.bf16.msrb.mxu2 %v1011_v40  ;;  %605 = vmatmul.bf16.vlgmr.msra.gmra.mxu3 %v41_v44  ;;  %v996_v7 = vld [vmem:[%s1274_s1 + $0x140] sm:$0xff]  ;;  %v27_v11 = vld.sshfl [vmem:[#allocation1 + $0x28] sm:$0xff pattern:$0x73625140]  ;;  %v44_v16 = vpack.c.bf16 %v28_v12, %v28_v12 }
  0x25   :  { %649 = vmatpush.bf16.msrb.mxu3 %v1019_v41  ;;  %v1004_v8 = vld [vmem:[%s1274_s1 + $0x180] sm:$0xff]  ;;  %v29_v13 = vld.sshfl [vmem:[#allocation1 + $0x38] sm:$0xff pattern:$0x73625140]  ;;  %v43_v15 = vpack.c.bf16 %v27_v11, %v27_v11 }
  0x26   :  { %611 = vmatpush.bf16.msrb.mxu0 %v994_v46  ;;  %v1012_v9 = vld [vmem:[%s1274_s1 + $0x1c0] sm:$0xff]  ;;  %v45_v17 = vpack.c.bf16 %v29_v13, %v29_v13 }
  0x27   :  { %624 = vmatpush.bf16.msrb.mxu1 %v1002_v47  ;;  %v26_v10 = vld.sshfl [vmem:[#allocation1 + $0x20] sm:$0xff pattern:$0x73625140] }
  0x28   :  { %637 = vmatpush.bf16.msrb.mxu2 %v1010_v48  ;;  %v42_v14 = vpack.c.bf16 %v26_v10, %v26_v10  ;;  %v1021_v41 = vld [vmem:[%s1275_s2] ss:$0 sm:$0xff] }
  0x29   :  { %650 = vmatpush.bf16.msrb.mxu3 %v1018_v49 }
  0x2a   :  { %612 = vmatpush.bf16.msrb.mxu0 %v993_v50 }
  0x2b   :  { %625 = vmatpush.bf16.msrb.mxu1 %v1001_v51 }
  0x2c   :  { %638 = vmatpush.bf16.msrb.mxu2 %v1009_v52 }
  0x2d   :  { %651 = vmatpush.bf16.msrb.mxu3 %v1017_v53 }
  0x2e   :  { %613 = vmatpush.bf16.msrb.mxu0 %v992_v54 }
  0x2f   :  { %626 = vmatpush.bf16.msrb.mxu1 %v1000_v55 }
  0x30   :  { %639 = vmatpush.bf16.msrb.mxu2 %v1008_v56 }
  0x31   :  { %652 = vmatpush.bf16.msrb.mxu3 %v1016_v57 }
  0x32   :  { %614 = vmatpush.bf16.msrb.mxu0 %v991_v58 }
  0x33   :  { %627 = vmatpush.bf16.msrb.mxu1 %v999_v59 }
  0x34   :  { %640 = vmatpush.bf16.msrb.mxu2 %v1007_v60 }
  0x35   :  { %653 = vmatpush.bf16.msrb.mxu3 %v1015_v61 }
  0x36   :  { %615 = vmatpush.bf16.msrb.mxu0 %v990_v62 }
  0x37   :  { %628 = vmatpush.bf16.msrb.mxu1 %v998_v63 }
  0x38   :  { %641 = vmatpush.bf16.msrb.mxu2 %v1006_v0 }
  0x39   :  { %654 = vmatpush.bf16.msrb.mxu3 %v1014_v1 }
  0x3a   :  { %616 = vmatpush.bf16.msrb.mxu0 %v989_v2 }
  0x3b   :  { %629 = vmatpush.bf16.msrb.mxu1 %v997_v3 }
  0x3c   :  { %642 = vmatpush.bf16.msrb.mxu2 %v1005_v4 }
  0x3d   :  { %655 = vmatpush.bf16.msrb.mxu3 %v1013_v5 }
  0x3e   :  { %617 = vmatpush.bf16.msrb.mxu0 %v988_v6 }
  0x3f   :  { %630 = vmatpush.bf16.msrb.mxu1 %v996_v7 }
  0x40   :  { %643 = vmatpush.bf16.msrb.mxu2 %v1004_v8 }
  0x41   :  { %656 = vmatpush.bf16.msrb.mxu3 %v1012_v9  ;;  %618 = vmatmul.bf16.vlgmr.msrb.gmra.mxu0 %v42_v14 }
  0x42   :  { %631 = vmatmul.bf16.vlgmr.msrb.gmra.mxu1 %v43_v15 }
  0x43   :  { %644 = vmatmul.bf16.vlgmr.msrb.gmra.mxu2 %v44_v16 }
  0x44   :  { %657 = vmatmul.bf16.vlgmr.msrb.gmra.mxu3 %v45_v17 }
  0x9e   :  { %v567_v18 = vpop.f32.mrf.mxu0 }
  0x9f   :  { %v580_v19 = vpop.f32.mrf.mxu1 }
  0xa0   :  { %v581_v26 = vadd.f32 %v580_v19, %v567_v18 }
  0xa6   :  { %v593_v20 = vpop.f32.mrf.mxu2  ;;  %v569_v22 = vpop.f32.mrf.mxu0 }
  0xa7   :  { %v606_v21 = vpop.f32.mrf.mxu3  ;;  %v582_v23 = vpop.f32.mrf.mxu1  ;;  %v594_v27 = vadd.f32 %v593_v20, %v581_v26 }
  0xa9   :  { %v607_v28 = vadd.f32 %v606_v21, %v594_v27 }
  0xae   :  { %v595_v24 = vpop.f32.mrf.mxu2 }
  0xaf   :  { %v608_v25 = vpop.f32.mrf.mxu3 }
  0xbe   :  { %v619_v29 = vpop.f32.mrf.mxu0 }
  0xbf   :  { %v632_v30 = vpop.f32.mrf.mxu1  ;;  %v620_v31 = vadd.f32 %v619_v29, %v607_v28 }
  0xc1   :  { %v633_v32 = vadd.f32 %v632_v30, %v620_v31 }
  0xc6   :  { %v645_v33 = vpop.f32.mrf.mxu2  ;;  %v621_v36 = vpop.f32.mrf.mxu0 }
  0xc7   :  { %v658_v34 = vpop.f32.mrf.mxu3  ;;  %v646_v35 = vadd.f32 %v645_v33, %v633_v32  ;;  %v634_v37 = vpop.f32.mrf.mxu1 }
  0xc9   :  { %v659_v38 = vadd.f32 %v658_v34, %v646_v35 }
  0xcb   :  { %666 = vst [vmem:[#allocation2] sm:$0x3] %v659_v38 }
  0xce   :  { %v647_v39 = vpop.f32.mrf.mxu2 }
  0xcf   :  { %v660_v40 = vpop.f32.mrf.mxu3 }
  0xd2   :  { %v677_v42 = vld [vmem:[#allocation2] sm:$0x3] }
  0xd3   :  { %v682_v43 = vadd.f32 %v1021_v41, %v677_v42 }
  0xd5   :  { %683 = vst [vmem:[#allocation2] sm:$0x3] %v682_v43 }
  0xd6   :  { %694 = dma.vmem_to_hbm [thread:$0]  %s690_s8, 32, %s692_s11, [#allocation3]  }
  0xd7   :  { %1046 = dma.done.wait [#allocation3], 32  }
  0xd8   :  { %1047 = vsyncadd [#allocation3], 4294967264 }
  0xd9   :  { %699 = vsyncpa [#allocation3], 1 }

// kernel: cnn_forward.6
= control target key start
LH: loop header
LB: loop body
LE: loop exit
PB: predicated region body
PF: predicated region fallthrough
CT: control target
= control target key end

     0   :  { %s9717_s12 = smov 0   ;;  %s9719_s13 = smov 0   ;;  %s11750_s0 = inlined_call_operand.vmem [shape: f32[2,2304], index: 0, kind: input, shape index: {}]   ;;  %s11751_s1 = inlined_call_operand.vmem [shape: bf16[2304,1024], index: 1, kind: input, shape index: {}]   ;;  %s11752_s2 = inlined_call_operand.vmem [shape: f32[1,1024], index: 2, kind: input, shape index: {}]   ;;  %s11753_s3 = inlined_call_operand.vmem [shape: f32[2,1024], index: 3, kind: output, shape index: {}]  }
   0x1   :  { %s9721_s14 = smov 0   ;;  %s9723_s15 = smov 0  }
   0x2   :  { %s9725_s16 = smov 0  }
   0x3 LB: > { %s25_s17 = sadd.s32 1, %s9675_s15  ;;  %p67_p1 = scmp.ne.s32.totalorder %s9667_s13, %s9663_s12  ;;  %s9679_s16 = sphi %s9725_s16, %s13_s16   ;;  %s9675_s15 = sphi %s9723_s15, %s11762_s15   ;;  %s9671_s14 = sphi %s9721_s14, %s11761_s14   ;;  %s9667_s13 = sphi %s9719_s13, %s11760_s13   ;;  %s9663_s12 = sphi %s9717_s12, %s11759_s12  }
   0x4   : > { %p27_p0 = scmp.ge.s32.totalorder %s25_s17, 2  ;;  %p68_p2 = scmp.eq.s32.totalorder %s9679_s16, 0 }
   0x5   : > { %s60_s19 = sadd.s32 1, %s9667_s13  ;;  %p6659_p5 = scmp.ge.s32.totalorder %s9679_s16, 2 }
   0x6   : > { %s11764_s17 = smov (%p27_p0, %s25_s17), 0  ;;  %p69_p3 = por %p68_p2, %p67_p1 }
   0x7   : > { %s56_s18 = ssub.s32 %s9675_s15, %s11764_s17  ;;  %154 = sbr.rel (%p6659_p5) target bundleno = 306 (0x132), region = 20 }
   0x8   : > { %p58_p4 = scmp.eq.s32.totalorder %s56_s18, 0 }
   0xa   : > { %s9752_s20 = scalar_select %p58_p4, %s9667_s13, %s60_s19  }
   0xc   : > { %157 = sbr.rel (!%p69_p3) target bundleno = 306 (0x132), region = 24  ;;  %s159_s21 = sand.u32 (%p69_p3), 1, %s9667_s13  }
   0xd   : > { %s8974_s22 = sshll.u32 (%p69_p3), %s9675_s15, 4  ;;  %s9757_s23 = smul.u32 (%p69_p3), 4608, %s159_s21 }
   0xe   : > { %s9762_s26 = scalar_lea.vmem (%p69_p3), %s11751_s1, %s8974_s22   ;;  %s9772_s30 = smov (%p69_p3), 0  }
   0xf   : > { %s161_s27 = scalar_lea.vmem (%p69_p3), [#allocation2], %s9757_s23   ;;  %s11755_s29 = smov (%p69_p3), %s9762_s26 }
  0x10   : > { %s11754_s28 = smov (%p69_p3), %s161_s27  ;;  %s9774_s4 = smov (%p69_p3), 0  }
  0x11 LB: >> { %v181_v0 = vld [vmem:[%s9687_s29] sm:$0xff]  ;;  %s757_s5 = sadd.s32 1, %s9691_s30  ;;  %s177_s4 = sadd.s32 1, %s9695_s4   ;;  %s9695_s4 = sphi %s9774_s4, %s177_s4   ;;  %s9691_s30 = sphi %s9772_s30, %s11758_s30   ;;  %s9687_s29 = sphi %s11755_s29, %s11757_s29   ;;  %s9683_s28 = sphi %s11754_s28, %s11756_s28  }
  0x12   : >> { %v183_v1 = vld [vmem:[%s9687_s29 + $0x20] sm:$0xff]  ;;  %182 = vst [vmem:[%s9683_s28] sm:$0xff] %v181_v0  ;;  %p758_p6 = scmp.ge.s32.totalorder %s757_s5, 2  ;;  %p174_p7 = scmp.ge.s32.totalorder %s177_s4, 2  }
  0x13   : >> { %v185_v2 = vld [vmem:[%s9687_s29 + $0x40] sm:$0xff]  ;;  %184 = vst [vmem:[%s9683_s28 + $0x10] sm:$0xff] %v183_v1 }
  0x14   : >> { %v187_v3 = vld [vmem:[%s9687_s29 + $0x60] sm:$0xff]  ;;  %186 = vst [vmem:[%s9683_s28 + $0x20] sm:$0xff] %v185_v2  ;;  %s11766_s5 = smov (%p758_p6, %s757_s5), 0 }
  0x15   : >> { %v189_v4 = vld [vmem:[%s9687_s29 + $0x80] sm:$0xff]  ;;  %188 = vst [vmem:[%s9683_s28 + $0x30] sm:$0xff] %v187_v3  ;;  %s6662_s6 = sshll.u32 %s11766_s5, 3  ;;  %s11758_s30 = smov %s11766_s5 }
  0x16   : >> { %v191_v5 = vld [vmem:[%s9687_s29 + $0xa0] sm:$0xff]  ;;  %190 = vst [vmem:[%s9683_s28 + $0x40] sm:$0xff] %v189_v4  ;;  %s10116_s7 = scalar_lea.vmem %s9762_s26, %s6662_s6   ;;  %s10120_s8 = scalar_lea.vmem %s161_s27, %s6662_s6 [#allocation2]  }
  0x17   : >> { %v193_v6 = vld [vmem:[%s9687_s29 + $0xc0] sm:$0xff]  ;;  %192 = vst [vmem:[%s9683_s28 + $0x50] sm:$0xff] %v191_v5 }
  0x18   : >> { %v195_v7 = vld [vmem:[%s9687_s29 + $0xe0] sm:$0xff]  ;;  %194 = vst [vmem:[%s9683_s28 + $0x60] sm:$0xff] %v193_v6 }
  0x19   : >> { %v197_v8 = vld [vmem:[%s9687_s29 + $0x100] sm:$0xff]  ;;  %196 = vst [vmem:[%s9683_s28 + $0x70] sm:$0xff] %v195_v7 }
  0x1a   : >> { %v199_v9 = vld [vmem:[%s9687_s29 + $0x120] sm:$0xff]  ;;  %198 = vst [vmem:[%s9683_s28 + $0x80] sm:$0xff] %v197_v8 }
  0x1b   : >> { %v201_v10 = vld [vmem:[%s9687_s29 + $0x140] sm:$0xff]  ;;  %200 = vst [vmem:[%s9683_s28 + $0x90] sm:$0xff] %v199_v9 }
  0x1c   : >> { %v203_v11 = vld [vmem:[%s9687_s29 + $0x160] sm:$0xff]  ;;  %202 = vst [vmem:[%s9683_s28 + $0xa0] sm:$0xff] %v201_v10 }
  0x1d   : >> { %v205_v12 = vld [vmem:[%s9687_s29 + $0x180] sm:$0xff]  ;;  %204 = vst [vmem:[%s9683_s28 + $0xb0] sm:$0xff] %v203_v11 }
  0x1e   : >> { %v207_v13 = vld [vmem:[%s9687_s29 + $0x1a0] sm:$0xff]  ;;  %206 = vst [vmem:[%s9683_s28 + $0xc0] sm:$0xff] %v205_v12 }
  0x1f   : >> { %v209_v14 = vld [vmem:[%s9687_s29 + $0x1c0] sm:$0xff]  ;;  %208 = vst [vmem:[%s9683_s28 + $0xd0] sm:$0xff] %v207_v13 }
  0x20   : >> { %v211_v15 = vld [vmem:[%s9687_s29 + $0x1e0] sm:$0xff]  ;;  %210 = vst [vmem:[%s9683_s28 + $0xe0] sm:$0xff] %v209_v14 }
  0x21   : >> { %v213_v16 = vld [vmem:[%s9687_s29 + $0x200] sm:$0xff]  ;;  %212 = vst [vmem:[%s9683_s28 + $0xf0] sm:$0xff] %v211_v15 }
  0x22   : >> { %v215_v17 = vld [vmem:[%s9687_s29 + $0x220] sm:$0xff]  ;;  %214 = vst [vmem:[%s9683_s28 + $0x100] sm:$0xff] %v213_v16 }
  0x23   : >> { %v217_v18 = vld [vmem:[%s9687_s29 + $0x240] sm:$0xff]  ;;  %216 = vst [vmem:[%s9683_s28 + $0x110] sm:$0xff] %v215_v17 }
  0x24   : >> { %v219_v19 = vld [vmem:[%s9687_s29 + $0x260] sm:$0xff]  ;;  %218 = vst [vmem:[%s9683_s28 + $0x120] sm:$0xff] %v217_v18 }
  0x25   : >> { %v221_v20 = vld [vmem:[%s9687_s29 + $0x280] sm:$0xff]  ;;  %220 = vst [vmem:[%s9683_s28 + $0x130] sm:$0xff] %v219_v19 }
  0x26   : >> { %v223_v21 = vld [vmem:[%s9687_s29 + $0x2a0] sm:$0xff]  ;;  %222 = vst [vmem:[%s9683_s28 + $0x140] sm:$0xff] %v221_v20 }
  0x27   : >> { %v225_v22 = vld [vmem:[%s9687_s29 + $0x2c0] sm:$0xff]  ;;  %224 = vst [vmem:[%s9683_s28 + $0x150] sm:$0xff] %v223_v21 }
  0x28   : >> { %v227_v23 = vld [vmem:[%s9687_s29 + $0x2e0] sm:$0xff]  ;;  %226 = vst [vmem:[%s9683_s28 + $0x160] sm:$0xff] %v225_v22 }
  0x29   : >> { %v229_v24 = vld [vmem:[%s9687_s29 + $0x300] sm:$0xff]  ;;  %228 = vst [vmem:[%s9683_s28 + $0x170] sm:$0xff] %v227_v23 }
  0x2a   : >> { %v231_v25 = vld [vmem:[%s9687_s29 + $0x320] sm:$0xff]  ;;  %230 = vst [vmem:[%s9683_s28 + $0x180] sm:$0xff] %v229_v24 }
  0x2b   : >> { %v233_v26 = vld [vmem:[%s9687_s29 + $0x340] sm:$0xff]  ;;  %232 = vst [vmem:[%s9683_s28 + $0x190] sm:$0xff] %v231_v25 }
  0x2c   : >> { %v235_v27 = vld [vmem:[%s9687_s29 + $0x360] sm:$0xff]  ;;  %234 = vst [vmem:[%s9683_s28 + $0x1a0] sm:$0xff] %v233_v26 }
  0x2d   : >> { %v237_v28 = vld [vmem:[%s9687_s29 + $0x380] sm:$0xff]  ;;  %236 = vst [vmem:[%s9683_s28 + $0x1b0] sm:$0xff] %v235_v27 }
  0x2e   : >> { %v239_v29 = vld [vmem:[%s9687_s29 + $0x3a0] sm:$0xff]  ;;  %238 = vst [vmem:[%s9683_s28 + $0x1c0] sm:$0xff] %v237_v28 }
  0x2f   : >> { %v241_v30 = vld [vmem:[%s9687_s29 + $0x3c0] sm:$0xff]  ;;  %240 = vst [vmem:[%s9683_s28 + $0x1d0] sm:$0xff] %v239_v29 }
  0x30   : >> { %v243_v31 = vld [vmem:[%s9687_s29 + $0x3e0] sm:$0xff]  ;;  %242 = vst [vmem:[%s9683_s28 + $0x1e0] sm:$0xff] %v241_v30 }
  0x31   : >> { %v245_v32 = vld [vmem:[%s9687_s29 + $0x400] sm:$0xff]  ;;  %244 = vst [vmem:[%s9683_s28 + $0x1f0] sm:$0xff] %v243_v31 }
  0x32   : >> { %v247_v33 = vld [vmem:[%s9687_s29 + $0x420] sm:$0xff]  ;;  %246 = vst [vmem:[%s9683_s28 + $0x200] sm:$0xff] %v245_v32 }
  0x33   : >> { %v249_v34 = vld [vmem:[%s9687_s29 + $0x440] sm:$0xff]  ;;  %248 = vst [vmem:[%s9683_s28 + $0x210] sm:$0xff] %v247_v33 }
  0x34   : >> { %v251_v35 = vld [vmem:[%s9687_s29 + $0x460] sm:$0xff]  ;;  %250 = vst [vmem:[%s9683_s28 + $0x220] sm:$0xff] %v249_v34 }
  0x35   : >> { %v253_v36 = vld [vmem:[%s9687_s29 + $0x480] sm:$0xff]  ;;  %252 = vst [vmem:[%s9683_s28 + $0x230] sm:$0xff] %v251_v35 }
  0x36   : >> { %v255_v37 = vld [vmem:[%s9687_s29 + $0x4a0] sm:$0xff]  ;;  %254 = vst [vmem:[%s9683_s28 + $0x240] sm:$0xff] %v253_v36 }
  0x37   : >> { %v257_v38 = vld [vmem:[%s9687_s29 + $0x4c0] sm:$0xff]  ;;  %256 = vst [vmem:[%s9683_s28 + $0x250] sm:$0xff] %v255_v37 }
  0x38   : >> { %v259_v39 = vld [vmem:[%s9687_s29 + $0x4e0] sm:$0xff]  ;;  %258 = vst [vmem:[%s9683_s28 + $0x260] sm:$0xff] %v257_v38 }
  0x39   : >> { %v261_v40 = vld [vmem:[%s9687_s29 + $0x500] sm:$0xff]  ;;  %260 = vst [vmem:[%s9683_s28 + $0x270] sm:$0xff] %v259_v39 }
  0x3a   : >> { %v263_v41 = vld [vmem:[%s9687_s29 + $0x520] sm:$0xff]  ;;  %262 = vst [vmem:[%s9683_s28 + $0x280] sm:$0xff] %v261_v40 }
  0x3b   : >> { %v265_v42 = vld [vmem:[%s9687_s29 + $0x540] sm:$0xff]  ;;  %264 = vst [vmem:[%s9683_s28 + $0x290] sm:$0xff] %v263_v41 }
  0x3c   : >> { %v267_v43 = vld [vmem:[%s9687_s29 + $0x560] sm:$0xff]  ;;  %266 = vst [vmem:[%s9683_s28 + $0x2a0] sm:$0xff] %v265_v42 }
  0x3d   : >> { %v269_v44 = vld [vmem:[%s9687_s29 + $0x580] sm:$0xff]  ;;  %268 = vst [vmem:[%s9683_s28 + $0x2b0] sm:$0xff] %v267_v43 }
  0x3e   : >> { %v271_v45 = vld [vmem:[%s9687_s29 + $0x5a0] sm:$0xff]  ;;  %270 = vst [vmem:[%s9683_s28 + $0x2c0] sm:$0xff] %v269_v44 }
  0x3f   : >> { %v273_v46 = vld [vmem:[%s9687_s29 + $0x5c0] sm:$0xff]  ;;  %272 = vst [vmem:[%s9683_s28 + $0x2d0] sm:$0xff] %v271_v45 }
  0x40   : >> { %v275_v47 = vld [vmem:[%s9687_s29 + $0x5e0] sm:$0xff]  ;;  %274 = vst [vmem:[%s9683_s28 + $0x2e0] sm:$0xff] %v273_v46 }
  0x41   : >> { %v277_v48 = vld [vmem:[%s9687_s29 + $0x600] sm:$0xff]  ;;  %276 = vst [vmem:[%s9683_s28 + $0x2f0] sm:$0xff] %v275_v47 }
  0x42   : >> { %v279_v49 = vld [vmem:[%s9687_s29 + $0x620] sm:$0xff]  ;;  %278 = vst [vmem:[%s9683_s28 + $0x300] sm:$0xff] %v277_v48 }
  0x43   : >> { %v281_v50 = vld [vmem:[%s9687_s29 + $0x640] sm:$0xff]  ;;  %280 = vst [vmem:[%s9683_s28 + $0x310] sm:$0xff] %v279_v49 }
  0x44   : >> { %v283_v51 = vld [vmem:[%s9687_s29 + $0x660] sm:$0xff]  ;;  %282 = vst [vmem:[%s9683_s28 + $0x320] sm:$0xff] %v281_v50 }
  0x45   : >> { %v285_v52 = vld [vmem:[%s9687_s29 + $0x680] sm:$0xff]  ;;  %284 = vst [vmem:[%s9683_s28 + $0x330] sm:$0xff] %v283_v51 }
  0x46   : >> { %v287_v53 = vld [vmem:[%s9687_s29 + $0x6a0] sm:$0xff]  ;;  %286 = vst [vmem:[%s9683_s28 + $0x340] sm:$0xff] %v285_v52 }
  0x47   : >> { %v289_v54 = vld [vmem:[%s9687_s29 + $0x6c0] sm:$0xff]  ;;  %288 = vst [vmem:[%s9683_s28 + $0x350] sm:$0xff] %v287_v53 }
  0x48   : >> { %v291_v55 = vld [vmem:[%s9687_s29 + $0x6e0] sm:$0xff]  ;;  %290 = vst [vmem:[%s9683_s28 + $0x360] sm:$0xff] %v289_v54 }
  0x49   : >> { %v293_v56 = vld [vmem:[%s9687_s29 + $0x700] sm:$0xff]  ;;  %292 = vst [vmem:[%s9683_s28 + $0x370] sm:$0xff] %v291_v55 }
  0x4a   : >> { %v295_v57 = vld [vmem:[%s9687_s29 + $0x720] sm:$0xff]  ;;  %294 = vst [vmem:[%s9683_s28 + $0x380] sm:$0xff] %v293_v56 }
  0x4b   : >> { %v297_v58 = vld [vmem:[%s9687_s29 + $0x740] sm:$0xff]  ;;  %296 = vst [vmem:[%s9683_s28 + $0x390] sm:$0xff] %v295_v57 }
  0x4c   : >> { %v299_v59 = vld [vmem:[%s9687_s29 + $0x760] sm:$0xff]  ;;  %298 = vst [vmem:[%s9683_s28 + $0x3a0] sm:$0xff] %v297_v58 }
  0x4d   : >> { %v301_v60 = vld [vmem:[%s9687_s29 + $0x780] sm:$0xff]  ;;  %300 = vst [vmem:[%s9683_s28 + $0x3b0] sm:$0xff] %v299_v59 }
  0x4e   : >> { %v303_v61 = vld [vmem:[%s9687_s29 + $0x7a0] sm:$0xff]  ;;  %302 = vst [vmem:[%s9683_s28 + $0x3c0] sm:$0xff] %v301_v60 }
  0x4f   : >> { %v305_v62 = vld [vmem:[%s9687_s29 + $0x7c0] sm:$0xff]  ;;  %304 = vst [vmem:[%s9683_s28 + $0x3d0] sm:$0xff] %v303_v61 }
  0x50   : >> { %v307_v63 = vld [vmem:[%s9687_s29 + $0x7e0] sm:$0xff]  ;;  %306 = vst [vmem:[%s9683_s28 + $0x3e0] sm:$0xff] %v305_v62 }
  0x51   : >> { %v309_v0 = vld [vmem:[%s9687_s29 + $0x800] sm:$0xff]  ;;  %308 = vst [vmem:[%s9683_s28 + $0x3f0] sm:$0xff] %v307_v63 }
  0x52   : >> { %v311_v1 = vld [vmem:[%s9687_s29 + $0x820] sm:$0xff]  ;;  %310 = vst [vmem:[%s9683_s28 + $0x400] sm:$0xff] %v309_v0 }
  0x53   : >> { %v313_v2 = vld [vmem:[%s9687_s29 + $0x840] sm:$0xff]  ;;  %312 = vst [vmem:[%s9683_s28 + $0x410] sm:$0xff] %v311_v1 }
  0x54   : >> { %v315_v3 = vld [vmem:[%s9687_s29 + $0x860] sm:$0xff]  ;;  %314 = vst [vmem:[%s9683_s28 + $0x420] sm:$0xff] %v313_v2 }
  0x55   : >> { %v317_v4 = vld [vmem:[%s9687_s29 + $0x880] sm:$0xff]  ;;  %316 = vst [vmem:[%s9683_s28 + $0x430] sm:$0xff] %v315_v3 }
  0x56   : >> { %v319_v5 = vld [vmem:[%s9687_s29 + $0x8a0] sm:$0xff]  ;;  %318 = vst [vmem:[%s9683_s28 + $0x440] sm:$0xff] %v317_v4 }
  0x57   : >> { %v321_v6 = vld [vmem:[%s9687_s29 + $0x8c0] sm:$0xff]  ;;  %320 = vst [vmem:[%s9683_s28 + $0x450] sm:$0xff] %v319_v5 }
  0x58   : >> { %v323_v7 = vld [vmem:[%s9687_s29 + $0x8e0] sm:$0xff]  ;;  %322 = vst [vmem:[%s9683_s28 + $0x460] sm:$0xff] %v321_v6 }
  0x59   : >> { %v325_v8 = vld [vmem:[%s9687_s29 + $0x900] sm:$0xff]  ;;  %324 = vst [vmem:[%s9683_s28 + $0x470] sm:$0xff] %v323_v7 }
  0x5a   : >> { %v327_v9 = vld [vmem:[%s9687_s29 + $0x920] sm:$0xff]  ;;  %326 = vst [vmem:[%s9683_s28 + $0x480] sm:$0xff] %v325_v8 }
  0x5b   : >> { %v329_v10 = vld [vmem:[%s9687_s29 + $0x940] sm:$0xff]  ;;  %328 = vst [vmem:[%s9683_s28 + $0x490] sm:$0xff] %v327_v9 }
  0x5c   : >> { %v331_v11 = vld [vmem:[%s9687_s29 + $0x960] sm:$0xff]  ;;  %330 = vst [vmem:[%s9683_s28 + $0x4a0] sm:$0xff] %v329_v10 }
  0x5d   : >> { %v333_v12 = vld [vmem:[%s9687_s29 + $0x980] sm:$0xff]  ;;  %332 = vst [vmem:[%s9683_s28 + $0x4b0] sm:$0xff] %v331_v11 }
  0x5e   : >> { %v335_v13 = vld [vmem:[%s9687_s29 + $0x9a0] sm:$0xff]  ;;  %334 = vst [vmem:[%s9683_s28 + $0x4c0] sm:$0xff] %v333_v12 }
  0x5f   : >> { %v337_v14 = vld [vmem:[%s9687_s29 + $0x9c0] sm:$0xff]  ;;  %336 = vst [vmem:[%s9683_s28 + $0x4d0] sm:$0xff] %v335_v13 }
  0x60   : >> { %v339_v15 = vld [vmem:[%s9687_s29 + $0x9e0] sm:$0xff]  ;;  %338 = vst [vmem:[%s9683_s28 + $0x4e0] sm:$0xff] %v337_v14 }
  0x61   : >> { %v341_v16 = vld [vmem:[%s9687_s29 + $0xa00] sm:$0xff]  ;;  %340 = vst [vmem:[%s9683_s28 + $0x4f0] sm:$0xff] %v339_v15 }
  0x62   : >> { %v343_v17 = vld [vmem:[%s9687_s29 + $0xa20] sm:$0xff]  ;;  %342 = vst [vmem:[%s9683_s28 + $0x500] sm:$0xff] %v341_v16 }
  0x63   : >> { %v345_v18 = vld [vmem:[%s9687_s29 + $0xa40] sm:$0xff]  ;;  %344 = vst [vmem:[%s9683_s28 + $0x510] sm:$0xff] %v343_v17 }
  0x64   : >> { %v347_v19 = vld [vmem:[%s9687_s29 + $0xa60] sm:$0xff]  ;;  %346 = vst [vmem:[%s9683_s28 + $0x520] sm:$0xff] %v345_v18 }
  0x65   : >> { %v349_v20 = vld [vmem:[%s9687_s29 + $0xa80] sm:$0xff]  ;;  %348 = vst [vmem:[%s9683_s28 + $0x530] sm:$0xff] %v347_v19 }
  0x66   : >> { %v351_v21 = vld [vmem:[%s9687_s29 + $0xaa0] sm:$0xff]  ;;  %350 = vst [vmem:[%s9683_s28 + $0x540] sm:$0xff] %v349_v20 }
  0x67   : >> { %v353_v22 = vld [vmem:[%s9687_s29 + $0xac0] sm:$0xff]  ;;  %352 = vst [vmem:[%s9683_s28 + $0x550] sm:$0xff] %v351_v21 }
  0x68   : >> { %v355_v23 = vld [vmem:[%s9687_s29 + $0xae0] sm:$0xff]  ;;  %354 = vst [vmem:[%s9683_s28 + $0x560] sm:$0xff] %v353_v22 }
  0x69   : >> { %v357_v24 = vld [vmem:[%s9687_s29 + $0xb00] sm:$0xff]  ;;  %356 = vst [vmem:[%s9683_s28 + $0x570] sm:$0xff] %v355_v23 }
  0x6a   : >> { %v359_v25 = vld [vmem:[%s9687_s29 + $0xb20] sm:$0xff]  ;;  %358 = vst [vmem:[%s9683_s28 + $0x580] sm:$0xff] %v357_v24 }
  0x6b   : >> { %v361_v26 = vld [vmem:[%s9687_s29 + $0xb40] sm:$0xff]  ;;  %360 = vst [vmem:[%s9683_s28 + $0x590] sm:$0xff] %v359_v25 }
  0x6c   : >> { %v363_v27 = vld [vmem:[%s9687_s29 + $0xb60] sm:$0xff]  ;;  %362 = vst [vmem:[%s9683_s28 + $0x5a0] sm:$0xff] %v361_v26 }
  0x6d   : >> { %v365_v28 = vld [vmem:[%s9687_s29 + $0xb80] sm:$0xff]  ;;  %364 = vst [vmem:[%s9683_s28 + $0x5b0] sm:$0xff] %v363_v27 }
  0x6e   : >> { %v367_v29 = vld [vmem:[%s9687_s29 + $0xba0] sm:$0xff]  ;;  %366 = vst [vmem:[%s9683_s28 + $0x5c0] sm:$0xff] %v365_v28 }
  0x6f   : >> { %v369_v30 = vld [vmem:[%s9687_s29 + $0xbc0] sm:$0xff]  ;;  %368 = vst [vmem:[%s9683_s28 + $0x5d0] sm:$0xff] %v367_v29 }
  0x70   : >> { %v371_v31 = vld [vmem:[%s9687_s29 + $0xbe0] sm:$0xff]  ;;  %370 = vst [vmem:[%s9683_s28 + $0x5e0] sm:$0xff] %v369_v30 }
  0x71   : >> { %v373_v32 = vld [vmem:[%s9687_s29 + $0xc00] sm:$0xff]  ;;  %372 = vst [vmem:[%s9683_s28 + $0x5f0] sm:$0xff] %v371_v31 }
  0x72   : >> { %v375_v33 = vld [vmem:[%s9687_s29 + $0xc20] sm:$0xff]  ;;  %374 = vst [vmem:[%s9683_s28 + $0x600] sm:$0xff] %v373_v32 }
  0x73   : >> { %v377_v34 = vld [vmem:[%s9687_s29 + $0xc40] sm:$0xff]  ;;  %376 = vst [vmem:[%s9683_s28 + $0x610] sm:$0xff] %v375_v33 }
  0x74   : >> { %v379_v35 = vld [vmem:[%s9687_s29 + $0xc60] sm:$0xff]  ;;  %378 = vst [vmem:[%s9683_s28 + $0x620] sm:$0xff] %v377_v34 }
  0x75   : >> { %v381_v36 = vld [vmem:[%s9687_s29 + $0xc80] sm:$0xff]  ;;  %380 = vst [vmem:[%s9683_s28 + $0x630] sm:$0xff] %v379_v35 }
  0x76   : >> { %v383_v37 = vld [vmem:[%s9687_s29 + $0xca0] sm:$0xff]  ;;  %382 = vst [vmem:[%s9683_s28 + $0x640] sm:$0xff] %v381_v36 }
  0x77   : >> { %v385_v38 = vld [vmem:[%s9687_s29 + $0xcc0] sm:$0xff]  ;;  %384 = vst [vmem:[%s9683_s28 + $0x650] sm:$0xff] %v383_v37 }
  0x78   : >> { %v387_v39 = vld [vmem:[%s9687_s29 + $0xce0] sm:$0xff]  ;;  %386 = vst [vmem:[%s9683_s28 + $0x660] sm:$0xff] %v385_v38 }
  0x79   : >> { %v389_v40 = vld [vmem:[%s9687_s29 + $0xd00] sm:$0xff]  ;;  %388 = vst [vmem:[%s9683_s28 + $0x670] sm:$0xff] %v387_v39 }
  0x7a   : >> { %v391_v41 = vld [vmem:[%s9687_s29 + $0xd20] sm:$0xff]  ;;  %390 = vst [vmem:[%s9683_s28 + $0x680] sm:$0xff] %v389_v40 }
  0x7b   : >> { %v393_v42 = vld [vmem:[%s9687_s29 + $0xd40] sm:$0xff]  ;;  %392 = vst [vmem:[%s9683_s28 + $0x690] sm:$0xff] %v391_v41 }
  0x7c   : >> { %v395_v43 = vld [vmem:[%s9687_s29 + $0xd60] sm:$0xff]  ;;  %394 = vst [vmem:[%s9683_s28 + $0x6a0] sm:$0xff] %v393_v42 }
  0x7d   : >> { %v397_v44 = vld [vmem:[%s9687_s29 + $0xd80] sm:$0xff]  ;;  %396 = vst [vmem:[%s9683_s28 + $0x6b0] sm:$0xff] %v395_v43 }
  0x7e   : >> { %v399_v45 = vld [vmem:[%s9687_s29 + $0xda0] sm:$0xff]  ;;  %398 = vst [vmem:[%s9683_s28 + $0x6c0] sm:$0xff] %v397_v44 }
  0x7f   : >> { %v401_v46 = vld [vmem:[%s9687_s29 + $0xdc0] sm:$0xff]  ;;  %400 = vst [vmem:[%s9683_s28 + $0x6d0] sm:$0xff] %v399_v45 }
  0x80   : >> { %v403_v47 = vld [vmem:[%s9687_s29 + $0xde0] sm:$0xff]  ;;  %402 = vst [vmem:[%s9683_s28 + $0x6e0] sm:$0xff] %v401_v46 }
  0x81   : >> { %v405_v48 = vld [vmem:[%s9687_s29 + $0xe00] sm:$0xff]  ;;  %404 = vst [vmem:[%s9683_s28 + $0x6f0] sm:$0xff] %v403_v47 }
  0x82   : >> { %v407_v49 = vld [vmem:[%s9687_s29 + $0xe20] sm:$0xff]  ;;  %406 = vst [vmem:[%s9683_s28 + $0x700] sm:$0xff] %v405_v48 }
  0x83   : >> { %v409_v50 = vld [vmem:[%s9687_s29 + $0xe40] sm:$0xff]  ;;  %408 = vst [vmem:[%s9683_s28 + $0x710] sm:$0xff] %v407_v49 }
  0x84   : >> { %v411_v51 = vld [vmem:[%s9687_s29 + $0xe60] sm:$0xff]  ;;  %410 = vst [vmem:[%s9683_s28 + $0x720] sm:$0xff] %v409_v50 }
  0x85   : >> { %v413_v52 = vld [vmem:[%s9687_s29 + $0xe80] sm:$0xff]  ;;  %412 = vst [vmem:[%s9683_s28 + $0x730] sm:$0xff] %v411_v51 }
  0x86   : >> { %v415_v53 = vld [vmem:[%s9687_s29 + $0xea0] sm:$0xff]  ;;  %414 = vst [vmem:[%s9683_s28 + $0x740] sm:$0xff] %v413_v52 }
  0x87   : >> { %v417_v54 = vld [vmem:[%s9687_s29 + $0xec0] sm:$0xff]  ;;  %416 = vst [vmem:[%s9683_s28 + $0x750] sm:$0xff] %v415_v53 }
  0x88   : >> { %v419_v55 = vld [vmem:[%s9687_s29 + $0xee0] sm:$0xff]  ;;  %418 = vst [vmem:[%s9683_s28 + $0x760] sm:$0xff] %v417_v54 }
  0x89   : >> { %v421_v56 = vld [vmem:[%s9687_s29 + $0xf00] sm:$0xff]  ;;  %420 = vst [vmem:[%s9683_s28 + $0x770] sm:$0xff] %v419_v55 }
  0x8a   : >> { %v423_v57 = vld [vmem:[%s9687_s29 + $0xf20] sm:$0xff]  ;;  %422 = vst [vmem:[%s9683_s28 + $0x780] sm:$0xff] %v421_v56 }
  0x8b   : >> { %v425_v58 = vld [vmem:[%s9687_s29 + $0xf40] sm:$0xff]  ;;  %424 = vst [vmem:[%s9683_s28 + $0x790] sm:$0xff] %v423_v57 }
  0x8c   : >> { %v427_v59 = vld [vmem:[%s9687_s29 + $0xf60] sm:$0xff]  ;;  %426 = vst [vmem:[%s9683_s28 + $0x7a0] sm:$0xff] %v425_v58 }
  0x8d   : >> { %v429_v60 = vld [vmem:[%s9687_s29 + $0xf80] sm:$0xff]  ;;  %428 = vst [vmem:[%s9683_s28 + $0x7b0] sm:$0xff] %v427_v59 }
  0x8e   : >> { %v431_v61 = vld [vmem:[%s9687_s29 + $0xfa0] sm:$0xff]  ;;  %430 = vst [vmem:[%s9683_s28 + $0x7c0] sm:$0xff] %v429_v60 }
  0x8f   : >> { %v433_v62 = vld [vmem:[%s9687_s29 + $0xfc0] sm:$0xff]  ;;  %432 = vst [vmem:[%s9683_s28 + $0x7d0] sm:$0xff] %v431_v61 }
  0x90   : >> { %v435_v63 = vld [vmem:[%s9687_s29 + $0xfe0] sm:$0xff]  ;;  %434 = vst [vmem:[%s9683_s28 + $0x7e0] sm:$0xff] %v433_v62 }
  0x91   : >> { %v437_v0 = vld [vmem:[%s9687_s29 + $0x1000] sm:$0xff]  ;;  %436 = vst [vmem:[%s9683_s28 + $0x7f0] sm:$0xff] %v435_v63 }
  0x92   : >> { %v439_v1 = vld [vmem:[%s9687_s29 + $0x1020] sm:$0xff]  ;;  %438 = vst [vmem:[%s9683_s28 + $0x800] sm:$0xff] %v437_v0 }
  0x93   : >> { %v441_v2 = vld [vmem:[%s9687_s29 + $0x1040] sm:$0xff]  ;;  %440 = vst [vmem:[%s9683_s28 + $0x810] sm:$0xff] %v439_v1 }
  0x94   : >> { %v443_v3 = vld [vmem:[%s9687_s29 + $0x1060] sm:$0xff]  ;;  %442 = vst [vmem:[%s9683_s28 + $0x820] sm:$0xff] %v441_v2 }
  0x95   : >> { %v445_v4 = vld [vmem:[%s9687_s29 + $0x1080] sm:$0xff]  ;;  %444 = vst [vmem:[%s9683_s28 + $0x830] sm:$0xff] %v443_v3 }
  0x96   : >> { %v447_v5 = vld [vmem:[%s9687_s29 + $0x10a0] sm:$0xff]  ;;  %446 = vst [vmem:[%s9683_s28 + $0x840] sm:$0xff] %v445_v4 }
  0x97   : >> { %v449_v6 = vld [vmem:[%s9687_s29 + $0x10c0] sm:$0xff]  ;;  %448 = vst [vmem:[%s9683_s28 + $0x850] sm:$0xff] %v447_v5 }
  0x98   : >> { %v451_v7 = vld [vmem:[%s9687_s29 + $0x10e0] sm:$0xff]  ;;  %450 = vst [vmem:[%s9683_s28 + $0x860] sm:$0xff] %v449_v6 }
  0x99   : >> { %v453_v8 = vld [vmem:[%s9687_s29 + $0x1100] sm:$0xff]  ;;  %452 = vst [vmem:[%s9683_s28 + $0x870] sm:$0xff] %v451_v7 }
  0x9a   : >> { %v455_v9 = vld [vmem:[%s9687_s29 + $0x1120] sm:$0xff]  ;;  %454 = vst [vmem:[%s9683_s28 + $0x880] sm:$0xff] %v453_v8 }
  0x9b   : >> { %v457_v10 = vld [vmem:[%s9687_s29 + $0x1140] sm:$0xff]  ;;  %456 = vst [vmem:[%s9683_s28 + $0x890] sm:$0xff] %v455_v9 }
  0x9c   : >> { %v459_v11 = vld [vmem:[%s9687_s29 + $0x1160] sm:$0xff]  ;;  %458 = vst [vmem:[%s9683_s28 + $0x8a0] sm:$0xff] %v457_v10 }
  0x9d   : >> { %v461_v12 = vld [vmem:[%s9687_s29 + $0x1180] sm:$0xff]  ;;  %460 = vst [vmem:[%s9683_s28 + $0x8b0] sm:$0xff] %v459_v11 }
  0x9e   : >> { %v463_v13 = vld [vmem:[%s9687_s29 + $0x11a0] sm:$0xff]  ;;  %462 = vst [vmem:[%s9683_s28 + $0x8c0] sm:$0xff] %v461_v12 }
  0x9f   : >> { %v465_v14 = vld [vmem:[%s9687_s29 + $0x11c0] sm:$0xff]  ;;  %464 = vst [vmem:[%s9683_s28 + $0x8d0] sm:$0xff] %v463_v13 }
  0xa0   : >> { %v467_v15 = vld [vmem:[%s9687_s29 + $0x11e0] sm:$0xff]  ;;  %466 = vst [vmem:[%s9683_s28 + $0x8e0] sm:$0xff] %v465_v14 }
  0xa1   : >> { %v469_v16 = vld [vmem:[%s9687_s29 + $0x1200] sm:$0xff]  ;;  %468 = vst [vmem:[%s9683_s28 + $0x8f0] sm:$0xff] %v467_v15 }
  0xa2   : >> { %v471_v17 = vld [vmem:[%s9687_s29 + $0x1220] sm:$0xff]  ;;  %470 = vst [vmem:[%s9683_s28 + $0x900] sm:$0xff] %v469_v16 }
  0xa3   : >> { %v473_v18 = vld [vmem:[%s9687_s29 + $0x1240] sm:$0xff]  ;;  %472 = vst [vmem:[%s9683_s28 + $0x910] sm:$0xff] %v471_v17 }
  0xa4   : >> { %v475_v19 = vld [vmem:[%s9687_s29 + $0x1260] sm:$0xff]  ;;  %474 = vst [vmem:[%s9683_s28 + $0x920] sm:$0xff] %v473_v18 }
  0xa5   : >> { %v477_v20 = vld [vmem:[%s9687_s29 + $0x1280] sm:$0xff]  ;;  %476 = vst [vmem:[%s9683_s28 + $0x930] sm:$0xff] %v475_v19 }
  0xa6   : >> { %v479_v21 = vld [vmem:[%s9687_s29 + $0x12a0] sm:$0xff]  ;;  %478 = vst [vmem:[%s9683_s28 + $0x940] sm:$0xff] %v477_v20 }
  0xa7   : >> { %v481_v22 = vld [vmem:[%s9687_s29 + $0x12c0] sm:$0xff]  ;;  %480 = vst [vmem:[%s9683_s28 + $0x950] sm:$0xff] %v479_v21 }
  0xa8   : >> { %v483_v23 = vld [vmem:[%s9687_s29 + $0x12e0] sm:$0xff]  ;;  %482 = vst [vmem:[%s9683_s28 + $0x960] sm:$0xff] %v481_v22 }
  0xa9   : >> { %v485_v24 = vld [vmem:[%s9687_s29 + $0x1300] sm:$0xff]  ;;  %484 = vst [vmem:[%s9683_s28 + $0x970] sm:$0xff] %v483_v23 }
  0xaa   : >> { %v487_v25 = vld [vmem:[%s9687_s29 + $0x1320] sm:$0xff]  ;;  %486 = vst [vmem:[%s9683_s28 + $0x980] sm:$0xff] %v485_v24 }
  0xab   : >> { %v489_v26 = vld [vmem:[%s9687_s29 + $0x1340] sm:$0xff]  ;;  %488 = vst [vmem:[%s9683_s28 + $0x990] sm:$0xff] %v487_v25 }
  0xac   : >> { %v491_v27 = vld [vmem:[%s9687_s29 + $0x1360] sm:$0xff]  ;;  %490 = vst [vmem:[%s9683_s28 + $0x9a0] sm:$0xff] %v489_v26 }
  0xad   : >> { %v493_v28 = vld [vmem:[%s9687_s29 + $0x1380] sm:$0xff]  ;;  %492 = vst [vmem:[%s9683_s28 + $0x9b0] sm:$0xff] %v491_v27 }
  0xae   : >> { %v495_v29 = vld [vmem:[%s9687_s29 + $0x13a0] sm:$0xff]  ;;  %494 = vst [vmem:[%s9683_s28 + $0x9c0] sm:$0xff] %v493_v28 }
  0xaf   : >> { %v497_v30 = vld [vmem:[%s9687_s29 + $0x13c0] sm:$0xff]  ;;  %496 = vst [vmem:[%s9683_s28 + $0x9d0] sm:$0xff] %v495_v29 }
  0xb0   : >> { %v499_v31 = vld [vmem:[%s9687_s29 + $0x13e0] sm:$0xff]  ;;  %498 = vst [vmem:[%s9683_s28 + $0x9e0] sm:$0xff] %v497_v30 }
  0xb1   : >> { %v501_v32 = vld [vmem:[%s9687_s29 + $0x1400] sm:$0xff]  ;;  %500 = vst [vmem:[%s9683_s28 + $0x9f0] sm:$0xff] %v499_v31 }
  0xb2   : >> { %v503_v33 = vld [vmem:[%s9687_s29 + $0x1420] sm:$0xff]  ;;  %502 = vst [vmem:[%s9683_s28 + $0xa00] sm:$0xff] %v501_v32 }
  0xb3   : >> { %v505_v34 = vld [vmem:[%s9687_s29 + $0x1440] sm:$0xff]  ;;  %504 = vst [vmem:[%s9683_s28 + $0xa10] sm:$0xff] %v503_v33 }
  0xb4   : >> { %v507_v35 = vld [vmem:[%s9687_s29 + $0x1460] sm:$0xff]  ;;  %506 = vst [vmem:[%s9683_s28 + $0xa20] sm:$0xff] %v505_v34 }
  0xb5   : >> { %v509_v36 = vld [vmem:[%s9687_s29 + $0x1480] sm:$0xff]  ;;  %508 = vst [vmem:[%s9683_s28 + $0xa30] sm:$0xff] %v507_v35 }
  0xb6   : >> { %v511_v37 = vld [vmem:[%s9687_s29 + $0x14a0] sm:$0xff]  ;;  %510 = vst [vmem:[%s9683_s28 + $0xa40] sm:$0xff] %v509_v36 }
  0xb7   : >> { %v513_v38 = vld [vmem:[%s9687_s29 + $0x14c0] sm:$0xff]  ;;  %512 = vst [vmem:[%s9683_s28 + $0xa50] sm:$0xff] %v511_v37 }
  0xb8   : >> { %v515_v39 = vld [vmem:[%s9687_s29 + $0x14e0] sm:$0xff]  ;;  %514 = vst [vmem:[%s9683_s28 + $0xa60] sm:$0xff] %v513_v38 }
  0xb9   : >> { %v517_v40 = vld [vmem:[%s9687_s29 + $0x1500] sm:$0xff]  ;;  %516 = vst [vmem:[%s9683_s28 + $0xa70] sm:$0xff] %v515_v39 }
  0xba   : >> { %v519_v41 = vld [vmem:[%s9687_s29 + $0x1520] sm:$0xff]  ;;  %518 = vst [vmem:[%s9683_s28 + $0xa80] sm:$0xff] %v517_v40 }
  0xbb   : >> { %v521_v42 = vld [vmem:[%s9687_s29 + $0x1540] sm:$0xff]  ;;  %520 = vst [vmem:[%s9683_s28 + $0xa90] sm:$0xff] %v519_v41 }
  0xbc   : >> { %v523_v43 = vld [vmem:[%s9687_s29 + $0x1560] sm:$0xff]  ;;  %522 = vst [vmem:[%s9683_s28 + $0xaa0] sm:$0xff] %v521_v42 }
  0xbd   : >> { %v525_v44 = vld [vmem:[%s9687_s29 + $0x1580] sm:$0xff]  ;;  %524 = vst [vmem:[%s9683_s28 + $0xab0] sm:$0xff] %v523_v43 }
  0xbe   : >> { %v527_v45 = vld [vmem:[%s9687_s29 + $0x15a0] sm:$0xff]  ;;  %526 = vst [vmem:[%s9683_s28 + $0xac0] sm:$0xff] %v525_v44 }
  0xbf   : >> { %v529_v46 = vld [vmem:[%s9687_s29 + $0x15c0] sm:$0xff]  ;;  %528 = vst [vmem:[%s9683_s28 + $0xad0] sm:$0xff] %v527_v45 }
  0xc0   : >> { %v531_v47 = vld [vmem:[%s9687_s29 + $0x15e0] sm:$0xff]  ;;  %530 = vst [vmem:[%s9683_s28 + $0xae0] sm:$0xff] %v529_v46 }
  0xc1   : >> { %v533_v48 = vld [vmem:[%s9687_s29 + $0x1600] sm:$0xff]  ;;  %532 = vst [vmem:[%s9683_s28 + $0xaf0] sm:$0xff] %v531_v47 }
  0xc2   : >> { %v535_v49 = vld [vmem:[%s9687_s29 + $0x1620] sm:$0xff]  ;;  %534 = vst [vmem:[%s9683_s28 + $0xb00] sm:$0xff] %v533_v48 }
  0xc3   : >> { %v537_v50 = vld [vmem:[%s9687_s29 + $0x1640] sm:$0xff]  ;;  %536 = vst [vmem:[%s9683_s28 + $0xb10] sm:$0xff] %v535_v49 }
  0xc4   : >> { %v539_v51 = vld [vmem:[%s9687_s29 + $0x1660] sm:$0xff]  ;;  %538 = vst [vmem:[%s9683_s28 + $0xb20] sm:$0xff] %v537_v50 }
  0xc5   : >> { %v541_v52 = vld [vmem:[%s9687_s29 + $0x1680] sm:$0xff]  ;;  %540 = vst [vmem:[%s9683_s28 + $0xb30] sm:$0xff] %v539_v51 }
  0xc6   : >> { %v543_v53 = vld [vmem:[%s9687_s29 + $0x16a0] sm:$0xff]  ;;  %542 = vst [vmem:[%s9683_s28 + $0xb40] sm:$0xff] %v541_v52 }
  0xc7   : >> { %v545_v54 = vld [vmem:[%s9687_s29 + $0x16c0] sm:$0xff]  ;;  %544 = vst [vmem:[%s9683_s28 + $0xb50] sm:$0xff] %v543_v53 }
  0xc8   : >> { %v547_v55 = vld [vmem:[%s9687_s29 + $0x16e0] sm:$0xff]  ;;  %546 = vst [vmem:[%s9683_s28 + $0xb60] sm:$0xff] %v545_v54 }
  0xc9   : >> { %v549_v56 = vld [vmem:[%s9687_s29 + $0x1700] sm:$0xff]  ;;  %548 = vst [vmem:[%s9683_s28 + $0xb70] sm:$0xff] %v547_v55 }
  0xca   : >> { %v551_v57 = vld [vmem:[%s9687_s29 + $0x1720] sm:$0xff]  ;;  %550 = vst [vmem:[%s9683_s28 + $0xb80] sm:$0xff] %v549_v56 }
  0xcb   : >> { %v553_v58 = vld [vmem:[%s9687_s29 + $0x1740] sm:$0xff]  ;;  %552 = vst [vmem:[%s9683_s28 + $0xb90] sm:$0xff] %v551_v57 }
  0xcc   : >> { %v555_v59 = vld [vmem:[%s9687_s29 + $0x1760] sm:$0xff]  ;;  %554 = vst [vmem:[%s9683_s28 + $0xba0] sm:$0xff] %v553_v58 }
  0xcd   : >> { %v557_v60 = vld [vmem:[%s9687_s29 + $0x1780] sm:$0xff]  ;;  %556 = vst [vmem:[%s9683_s28 + $0xbb0] sm:$0xff] %v555_v59 }
  0xce   : >> { %v559_v61 = vld [vmem:[%s9687_s29 + $0x17a0] sm:$0xff]  ;;  %558 = vst [vmem:[%s9683_s28 + $0xbc0] sm:$0xff] %v557_v60 }
  0xcf   : >> { %v561_v62 = vld [vmem:[%s9687_s29 + $0x17c0] sm:$0xff]  ;;  %560 = vst [vmem:[%s9683_s28 + $0xbd0] sm:$0xff] %v559_v61 }
  0xd0   : >> { %v563_v63 = vld [vmem:[%s9687_s29 + $0x17e0] sm:$0xff]  ;;  %562 = vst [vmem:[%s9683_s28 + $0xbe0] sm:$0xff] %v561_v62 }
  0xd1   : >> { %v565_v0 = vld [vmem:[%s9687_s29 + $0x1800] sm:$0xff]  ;;  %564 = vst [vmem:[%s9683_s28 + $0xbf0] sm:$0xff] %v563_v63 }
  0xd2   : >> { %v567_v1 = vld [vmem:[%s9687_s29 + $0x1820] sm:$0xff]  ;;  %566 = vst [vmem:[%s9683_s28 + $0xc00] sm:$0xff] %v565_v0 }
  0xd3   : >> { %v569_v2 = vld [vmem:[%s9687_s29 + $0x1840] sm:$0xff]  ;;  %568 = vst [vmem:[%s9683_s28 + $0xc10] sm:$0xff] %v567_v1 }
  0xd4   : >> { %v571_v3 = vld [vmem:[%s9687_s29 + $0x1860] sm:$0xff]  ;;  %570 = vst [vmem:[%s9683_s28 + $0xc20] sm:$0xff] %v569_v2 }
  0xd5   : >> { %v573_v4 = vld [vmem:[%s9687_s29 + $0x1880] sm:$0xff]  ;;  %572 = vst [vmem:[%s9683_s28 + $0xc30] sm:$0xff] %v571_v3 }
  0xd6   : >> { %v575_v5 = vld [vmem:[%s9687_s29 + $0x18a0] sm:$0xff]  ;;  %574 = vst [vmem:[%s9683_s28 + $0xc40] sm:$0xff] %v573_v4 }
  0xd7   : >> { %v577_v6 = vld [vmem:[%s9687_s29 + $0x18c0] sm:$0xff]  ;;  %576 = vst [vmem:[%s9683_s28 + $0xc50] sm:$0xff] %v575_v5 }
  0xd8   : >> { %v579_v7 = vld [vmem:[%s9687_s29 + $0x18e0] sm:$0xff]  ;;  %578 = vst [vmem:[%s9683_s28 + $0xc60] sm:$0xff] %v577_v6 }
  0xd9   : >> { %v581_v8 = vld [vmem:[%s9687_s29 + $0x1900] sm:$0xff]  ;;  %580 = vst [vmem:[%s9683_s28 + $0xc70] sm:$0xff] %v579_v7 }
  0xda   : >> { %v583_v9 = vld [vmem:[%s9687_s29 + $0x1920] sm:$0xff]  ;;  %582 = vst [vmem:[%s9683_s28 + $0xc80] sm:$0xff] %v581_v8 }
  0xdb   : >> { %v585_v10 = vld [vmem:[%s9687_s29 + $0x1940] sm:$0xff]  ;;  %584 = vst [vmem:[%s9683_s28 + $0xc90] sm:$0xff] %v583_v9 }
  0xdc   : >> { %v587_v11 = vld [vmem:[%s9687_s29 + $0x1960] sm:$0xff]  ;;  %586 = vst [vmem:[%s9683_s28 + $0xca0] sm:$0xff] %v585_v10 }
  0xdd   : >> { %v589_v12 = vld [vmem:[%s9687_s29 + $0x1980] sm:$0xff]  ;;  %588 = vst [vmem:[%s9683_s28 + $0xcb0] sm:$0xff] %v587_v11 }
  0xde   : >> { %v591_v13 = vld [vmem:[%s9687_s29 + $0x19a0] sm:$0xff]  ;;  %590 = vst [vmem:[%s9683_s28 + $0xcc0] sm:$0xff] %v589_v12 }
  0xdf   : >> { %v593_v14 = vld [vmem:[%s9687_s29 + $0x19c0] sm:$0xff]  ;;  %592 = vst [vmem:[%s9683_s28 + $0xcd0] sm:$0xff] %v591_v13 }
  0xe0   : >> { %v595_v15 = vld [vmem:[%s9687_s29 + $0x19e0] sm:$0xff]  ;;  %594 = vst [vmem:[%s9683_s28 + $0xce0] sm:$0xff] %v593_v14 }
  0xe1   : >> { %v597_v16 = vld [vmem:[%s9687_s29 + $0x1a00] sm:$0xff]  ;;  %596 = vst [vmem:[%s9683_s28 + $0xcf0] sm:$0xff] %v595_v15 }
  0xe2   : >> { %v599_v17 = vld [vmem:[%s9687_s29 + $0x1a20] sm:$0xff]  ;;  %598 = vst [vmem:[%s9683_s28 + $0xd00] sm:$0xff] %v597_v16 }
  0xe3   : >> { %v601_v18 = vld [vmem:[%s9687_s29 + $0x1a40] sm:$0xff]  ;;  %600 = vst [vmem:[%s9683_s28 + $0xd10] sm:$0xff] %v599_v17 }
  0xe4   : >> { %v603_v19 = vld [vmem:[%s9687_s29 + $0x1a60] sm:$0xff]  ;;  %602 = vst [vmem:[%s9683_s28 + $0xd20] sm:$0xff] %v601_v18 }
  0xe5   : >> { %v605_v20 = vld [vmem:[%s9687_s29 + $0x1a80] sm:$0xff]  ;;  %604 = vst [vmem:[%s9683_s28 + $0xd30] sm:$0xff] %v603_v19 }
  0xe6   : >> { %v607_v21 = vld [vmem:[%s9687_s29 + $0x1aa0] sm:$0xff]  ;;  %606 = vst [vmem:[%s9683_s28 + $0xd40] sm:$0xff] %v605_v20 }
  0xe7   : >> { %v609_v22 = vld [vmem:[%s9687_s29 + $0x1ac0] sm:$0xff]  ;;  %608 = vst [vmem:[%s9683_s28 + $0xd50] sm:$0xff] %v607_v21 }
  0xe8   : >> { %v611_v23 = vld [vmem:[%s9687_s29 + $0x1ae0] sm:$0xff]  ;;  %610 = vst [vmem:[%s9683_s28 + $0xd60] sm:$0xff] %v609_v22 }
  0xe9   : >> { %v613_v24 = vld [vmem:[%s9687_s29 + $0x1b00] sm:$0xff]  ;;  %612 = vst [vmem:[%s9683_s28 + $0xd70] sm:$0xff] %v611_v23 }
  0xea   : >> { %v615_v25 = vld [vmem:[%s9687_s29 + $0x1b20] sm:$0xff]  ;;  %614 = vst [vmem:[%s9683_s28 + $0xd80] sm:$0xff] %v613_v24 }
  0xeb   : >> { %v617_v26 = vld [vmem:[%s9687_s29 + $0x1b40] sm:$0xff]  ;;  %616 = vst [vmem:[%s9683_s28 + $0xd90] sm:$0xff] %v615_v25 }
  0xec   : >> { %v619_v27 = vld [vmem:[%s9687_s29 + $0x1b60] sm:$0xff]  ;;  %618 = vst [vmem:[%s9683_s28 + $0xda0] sm:$0xff] %v617_v26 }
  0xed   : >> { %v621_v28 = vld [vmem:[%s9687_s29 + $0x1b80] sm:$0xff]  ;;  %620 = vst [vmem:[%s9683_s28 + $0xdb0] sm:$0xff] %v619_v27 }
  0xee   : >> { %v623_v29 = vld [vmem:[%s9687_s29 + $0x1ba0] sm:$0xff]  ;;  %622 = vst [vmem:[%s9683_s28 + $0xdc0] sm:$0xff] %v621_v28 }
  0xef   : >> { %v625_v30 = vld [vmem:[%s9687_s29 + $0x1bc0] sm:$0xff]  ;;  %624 = vst [vmem:[%s9683_s28 + $0xdd0] sm:$0xff] %v623_v29 }
  0xf0   : >> { %v627_v31 = vld [vmem:[%s9687_s29 + $0x1be0] sm:$0xff]  ;;  %626 = vst [vmem:[%s9683_s28 + $0xde0] sm:$0xff] %v625_v30 }
  0xf1   : >> { %v629_v32 = vld [vmem:[%s9687_s29 + $0x1c00] sm:$0xff]  ;;  %628 = vst [vmem:[%s9683_s28 + $0xdf0] sm:$0xff] %v627_v31 }
  0xf2   : >> { %v631_v33 = vld [vmem:[%s9687_s29 + $0x1c20] sm:$0xff]  ;;  %630 = vst [vmem:[%s9683_s28 + $0xe00] sm:$0xff] %v629_v32 }
  0xf3   : >> { %v633_v34 = vld [vmem:[%s9687_s29 + $0x1c40] sm:$0xff]  ;;  %632 = vst [vmem:[%s9683_s28 + $0xe10] sm:$0xff] %v631_v33 }
  0xf4   : >> { %v635_v35 = vld [vmem:[%s9687_s29 + $0x1c60] sm:$0xff]  ;;  %634 = vst [vmem:[%s9683_s28 + $0xe20] sm:$0xff] %v633_v34 }
  0xf5   : >> { %v637_v36 = vld [vmem:[%s9687_s29 + $0x1c80] sm:$0xff]  ;;  %636 = vst [vmem:[%s9683_s28 + $0xe30] sm:$0xff] %v635_v35 }
  0xf6   : >> { %v639_v37 = vld [vmem:[%s9687_s29 + $0x1ca0] sm:$0xff]  ;;  %638 = vst [vmem:[%s9683_s28 + $0xe40] sm:$0xff] %v637_v36 }
  0xf7   : >> { %v641_v38 = vld [vmem:[%s9687_s29 + $0x1cc0] sm:$0xff]  ;;  %640 = vst [vmem:[%s9683_s28 + $0xe50] sm:$0xff] %v639_v37 }
  0xf8   : >> { %v643_v39 = vld [vmem:[%s9687_s29 + $0x1ce0] sm:$0xff]  ;;  %642 = vst [vmem:[%s9683_s28 + $0xe60] sm:$0xff] %v641_v38 }
  0xf9   : >> { %v645_v40 = vld [vmem:[%s9687_s29 + $0x1d00] sm:$0xff]  ;;  %644 = vst [vmem:[%s9683_s28 + $0xe70] sm:$0xff] %v643_v39 }
  0xfa   : >> { %v647_v41 = vld [vmem:[%s9687_s29 + $0x1d20] sm:$0xff]  ;;  %646 = vst [vmem:[%s9683_s28 + $0xe80] sm:$0xff] %v645_v40 }
  0xfb   : >> { %v649_v42 = vld [vmem:[%s9687_s29 + $0x1d40] sm:$0xff]  ;;  %648 = vst [vmem:[%s9683_s28 + $0xe90] sm:$0xff] %v647_v41 }
  0xfc   : >> { %v651_v43 = vld [vmem:[%s9687_s29 + $0x1d60] sm:$0xff]  ;;  %650 = vst [vmem:[%s9683_s28 + $0xea0] sm:$0xff] %v649_v42 }
  0xfd   : >> { %v653_v44 = vld [vmem:[%s9687_s29 + $0x1d80] sm:$0xff]  ;;  %652 = vst [vmem:[%s9683_s28 + $0xeb0] sm:$0xff] %v651_v43 }
  0xfe   : >> { %v655_v45 = vld [vmem:[%s9687_s29 + $0x1da0] sm:$0xff]  ;;  %654 = vst [vmem:[%s9683_s28 + $0xec0] sm:$0xff] %v653_v44 }
  0xff   : >> { %v657_v46 = vld [vmem:[%s9687_s29 + $0x1dc0] sm:$0xff]  ;;  %656 = vst [vmem:[%s9683_s28 + $0xed0] sm:$0xff] %v655_v45 }
 0x100   : >> { %v659_v47 = vld [vmem:[%s9687_s29 + $0x1de0] sm:$0xff]  ;;  %658 = vst [vmem:[%s9683_s28 + $0xee0] sm:$0xff] %v657_v46 }
 0x101   : >> { %v661_v48 = vld [vmem:[%s9687_s29 + $0x1e00] sm:$0xff]  ;;  %660 = vst [vmem:[%s9683_s28 + $0xef0] sm:$0xff] %v659_v47 }
 0x102   : >> { %v663_v49 = vld [vmem:[%s9687_s29 + $0x1e20] sm:$0xff]  ;;  %662 = vst [vmem:[%s9683_s28 + $0xf00] sm:$0xff] %v661_v48 }
 0x103   : >> { %v665_v50 = vld [vmem:[%s9687_s29 + $0x1e40] sm:$0xff]  ;;  %664 = vst [vmem:[%s9683_s28 + $0xf10] sm:$0xff] %v663_v49 }
 0x104   : >> { %v667_v51 = vld [vmem:[%s9687_s29 + $0x1e60] sm:$0xff]  ;;  %666 = vst [vmem:[%s9683_s28 + $0xf20] sm:$0xff] %v665_v50 }
 0x105   : >> { %v669_v52 = vld [vmem:[%s9687_s29 + $0x1e80] sm:$0xff]  ;;  %668 = vst [vmem:[%s9683_s28 + $0xf30] sm:$0xff] %v667_v51 }
 0x106   : >> { %v671_v53 = vld [vmem:[%s9687_s29 + $0x1ea0] sm:$0xff]  ;;  %670 = vst [vmem:[%s9683_s28 + $0xf40] sm:$0xff] %v669_v52 }
 0x107   : >> { %v673_v54 = vld [vmem:[%s9687_s29 + $0x1ec0] sm:$0xff]  ;;  %672 = vst [vmem:[%s9683_s28 + $0xf50] sm:$0xff] %v671_v53 }
 0x108   : >> { %v675_v55 = vld [vmem:[%s9687_s29 + $0x1ee0] sm:$0xff]  ;;  %674 = vst [vmem:[%s9683_s28 + $0xf60] sm:$0xff] %v673_v54 }
 0x109   : >> { %v677_v56 = vld [vmem:[%s9687_s29 + $0x1f00] sm:$0xff]  ;;  %676 = vst [vmem:[%s9683_s28 + $0xf70] sm:$0xff] %v675_v55 }
 0x10a   : >> { %v679_v57 = vld [vmem:[%s9687_s29 + $0x1f20] sm:$0xff]  ;;  %678 = vst [vmem:[%s9683_s28 + $0xf80] sm:$0xff] %v677_v56 }
 0x10b   : >> { %v681_v58 = vld [vmem:[%s9687_s29 + $0x1f40] sm:$0xff]  ;;  %680 = vst [vmem:[%s9683_s28 + $0xf90] sm:$0xff] %v679_v57 }
 0x10c   : >> { %v683_v59 = vld [vmem:[%s9687_s29 + $0x1f60] sm:$0xff]  ;;  %682 = vst [vmem:[%s9683_s28 + $0xfa0] sm:$0xff] %v681_v58 }
 0x10d   : >> { %v685_v60 = vld [vmem:[%s9687_s29 + $0x1f80] sm:$0xff]  ;;  %684 = vst [vmem:[%s9683_s28 + $0xfb0] sm:$0xff] %v683_v59 }
 0x10e   : >> { %v687_v61 = vld [vmem:[%s9687_s29 + $0x1fa0] sm:$0xff]  ;;  %686 = vst [vmem:[%s9683_s28 + $0xfc0] sm:$0xff] %v685_v60 }
 0x10f   : >> { %v689_v62 = vld [vmem:[%s9687_s29 + $0x1fc0] sm:$0xff]  ;;  %688 = vst [vmem:[%s9683_s28 + $0xfd0] sm:$0xff] %v687_v61 }
 0x110   : >> { %v691_v63 = vld [vmem:[%s9687_s29 + $0x1fe0] sm:$0xff]  ;;  %690 = vst [vmem:[%s9683_s28 + $0xfe0] sm:$0xff] %v689_v62 }
 0x111   : >> { %v693_v0 = vld [vmem:[%s9687_s29 + $0x2000] sm:$0xff]  ;;  %692 = vst [vmem:[%s9683_s28 + $0xff0] sm:$0xff] %v691_v63 }
 0x112   : >> { %v695_v1 = vld [vmem:[%s9687_s29 + $0x2020] sm:$0xff]  ;;  %694 = vst [vmem:[%s9683_s28 + $0x1000] sm:$0xff] %v693_v0 }
 0x113   : >> { %v697_v2 = vld [vmem:[%s9687_s29 + $0x2040] sm:$0xff]  ;;  %696 = vst [vmem:[%s9683_s28 + $0x1010] sm:$0xff] %v695_v1 }
 0x114   : >> { %v699_v3 = vld [vmem:[%s9687_s29 + $0x2060] sm:$0xff]  ;;  %698 = vst [vmem:[%s9683_s28 + $0x1020] sm:$0xff] %v697_v2 }
 0x115   : >> { %v701_v4 = vld [vmem:[%s9687_s29 + $0x2080] sm:$0xff]  ;;  %700 = vst [vmem:[%s9683_s28 + $0x1030] sm:$0xff] %v699_v3 }
 0x116   : >> { %v703_v5 = vld [vmem:[%s9687_s29 + $0x20a0] sm:$0xff]  ;;  %702 = vst [vmem:[%s9683_s28 + $0x1040] sm:$0xff] %v701_v4 }
 0x117   : >> { %v705_v6 = vld [vmem:[%s9687_s29 + $0x20c0] sm:$0xff]  ;;  %704 = vst [vmem:[%s9683_s28 + $0x1050] sm:$0xff] %v703_v5 }
 0x118   : >> { %v707_v7 = vld [vmem:[%s9687_s29 + $0x20e0] sm:$0xff]  ;;  %706 = vst [vmem:[%s9683_s28 + $0x1060] sm:$0xff] %v705_v6 }
 0x119   : >> { %v709_v8 = vld [vmem:[%s9687_s29 + $0x2100] sm:$0xff]  ;;  %708 = vst [vmem:[%s9683_s28 + $0x1070] sm:$0xff] %v707_v7 }
 0x11a   : >> { %v711_v9 = vld [vmem:[%s9687_s29 + $0x2120] sm:$0xff]  ;;  %710 = vst [vmem:[%s9683_s28 + $0x1080] sm:$0xff] %v709_v8 }
 0x11b   : >> { %v713_v10 = vld [vmem:[%s9687_s29 + $0x2140] sm:$0xff]  ;;  %712 = vst [vmem:[%s9683_s28 + $0x1090] sm:$0xff] %v711_v9 }
 0x11c   : >> { %v715_v11 = vld [vmem:[%s9687_s29 + $0x2160] sm:$0xff]  ;;  %714 = vst [vmem:[%s9683_s28 + $0x10a0] sm:$0xff] %v713_v10 }
 0x11d   : >> { %v717_v12 = vld [vmem:[%s9687_s29 + $0x2180] sm:$0xff]  ;;  %716 = vst [vmem:[%s9683_s28 + $0x10b0] sm:$0xff] %v715_v11 }
 0x11e   : >> { %v719_v13 = vld [vmem:[%s9687_s29 + $0x21a0] sm:$0xff]  ;;  %718 = vst [vmem:[%s9683_s28 + $0x10c0] sm:$0xff] %v717_v12 }
 0x11f   : >> { %v721_v14 = vld [vmem:[%s9687_s29 + $0x21c0] sm:$0xff]  ;;  %720 = vst [vmem:[%s9683_s28 + $0x10d0] sm:$0xff] %v719_v13 }
 0x120   : >> { %v723_v15 = vld [vmem:[%s9687_s29 + $0x21e0] sm:$0xff]  ;;  %722 = vst [vmem:[%s9683_s28 + $0x10e0] sm:$0xff] %v721_v14 }
 0x121   : >> { %v725_v16 = vld [vmem:[%s9687_s29 + $0x2200] sm:$0xff]  ;;  %724 = vst [vmem:[%s9683_s28 + $0x10f0] sm:$0xff] %v723_v15 }
 0x122   : >> { %v727_v17 = vld [vmem:[%s9687_s29 + $0x2220] sm:$0xff]  ;;  %726 = vst [vmem:[%s9683_s28 + $0x1100] sm:$0xff] %v725_v16 }
 0x123   : >> { %v729_v18 = vld [vmem:[%s9687_s29 + $0x2240] sm:$0xff]  ;;  %728 = vst [vmem:[%s9683_s28 + $0x1110] sm:$0xff] %v727_v17 }
 0x124   : >> { %v731_v19 = vld [vmem:[%s9687_s29 + $0x2260] sm:$0xff]  ;;  %730 = vst [vmem:[%s9683_s28 + $0x1120] sm:$0xff] %v729_v18 }
 0x125   : >> { %v733_v20 = vld [vmem:[%s9687_s29 + $0x2280] sm:$0xff]  ;;  %732 = vst [vmem:[%s9683_s28 + $0x1130] sm:$0xff] %v731_v19 }
 0x126   : >> { %v735_v21 = vld [vmem:[%s9687_s29 + $0x22a0] sm:$0xff]  ;;  %734 = vst [vmem:[%s9683_s28 + $0x1140] sm:$0xff] %v733_v20 }
 0x127   : >> { %v737_v22 = vld [vmem:[%s9687_s29 + $0x22c0] sm:$0xff]  ;;  %736 = vst [vmem:[%s9683_s28 + $0x1150] sm:$0xff] %v735_v21 }
 0x128   : >> { %v739_v23 = vld [vmem:[%s9687_s29 + $0x22e0] sm:$0xff]  ;;  %738 = vst [vmem:[%s9683_s28 + $0x1160] sm:$0xff] %v737_v22 }
 0x129   : >> { %v741_v24 = vld [vmem:[%s9687_s29 + $0x2300] sm:$0xff]  ;;  %740 = vst [vmem:[%s9683_s28 + $0x1170] sm:$0xff] %v739_v23 }
 0x12a   : >> { %v743_v25 = vld [vmem:[%s9687_s29 + $0x2320] sm:$0xff]  ;;  %742 = vst [vmem:[%s9683_s28 + $0x1180] sm:$0xff] %v741_v24 }
 0x12b   : >> { %v745_v26 = vld [vmem:[%s9687_s29 + $0x2340] sm:$0xff]  ;;  %744 = vst [vmem:[%s9683_s28 + $0x1190] sm:$0xff] %v743_v25 }
 0x12c   : >> { %v747_v27 = vld [vmem:[%s9687_s29 + $0x2360] sm:$0xff]  ;;  %746 = vst [vmem:[%s9683_s28 + $0x11a0] sm:$0xff] %v745_v26 }
 0x12d   : >> { %v749_v28 = vld [vmem:[%s9687_s29 + $0x2380] sm:$0xff]  ;;  %748 = vst [vmem:[%s9683_s28 + $0x11b0] sm:$0xff] %v747_v27  ;;  %176 = sbr.rel (!%p174_p7) target bundleno = 17 (0x11), region = 125 }
 0x12e   : >> { %v751_v29 = vld [vmem:[%s9687_s29 + $0x23a0] sm:$0xff]  ;;  %750 = vst [vmem:[%s9683_s28 + $0x11c0] sm:$0xff] %v749_v28 }
 0x12f   : >> { %v753_v30 = vld [vmem:[%s9687_s29 + $0x23c0] sm:$0xff]  ;;  %752 = vst [vmem:[%s9683_s28 + $0x11d0] sm:$0xff] %v751_v29 }
 0x130   : >> { %v755_v31 = vld [vmem:[%s9687_s29 + $0x23e0] sm:$0xff]  ;;  %754 = vst [vmem:[%s9683_s28 + $0x11e0] sm:$0xff] %v753_v30  ;;  %s11757_s29 = smov %s10116_s7 }
 0x131   : >> { %756 = vst [vmem:[%s9683_s28 + $0x11f0] sm:$0xff] %v755_v31  ;;  %s11756_s28 = smov %s10120_s8 }
 0x132 PF: > { %p6664_p8 = scmp.ge.s32.totalorder %s9679_s16, 1  ;;  %p1956_p9 = scmp.lt.s32.totalorder %s9679_s16, 3 }
 0x134   : > { %p1957_p10 = pnand %p6664_p8, %p1956_p9 }
 0x135   : > { %s1963_s9 = sand.u32 (!%p1957_p10), 1, %s9663_s12   ;;  %s6665_s28 = sshll.u32 (!%p1957_p10), %s9671_s14, 2 }
 0x136   : > { %1960 = sbr.rel (%p1957_p10) target bundleno = 1047 (0x417), region = 65  ;;  %p2004_p11 = scmp.lt.s32.totalorder (!%p1957_p10), %s6665_s28, 7 }
 0x137   : > { %s9552_s10 = smul.u32 (!%p1957_p10), 4608, %s1963_s9 }
 0x139   : > { %s10390_s11 = scalar_lea.vmem (!%p1957_p10), [#allocation2], %s9552_s10 }
 0x13b   : > { %v6782_v32 = vld [vmem:[%s10390_s11 + $0xe0] sm:$0xf]  ;;  %v9005_v33 = vld [vmem:[%s10390_s11 + $0xec] sm:$0xf0]  ;;  %vm6487_vm0 = vcmask 1041408   ;;  %s11768_s28 = smov (!%p2004_p11, %s6665_s28), 7 }
 0x13c   : > { %v6910_v34 = vld [vmem:[%s10390_s11 + $0x1e0] sm:$0xf]  ;;  %v6783_v35 = vor.u32 %v9005_v33, %v6782_v32  ;;  %v9037_v36 = vld [vmem:[%s10390_s11 + $0x1ec] sm:$0xf0]  ;;  %s2006_s4 = scalar_lea.vmem %s11752_s2, %s11768_s28  ;;  %vm6489_vm1 = vcmask 1045508   ;;  %vm6491_vm2 = vcmask 1043456  }
 0x13d   : > { %v7038_v37 = vld [vmem:[%s10390_s11 + $0x2e0] sm:$0xf]  ;;  %v9069_v38 = vld [vmem:[%s10390_s11 + $0x2ec] sm:$0xf0]  ;;  %v6911_v39 = vor.u32 %v9037_v36, %v6910_v34  ;;  %s6667_s14 = sshll.u32 %s11768_s28, 1 }
 0x13e   : > { %v7039_v40 = vor.u32 %v9069_v38, %v7038_v37  ;;  %v7166_v41 = vld [vmem:[%s10390_s11 + $0x3e0] sm:$0xf]  ;;  %v9101_v42 = vld [vmem:[%s10390_s11 + $0x3ec] sm:$0xf0]  ;;  %5540 = vmatpush.bf16.msra.mxu0 %v6783_v35  ;;  %s2012_s7 = scalar_lea.vmem %s11753_s3, %s6667_s14 }
 0x13f   : > { %v6766_v43 = vld [vmem:[%s10390_s11 + $0xc0] sm:$0xf]  ;;  %v7167_v44 = vor.u32 %v9101_v42, %v7166_v41  ;;  %v9001_v45 = vld [vmem:[%s10390_s11 + $0xcc] sm:$0xf0]  ;;  %5553 = vmatpush.bf16.msra.mxu1 %v6911_v39 }
 0x140   : > { %v6894_v46 = vld [vmem:[%s10390_s11 + $0x1c0] sm:$0xf]  ;;  %v9033_v47 = vld [vmem:[%s10390_s11 + $0x1cc] sm:$0xf0]  ;;  %5566 = vmatpush.bf16.msra.mxu2 %v7039_v40  ;;  %v6767_v48 = vor.u32 %v9001_v45, %v6766_v43 }
 0x141   : > { %v6895_v49 = vor.u32 %v9033_v47, %v6894_v46  ;;  %v7022_v50 = vld [vmem:[%s10390_s11 + $0x2c0] sm:$0xf]  ;;  %v9065_v51 = vld [vmem:[%s10390_s11 + $0x2cc] sm:$0xf0]  ;;  %5579 = vmatpush.bf16.msra.mxu3 %v7167_v44 }
 0x142   : > { %v7150_v52 = vld [vmem:[%s10390_s11 + $0x3c0] sm:$0xf]  ;;  %v7023_v53 = vor.u32 %v9065_v51, %v7022_v50  ;;  %v9097_v54 = vld [vmem:[%s10390_s11 + $0x3cc] sm:$0xf0]  ;;  %5541 = vmatpush.bf16.msra.mxu0 %v6767_v48 }
 0x143   : > { %v6750_v55 = vld [vmem:[%s10390_s11 + $0xa0] sm:$0xf]  ;;  %v8997_v56 = vld [vmem:[%s10390_s11 + $0xac] sm:$0xf0]  ;;  %v7151_v57 = vor.u32 %v9097_v54, %v7150_v52  ;;  %5554 = vmatpush.bf16.msra.mxu1 %v6895_v49 }
 0x144   : > { %v6878_v58 = vld [vmem:[%s10390_s11 + $0x1a0] sm:$0xf]  ;;  %v9029_v59 = vld [vmem:[%s10390_s11 + $0x1ac] sm:$0xf0]  ;;  %v6751_v61 = vor.u32 %v8997_v56, %v6750_v55  ;;  %5567 = vmatpush.bf16.msra.mxu2 %v7023_v53 }
 0x145   : > { %v7006_v60 = vld [vmem:[%s10390_s11 + $0x2a0] sm:$0xf]  ;;  %v9061_v62 = vld [vmem:[%s10390_s11 + $0x2ac] sm:$0xf0]  ;;  %v6879_v1 = vor.u32 %v9029_v59, %v6878_v58  ;;  %5580 = vmatpush.bf16.msra.mxu3 %v7151_v57 }
 0x146   : > { %v7134_v63 = vld [vmem:[%s10390_s11 + $0x3a0] sm:$0xf]  ;;  %v9093_v0 = vld [vmem:[%s10390_s11 + $0x3ac] sm:$0xf0]  ;;  %v7007_v2 = vor.u32 %v9061_v62, %v7006_v60  ;;  %5542 = vmatpush.bf16.msra.mxu0 %v6751_v61 }
 0x147   : > { %v6734_v3 = vld [vmem:[%s10390_s11 + $0x80] sm:$0xf]  ;;  %v8993_v4 = vld [vmem:[%s10390_s11 + $0x8c] sm:$0xf0]  ;;  %v7135_v6 = vor.u32 %v9093_v0, %v7134_v63  ;;  %5555 = vmatpush.bf16.msra.mxu1 %v6879_v1 }
 0x148   : > { %v6862_v5 = vld [vmem:[%s10390_s11 + $0x180] sm:$0xf]  ;;  %v9025_v7 = vld [vmem:[%s10390_s11 + $0x18c] sm:$0xf0]  ;;  %v6735_v12 = vor.u32 %v8993_v4, %v6734_v3  ;;  %5568 = vmatpush.bf16.msra.mxu2 %v7007_v2 }
 0x149   : > { %v6990_v8 = vld [vmem:[%s10390_s11 + $0x280] sm:$0xf]  ;;  %v9057_v9 = vld [vmem:[%s10390_s11 + $0x28c] sm:$0xf0]  ;;  %v6863_v13 = vor.u32 %v9025_v7, %v6862_v5  ;;  %5581 = vmatpush.bf16.msra.mxu3 %v7135_v6 }
 0x14a   : > { %v7118_v10 = vld [vmem:[%s10390_s11 + $0x380] sm:$0xf]  ;;  %v9089_v11 = vld [vmem:[%s10390_s11 + $0x38c] sm:$0xf0]  ;;  %v6991_v14 = vor.u32 %v9057_v9, %v6990_v8  ;;  %5543 = vmatpush.bf16.msra.mxu0 %v6735_v12 }
 0x14b   : > { %v6718_v15 = vld [vmem:[%s10390_s11 + $0x60] sm:$0xf]  ;;  %v8989_v16 = vld [vmem:[%s10390_s11 + $0x6c] sm:$0xf0]  ;;  %v7119_v18 = vor.u32 %v9089_v11, %v7118_v10  ;;  %5556 = vmatpush.bf16.msra.mxu1 %v6863_v13 }
 0x14c   : > { %v6846_v17 = vld [vmem:[%s10390_s11 + $0x160] sm:$0xf]  ;;  %v9021_v19 = vld [vmem:[%s10390_s11 + $0x16c] sm:$0xf0]  ;;  %v6719_v24 = vor.u32 %v8989_v16, %v6718_v15  ;;  %5569 = vmatpush.bf16.msra.mxu2 %v6991_v14 }
 0x14d   : > { %v6974_v20 = vld [vmem:[%s10390_s11 + $0x260] sm:$0xf]  ;;  %v9053_v21 = vld [vmem:[%s10390_s11 + $0x26c] sm:$0xf0]  ;;  %v6847_v25 = vor.u32 %v9021_v19, %v6846_v17  ;;  %5582 = vmatpush.bf16.msra.mxu3 %v7119_v18 }
 0x14e   : > { %v7102_v22 = vld [vmem:[%s10390_s11 + $0x360] sm:$0xf]  ;;  %v9085_v23 = vld [vmem:[%s10390_s11 + $0x36c] sm:$0xf0]  ;;  %v6975_v26 = vor.u32 %v9053_v21, %v6974_v20  ;;  %5544 = vmatpush.bf16.msra.mxu0 %v6719_v24 }
 0x14f   : > { %v6702_v27 = vld [vmem:[%s10390_s11 + $0x40] sm:$0xf]  ;;  %v8985_v28 = vld [vmem:[%s10390_s11 + $0x4c] sm:$0xf0]  ;;  %v7103_v30 = vor.u32 %v9085_v23, %v7102_v22  ;;  %5557 = vmatpush.bf16.msra.mxu1 %v6847_v25 }
 0x150   : > { %v6830_v29 = vld [vmem:[%s10390_s11 + $0x140] sm:$0xf]  ;;  %v9017_v31 = vld [vmem:[%s10390_s11 + $0x14c] sm:$0xf0]  ;;  %v6703_v36 = vor.u32 %v8985_v28, %v6702_v27  ;;  %5570 = vmatpush.bf16.msra.mxu2 %v6975_v26  ;;  %v2014_v27 = vld [vmem:[%s11750_s0] sm:$0xff] }
 0x151   : > { %v6958_v32 = vld [vmem:[%s10390_s11 + $0x240] sm:$0xf]  ;;  %v9049_v33 = vld [vmem:[%s10390_s11 + $0x24c] sm:$0xf0]  ;;  %v6831_v37 = vor.u32 %v9017_v31, %v6830_v29  ;;  %5583 = vmatpush.bf16.msra.mxu3 %v7103_v30  ;;  %2024 = vst [vmem:[#allocation1] ss:$4 sm:$0xff] %v2014_v27 }
 0x152   : > { %v7086_v34 = vld [vmem:[%s10390_s11 + $0x340] sm:$0xf]  ;;  %v9081_v35 = vld [vmem:[%s10390_s11 + $0x34c] sm:$0xf0]  ;;  %v6959_v38 = vor.u32 %v9049_v33, %v6958_v32  ;;  %5545 = vmatpush.bf16.msra.mxu0 %v6703_v36 }
 0x153   : > { %v6686_v39 = vld [vmem:[%s10390_s11 + $0x20] sm:$0xf]  ;;  %v8981_v40 = vld [vmem:[%s10390_s11 + $0x2c] sm:$0xf0]  ;;  %v7087_v42 = vor.u32 %v9081_v35, %v7086_v34  ;;  %5558 = vmatpush.bf16.msra.mxu1 %v6831_v37 }
 0x154   : > { %v6814_v41 = vld [vmem:[%s10390_s11 + $0x120] sm:$0xf]  ;;  %v9013_v43 = vld [vmem:[%s10390_s11 + $0x12c] sm:$0xf0]  ;;  %v6687_v48 = vor.u32 %v8981_v40, %v6686_v39  ;;  %5571 = vmatpush.bf16.msra.mxu2 %v6959_v38 }
 0x155   : > { %v6942_v44 = vld [vmem:[%s10390_s11 + $0x220] sm:$0xf]  ;;  %v9045_v45 = vld [vmem:[%s10390_s11 + $0x22c] sm:$0xf0]  ;;  %v6815_v51 = vor.u32 %v9013_v43, %v6814_v41  ;;  %5584 = vmatpush.bf16.msra.mxu3 %v7087_v42 }
 0x156   : > { %v7070_v46 = vld [vmem:[%s10390_s11 + $0x320] sm:$0xf]  ;;  %v9077_v47 = vld [vmem:[%s10390_s11 + $0x32c] sm:$0xf0]  ;;  %v6943_v52 = vor.u32 %v9045_v45, %v6942_v44  ;;  %5546 = vmatpush.bf16.msra.mxu0 %v6687_v48 }
 0x157   : > { %v6670_v49 = vld [vmem:[%s10390_s11] sm:$0xf]  ;;  %v8977_v50 = vld [vmem:[%s10390_s11 + $0xc] sm:$0xf0]  ;;  %v7071_v56 = vor.u32 %v9077_v47, %v7070_v46  ;;  %5559 = vmatpush.bf16.msra.mxu1 %v6815_v51 }
 0x158   : > { %v6798_v53 = vld [vmem:[%s10390_s11 + $0x100] sm:$0xf]  ;;  %v9009_v54 = vld [vmem:[%s10390_s11 + $0x10c] sm:$0xf0]  ;;  %v6671_v63 = vor.u32 %v8977_v50, %v6670_v49  ;;  %5572 = vmatpush.bf16.msra.mxu2 %v6943_v52  ;;  %v2016_v52 = vld [vmem:[%s11750_s0 + $0x10] sm:$0xff] }
 0x159   : > { %v6926_v55 = vld [vmem:[%s10390_s11 + $0x200] sm:$0xf]  ;;  %v9041_v57 = vld [vmem:[%s10390_s11 + $0x20c] sm:$0xf0]  ;;  %v6799_v3 = vor.u32 %v9009_v54, %v6798_v53  ;;  %5585 = vmatpush.bf16.msra.mxu3 %v7071_v56 }
 0x15a   : > { %v7054_v58 = vld [vmem:[%s10390_s11 + $0x300] sm:$0xf]  ;;  %v9073_v59 = vld [vmem:[%s10390_s11 + $0x30c] sm:$0xf0]  ;;  %v6927_v4 = vor.u32 %v9041_v57, %v6926_v55  ;;  %5547 = vmatpush.bf16.msra.mxu0 %v6671_v63 }
 0x15b   : > { %v7294_v60 = vld [vmem:[%s10390_s11 + $0x4e0] sm:$0xf]  ;;  %v9133_v61 = vld [vmem:[%s10390_s11 + $0x4ec] sm:$0xf0]  ;;  %v7055_v7 = vor.u32 %v9073_v59, %v7054_v58  ;;  %5560 = vmatpush.bf16.msra.mxu1 %v6799_v3 }
 0x15c   : > { %v7422_v62 = vld [vmem:[%s10390_s11 + $0x5e0] sm:$0xf]  ;;  %v9165_v0 = vld [vmem:[%s10390_s11 + $0x5ec] sm:$0xf0]  ;;  %v7295_v8 = vor.u32 %v9133_v61, %v7294_v60  ;;  %5573 = vmatpush.bf16.msra.mxu2 %v6927_v4 }
 0x15d   : > { %v7550_v1 = vld [vmem:[%s10390_s11 + $0x6e0] sm:$0xf]  ;;  %v9197_v2 = vld [vmem:[%s10390_s11 + $0x6ec] sm:$0xf0]  ;;  %v7423_v9 = vor.u32 %v9165_v0, %v7422_v62  ;;  %5586 = vmatpush.bf16.msra.mxu3 %v7055_v7 }
 0x15e   : > { %v7678_v5 = vld [vmem:[%s10390_s11 + $0x7e0] sm:$0xf]  ;;  %v9229_v6 = vld [vmem:[%s10390_s11 + $0x7ec] sm:$0xf0]  ;;  %v7551_v10 = vor.u32 %v9197_v2, %v7550_v1  ;;  %5592 = vmatpush.bf16.msrb.mxu0 %v7295_v8 }
 0x15f   : > { %v7278_v11 = vld [vmem:[%s10390_s11 + $0x4c0] sm:$0xf]  ;;  %v9129_v12 = vld [vmem:[%s10390_s11 + $0x4cc] sm:$0xf0]  ;;  %v7679_v14 = vor.u32 %v9229_v6, %v7678_v5  ;;  %5605 = vmatpush.bf16.msrb.mxu1 %v7423_v9 }
 0x160   : > { %v7406_v13 = vld [vmem:[%s10390_s11 + $0x5c0] sm:$0xf]  ;;  %v9161_v15 = vld [vmem:[%s10390_s11 + $0x5cc] sm:$0xf0]  ;;  %v7279_v20 = vor.u32 %v9129_v12, %v7278_v11  ;;  %5618 = vmatpush.bf16.msrb.mxu2 %v7551_v10 }
 0x161   : > { %v7534_v16 = vld [vmem:[%s10390_s11 + $0x6c0] sm:$0xf]  ;;  %v9193_v17 = vld [vmem:[%s10390_s11 + $0x6cc] sm:$0xf0]  ;;  %v7407_v23 = vor.u32 %v9161_v15, %v7406_v13  ;;  %5631 = vmatpush.bf16.msrb.mxu3 %v7679_v14 }
 0x162   : > { %v7662_v18 = vld [vmem:[%s10390_s11 + $0x7c0] sm:$0xf]  ;;  %v9225_v19 = vld [vmem:[%s10390_s11 + $0x7cc] sm:$0xf0]  ;;  %v7535_v24 = vor.u32 %v9193_v17, %v7534_v16  ;;  %5593 = vmatpush.bf16.msrb.mxu0 %v7279_v20 }
 0x163   : > { %v7262_v21 = vld [vmem:[%s10390_s11 + $0x4a0] sm:$0xf]  ;;  %v9125_v22 = vld [vmem:[%s10390_s11 + $0x4ac] sm:$0xf0]  ;;  %v7663_v28 = vor.u32 %v9225_v19, %v7662_v18  ;;  %5606 = vmatpush.bf16.msrb.mxu1 %v7407_v23 }
 0x164   : > { %v7390_v25 = vld [vmem:[%s10390_s11 + $0x5a0] sm:$0xf]  ;;  %v9157_v26 = vld [vmem:[%s10390_s11 + $0x5ac] sm:$0xf0]  ;;  %v7263_v33 = vor.u32 %v9125_v22, %v7262_v21  ;;  %5619 = vmatpush.bf16.msrb.mxu2 %v7535_v24 }
 0x165   : > { %v7518_v29 = vld [vmem:[%s10390_s11 + $0x6a0] sm:$0xf]  ;;  %v9189_v30 = vld [vmem:[%s10390_s11 + $0x6ac] sm:$0xf0]  ;;  %v7391_v35 = vor.u32 %v9157_v26, %v7390_v25  ;;  %5632 = vmatpush.bf16.msrb.mxu3 %v7663_v28 }
 0x166   : > { %v7646_v31 = vld [vmem:[%s10390_s11 + $0x7a0] sm:$0xf]  ;;  %v9221_v32 = vld [vmem:[%s10390_s11 + $0x7ac] sm:$0xf0]  ;;  %v7519_v36 = vor.u32 %v9189_v30, %v7518_v29  ;;  %5594 = vmatpush.bf16.msrb.mxu0 %v7263_v33 }
 0x167   : > { %v7246_v34 = vld [vmem:[%s10390_s11 + $0x480] sm:$0xf]  ;;  %v9121_v37 = vld [vmem:[%s10390_s11 + $0x48c] sm:$0xf0]  ;;  %v7647_v40 = vor.u32 %v9221_v32, %v7646_v31  ;;  %5607 = vmatpush.bf16.msrb.mxu1 %v7391_v35 }
 0x168   : > { %v7374_v38 = vld [vmem:[%s10390_s11 + $0x580] sm:$0xf]  ;;  %v9153_v39 = vld [vmem:[%s10390_s11 + $0x58c] sm:$0xf0]  ;;  %v7247_v47 = vor.u32 %v9121_v37, %v7246_v34  ;;  %5620 = vmatpush.bf16.msrb.mxu2 %v7519_v36 }
 0x169   : > { %v7502_v41 = vld [vmem:[%s10390_s11 + $0x680] sm:$0xf]  ;;  %v9185_v42 = vld [vmem:[%s10390_s11 + $0x68c] sm:$0xf0]  ;;  %v7375_v53 = vor.u32 %v9153_v39, %v7374_v38  ;;  %5633 = vmatpush.bf16.msrb.mxu3 %v7647_v40 }
 0x16a   : > { %v7630_v43 = vld [vmem:[%s10390_s11 + $0x780] sm:$0xf]  ;;  %v9217_v44 = vld [vmem:[%s10390_s11 + $0x78c] sm:$0xf0]  ;;  %v7503_v54 = vor.u32 %v9185_v42, %v7502_v41  ;;  %5595 = vmatpush.bf16.msrb.mxu0 %v7247_v47 }
 0x16b   : > { %v7230_v45 = vld [vmem:[%s10390_s11 + $0x460] sm:$0xf]  ;;  %v9117_v46 = vld [vmem:[%s10390_s11 + $0x46c] sm:$0xf0]  ;;  %v7631_v57 = vor.u32 %v9217_v44, %v7630_v43  ;;  %5608 = vmatpush.bf16.msrb.mxu1 %v7375_v53 }
 0x16c   : > { %v7358_v48 = vld [vmem:[%s10390_s11 + $0x560] sm:$0xf]  ;;  %v9149_v49 = vld [vmem:[%s10390_s11 + $0x56c] sm:$0xf0]  ;;  %v7231_v2 = vor.u32 %v9117_v46, %v7230_v45  ;;  %5621 = vmatpush.bf16.msrb.mxu2 %v7503_v54 }
 0x16d   : > { %v7486_v50 = vld [vmem:[%s10390_s11 + $0x660] sm:$0xf]  ;;  %v9181_v51 = vld [vmem:[%s10390_s11 + $0x66c] sm:$0xf0]  ;;  %v7359_v3 = vor.u32 %v9149_v49, %v7358_v48  ;;  %5634 = vmatpush.bf16.msrb.mxu3 %v7631_v57 }
 0x16e   : > { %v2029_v55 = vld.sshfl [vmem:[#allocation1 + $0x10] sm:$0xff pattern:$0x73625140]  ;;  %v2027_v56 = vld.sshfl [vmem:[#allocation1] sm:$0xff pattern:$0x73625140]  ;;  %v7487_v4 = vor.u32 %v9181_v51, %v7486_v50  ;;  %5596 = vmatpush.bf16.msrb.mxu0 %v7231_v2 }
 0x16f   : > { %v10500_v58 = vpack.c.bf16 %v2029_v55, %v2029_v55  ;;  %v10502_v59 = vpack.c.bf16 %v2027_v56, %v2027_v56  ;;  %v2030_v60 = vld.sshfl [vmem:[#allocation1 + $0x18] sm:$0xff pattern:$0x73625140]  ;;  %v2028_v61 = vld.sshfl [vmem:[#allocation1 + $0x8] sm:$0xff pattern:$0x73625140]  ;;  %5609 = vmatpush.bf16.msrb.mxu1 %v7359_v3 }
 0x170   : > { %v7614_v62 = vld [vmem:[%s10390_s11 + $0x760] sm:$0xf]  ;;  %v9213_v63 = vld [vmem:[%s10390_s11 + $0x76c] sm:$0xf0]  ;;  %v10506_v0 = vpack.c.bf16 %v2030_v60, %v2030_v60  ;;  %2035 = vst [vmem:[#allocation1] ss:$4 sm:$0xff] %v2016_v52  ;;  %v10508_v1 = vpack.c.bf16 %v2028_v61, %v2028_v61  ;;  %5622 = vmatpush.bf16.msrb.mxu2 %v7487_v4 }
 0x171   : > { %5574 = vmatmul.bf16.vlgmr.msra.gmra.mxu2 %v10500_v58  ;;  %v7214_v5 = vld [vmem:[%s10390_s11 + $0x440] sm:$0xf]  ;;  %v9113_v6 = vld [vmem:[%s10390_s11 + $0x44c] sm:$0xf0]  ;;  %v7615_v8 = vor.u32 %v9213_v63, %v7614_v62  ;;  %5548 = vmatmul.bf16.vlgmr.msra.gmra.mxu0 %v10502_v59 }
 0x172   : > { %v7342_v7 = vld [vmem:[%s10390_s11 + $0x540] sm:$0xf]  ;;  %v9145_v9 = vld [vmem:[%s10390_s11 + $0x54c] sm:$0xf0]  ;;  %5587 = vmatmul.bf16.vlgmr.msra.gmra.mxu3 %v10506_v0  ;;  %5561 = vmatmul.bf16.vlgmr.msra.gmra.mxu1 %v10508_v1  ;;  %v7215_v14 = vor.u32 %v9113_v6, %v7214_v5 }
 0x173   : > { %v7470_v10 = vld [vmem:[%s10390_s11 + $0x640] sm:$0xf]  ;;  %v9177_v11 = vld [vmem:[%s10390_s11 + $0x64c] sm:$0xf0]  ;;  %v7343_v17 = vor.u32 %v9145_v9, %v7342_v7  ;;  %5635 = vmatpush.bf16.msrb.mxu3 %v7615_v8 }
 0x174   : > { %v7598_v12 = vld [vmem:[%s10390_s11 + $0x740] sm:$0xf]  ;;  %v9209_v13 = vld [vmem:[%s10390_s11 + $0x74c] sm:$0xf0]  ;;  %v7471_v18 = vor.u32 %v9177_v11, %v7470_v10  ;;  %5597 = vmatpush.bf16.msrb.mxu0 %v7215_v14 }
 0x175   : > { %v7198_v15 = vld [vmem:[%s10390_s11 + $0x420] sm:$0xf]  ;;  %v9109_v16 = vld [vmem:[%s10390_s11 + $0x42c] sm:$0xf0]  ;;  %v7599_v22 = vor.u32 %v9209_v13, %v7598_v12  ;;  %5610 = vmatpush.bf16.msrb.mxu1 %v7343_v17 }
 0x176   : > { %v7326_v19 = vld [vmem:[%s10390_s11 + $0x520] sm:$0xf]  ;;  %v9141_v20 = vld [vmem:[%s10390_s11 + $0x52c] sm:$0xf0]  ;;  %v7199_v28 = vor.u32 %v9109_v16, %v7198_v15  ;;  %5623 = vmatpush.bf16.msrb.mxu2 %v7471_v18 }
 0x177   : > { %v7454_v21 = vld [vmem:[%s10390_s11 + $0x620] sm:$0xf]  ;;  %v9173_v23 = vld [vmem:[%s10390_s11 + $0x62c] sm:$0xf0]  ;;  %v7327_v32 = vor.u32 %v9141_v20, %v7326_v19  ;;  %5636 = vmatpush.bf16.msrb.mxu3 %v7599_v22 }
 0x178   : > { %v7582_v24 = vld [vmem:[%s10390_s11 + $0x720] sm:$0xf]  ;;  %v9205_v26 = vld [vmem:[%s10390_s11 + $0x72c] sm:$0xf0]  ;;  %v7455_v33 = vor.u32 %v9173_v23, %v7454_v21  ;;  %5598 = vmatpush.bf16.msrb.mxu0 %v7199_v28 }
 0x179   : > { %v2015_v25 = vld [vmem:[%s11750_s0 + $0x8] sm:$0xff]  ;;  %v9105_v29 = vld [vmem:[%s10390_s11 + $0x40c] sm:$0xf0]  ;;  %v7583_v37 = vor.u32 %v9205_v26, %v7582_v24  ;;  %5611 = vmatpush.bf16.msrb.mxu1 %v7327_v32 }
 0x17a   : > { %v7182_v27 = vld [vmem:[%s10390_s11 + $0x400] sm:$0xf]  ;;  %2026 = vst [vmem:[#allocation1 + $0x20] ss:$4 sm:$0xff] %v2015_v25  ;;  %v9137_v31 = vld [vmem:[%s10390_s11 + $0x50c] sm:$0xf0]  ;;  %5624 = vmatpush.bf16.msrb.mxu2 %v7455_v33 }
 0x17b   : > { %v7310_v30 = vld [vmem:[%s10390_s11 + $0x500] sm:$0xf]  ;;  %v9169_v35 = vld [vmem:[%s10390_s11 + $0x60c] sm:$0xf0]  ;;  %v7183_v44 = vor.u32 %v9105_v29, %v7182_v27  ;;  %5637 = vmatpush.bf16.msrb.mxu3 %v7583_v37 }
 0x17c   : > { %v7438_v34 = vld [vmem:[%s10390_s11 + $0x600] sm:$0xf]  ;;  %v9201_v38 = vld [vmem:[%s10390_s11 + $0x70c] sm:$0xf0]  ;;  %v7311_v48 = vor.u32 %v9137_v31, %v7310_v30 }
 0x17d   : > { %v7566_v36 = vld [vmem:[%s10390_s11 + $0x700] sm:$0xf]  ;;  %v9261_v40 = vld [vmem:[%s10390_s11 + $0x8ec] sm:$0xf0]  ;;  %v7439_v49 = vor.u32 %v9169_v35, %v7438_v34  ;;  %5599 = vmatpush.bf16.msrb.mxu0 %v7183_v44 }
 0x17e   : > { %v7806_v39 = vld [vmem:[%s10390_s11 + $0x8e0] sm:$0xf]  ;;  %v9293_v42 = vld [vmem:[%s10390_s11 + $0x9ec] sm:$0xf0]  ;;  %v7567_v53 = vor.u32 %v9201_v38, %v7566_v36  ;;  %5612 = vmatpush.bf16.msrb.mxu1 %v7311_v48 }
 0x17f   : > { %v7934_v41 = vld [vmem:[%s10390_s11 + $0x9e0] sm:$0xf]  ;;  %v9325_v45 = vld [vmem:[%s10390_s11 + $0xaec] sm:$0xf0]  ;;  %v7807_v54 = vor.u32 %v9261_v40, %v7806_v39  ;;  %5625 = vmatpush.bf16.msrb.mxu2 %v7439_v49 }
 0x180   : > { %v8062_v43 = vld [vmem:[%s10390_s11 + $0xae0] sm:$0xf]  ;;  %v9357_v47 = vld [vmem:[%s10390_s11 + $0xbec] sm:$0xf0]  ;;  %v7935_v61 = vor.u32 %v9293_v42, %v7934_v41  ;;  %5638 = vmatpush.bf16.msrb.mxu3 %v7567_v53  ;;  %v2018_v53 = vld [vmem:[%s11750_s0 + $0x20] sm:$0xf] }
 0x181   : > { %v8190_v46 = vld [vmem:[%s10390_s11 + $0xbe0] sm:$0xf]  ;;  %v9257_v51 = vld [vmem:[%s10390_s11 + $0x8cc] sm:$0xf0]  ;;  %v8063_v62 = vor.u32 %v9325_v45, %v8062_v43  ;;  %5644 = vmatpush.bf16.msra.mxu0 %v7807_v54 }
 0x182   : > { %v7790_v50 = vld [vmem:[%s10390_s11 + $0x8c0] sm:$0xf]  ;;  %v2017_v52 = vld [vmem:[%s11750_s0 + $0x18] sm:$0xff]  ;;  %v2033_v57 = vld.sshfl [vmem:[#allocation1 + $0x30] sm:$0xff pattern:$0x73625140]  ;;  %v8191_v3 = vor.u32 %v9357_v47, %v8190_v46  ;;  %5657 = vmatpush.bf16.msra.mxu1 %v7935_v61 }
 0x183   : > { %v7918_v55 = vld [vmem:[%s10390_s11 + $0x9c0] sm:$0xf]  ;;  %v9289_v56 = vld [vmem:[%s10390_s11 + $0x9cc] sm:$0xf0]  ;;  %v10558_v6 = vpack.c.bf16 %v2033_v57, %v2033_v57  ;;  %v7791_v11 = vor.u32 %v9257_v51, %v7790_v50  ;;  %5670 = vmatpush.bf16.msra.mxu2 %v8063_v62 }
 0x184   : > { %v2031_v60 = vld.sshfl [vmem:[#allocation1 + $0x20] sm:$0xff pattern:$0x73625140]  ;;  %v2034_v63 = vld.sshfl [vmem:[#allocation1 + $0x38] sm:$0xff pattern:$0x73625140]  ;;  %v7919_v13 = vor.u32 %v9289_v56, %v7918_v55  ;;  %5683 = vmatpush.bf16.msra.mxu3 %v8191_v3 }
 0x185   : > { %v2032_v2 = vld.sshfl [vmem:[#allocation1 + $0x28] sm:$0xff pattern:$0x73625140]  ;;  %v9321_v5 = vld [vmem:[%s10390_s11 + $0xacc] sm:$0xf0]  ;;  %v10562_v9 = vpack.c.bf16 %v2031_v60, %v2031_v60  ;;  %v10564_v10 = vpack.c.bf16 %v2034_v63, %v2034_v63  ;;  %5626 = vmatmul.bf16.vlgmr.msrb.gmra.mxu2 %v10558_v6  ;;  %5645 = vmatpush.bf16.msra.mxu0 %v7791_v11 }
 0x186   : > { %v8046_v4 = vld [vmem:[%s10390_s11 + $0xac0] sm:$0xf]  ;;  %2036 = vst [vmem:[#allocation1 + $0x20] ss:$4 sm:$0xff] %v2017_v52  ;;  %v9353_v8 = vld [vmem:[%s10390_s11 + $0xbcc] sm:$0xf0]  ;;  %v10566_v12 = vpack.c.bf16 %v2032_v2, %v2032_v2  ;;  %5658 = vmatpush.bf16.msra.mxu1 %v7919_v13 }
 0x187   : > { %v8174_v7 = vld [vmem:[%s10390_s11 + $0xbc0] sm:$0xf]  ;;  %v8047_v14 = vor.u32 %v9321_v5, %v8046_v4  ;;  %v9253_v16 = vld [vmem:[%s10390_s11 + $0x8ac] sm:$0xf0]  ;;  %5600 = vmatmul.bf16.vlgmr.msrb.gmra.mxu0 %v10562_v9  ;;  %5639 = vmatmul.bf16.vlgmr.msrb.gmra.mxu3 %v10564_v10 }
 0x188   : > { %v7774_v15 = vld [vmem:[%s10390_s11 + $0x8a0] sm:$0xf]  ;;  %v8175_v18 = vor.u32 %v9353_v8, %v8174_v7  ;;  %v9285_v19 = vld [vmem:[%s10390_s11 + $0x9ac] sm:$0xf0]  ;;  %5613 = vmatmul.bf16.vlgmr.msrb.gmra.mxu1 %v10566_v12 }
 0x189   : > { %v7902_v17 = vld [vmem:[%s10390_s11 + $0x9a0] sm:$0xf]  ;;  %v9317_v21 = vld [vmem:[%s10390_s11 + $0xaac] sm:$0xf0]  ;;  %v7775_v24 = vor.u32 %v9253_v16, %v7774_v15  ;;  %5671 = vmatpush.bf16.msra.mxu2 %v8047_v14 }
 0x18a   : > { %v8030_v20 = vld [vmem:[%s10390_s11 + $0xaa0] sm:$0xf]  ;;  %v9349_v23 = vld [vmem:[%s10390_s11 + $0xbac] sm:$0xf0]  ;;  %v7903_v25 = vor.u32 %v9285_v19, %v7902_v17  ;;  %5684 = vmatpush.bf16.msra.mxu3 %v8175_v18 }
 0x18b   : > { %v8158_v22 = vld [vmem:[%s10390_s11 + $0xba0] sm:$0xf]  ;;  %v8031_v26 = vor.u32 %v9317_v21, %v8030_v20  ;;  %v9249_v28 = vld [vmem:[%s10390_s11 + $0x88c] sm:$0xf0]  ;;  %5646 = vmatpush.bf16.msra.mxu0 %v7775_v24 }
 0x18c   : > { %v7758_v27 = vld [vmem:[%s10390_s11 + $0x880] sm:$0xf]  ;;  %v8159_v30 = vor.u32 %v9349_v23, %v8158_v22  ;;  %v9281_v31 = vld [vmem:[%s10390_s11 + $0x98c] sm:$0xf0]  ;;  %5659 = vmatpush.bf16.msra.mxu1 %v7903_v25 }
 0x18d   : > { %v7886_v29 = vld [vmem:[%s10390_s11 + $0x980] sm:$0xf]  ;;  %v9313_v33 = vld [vmem:[%s10390_s11 + $0xa8c] sm:$0xf0]  ;;  %v7759_v37 = vor.u32 %v9249_v28, %v7758_v27  ;;  %5672 = vmatpush.bf16.msra.mxu2 %v8031_v26 }
 0x18e   : > { %v8014_v32 = vld [vmem:[%s10390_s11 + $0xa80] sm:$0xf]  ;;  %v9345_v35 = vld [vmem:[%s10390_s11 + $0xb8c] sm:$0xf0]  ;;  %v7887_v41 = vor.u32 %v9281_v31, %v7886_v29  ;;  %5685 = vmatpush.bf16.msra.mxu3 %v8159_v30 }
 0x18f   : > { %v8142_v34 = vld [vmem:[%s10390_s11 + $0xb80] sm:$0xf]  ;;  %v9245_v38 = vld [vmem:[%s10390_s11 + $0x86c] sm:$0xf0]  ;;  %v8015_v42 = vor.u32 %v9313_v33, %v8014_v32  ;;  %5647 = vmatpush.bf16.msra.mxu0 %v7759_v37 }
 0x190   : > { %v7742_v36 = vld [vmem:[%s10390_s11 + $0x860] sm:$0xf]  ;;  %v9277_v40 = vld [vmem:[%s10390_s11 + $0x96c] sm:$0xf0]  ;;  %v8143_v46 = vor.u32 %v9345_v35, %v8142_v34  ;;  %5660 = vmatpush.bf16.msra.mxu1 %v7887_v41 }
 0x191   : > { %v7870_v39 = vld [vmem:[%s10390_s11 + $0x960] sm:$0xf]  ;;  %v9309_v44 = vld [vmem:[%s10390_s11 + $0xa6c] sm:$0xf0]  ;;  %v7743_v52 = vor.u32 %v9245_v38, %v7742_v36  ;;  %5673 = vmatpush.bf16.msra.mxu2 %v8015_v42 }
 0x192   : > { %v7998_v43 = vld [vmem:[%s10390_s11 + $0xa60] sm:$0xf]  ;;  %v9341_v47 = vld [vmem:[%s10390_s11 + $0xb6c] sm:$0xf0]  ;;  %v7871_v55 = vor.u32 %v9277_v40, %v7870_v39  ;;  %5686 = vmatpush.bf16.msra.mxu3 %v8143_v46 }
 0x193   : > { %v8126_v45 = vld [vmem:[%s10390_s11 + $0xb60] sm:$0xf]  ;;  %v10596_v48 = vld.sshfl [vmem:[#allocation1] sm:$0xff pattern:$0x73625140]  ;;  %v7999_v56 = vor.u32 %v9309_v44, %v7998_v43  ;;  %5648 = vmatpush.bf16.msra.mxu0 %v7743_v52 }
 0x194   : > { %v7726_v49 = vld [vmem:[%s10390_s11 + $0x840] sm:$0xf]  ;;  %v10599_v50 = vld.sshfl [vmem:[#allocation1 + $0x10] sm:$0xff pattern:$0x73625140]  ;;  %v8127_v61 = vor.u32 %v9341_v47, %v8126_v45  ;;  %5661 = vmatpush.bf16.msra.mxu1 %v7871_v55 }
 0x195   : > { %v10601_v51 = vld.sshfl [vmem:[#allocation1 + $0x8] sm:$0xff pattern:$0x73625140]  ;;  %v10606_v54 = vld.sshfl [vmem:[#allocation1 + $0x18] sm:$0xff pattern:$0x73625140]  ;;  %5674 = vmatpush.bf16.msra.mxu2 %v7999_v56  ;;  %v10644_v56 = vpack.c.bf16 %v10596_v48, %v10596_v48 }
 0x196   : > { %v9241_v57 = vld [vmem:[%s10390_s11 + $0x84c] sm:$0xf0]  ;;  %v7854_v60 = vld [vmem:[%s10390_s11 + $0x940] sm:$0xf]  ;;  %2045 = vst [vmem:[#allocation1] ss:$4 sm:$0xff] %v2018_v53  ;;  %5687 = vmatpush.bf16.msra.mxu3 %v8127_v61 }
 0x197   : > { %v9273_v62 = vld [vmem:[%s10390_s11 + $0x94c] sm:$0xf0]  ;;  %v7982_v63 = vld [vmem:[%s10390_s11 + $0xa40] sm:$0xf]  ;;  %v7727_v5 = vor.u32 %v9241_v57, %v7726_v49 }
 0x198   : > { %v9305_v2 = vld [vmem:[%s10390_s11 + $0xa4c] sm:$0xf0]  ;;  %v8110_v3 = vld [vmem:[%s10390_s11 + $0xb40] sm:$0xf]  ;;  %v7855_v7 = vor.u32 %v9273_v62, %v7854_v60  ;;  %v10651_v62 = vpack.c.bf16 %v10599_v50, %v10599_v50 }
 0x199   : > { %v9337_v4 = vld [vmem:[%s10390_s11 + $0xb4c] sm:$0xf0]  ;;  %v7983_v8 = vor.u32 %v9305_v2, %v7982_v63  ;;  %v7710_v11 = vld [vmem:[%s10390_s11 + $0x820] sm:$0xf]  ;;  %5649 = vmatpush.bf16.msra.mxu0 %v7727_v5  ;;  %v10655_v63 = vpack.c.bf16 %v10601_v51, %v10601_v51 }
 0x19a   : > { %v9237_v13 = vld [vmem:[%s10390_s11 + $0x82c] sm:$0xf0]  ;;  %v7838_v14 = vld [vmem:[%s10390_s11 + $0x920] sm:$0xf]  ;;  %v8111_v15 = vor.u32 %v9337_v4, %v8110_v3  ;;  %5662 = vmatpush.bf16.msra.mxu1 %v7855_v7  ;;  %v10661_v3 = vpack.c.bf16 %v10606_v54, %v10606_v54 }
 0x19b   : > { %v9269_v16 = vld [vmem:[%s10390_s11 + $0x92c] sm:$0xf0]  ;;  %v7966_v17 = vld [vmem:[%s10390_s11 + $0xa20] sm:$0xf]  ;;  %v7711_v21 = vor.u32 %v9237_v13, %v7710_v11  ;;  %5675 = vmatpush.bf16.msra.mxu2 %v7983_v8 }
 0x19c   : > { %v9301_v18 = vld [vmem:[%s10390_s11 + $0xa2c] sm:$0xf0]  ;;  %v8094_v19 = vld [vmem:[%s10390_s11 + $0xb20] sm:$0xf]  ;;  %v7839_v24 = vor.u32 %v9269_v16, %v7838_v14  ;;  %5688 = vmatpush.bf16.msra.mxu3 %v8111_v15 }
 0x19d   : > { %v9333_v20 = vld [vmem:[%s10390_s11 + $0xb2c] sm:$0xf0]  ;;  %v7694_v22 = vld [vmem:[%s10390_s11 + $0x800] sm:$0xf]  ;;  %v7967_v25 = vor.u32 %v9301_v18, %v7966_v17  ;;  %5650 = vmatpush.bf16.msra.mxu0 %v7711_v21 }
 0x19e   : > { %v9233_v23 = vld [vmem:[%s10390_s11 + $0x80c] sm:$0xf0]  ;;  %v7822_v26 = vld [vmem:[%s10390_s11 + $0x900] sm:$0xf]  ;;  %v8095_v29 = vor.u32 %v9333_v20, %v8094_v19  ;;  %5663 = vmatpush.bf16.msra.mxu1 %v7839_v24 }
 0x19f   : > { %v9265_v27 = vld [vmem:[%s10390_s11 + $0x90c] sm:$0xf0]  ;;  %v7950_v28 = vld [vmem:[%s10390_s11 + $0xa00] sm:$0xf]  ;;  %v7695_v36 = vor.u32 %v9233_v23, %v7694_v22  ;;  %5676 = vmatpush.bf16.msra.mxu2 %v7967_v25 }
 0x1a0   : > { %v9297_v30 = vld [vmem:[%s10390_s11 + $0xa0c] sm:$0xf0]  ;;  %v8078_v31 = vld [vmem:[%s10390_s11 + $0xb00] sm:$0xf]  ;;  %v7823_v40 = vor.u32 %v9265_v27, %v7822_v26  ;;  %5689 = vmatpush.bf16.msra.mxu3 %v8095_v29 }
 0x1a1   : > { %v9329_v32 = vld [vmem:[%s10390_s11 + $0xb0c] sm:$0xf0]  ;;  %v8318_v33 = vld [vmem:[%s10390_s11 + $0xce0] sm:$0xf]  ;;  %v7951_v41 = vor.u32 %v9297_v30, %v7950_v28  ;;  %5651 = vmatpush.bf16.msra.mxu0 %v7695_v36 }
 0x1a2   : > { %v9389_v34 = vld [vmem:[%s10390_s11 + $0xcec] sm:$0xf0]  ;;  %v8446_v35 = vld [vmem:[%s10390_s11 + $0xde0] sm:$0xf]  ;;  %v8079_v44 = vor.u32 %v9329_v32, %v8078_v31  ;;  %5664 = vmatpush.bf16.msra.mxu1 %v7823_v40 }
 0x1a3   : > { %v9421_v37 = vld [vmem:[%s10390_s11 + $0xdec] sm:$0xf0]  ;;  %v8574_v38 = vld [vmem:[%s10390_s11 + $0xee0] sm:$0xf]  ;;  %v8319_v45 = vor.u32 %v9389_v34, %v8318_v33  ;;  %5677 = vmatpush.bf16.msra.mxu2 %v7951_v41 }
 0x1a4   : > { %v9453_v39 = vld [vmem:[%s10390_s11 + $0xeec] sm:$0xf0]  ;;  %v8702_v42 = vld [vmem:[%s10390_s11 + $0xfe0] sm:$0xf]  ;;  %v8447_v46 = vor.u32 %v9421_v37, %v8446_v35  ;;  %5690 = vmatpush.bf16.msra.mxu3 %v8079_v44  ;;  %5652 = vmatmul.bf16.vlgmr.msra.gmra.mxu0 %v10644_v56 }
 0x1a5   : > { %v9485_v43 = vld [vmem:[%s10390_s11 + $0xfec] sm:$0xf0]  ;;  %v8575_v47 = vor.u32 %v9453_v39, %v8574_v38  ;;  %v8302_v49 = vld [vmem:[%s10390_s11 + $0xcc0] sm:$0xf]  ;;  %5696 = vmatpush.bf16.msrb.mxu0 %v8319_v45  ;;  %5665 = vmatmul.bf16.vlgmr.msra.gmra.mxu1 %v10655_v63 }
 0x1a6   : > { %v9385_v52 = vld [vmem:[%s10390_s11 + $0xccc] sm:$0xf0]  ;;  %v8430_v53 = vld [vmem:[%s10390_s11 + $0xdc0] sm:$0xf]  ;;  %v8703_v55 = vor.u32 %v9485_v43, %v8702_v42  ;;  %5709 = vmatpush.bf16.msrb.mxu1 %v8447_v46  ;;  %5678 = vmatmul.bf16.vlgmr.msra.gmra.mxu2 %v10651_v62 }
 0x1a7   : > { %v9417_v57 = vld [vmem:[%s10390_s11 + $0xdcc] sm:$0xf0]  ;;  %v8558_v60 = vld [vmem:[%s10390_s11 + $0xec0] sm:$0xf]  ;;  %v8303_v4 = vor.u32 %v9385_v52, %v8302_v49  ;;  %5722 = vmatpush.bf16.msrb.mxu2 %v8575_v47  ;;  %5691 = vmatmul.bf16.vlgmr.msra.gmra.mxu3 %v10661_v3 }
 0x1a8   : > { %v9449_v61 = vld [vmem:[%s10390_s11 + $0xecc] sm:$0xf0]  ;;  %v8686_v2 = vld [vmem:[%s10390_s11 + $0xfc0] sm:$0xf]  ;;  %v8431_v50 = vor.u32 %v9417_v57, %v8430_v53  ;;  %5735 = vmatpush.bf16.msrb.mxu3 %v8703_v55 }
 0x1a9   : > { %v9481_v48 = vld [vmem:[%s10390_s11 + $0xfcc] sm:$0xf0]  ;;  %v8559_v5 = vor.u32 %v9449_v61, %v8558_v60  ;;  %v8286_v51 = vld [vmem:[%s10390_s11 + $0xca0] sm:$0xf]  ;;  %5697 = vmatpush.bf16.msrb.mxu0 %v8303_v4 }
 0x1aa   : > { %v9381_v7 = vld [vmem:[%s10390_s11 + $0xcac] sm:$0xf0]  ;;  %v8414_v8 = vld [vmem:[%s10390_s11 + $0xda0] sm:$0xf]  ;;  %v8687_v11 = vor.u32 %v9481_v48, %v8686_v2  ;;  %5710 = vmatpush.bf16.msrb.mxu1 %v8431_v50 }
 0x1ab   : > { %v9413_v13 = vld [vmem:[%s10390_s11 + $0xdac] sm:$0xf0]  ;;  %v8542_v54 = vld [vmem:[%s10390_s11 + $0xea0] sm:$0xf]  ;;  %v8287_v17 = vor.u32 %v9381_v7, %v8286_v51  ;;  %5723 = vmatpush.bf16.msrb.mxu2 %v8559_v5 }
 0x1ac   : > { %v9445_v14 = vld [vmem:[%s10390_s11 + $0xeac] sm:$0xf0]  ;;  %v8670_v15 = vld [vmem:[%s10390_s11 + $0xfa0] sm:$0xf]  ;;  %v8415_v18 = vor.u32 %v9413_v13, %v8414_v8  ;;  %5736 = vmatpush.bf16.msrb.mxu3 %v8687_v11 }
 0x1ad   : > { %v9477_v16 = vld [vmem:[%s10390_s11 + $0xfac] sm:$0xf0]  ;;  %v8543_v19 = vor.u32 %v9445_v14, %v8542_v54  ;;  %v8270_v20 = vld [vmem:[%s10390_s11 + $0xc80] sm:$0xf]  ;;  %5698 = vmatpush.bf16.msrb.mxu0 %v8287_v17 }
 0x1ae   : > { %v9377_v21 = vld [vmem:[%s10390_s11 + $0xc8c] sm:$0xf0]  ;;  %v8398_v22 = vld [vmem:[%s10390_s11 + $0xd80] sm:$0xf]  ;;  %v8671_v23 = vor.u32 %v9477_v16, %v8670_v15  ;;  %5711 = vmatpush.bf16.msrb.mxu1 %v8415_v18 }
 0x1af   : > { %v9409_v24 = vld [vmem:[%s10390_s11 + $0xd8c] sm:$0xf0]  ;;  %v8526_v25 = vld [vmem:[%s10390_s11 + $0xe80] sm:$0xf]  ;;  %v8271_v29 = vor.u32 %v9377_v21, %v8270_v20  ;;  %5724 = vmatpush.bf16.msrb.mxu2 %v8543_v19 }
 0x1b0   : > { %v9441_v26 = vld [vmem:[%s10390_s11 + $0xe8c] sm:$0xf0]  ;;  %v8654_v27 = vld [vmem:[%s10390_s11 + $0xf80] sm:$0xf]  ;;  %v8399_v30 = vor.u32 %v9409_v24, %v8398_v22  ;;  %5737 = vmatpush.bf16.msrb.mxu3 %v8671_v23 }
 0x1b1   : > { %v9473_v28 = vld [vmem:[%s10390_s11 + $0xf8c] sm:$0xf0]  ;;  %v8527_v31 = vor.u32 %v9441_v26, %v8526_v25  ;;  %v8254_v32 = vld [vmem:[%s10390_s11 + $0xc60] sm:$0xf]  ;;  %5699 = vmatpush.bf16.msrb.mxu0 %v8271_v29  ;;  %v9003_v29 = vld [vmem:[%s10390_s11 + $0xe4] sm:$0xf] }
 0x1b2   : > { %v9373_v33 = vld [vmem:[%s10390_s11 + $0xc6c] sm:$0xf0]  ;;  %v8382_v34 = vld [vmem:[%s10390_s11 + $0xd60] sm:$0xf]  ;;  %v8655_v35 = vor.u32 %v9473_v28, %v8654_v27  ;;  %5712 = vmatpush.bf16.msrb.mxu1 %v8399_v30 }
 0x1b3   : > { %v9405_v36 = vld [vmem:[%s10390_s11 + $0xd6c] sm:$0xf0]  ;;  %v8510_v37 = vld [vmem:[%s10390_s11 + $0xe60] sm:$0xf]  ;;  %v8255_v41 = vor.u32 %v9373_v33, %v8254_v32  ;;  %5725 = vmatpush.bf16.msrb.mxu2 %v8527_v31  ;;  %v6784_v31 = vld [vmem:[%s10390_s11 + $0xf0] sm:$0xf0] }
 0x1b4   : > { %v9437_v38 = vld [vmem:[%s10390_s11 + $0xe6c] sm:$0xf0]  ;;  %v8638_v39 = vld [vmem:[%s10390_s11 + $0xf60] sm:$0xf]  ;;  %v8383_v42 = vor.u32 %v9405_v36, %v8382_v34  ;;  %5738 = vmatpush.bf16.msrb.mxu3 %v8655_v35  ;;  %v9035_v32 = vld [vmem:[%s10390_s11 + $0x1e4] sm:$0xf] }
 0x1b5   : > { %v9469_v40 = vld [vmem:[%s10390_s11 + $0xf6c] sm:$0xf0]  ;;  %v8511_v43 = vor.u32 %v9437_v38, %v8510_v37  ;;  %v8238_v44 = vld [vmem:[%s10390_s11 + $0xc40] sm:$0xf]  ;;  %5700 = vmatpush.bf16.msrb.mxu0 %v8255_v41  ;;  %v6912_v33 = vld [vmem:[%s10390_s11 + $0x1f0] sm:$0xf0] }
 0x1b6   : > { %v9369_v45 = vld [vmem:[%s10390_s11 + $0xc4c] sm:$0xf0]  ;;  %v8366_v46 = vld [vmem:[%s10390_s11 + $0xd40] sm:$0xf]  ;;  %v8639_v47 = vor.u32 %v9469_v40, %v8638_v39  ;;  %5713 = vmatpush.bf16.msrb.mxu1 %v8383_v42 }
 0x1b7   : > { %v9401_v49 = vld [vmem:[%s10390_s11 + $0xd4c] sm:$0xf0]  ;;  %v8494_v52 = vld [vmem:[%s10390_s11 + $0xe40] sm:$0xf]  ;;  %v8239_v60 = vor.u32 %v9369_v45, %v8238_v44  ;;  %5726 = vmatpush.bf16.msrb.mxu2 %v8511_v43  ;;  %v6787_v43 = vor.u32 %v9003_v29, %v6784_v31 }
 0x1b8   : > { %v9433_v53 = vld [vmem:[%s10390_s11 + $0xe4c] sm:$0xf0]  ;;  %v8622_v55 = vld [vmem:[%s10390_s11 + $0xf40] sm:$0xf]  ;;  %v8367_v61 = vor.u32 %v9401_v49, %v8366_v46  ;;  %5739 = vmatpush.bf16.msrb.mxu3 %v8639_v47  ;;  %v6915_v47 = vor.u32 %v9035_v32, %v6912_v33 }
 0x1b9   : > { %v9465_v57 = vld [vmem:[%s10390_s11 + $0xf4c] sm:$0xf0]  ;;  %v8495_v2 = vor.u32 %v9433_v53, %v8494_v52  ;;  %v8222_v48 = vld [vmem:[%s10390_s11 + $0xc20] sm:$0xf]  ;;  %5701 = vmatpush.bf16.msrb.mxu0 %v8239_v60  ;;  %v8999_v53 = vld [vmem:[%s10390_s11 + $0xc4] sm:$0xf] }
 0x1ba   : > { %v9365_v4 = vld [vmem:[%s10390_s11 + $0xc2c] sm:$0xf0]  ;;  %v8350_v50 = vld [vmem:[%s10390_s11 + $0xd20] sm:$0xf]  ;;  %v8623_v5 = vor.u32 %v9465_v57, %v8622_v55  ;;  %5714 = vmatpush.bf16.msrb.mxu1 %v8367_v61  ;;  %v6768_v55 = vld [vmem:[%s10390_s11 + $0xd0] sm:$0xf0] }
 0x1bb   : > { %v9397_v51 = vld [vmem:[%s10390_s11 + $0xd2c] sm:$0xf0]  ;;  %v8478_v7 = vld [vmem:[%s10390_s11 + $0xe20] sm:$0xf]  ;;  %v8223_v14 = vor.u32 %v9365_v4, %v8222_v48  ;;  %5727 = vmatpush.bf16.msrb.mxu2 %v8495_v2  ;;  %v9031_v61 = vld [vmem:[%s10390_s11 + $0x1c4] sm:$0xf] }
 0x1bc   : > { %v9429_v8 = vld [vmem:[%s10390_s11 + $0xe2c] sm:$0xf0]  ;;  %v8606_v11 = vld [vmem:[%s10390_s11 + $0xf20] sm:$0xf]  ;;  %v8351_v18 = vor.u32 %v9397_v51, %v8350_v50  ;;  %5740 = vmatpush.bf16.msrb.mxu3 %v8623_v5  ;;  %v6896_v2 = vld [vmem:[%s10390_s11 + $0x1d0] sm:$0xf0]  ;;  %v6771_v5 = vor.u32 %v8999_v53, %v6768_v55 }
 0x1bd   : > { %v9461_v13 = vld [vmem:[%s10390_s11 + $0xf2c] sm:$0xf0]  ;;  %v8206_v54 = vld [vmem:[%s10390_s11 + $0xc00] sm:$0xf]  ;;  %v8479_v19 = vor.u32 %v9429_v8, %v8478_v7  ;;  %5702 = vmatpush.bf16.msrb.mxu0 %v8223_v14  ;;  %v6752_v14 = vld [vmem:[%s10390_s11 + $0xb0] sm:$0xf0] }
 0x1be   : > { %v9361_v15 = vld [vmem:[%s10390_s11 + $0xc0c] sm:$0xf0]  ;;  %v8334_v16 = vld [vmem:[%s10390_s11 + $0xd00] sm:$0xf]  ;;  %v8607_v23 = vor.u32 %v9461_v13, %v8606_v11  ;;  %5715 = vmatpush.bf16.msrb.mxu1 %v8351_v18  ;;  %v6899_v11 = vor.u32 %v9031_v61, %v6896_v2  ;;  %v8983_v53 = vld [vmem:[%s10390_s11 + $0x44] sm:$0xf] }
 0x1bf   : > { %v9393_v17 = vld [vmem:[%s10390_s11 + $0xd0c] sm:$0xf0]  ;;  %v8462_v20 = vld [vmem:[%s10390_s11 + $0xe00] sm:$0xf]  ;;  %v8207_v30 = vor.u32 %v9361_v15, %v8206_v54  ;;  %5728 = vmatpush.bf16.msrb.mxu2 %v8479_v19  ;;  %v8995_v54 = vld [vmem:[%s10390_s11 + $0xa4] sm:$0xf] }
 0x1c0   : > { %v9425_v21 = vld [vmem:[%s10390_s11 + $0xe0c] sm:$0xf0]  ;;  %v8590_v22 = vld [vmem:[%s10390_s11 + $0xf00] sm:$0xf]  ;;  %v8335_v34 = vor.u32 %v9393_v17, %v8334_v16  ;;  %5741 = vmatpush.bf16.msrb.mxu3 %v8607_v23  ;;  %v9027_v15 = vld [vmem:[%s10390_s11 + $0x1a4] sm:$0xf]  ;;  %v6755_v19 = vor.u32 %v8995_v54, %v6752_v14 }
 0x1c1   : > { %v9457_v24 = vld [vmem:[%s10390_s11 + $0xf0c] sm:$0xf0]  ;;  %v8830_v25 = vld [vmem:[%s10390_s11 + $0x10e0] sm:$0xf]  ;;  %v8463_v35 = vor.u32 %v9425_v21, %v8462_v20  ;;  %5703 = vmatpush.bf16.msrb.mxu0 %v8207_v30  ;;  %v6880_v16 = vld [vmem:[%s10390_s11 + $0x1b0] sm:$0xf0] }
 0x1c2   : > { %v9517_v26 = vld [vmem:[%s10390_s11 + $0x10ec] sm:$0xf0]  ;;  %v8958_v27 = vld [vmem:[%s10390_s11 + $0x11e0] sm:$0xf]  ;;  %v8591_v38 = vor.u32 %v9457_v24, %v8590_v22  ;;  %5716 = vmatpush.bf16.msrb.mxu1 %v8335_v34  ;;  %v6883_v23 = vor.u32 %v9027_v15, %v6880_v16  ;;  %v6704_v55 = vld [vmem:[%s10390_s11 + $0x50] sm:$0xf0] }
 0x1c3   : > { %v9549_v28 = vld [vmem:[%s10390_s11 + $0x11ec] sm:$0xf0]  ;;  %v2041_v36 = vld.sshfl [vmem:[#allocation1 + $0x20] sm:$0xff pattern:$0x73625140]  ;;  %v8831_v39 = vor.u32 %v9517_v26, %v8830_v25  ;;  %5729 = vmatpush.bf16.msrb.mxu2 %v8463_v35 }
 0x1c4   : > { %v2043_v37 = vld.sshfl [vmem:[#allocation1 + $0x30] sm:$0xff pattern:$0x73625140]  ;;  %v2042_v40 = vld.sshfl [vmem:[#allocation1 + $0x28] sm:$0xff pattern:$0x73625140]  ;;  %v8959_v42 = vor.u32 %v9549_v28, %v8958_v27  ;;  %v10726_v49 = vpack.c.bf16 %v2041_v36, %v2041_v36  ;;  %5742 = vmatpush.bf16.msrb.mxu3 %v8591_v38 }
 0x1c5   : > { %v2044_v41 = vld.sshfl [vmem:[#allocation1 + $0x38] sm:$0xff pattern:$0x73625140]  ;;  %v8814_v44 = vld [vmem:[%s10390_s11 + $0x10c0] sm:$0xf]  ;;  %v10731_v57 = vpack.c.bf16 %v2043_v37, %v2043_v37  ;;  %v10733_v60 = vpack.c.bf16 %v2042_v40, %v2042_v40  ;;  %5748 = vmatpush.bf16.msra.mxu0 %v8831_v39 }
 0x1c6   : > { %v9513_v45 = vld [vmem:[%s10390_s11 + $0x10cc] sm:$0xf0]  ;;  %v8942_v46 = vld [vmem:[%s10390_s11 + $0x11c0] sm:$0xf]  ;;  %v10737_v48 = vpack.c.bf16 %v2044_v41, %v2044_v41  ;;  %5761 = vmatpush.bf16.msra.mxu1 %v8959_v42  ;;  %5704 = vmatmul.bf16.vlgmr.msrb.gmra.mxu0 %v10726_v49  ;;  %v8991_v25 = vld [vmem:[%s10390_s11 + $0x84] sm:$0xf] }
 0x1c7   : > { %v9545_v52 = vld [vmem:[%s10390_s11 + $0x11cc] sm:$0xf0]  ;;  %v8815_v4 = vor.u32 %v9513_v45, %v8814_v44  ;;  %5774 = vmatpush.bf16.msra.mxu2 %v6787_v43  ;;  %v8798_v51 = vld [vmem:[%s10390_s11 + $0x10a0] sm:$0xf]  ;;  %5717 = vmatmul.bf16.vlgmr.msrb.gmra.mxu1 %v10733_v60  ;;  %v6736_v26 = vld [vmem:[%s10390_s11 + $0x90] sm:$0xf0] }
 0x1c8   : > { %v8943_v50 = vor.u32 %v9545_v52, %v8942_v46  ;;  %v9509_v7 = vld [vmem:[%s10390_s11 + $0x10ac] sm:$0xf0]  ;;  %v8926_v8 = vld [vmem:[%s10390_s11 + $0x11a0] sm:$0xf]  ;;  %5787 = vmatpush.bf16.msra.mxu3 %v6915_v47  ;;  %5730 = vmatmul.bf16.vlgmr.msrb.gmra.mxu2 %v10731_v57  ;;  %v9023_v27 = vld [vmem:[%s10390_s11 + $0x184] sm:$0xf]  ;;  %v6739_v31 = vor.u32 %v8991_v25, %v6736_v26 }
 0x1c9   : > { %v9541_v13 = vld [vmem:[%s10390_s11 + $0x11ac] sm:$0xf0]  ;;  %5743 = vmatmul.bf16.vlgmr.msrb.gmra.mxu3 %v10737_v48  ;;  %5749 = vmatpush.bf16.msra.mxu0 %v8815_v4  ;;  %v8799_v17 = vor.u32 %v9509_v7, %v8798_v51  ;;  %v8782_v20 = vld [vmem:[%s10390_s11 + $0x1080] sm:$0xf]  ;;  %v6864_v28 = vld [vmem:[%s10390_s11 + $0x190] sm:$0xf0] }
 0x1ca   : > { %5762 = vmatpush.bf16.msra.mxu1 %v8943_v50  ;;  %v8927_v18 = vor.u32 %v9541_v13, %v8926_v8  ;;  %v9505_v21 = vld [vmem:[%s10390_s11 + $0x108c] sm:$0xf0]  ;;  %v8910_v22 = vld [vmem:[%s10390_s11 + $0x1180] sm:$0xf]  ;;  %v6867_v35 = vor.u32 %v9023_v27, %v6864_v28  ;;  %v8987_v37 = vld [vmem:[%s10390_s11 + $0x64] sm:$0xf] }
 0x1cb   : > { %5775 = vmatpush.bf16.msra.mxu2 %v6771_v5  ;;  %v9537_v24 = vld [vmem:[%s10390_s11 + $0x118c] sm:$0xf0]  ;;  %v8783_v29 = vor.u32 %v9505_v21, %v8782_v20  ;;  %v8766_v32 = vld [vmem:[%s10390_s11 + $0x1060] sm:$0xf]  ;;  %v6720_v38 = vld [vmem:[%s10390_s11 + $0x70] sm:$0xf0]  ;;  %v6707_v5 = vor.u32 %v8983_v53, %v6704_v55 }
 0x1cc   : > { %5788 = vmatpush.bf16.msra.mxu3 %v6899_v11  ;;  %v8911_v30 = vor.u32 %v9537_v24, %v8910_v22  ;;  %v9501_v33 = vld [vmem:[%s10390_s11 + $0x106c] sm:$0xf0]  ;;  %v8894_v34 = vld [vmem:[%s10390_s11 + $0x1160] sm:$0xf]  ;;  %v9019_v39 = vld [vmem:[%s10390_s11 + $0x164] sm:$0xf]  ;;  %v6723_v43 = vor.u32 %v8987_v37, %v6720_v38 }
 0x1cd   : > { %5750 = vmatpush.bf16.msra.mxu0 %v8799_v17  ;;  %v9533_v36 = vld [vmem:[%s10390_s11 + $0x116c] sm:$0xf0]  ;;  %v6848_v40 = vld [vmem:[%s10390_s11 + $0x170] sm:$0xf0]  ;;  %v8767_v41 = vor.u32 %v9501_v33, %v8766_v32  ;;  %v8750_v44 = vld [vmem:[%s10390_s11 + $0x1040] sm:$0xf] }
 0x1ce   : > { %5763 = vmatpush.bf16.msra.mxu1 %v8927_v18  ;;  %v8895_v42 = vor.u32 %v9533_v36, %v8894_v34  ;;  %v9497_v45 = vld [vmem:[%s10390_s11 + $0x104c] sm:$0xf0]  ;;  %v8878_v46 = vld [vmem:[%s10390_s11 + $0x1140] sm:$0xf]  ;;  %v6851_v47 = vor.u32 %v9019_v39, %v6848_v40  ;;  %v9015_v61 = vld [vmem:[%s10390_s11 + $0x144] sm:$0xf] }
 0x1cf   : > { %5776 = vmatpush.bf16.msra.mxu2 %v6755_v19  ;;  %v9529_v52 = vld [vmem:[%s10390_s11 + $0x114c] sm:$0xf0]  ;;  %v6832_v2 = vld [vmem:[%s10390_s11 + $0x150] sm:$0xf0]  ;;  %v8751_v4 = vor.u32 %v9497_v45, %v8750_v44  ;;  %v8734_v51 = vld [vmem:[%s10390_s11 + $0x1020] sm:$0xf] }
 0x1d0   : > { %5789 = vmatpush.bf16.msra.mxu3 %v6883_v23  ;;  %v8879_v50 = vor.u32 %v9529_v52, %v8878_v46  ;;  %v9493_v7 = vld [vmem:[%s10390_s11 + $0x102c] sm:$0xf0]  ;;  %v8862_v8 = vld [vmem:[%s10390_s11 + $0x1120] sm:$0xf]  ;;  %v6835_v11 = vor.u32 %v9015_v61, %v6832_v2  ;;  %v8979_v54 = vld [vmem:[%s10390_s11 + $0x24] sm:$0xf] }
 0x1d1   : > { %5751 = vmatpush.bf16.msra.mxu0 %v8783_v29  ;;  %v9525_v13 = vld [vmem:[%s10390_s11 + $0x112c] sm:$0xf0]  ;;  %v6688_v14 = vld [vmem:[%s10390_s11 + $0x30] sm:$0xf0]  ;;  %v9011_v15 = vld [vmem:[%s10390_s11 + $0x124] sm:$0xf]  ;;  %v8735_v17 = vor.u32 %v9493_v7, %v8734_v51 }
 0x1d2   : > { %5764 = vmatpush.bf16.msra.mxu1 %v8911_v30  ;;  %v6816_v16 = vld [vmem:[%s10390_s11 + $0x130] sm:$0xf0]  ;;  %v8718_v18 = vld [vmem:[%s10390_s11 + $0x1000] sm:$0xf]  ;;  %v9489_v19 = vld [vmem:[%s10390_s11 + $0x100c] sm:$0xf0]  ;;  %v8863_v21 = vor.u32 %v9525_v13, %v8862_v8  ;;  %v6691_v22 = vor.u32 %v8979_v54, %v6688_v14 }
 0x1d3   : > { %5777 = vmatpush.bf16.msra.mxu2 %v6739_v31  ;;  %v8846_v20 = vld [vmem:[%s10390_s11 + $0x1100] sm:$0xf]  ;;  %v9521_v23 = vld [vmem:[%s10390_s11 + $0x110c] sm:$0xf0]  ;;  %v8975_v24 = vld [vmem:[%s10390_s11 + $0x4] sm:$0xf]  ;;  %v6819_v26 = vor.u32 %v9011_v15, %v6816_v16  ;;  %v8719_v33 = vor.u32 %v9489_v19, %v8718_v18 }
 0x1d4   : > { %5790 = vmatpush.bf16.msra.mxu3 %v6867_v35  ;;  %v6672_v25 = vld [vmem:[%s10390_s11 + $0x10] sm:$0xf0]  ;;  %v9007_v27 = vld [vmem:[%s10390_s11 + $0x104] sm:$0xf]  ;;  %v8847_v37 = vor.u32 %v9521_v23, %v8846_v20 }
 0x1d5   : > { %5752 = vmatpush.bf16.msra.mxu0 %v8767_v41  ;;  %v6800_v28 = vld [vmem:[%s10390_s11 + $0x110] sm:$0xf0]  ;;  %v9067_v29 = vld [vmem:[%s10390_s11 + $0x2e4] sm:$0xf]  ;;  %v6675_v38 = vor.u32 %v8975_v24, %v6672_v25 }
 0x1d6   : > { %5765 = vmatpush.bf16.msra.mxu1 %v8895_v42  ;;  %v7040_v30 = vld [vmem:[%s10390_s11 + $0x2f0] sm:$0xf0]  ;;  %v9099_v31 = vld [vmem:[%s10390_s11 + $0x3e4] sm:$0xf]  ;;  %v6803_v41 = vor.u32 %v9007_v27, %v6800_v28 }
 0x1d7   : > { %5778 = vmatpush.bf16.msra.mxu2 %v6723_v43  ;;  %v7168_v32 = vld [vmem:[%s10390_s11 + $0x3f0] sm:$0xf0]  ;;  %v9131_v34 = vld [vmem:[%s10390_s11 + $0x4e4] sm:$0xf]  ;;  %v7043_v42 = vor.u32 %v9067_v29, %v7040_v30 }
 0x1d8   : > { %5791 = vmatpush.bf16.msra.mxu3 %v6851_v47  ;;  %v7296_v35 = vld [vmem:[%s10390_s11 + $0x4f0] sm:$0xf0]  ;;  %v9163_v36 = vld [vmem:[%s10390_s11 + $0x5e4] sm:$0xf]  ;;  %v7171_v44 = vor.u32 %v9099_v31, %v7168_v32 }
 0x1d9   : > { %5753 = vmatpush.bf16.msra.mxu0 %v8751_v4  ;;  %v7424_v39 = vld [vmem:[%s10390_s11 + $0x5f0] sm:$0xf0]  ;;  %v2046_v40 = vld.sshfl [vmem:[#allocation1] sm:$0xff pattern:$0x73625140]  ;;  %v7299_v45 = vor.u32 %v9131_v34, %v7296_v35 }
 0x1da   : > { %5766 = vmatpush.bf16.msra.mxu1 %v8879_v50  ;;  %v2047_v43 = vld.sshfl [vmem:[#allocation1 + $0x8] sm:$0xff pattern:$0x73625140]  ;;  %v7024_v47 = vld [vmem:[%s10390_s11 + $0x2d0] sm:$0xf0]  ;;  %v7427_v53 = vor.u32 %v9163_v36, %v7424_v39  ;;  %v10802_v55 = vpack.c.bf16 %v2046_v40, %v2046_v40 }
 0x1db   : > { %5779 = vmatpush.bf16.msra.mxu2 %v6707_v5  ;;  %v9063_v46 = vld [vmem:[%s10390_s11 + $0x2c4] sm:$0xf]  ;;  %v7152_v61 = vld [vmem:[%s10390_s11 + $0x3d0] sm:$0xf0]  ;;  %v10807_v50 = vpack.c.bf16 %v2047_v43, %v2047_v43 }
 0x1dc   : > { %5792 = vmatpush.bf16.msra.mxu3 %v6835_v11  ;;  %v9095_v52 = vld [vmem:[%s10390_s11 + $0x3c4] sm:$0xf]  ;;  %v7280_v4 = vld [vmem:[%s10390_s11 + $0x4d0] sm:$0xf0]  ;;  %v7027_v7 = vor.u32 %v9063_v46, %v7024_v47 }
 0x1dd   : > { %5754 = vmatpush.bf16.msra.mxu0 %v8735_v17  ;;  %v9127_v2 = vld [vmem:[%s10390_s11 + $0x4c4] sm:$0xf]  ;;  %v7408_v51 = vld [vmem:[%s10390_s11 + $0x5d0] sm:$0xf0]  ;;  %v7155_v8 = vor.u32 %v9095_v52, %v7152_v61 }
 0x1de   : > { %5767 = vmatpush.bf16.msra.mxu1 %v8863_v21  ;;  %v9159_v5 = vld [vmem:[%s10390_s11 + $0x5c4] sm:$0xf]  ;;  %v7283_v11 = vor.u32 %v9127_v2, %v7280_v4  ;;  %v7008_v54 = vld [vmem:[%s10390_s11 + $0x2b0] sm:$0xf0] }
 0x1df   : > { %5780 = vmatpush.bf16.msra.mxu2 %v6691_v22  ;;  %v9059_v13 = vld [vmem:[%s10390_s11 + $0x2a4] sm:$0xf]  ;;  %v7411_v15 = vor.u32 %v9159_v5, %v7408_v51  ;;  %v7136_v16 = vld [vmem:[%s10390_s11 + $0x3b0] sm:$0xf0] }
 0x1e0   : > { %5793 = vmatpush.bf16.msra.mxu3 %v6819_v26  ;;  %v9091_v14 = vld [vmem:[%s10390_s11 + $0x3a4] sm:$0xf]  ;;  %v7264_v18 = vld [vmem:[%s10390_s11 + $0x4b0] sm:$0xf0]  ;;  %v7011_v21 = vor.u32 %v9059_v13, %v7008_v54 }
 0x1e1   : > { %5755 = vmatpush.bf16.msra.mxu0 %v8719_v33  ;;  %v9123_v17 = vld [vmem:[%s10390_s11 + $0x4a4] sm:$0xf]  ;;  %v7392_v20 = vld [vmem:[%s10390_s11 + $0x5b0] sm:$0xf0]  ;;  %v7139_v22 = vor.u32 %v9091_v14, %v7136_v16 }
 0x1e2   : > { %5768 = vmatpush.bf16.msra.mxu1 %v8847_v37  ;;  %v9155_v19 = vld [vmem:[%s10390_s11 + $0x5a4] sm:$0xf]  ;;  %v7267_v23 = vor.u32 %v9123_v17, %v7264_v18  ;;  %v6992_v25 = vld [vmem:[%s10390_s11 + $0x290] sm:$0xf0] }
 0x1e3   : > { %5781 = vmatpush.bf16.msra.mxu2 %v6675_v38  ;;  %v9055_v24 = vld [vmem:[%s10390_s11 + $0x284] sm:$0xf]  ;;  %v7395_v27 = vor.u32 %v9155_v19, %v7392_v20  ;;  %v7120_v28 = vld [vmem:[%s10390_s11 + $0x390] sm:$0xf0] }
 0x1e4   : > { %5794 = vmatpush.bf16.msra.mxu3 %v6803_v41  ;;  %5756 = vmatmul.bf16.vlgmr.msra.gmra.mxu0 %v10802_v55  ;;  %v9087_v26 = vld [vmem:[%s10390_s11 + $0x384] sm:$0xf]  ;;  %v7248_v30 = vld [vmem:[%s10390_s11 + $0x490] sm:$0xf0]  ;;  %v6995_v33 = vor.u32 %v9055_v24, %v6992_v25 }
 0x1e5   : > { %5800 = vmatpush.bf16.msrb.mxu0 %v7043_v42  ;;  %5769 = vmatmul.bf16.vlgmr.msra.gmra.mxu1 %v10807_v50  ;;  %v9119_v29 = vld [vmem:[%s10390_s11 + $0x484] sm:$0xf]  ;;  %v7376_v32 = vld [vmem:[%s10390_s11 + $0x590] sm:$0xf0]  ;;  %v7123_v34 = vor.u32 %v9087_v26, %v7120_v28 }
 0x1e6   : > { %5813 = vmatpush.bf16.msrb.mxu1 %v7171_v44  ;;  %5782 = vmatmul.bf16.vlgmr.msra.gmra.mxu2 %v10502_v59  ;;  %v9151_v31 = vld [vmem:[%s10390_s11 + $0x584] sm:$0xf]  ;;  %v7251_v35 = vor.u32 %v9119_v29, %v7248_v30  ;;  %v6976_v37 = vld [vmem:[%s10390_s11 + $0x270] sm:$0xf0] }
 0x1e7   : > { %5826 = vmatpush.bf16.msrb.mxu2 %v7299_v45  ;;  %5795 = vmatmul.bf16.vlgmr.msra.gmra.mxu3 %v10508_v1  ;;  %v9051_v36 = vld [vmem:[%s10390_s11 + $0x264] sm:$0xf]  ;;  %v7379_v39 = vor.u32 %v9151_v31, %v7376_v32  ;;  %v7104_v40 = vld [vmem:[%s10390_s11 + $0x370] sm:$0xf0] }
 0x1e8   : > { %5839 = vmatpush.bf16.msrb.mxu3 %v7427_v53  ;;  %v9083_v38 = vld [vmem:[%s10390_s11 + $0x364] sm:$0xf]  ;;  %v7232_v42 = vld [vmem:[%s10390_s11 + $0x470] sm:$0xf0]  ;;  %v6979_v45 = vor.u32 %v9051_v36, %v6976_v37 }
 0x1e9   : > { %5801 = vmatpush.bf16.msrb.mxu0 %v7027_v7  ;;  %v9115_v41 = vld [vmem:[%s10390_s11 + $0x464] sm:$0xf]  ;;  %v7360_v44 = vld [vmem:[%s10390_s11 + $0x570] sm:$0xf0]  ;;  %v7107_v46 = vor.u32 %v9083_v38, %v7104_v40 }
 0x1ea   : > { %5814 = vmatpush.bf16.msrb.mxu1 %v7155_v8  ;;  %v9147_v43 = vld [vmem:[%s10390_s11 + $0x564] sm:$0xf]  ;;  %v7235_v47 = vor.u32 %v9115_v41, %v7232_v42  ;;  %v6960_v53 = vld [vmem:[%s10390_s11 + $0x250] sm:$0xf0] }
 0x1eb   : > { %5827 = vmatpush.bf16.msrb.mxu2 %v7283_v11  ;;  %v9047_v52 = vld [vmem:[%s10390_s11 + $0x244] sm:$0xf]  ;;  %v7363_v2 = vor.u32 %v9147_v43, %v7360_v44  ;;  %v7088_v4 = vld [vmem:[%s10390_s11 + $0x350] sm:$0xf0] }
 0x1ec   : > { %5840 = vmatpush.bf16.msrb.mxu3 %v7411_v15  ;;  %v9079_v61 = vld [vmem:[%s10390_s11 + $0x344] sm:$0xf]  ;;  %v7216_v51 = vld [vmem:[%s10390_s11 + $0x450] sm:$0xf0]  ;;  %v6963_v11 = vor.u32 %v9047_v52, %v6960_v53 }
 0x1ed   : > { %5802 = vmatpush.bf16.msrb.mxu0 %v7011_v21  ;;  %v9111_v5 = vld [vmem:[%s10390_s11 + $0x444] sm:$0xf]  ;;  %v7344_v8 = vld [vmem:[%s10390_s11 + $0x550] sm:$0xf0]  ;;  %v7091_v13 = vor.u32 %v9079_v61, %v7088_v4 }
 0x1ee   : > { %5815 = vmatpush.bf16.msrb.mxu1 %v7139_v22  ;;  %v9143_v7 = vld [vmem:[%s10390_s11 + $0x544] sm:$0xf]  ;;  %v7219_v54 = vor.u32 %v9111_v5, %v7216_v51  ;;  %v6944_v15 = vld [vmem:[%s10390_s11 + $0x230] sm:$0xf0] }
 0x1ef   : > { %5828 = vmatpush.bf16.msrb.mxu2 %v7267_v23  ;;  %v9043_v14 = vld [vmem:[%s10390_s11 + $0x224] sm:$0xf]  ;;  %v7347_v17 = vor.u32 %v9143_v7, %v7344_v8  ;;  %v7072_v18 = vld [vmem:[%s10390_s11 + $0x330] sm:$0xf0]  ;;  %v5549_v23 = vpop.f32.mrf.mxu0 }
 0x1f0   : > { %5841 = vmatpush.bf16.msrb.mxu3 %v7395_v27  ;;  %v9075_v16 = vld [vmem:[%s10390_s11 + $0x324] sm:$0xf]  ;;  %v7200_v20 = vld [vmem:[%s10390_s11 + $0x430] sm:$0xf0]  ;;  %v6947_v24 = vor.u32 %v9043_v14, %v6944_v15  ;;  %v5562_v27 = vpop.f32.mrf.mxu1 }
 0x1f1   : > { %5803 = vmatpush.bf16.msrb.mxu0 %v6995_v33  ;;  %v9107_v19 = vld [vmem:[%s10390_s11 + $0x424] sm:$0xf]  ;;  %v7328_v22 = vld [vmem:[%s10390_s11 + $0x530] sm:$0xf0]  ;;  %v7075_v28 = vor.u32 %v9075_v16, %v7072_v18  ;;  %v5563_v33 = vadd.f32 %v5562_v27, %v5549_v23 }
 0x1f2   : > { %5816 = vmatpush.bf16.msrb.mxu1 %v7123_v34  ;;  %v9139_v21 = vld [vmem:[%s10390_s11 + $0x524] sm:$0xf]  ;;  %v6928_v26 = vld [vmem:[%s10390_s11 + $0x210] sm:$0xf0]  ;;  %v7203_v29 = vor.u32 %v9107_v19, %v7200_v20 }
 0x1f3   : > { %5829 = vmatpush.bf16.msrb.mxu2 %v7251_v35  ;;  %v9039_v25 = vld [vmem:[%s10390_s11 + $0x204] sm:$0xf]  ;;  %v7056_v31 = vld [vmem:[%s10390_s11 + $0x310] sm:$0xf0]  ;;  %v7331_v34 = vor.u32 %v9139_v21, %v7328_v22 }
 0x1f4   : > { %5842 = vmatpush.bf16.msrb.mxu3 %v7379_v39  ;;  %v9071_v30 = vld [vmem:[%s10390_s11 + $0x304] sm:$0xf]  ;;  %v7184_v35 = vld [vmem:[%s10390_s11 + $0x410] sm:$0xf0]  ;;  %v5575_v41 = vpop.f32.mrf.mxu2  ;;  %v6931_v42 = vor.u32 %v9039_v25, %v6928_v26 }
 0x1f5   : > { %5804 = vmatpush.bf16.msrb.mxu0 %v6979_v45  ;;  %v9103_v32 = vld [vmem:[%s10390_s11 + $0x404] sm:$0xf]  ;;  %v7312_v37 = vld [vmem:[%s10390_s11 + $0x510] sm:$0xf0]  ;;  %v5588_v5 = vpop.f32.mrf.mxu3 }
 0x1f6   : > { %5817 = vmatpush.bf16.msrb.mxu1 %v7107_v46  ;;  %v9135_v36 = vld [vmem:[%s10390_s11 + $0x504] sm:$0xf]  ;;  %v7552_v39 = vld [vmem:[%s10390_s11 + $0x6f0] sm:$0xf0]  ;;  %v5576_v46 = vadd.f32 %v5575_v41, %v5563_v33  ;;  %v7187_v52 = vor.u32 %v9103_v32, %v7184_v35 }
 0x1f7   : > { %5830 = vmatpush.bf16.msrb.mxu2 %v7235_v47  ;;  %v9195_v38 = vld [vmem:[%s10390_s11 + $0x6e4] sm:$0xf]  ;;  %v7680_v43 = vld [vmem:[%s10390_s11 + $0x7f0] sm:$0xf0]  ;;  %v7059_v47 = vor.u32 %v9071_v30, %v7056_v31  ;;  %v5551_v14 = vpop.f32.mrf.mxu0 }
 0x1f8   : > { %5843 = vmatpush.bf16.msrb.mxu3 %v7363_v2  ;;  %v9227_v40 = vld [vmem:[%s10390_s11 + $0x7e4] sm:$0xf]  ;;  %v7808_v45 = vld [vmem:[%s10390_s11 + $0x8f0] sm:$0xf0]  ;;  %v7315_v2 = vor.u32 %v9135_v36, %v7312_v37  ;;  %v7555_v4 = vor.u32 %v9195_v38, %v7552_v39  ;;  %v5564_v19 = vpop.f32.mrf.mxu1 }
 0x1f9   : > { %5805 = vmatpush.bf16.msrb.mxu0 %v6963_v11  ;;  %v9259_v44 = vld [vmem:[%s10390_s11 + $0x8e4] sm:$0xf]  ;;  %v7936_v61 = vld [vmem:[%s10390_s11 + $0x9f0] sm:$0xf0]  ;;  %v7683_v51 = vor.u32 %v9227_v40, %v7680_v43 }
 0x1fa   : > { %5818 = vmatpush.bf16.msrb.mxu1 %v7091_v13  ;;  %v9291_v53 = vld [vmem:[%s10390_s11 + $0x9e4] sm:$0xf]  ;;  %v7811_v7 = vor.u32 %v9259_v44, %v7808_v45  ;;  %v7536_v11 = vld [vmem:[%s10390_s11 + $0x6d0] sm:$0xf0] }
 0x1fb   : > { %5831 = vmatpush.bf16.msrb.mxu2 %v7219_v54  ;;  %v9191_v8 = vld [vmem:[%s10390_s11 + $0x6c4] sm:$0xf]  ;;  %v5589_v54 = vadd.f32 %v5588_v5, %v5576_v46  ;;  %v7939_v15 = vor.u32 %v9291_v53, %v7936_v61  ;;  %v7664_v16 = vld [vmem:[%s10390_s11 + $0x7d0] sm:$0xf0] }
 0x1fc   : > { %5844 = vmatpush.bf16.msrb.mxu3 %v7347_v17  ;;  %v9223_v13 = vld [vmem:[%s10390_s11 + $0x7c4] sm:$0xf]  ;;  %v7792_v18 = vld [vmem:[%s10390_s11 + $0x8d0] sm:$0xf0]  ;;  %v7539_v22 = vor.u32 %v9191_v8, %v7536_v11 }
 0x1fd   : > { %5806 = vmatpush.bf16.msrb.mxu0 %v6947_v24  ;;  %v9255_v17 = vld [vmem:[%s10390_s11 + $0x8c4] sm:$0xf]  ;;  %v7920_v21 = vld [vmem:[%s10390_s11 + $0x9d0] sm:$0xf0]  ;;  %v7667_v23 = vor.u32 %v9223_v13, %v7664_v16  ;;  %v5590_v36 = vpop.f32.mrf.mxu3 }
 0x1fe   : > { %5819 = vmatpush.bf16.msrb.mxu1 %v7075_v28  ;;  %v9287_v20 = vld [vmem:[%s10390_s11 + $0x9c4] sm:$0xf]  ;;  %v7795_v24 = vor.u32 %v9255_v17, %v7792_v18  ;;  %v7520_v26 = vld [vmem:[%s10390_s11 + $0x6b0] sm:$0xf0]  ;;  %v5577_v28 = vpop.f32.mrf.mxu2 }
 0x1ff   : > { %5832 = vmatpush.bf16.msrb.mxu2 %v7203_v29  ;;  %v9187_v25 = vld [vmem:[%s10390_s11 + $0x6a4] sm:$0xf]  ;;  %v7923_v29 = vor.u32 %v9287_v20, %v7920_v21  ;;  %v7648_v30 = vld [vmem:[%s10390_s11 + $0x7b0] sm:$0xf0] }
 0x200   : > { %5845 = vmatpush.bf16.msrb.mxu3 %v7331_v34  ;;  %v9219_v27 = vld [vmem:[%s10390_s11 + $0x7a4] sm:$0xf]  ;;  %v7776_v32 = vld [vmem:[%s10390_s11 + $0x8b0] sm:$0xf0]  ;;  %v7523_v35 = vor.u32 %v9187_v25, %v7520_v26 }
 0x201   : > { %5807 = vmatpush.bf16.msrb.mxu0 %v6931_v42  ;;  %v9251_v31 = vld [vmem:[%s10390_s11 + $0x8a4] sm:$0xf]  ;;  %v7904_v34 = vld [vmem:[%s10390_s11 + $0x9b0] sm:$0xf0]  ;;  %v7651_v37 = vor.u32 %v9219_v27, %v7648_v30 }
 0x202   : > { %5820 = vmatpush.bf16.msrb.mxu1 %v7059_v47  ;;  %v9283_v33 = vld [vmem:[%s10390_s11 + $0x9a4] sm:$0xf]  ;;  %v7779_v38 = vor.u32 %v9251_v31, %v7776_v32  ;;  %v7504_v40 = vld [vmem:[%s10390_s11 + $0x690] sm:$0xf0] }
 0x203   : > { %5833 = vmatpush.bf16.msrb.mxu2 %v7187_v52  ;;  %v9183_v39 = vld [vmem:[%s10390_s11 + $0x684] sm:$0xf]  ;;  %v7907_v42 = vor.u32 %v9283_v33, %v7904_v34  ;;  %v7632_v43 = vld [vmem:[%s10390_s11 + $0x790] sm:$0xf0] }
 0x204   : > { %5846 = vmatpush.bf16.msrb.mxu3 %v7315_v2  ;;  %5808 = vmatmul.bf16.vlgmr.msrb.gmra.mxu0 %v10500_v58  ;;  %v9215_v41 = vld [vmem:[%s10390_s11 + $0x784] sm:$0xf]  ;;  %v7760_v45 = vld [vmem:[%s10390_s11 + $0x890] sm:$0xf0]  ;;  %v7507_v52 = vor.u32 %v9183_v39, %v7504_v40  ;;  %v5601_v53 = vpop.f32.mrf.mxu0 }
 0x205   : > { %5852 = vmatpush.bf16.msra.mxu0 %v7555_v4  ;;  %5821 = vmatmul.bf16.vlgmr.msrb.gmra.mxu1 %v10506_v0  ;;  %v9247_v44 = vld [vmem:[%s10390_s11 + $0x884] sm:$0xf]  ;;  %v7888_v47 = vld [vmem:[%s10390_s11 + $0x990] sm:$0xf0]  ;;  %v7635_v61 = vor.u32 %v9215_v41, %v7632_v43  ;;  %v5614_v8 = vpop.f32.mrf.mxu1 }
 0x206   : > { %5865 = vmatpush.bf16.msra.mxu1 %v7683_v51  ;;  %5834 = vmatmul.bf16.vlgmr.msrb.gmra.mxu2 %v10562_v9  ;;  %v9279_v46 = vld [vmem:[%s10390_s11 + $0x984] sm:$0xf]  ;;  %v7763_v2 = vor.u32 %v9247_v44, %v7760_v45  ;;  %v7488_v5 = vld [vmem:[%s10390_s11 + $0x670] sm:$0xf0] }
 0x207   : > { %5878 = vmatpush.bf16.msra.mxu2 %v7811_v7  ;;  %5847 = vmatmul.bf16.vlgmr.msrb.gmra.mxu3 %v10566_v12  ;;  %v9179_v4 = vld [vmem:[%s10390_s11 + $0x664] sm:$0xf]  ;;  %v5602_v7 = vadd.f32 %v5601_v53, %v5589_v54  ;;  %v7891_v11 = vor.u32 %v9279_v46, %v7888_v47  ;;  %v7616_v13 = vld [vmem:[%s10390_s11 + $0x770] sm:$0xf0] }
 0x208   : > { %5891 = vmatpush.bf16.msra.mxu3 %v7939_v15  ;;  %v9211_v51 = vld [vmem:[%s10390_s11 + $0x764] sm:$0xf]  ;;  %v7744_v15 = vld [vmem:[%s10390_s11 + $0x870] sm:$0xf0]  ;;  %v7491_v19 = vor.u32 %v9179_v4, %v7488_v5 }
 0x209   : > { %5853 = vmatpush.bf16.msra.mxu0 %v7539_v22  ;;  %v9243_v14 = vld [vmem:[%s10390_s11 + $0x864] sm:$0xf]  ;;  %v7872_v17 = vld [vmem:[%s10390_s11 + $0x970] sm:$0xf0]  ;;  %v5615_v18 = vadd.f32 %v5614_v8, %v5602_v7  ;;  %v7619_v54 = vor.u32 %v9211_v51, %v7616_v13 }
 0x20a   : > { %5866 = vmatpush.bf16.msra.mxu1 %v7667_v23  ;;  %v9275_v16 = vld [vmem:[%s10390_s11 + $0x964] sm:$0xf]  ;;  %v7747_v20 = vor.u32 %v9243_v14, %v7744_v15  ;;  %v7472_v22 = vld [vmem:[%s10390_s11 + $0x650] sm:$0xf0]  ;;  %v5640_v30 = vpop.f32.mrf.mxu3 }
 0x20b   : > { %5879 = vmatpush.bf16.msra.mxu2 %v7795_v24  ;;  %v9175_v21 = vld [vmem:[%s10390_s11 + $0x644] sm:$0xf]  ;;  %v5627_v24 = vpop.f32.mrf.mxu2  ;;  %v7875_v25 = vor.u32 %v9275_v16, %v7872_v17  ;;  %v7600_v26 = vld [vmem:[%s10390_s11 + $0x750] sm:$0xf0] }
 0x20c   : > { %5892 = vmatpush.bf16.msra.mxu3 %v7923_v29  ;;  %v9207_v23 = vld [vmem:[%s10390_s11 + $0x744] sm:$0xf]  ;;  %v7728_v28 = vld [vmem:[%s10390_s11 + $0x850] sm:$0xf0]  ;;  %v5628_v29 = vadd.f32 %v5627_v24, %v5615_v18  ;;  %v7475_v33 = vor.u32 %v9175_v21, %v7472_v22 }
 0x20d   : > { %5854 = vmatpush.bf16.msra.mxu0 %v7523_v35  ;;  %v9239_v27 = vld [vmem:[%s10390_s11 + $0x844] sm:$0xf]  ;;  %v7856_v32 = vld [vmem:[%s10390_s11 + $0x950] sm:$0xf0]  ;;  %v5603_v35 = vpop.f32.mrf.mxu0  ;;  %v7603_v36 = vor.u32 %v9207_v23, %v7600_v26  ;;  %v5616_v41 = vpop.f32.mrf.mxu1 }
 0x20e   : > { %5867 = vmatpush.bf16.msra.mxu1 %v7651_v37  ;;  %v9271_v31 = vld [vmem:[%s10390_s11 + $0x944] sm:$0xf]  ;;  %v10915_v34 = vadd.f32 %v5640_v30, %v5628_v29  ;;  %v7731_v37 = vor.u32 %v9239_v27, %v7728_v28  ;;  %v7456_v39 = vld [vmem:[%s10390_s11 + $0x630] sm:$0xf0] }
 0x20f   : > { %5880 = vmatpush.bf16.msra.mxu2 %v7779_v38  ;;  %v9171_v38 = vld [vmem:[%s10390_s11 + $0x624] sm:$0xf]  ;;  %v7584_v43 = vld [vmem:[%s10390_s11 + $0x730] sm:$0xf0] }
 0x210   : > { %5893 = vmatpush.bf16.msra.mxu3 %v7907_v42  ;;  %v9203_v40 = vld [vmem:[%s10390_s11 + $0x724] sm:$0xf]  ;;  %v7859_v42 = vor.u32 %v9271_v31, %v7856_v32  ;;  %v7712_v45 = vld [vmem:[%s10390_s11 + $0x830] sm:$0xf0] }
 0x211   : > { %5855 = vmatpush.bf16.msra.mxu0 %v7507_v52  ;;  %v9235_v44 = vld [vmem:[%s10390_s11 + $0x824] sm:$0xf]  ;;  %v7840_v47 = vld [vmem:[%s10390_s11 + $0x930] sm:$0xf0]  ;;  %v7459_v52 = vor.u32 %v9171_v38, %v7456_v39 }
 0x212   : > { %5868 = vmatpush.bf16.msra.mxu1 %v7635_v61  ;;  %v9267_v46 = vld [vmem:[%s10390_s11 + $0x924] sm:$0xf]  ;;  %v7440_v61 = vld [vmem:[%s10390_s11 + $0x610] sm:$0xf0]  ;;  %v7715_v4 = vor.u32 %v9235_v44, %v7712_v45  ;;  %v5642_v16 = vpop.f32.mrf.mxu3 }
 0x213   : > { %5881 = vmatpush.bf16.msra.mxu2 %v7763_v2  ;;  %v9167_v53 = vld [vmem:[%s10390_s11 + $0x604] sm:$0xf]  ;;  %v7587_v2 = vor.u32 %v9203_v40, %v7584_v43  ;;  %v7568_v51 = vld [vmem:[%s10390_s11 + $0x710] sm:$0xf0]  ;;  %v5629_v8 = vpop.f32.mrf.mxu2 }
 0x214   : > { %5894 = vmatpush.bf16.msra.mxu3 %v7891_v11  ;;  %v9199_v5 = vld [vmem:[%s10390_s11 + $0x704] sm:$0xf]  ;;  %v7843_v11 = vor.u32 %v9267_v46, %v7840_v47  ;;  %v7696_v13 = vld [vmem:[%s10390_s11 + $0x810] sm:$0xf0] }
 0x215   : > { %5856 = vmatpush.bf16.msra.mxu0 %v7491_v19  ;;  %v9231_v7 = vld [vmem:[%s10390_s11 + $0x804] sm:$0xf]  ;;  %v7824_v15 = vld [vmem:[%s10390_s11 + $0x910] sm:$0xf0]  ;;  %v7571_v23 = vor.u32 %v9199_v5, %v7568_v51 }
 0x216   : > { %5869 = vmatpush.bf16.msra.mxu1 %v7619_v54  ;;  %v9263_v14 = vld [vmem:[%s10390_s11 + $0x904] sm:$0xf]  ;;  %v8064_v18 = vld [vmem:[%s10390_s11 + $0xaf0] sm:$0xf0]  ;;  %v7443_v54 = vor.u32 %v9167_v53, %v7440_v61  ;;  %v7699_v24 = vor.u32 %v9231_v7, %v7696_v13 }
 0x217   : > { %5882 = vmatpush.bf16.msra.mxu2 %v7747_v20  ;;  %v9323_v17 = vld [vmem:[%s10390_s11 + $0xae4] sm:$0xf]  ;;  %v8192_v20 = vld [vmem:[%s10390_s11 + $0xbf0] sm:$0xf0]  ;;  %v7827_v27 = vor.u32 %v9263_v14, %v7824_v15 }
 0x218   : > { %5895 = vmatpush.bf16.msra.mxu3 %v7875_v25  ;;  %v9355_v19 = vld [vmem:[%s10390_s11 + $0xbe4] sm:$0xf]  ;;  %v8320_v22 = vld [vmem:[%s10390_s11 + $0xcf0] sm:$0xf0]  ;;  %v8067_v28 = vor.u32 %v9323_v17, %v8064_v18 }
 0x219   : > { %5857 = vmatpush.bf16.msra.mxu0 %v7475_v33  ;;  %v9387_v21 = vld [vmem:[%s10390_s11 + $0xce4] sm:$0xf]  ;;  %v8448_v26 = vld [vmem:[%s10390_s11 + $0xdf0] sm:$0xf0]  ;;  %v8195_v29 = vor.u32 %v9355_v19, %v8192_v20 }
 0x21a   : > { %5870 = vmatpush.bf16.msra.mxu1 %v7603_v36  ;;  %v9419_v25 = vld [vmem:[%s10390_s11 + $0xde4] sm:$0xf]  ;;  %v8323_v30 = vor.u32 %v9387_v21, %v8320_v22  ;;  %v8048_v32 = vld [vmem:[%s10390_s11 + $0xad0] sm:$0xf0] }
 0x21b   : > { %5883 = vmatpush.bf16.msra.mxu2 %v7731_v37  ;;  %v9319_v31 = vld [vmem:[%s10390_s11 + $0xac4] sm:$0xf]  ;;  %v8451_v35 = vor.u32 %v9419_v25, %v8448_v26  ;;  %v8176_v36 = vld [vmem:[%s10390_s11 + $0xbd0] sm:$0xf0] }
 0x21c   : > { %5896 = vmatpush.bf16.msra.mxu3 %v7859_v42  ;;  %v9351_v33 = vld [vmem:[%s10390_s11 + $0xbc4] sm:$0xf]  ;;  %v8304_v38 = vld [vmem:[%s10390_s11 + $0xcd0] sm:$0xf0]  ;;  %v8051_v41 = vor.u32 %v9319_v31, %v8048_v32 }
 0x21d   : > { %5858 = vmatpush.bf16.msra.mxu0 %v7459_v52  ;;  %v9383_v37 = vld [vmem:[%s10390_s11 + $0xcc4] sm:$0xf]  ;;  %v8432_v40 = vld [vmem:[%s10390_s11 + $0xdd0] sm:$0xf0]  ;;  %v8179_v42 = vor.u32 %v9351_v33, %v8176_v36 }
 0x21e   : > { %5871 = vmatpush.bf16.msra.mxu1 %v7587_v2  ;;  %v9415_v39 = vld [vmem:[%s10390_s11 + $0xdc4] sm:$0xf]  ;;  %v8307_v43 = vor.u32 %v9383_v37, %v8304_v38  ;;  %v8032_v45 = vld [vmem:[%s10390_s11 + $0xab0] sm:$0xf0] }
 0x21f   : > { %5884 = vmatpush.bf16.msra.mxu2 %v7715_v4  ;;  %v9315_v44 = vld [vmem:[%s10390_s11 + $0xaa4] sm:$0xf]  ;;  %v8435_v47 = vor.u32 %v9415_v39, %v8432_v40  ;;  %v8160_v52 = vld [vmem:[%s10390_s11 + $0xbb0] sm:$0xf0] }
 0x220   : > { %5897 = vmatpush.bf16.msra.mxu3 %v7843_v11  ;;  %v9347_v46 = vld [vmem:[%s10390_s11 + $0xba4] sm:$0xf]  ;;  %v8288_v61 = vld [vmem:[%s10390_s11 + $0xcb0] sm:$0xf0]  ;;  %v8035_v5 = vor.u32 %v9315_v44, %v8032_v45 }
 0x221   : > { %5859 = vmatpush.bf16.msra.mxu0 %v7443_v54  ;;  %v9379_v53 = vld [vmem:[%s10390_s11 + $0xca4] sm:$0xf]  ;;  %v8416_v4 = vld [vmem:[%s10390_s11 + $0xdb0] sm:$0xf0]  ;;  %v8163_v51 = vor.u32 %v9347_v46, %v8160_v52  ;;  %v5653_v18 = vpop.f32.mrf.mxu0 }
 0x222   : > { %5872 = vmatpush.bf16.msra.mxu1 %v7571_v23  ;;  %v9411_v2 = vld [vmem:[%s10390_s11 + $0xda4] sm:$0xf]  ;;  %v8291_v7 = vor.u32 %v9379_v53, %v8288_v61  ;;  %v8016_v11 = vld [vmem:[%s10390_s11 + $0xa90] sm:$0xf0]  ;;  %v5654_v20 = vadd.f32 %v5653_v18, %v10915_v34  ;;  %v5666_v22 = vpop.f32.mrf.mxu1 }
 0x223   : > { %5885 = vmatpush.bf16.msra.mxu2 %v7699_v24  ;;  %v9311_v8 = vld [vmem:[%s10390_s11 + $0xa84] sm:$0xf]  ;;  %v8419_v14 = vor.u32 %v9411_v2, %v8416_v4  ;;  %v8144_v15 = vld [vmem:[%s10390_s11 + $0xb90] sm:$0xf0] }
 0x224   : > { %5898 = vmatpush.bf16.msra.mxu3 %v7827_v27  ;;  %5860 = vmatmul.bf16.vlgmr.msra.gmra.mxu0 %v10558_v6  ;;  %v9343_v13 = vld [vmem:[%s10390_s11 + $0xb84] sm:$0xf]  ;;  %v8272_v17 = vld [vmem:[%s10390_s11 + $0xc90] sm:$0xf0]  ;;  %v8019_v21 = vor.u32 %v9311_v8, %v8016_v11 }
 0x225   : > { %5904 = vmatpush.bf16.msrb.mxu0 %v8067_v28  ;;  %5873 = vmatmul.bf16.vlgmr.msra.gmra.mxu1 %v10564_v10  ;;  %v9375_v16 = vld [vmem:[%s10390_s11 + $0xc84] sm:$0xf]  ;;  %v8400_v54 = vld [vmem:[%s10390_s11 + $0xd90] sm:$0xf0]  ;;  %v8147_v23 = vor.u32 %v9343_v13, %v8144_v15 }
 0x226   : > { %5917 = vmatpush.bf16.msrb.mxu1 %v8195_v29  ;;  %5886 = vmatmul.bf16.vlgmr.msra.gmra.mxu2 %v10644_v56  ;;  %v9407_v19 = vld [vmem:[%s10390_s11 + $0xd84] sm:$0xf]  ;;  %v8275_v24 = vor.u32 %v9375_v16, %v8272_v17  ;;  %v8000_v26 = vld [vmem:[%s10390_s11 + $0xa70] sm:$0xf0]  ;;  %v5667_v29 = vadd.f32 %v5666_v22, %v5654_v20 }
 0x227   : > { %5930 = vmatpush.bf16.msrb.mxu2 %v8323_v30  ;;  %5899 = vmatmul.bf16.vlgmr.msra.gmra.mxu3 %v10655_v63  ;;  %v9307_v25 = vld [vmem:[%s10390_s11 + $0xa64] sm:$0xf]  ;;  %v8403_v28 = vor.u32 %v9407_v19, %v8400_v54  ;;  %v8128_v30 = vld [vmem:[%s10390_s11 + $0xb70] sm:$0xf0] }
 0x228   : > { %5943 = vmatpush.bf16.msrb.mxu3 %v8451_v35  ;;  %v9339_v27 = vld [vmem:[%s10390_s11 + $0xb64] sm:$0xf]  ;;  %v8256_v34 = vld [vmem:[%s10390_s11 + $0xc70] sm:$0xf0]  ;;  %v8003_v35 = vor.u32 %v9307_v25, %v8000_v26 }
 0x229   : > { %5905 = vmatpush.bf16.msrb.mxu0 %v8051_v41  ;;  %v9371_v31 = vld [vmem:[%s10390_s11 + $0xc64] sm:$0xf]  ;;  %v8384_v33 = vld [vmem:[%s10390_s11 + $0xd70] sm:$0xf0]  ;;  %v8131_v36 = vor.u32 %v9339_v27, %v8128_v30  ;;  %v5655_v61 = vpop.f32.mrf.mxu0 }
 0x22a   : > { %5918 = vmatpush.bf16.msrb.mxu1 %v8179_v42  ;;  %v9403_v32 = vld [vmem:[%s10390_s11 + $0xd64] sm:$0xf]  ;;  %v8259_v37 = vor.u32 %v9371_v31, %v8256_v34  ;;  %v7984_v39 = vld [vmem:[%s10390_s11 + $0xa50] sm:$0xf0]  ;;  %v5679_v42 = vpop.f32.mrf.mxu2  ;;  %v5668_v4 = vpop.f32.mrf.mxu1 }
 0x22b   : > { %5931 = vmatpush.bf16.msrb.mxu2 %v8307_v43  ;;  %v9303_v38 = vld [vmem:[%s10390_s11 + $0xa44] sm:$0xf]  ;;  %v8387_v41 = vor.u32 %v9403_v32, %v8384_v33  ;;  %v8112_v43 = vld [vmem:[%s10390_s11 + $0xb50] sm:$0xf0]  ;;  %v5680_v46 = vadd.f32 %v5679_v42, %v5667_v29 }
 0x22c   : > { %5944 = vmatpush.bf16.msrb.mxu3 %v8435_v47  ;;  %v9335_v40 = vld [vmem:[%s10390_s11 + $0xb44] sm:$0xf]  ;;  %v8240_v45 = vld [vmem:[%s10390_s11 + $0xc50] sm:$0xf0]  ;;  %v5692_v47 = vpop.f32.mrf.mxu3  ;;  %v7987_v2 = vor.u32 %v9303_v38, %v7984_v39 }
 0x22d   : > { %5906 = vmatpush.bf16.msrb.mxu0 %v8035_v5  ;;  %v9367_v44 = vld [vmem:[%s10390_s11 + $0xc44] sm:$0xf]  ;;  %v8368_v53 = vld [vmem:[%s10390_s11 + $0xd50] sm:$0xf0]  ;;  %v10986_v5 = vadd.f32 %v5692_v47, %v5680_v46 }
 0x22e   : > { %5919 = vmatpush.bf16.msrb.mxu1 %v8163_v51  ;;  %v9399_v52 = vld [vmem:[%s10390_s11 + $0xd44] sm:$0xf]  ;;  %v8115_v51 = vor.u32 %v9335_v40, %v8112_v43  ;;  %v7968_v11 = vld [vmem:[%s10390_s11 + $0xa30] sm:$0xf0] }
 0x22f   : > { %5932 = vmatpush.bf16.msrb.mxu2 %v8291_v7  ;;  %v8243_v7 = vor.u32 %v9367_v44, %v8240_v45  ;;  %v9299_v8 = vld [vmem:[%s10390_s11 + $0xa24] sm:$0xf]  ;;  %v8096_v15 = vld [vmem:[%s10390_s11 + $0xb30] sm:$0xf0] }
 0x230   : > { %5945 = vmatpush.bf16.msrb.mxu3 %v8419_v14  ;;  %v9331_v13 = vld [vmem:[%s10390_s11 + $0xb24] sm:$0xf]  ;;  %v8371_v14 = vor.u32 %v9399_v52, %v8368_v53  ;;  %v8224_v17 = vld [vmem:[%s10390_s11 + $0xc30] sm:$0xf0]  ;;  %v7971_v54 = vor.u32 %v9299_v8, %v7968_v11 }
 0x231   : > { %5907 = vmatpush.bf16.msrb.mxu0 %v8019_v21  ;;  %v9363_v16 = vld [vmem:[%s10390_s11 + $0xc24] sm:$0xf]  ;;  %v8352_v19 = vld [vmem:[%s10390_s11 + $0xd30] sm:$0xf0]  ;;  %v8099_v22 = vor.u32 %v9331_v13, %v8096_v15 }
 0x232   : > { %5920 = vmatpush.bf16.msrb.mxu1 %v8147_v23  ;;  %v9395_v18 = vld [vmem:[%s10390_s11 + $0xd24] sm:$0xf]  ;;  %v7952_v21 = vld [vmem:[%s10390_s11 + $0xa10] sm:$0xf0]  ;;  %v8227_v23 = vor.u32 %v9363_v16, %v8224_v17  ;;  %v5681_v31 = vpop.f32.mrf.mxu2 }
 0x233   : > { %5933 = vmatpush.bf16.msrb.mxu2 %v8275_v24  ;;  %v9295_v20 = vld [vmem:[%s10390_s11 + $0xa04] sm:$0xf]  ;;  %v8080_v25 = vld [vmem:[%s10390_s11 + $0xb10] sm:$0xf0]  ;;  %v8355_v27 = vor.u32 %v9395_v18, %v8352_v19 }
 0x234   : > { %5946 = vmatpush.bf16.msrb.mxu3 %v8403_v28  ;;  %v9327_v24 = vld [vmem:[%s10390_s11 + $0xb04] sm:$0xf]  ;;  %v8208_v28 = vld [vmem:[%s10390_s11 + $0xc10] sm:$0xf0] }
 0x235   : > { %5908 = vmatpush.bf16.msrb.mxu0 %v8003_v35  ;;  %v9359_v26 = vld [vmem:[%s10390_s11 + $0xc04] sm:$0xf]  ;;  %v8336_v30 = vld [vmem:[%s10390_s11 + $0xd10] sm:$0xf0]  ;;  %v5694_v35 = vpop.f32.mrf.mxu3  ;;  %v8083_v40 = vor.u32 %v9327_v24, %v8080_v25 }
 0x236   : > { %5921 = vmatpush.bf16.msrb.mxu1 %v8131_v36  ;;  %v9391_v29 = vld [vmem:[%s10390_s11 + $0xd04] sm:$0xf]  ;;  %v8576_v32 = vld [vmem:[%s10390_s11 + $0xef0] sm:$0xf0]  ;;  %v7955_v36 = vor.u32 %v9295_v20, %v7952_v21 }
 0x237   : > { %5934 = vmatpush.bf16.msrb.mxu2 %v8259_v37  ;;  %v9451_v34 = vld [vmem:[%s10390_s11 + $0xee4] sm:$0xf]  ;;  %v8704_v37 = vld [vmem:[%s10390_s11 + $0xff0] sm:$0xf0]  ;;  %v8339_v44 = vor.u32 %v9391_v29, %v8336_v30 }
 0x238   : > { %5947 = vmatpush.bf16.msrb.mxu3 %v8387_v41  ;;  %v9483_v33 = vld [vmem:[%s10390_s11 + $0xfe4] sm:$0xf]  ;;  %v8832_v39 = vld [vmem:[%s10390_s11 + $0x10f0] sm:$0xf0]  ;;  %v8211_v41 = vor.u32 %v9359_v26, %v8208_v28  ;;  %v8579_v45 = vor.u32 %v9451_v34, %v8576_v32 }
 0x239   : > { %5909 = vmatpush.bf16.msrb.mxu0 %v7987_v2  ;;  %v9515_v38 = vld [vmem:[%s10390_s11 + $0x10e4] sm:$0xf]  ;;  %v8960_v43 = vld [vmem:[%s10390_s11 + $0x11f0] sm:$0xf0]  ;;  %v8707_v46 = vor.u32 %v9483_v33, %v8704_v37 }
 0x23a   : > { %5922 = vmatpush.bf16.msrb.mxu1 %v8115_v51  ;;  %v9547_v42 = vld [vmem:[%s10390_s11 + $0x11e4] sm:$0xf]  ;;  %v8835_v47 = vor.u32 %v9515_v38, %v8832_v39  ;;  %v8560_v53 = vld [vmem:[%s10390_s11 + $0xed0] sm:$0xf0] }
 0x23b   : > { %5935 = vmatpush.bf16.msrb.mxu2 %v8243_v7  ;;  %v9447_v52 = vld [vmem:[%s10390_s11 + $0xec4] sm:$0xf]  ;;  %v8963_v2 = vor.u32 %v9547_v42, %v8960_v43  ;;  %v8688_v4 = vld [vmem:[%s10390_s11 + $0xfd0] sm:$0xf0] }
 0x23c   : > { %5948 = vmatpush.bf16.msrb.mxu3 %v8371_v14  ;;  %v9479_v61 = vld [vmem:[%s10390_s11 + $0xfc4] sm:$0xf]  ;;  %v8816_v7 = vld [vmem:[%s10390_s11 + $0x10d0] sm:$0xf0]  ;;  %v8563_v13 = vor.u32 %v9447_v52, %v8560_v53 }
 0x23d   : > { %5910 = vmatpush.bf16.msrb.mxu0 %v7971_v54  ;;  %v9511_v51 = vld [vmem:[%s10390_s11 + $0x10c4] sm:$0xf]  ;;  %v8944_v11 = vld [vmem:[%s10390_s11 + $0x11d0] sm:$0xf0]  ;;  %v8691_v14 = vor.u32 %v9479_v61, %v8688_v4 }
 0x23e   : > { %5923 = vmatpush.bf16.msrb.mxu1 %v8099_v22  ;;  %v9543_v8 = vld [vmem:[%s10390_s11 + $0x11c4] sm:$0xf]  ;;  %v8819_v15 = vor.u32 %v9511_v51, %v8816_v7  ;;  %v8544_v17 = vld [vmem:[%s10390_s11 + $0xeb0] sm:$0xf0] }
 0x23f   : > { %5936 = vmatpush.bf16.msrb.mxu2 %v8227_v23  ;;  %v9443_v16 = vld [vmem:[%s10390_s11 + $0xea4] sm:$0xf]  ;;  %v8947_v19 = vor.u32 %v9543_v8, %v8944_v11  ;;  %v8672_v54 = vld [vmem:[%s10390_s11 + $0xfb0] sm:$0xf0] }
 0x240   : > { %5949 = vmatpush.bf16.msrb.mxu3 %v8355_v27  ;;  %v9475_v18 = vld [vmem:[%s10390_s11 + $0xfa4] sm:$0xf]  ;;  %v8800_v21 = vld [vmem:[%s10390_s11 + $0x10b0] sm:$0xf0]  ;;  %v8547_v24 = vor.u32 %v9443_v16, %v8544_v17 }
 0x241   : > { %5911 = vmatpush.bf16.msrb.mxu0 %v7955_v36  ;;  %v9507_v20 = vld [vmem:[%s10390_s11 + $0x10a4] sm:$0xf]  ;;  %v8928_v23 = vld [vmem:[%s10390_s11 + $0x11b0] sm:$0xf0]  ;;  %v8675_v25 = vor.u32 %v9475_v18, %v8672_v54 }
 0x242   : > { %5924 = vmatpush.bf16.msrb.mxu1 %v8083_v40  ;;  %v9539_v22 = vld [vmem:[%s10390_s11 + $0x11a4] sm:$0xf]  ;;  %v8803_v26 = vor.u32 %v9507_v20, %v8800_v21  ;;  %v8528_v28 = vld [vmem:[%s10390_s11 + $0xe90] sm:$0xf0] }
 0x243   : > { %5937 = vmatpush.bf16.msrb.mxu2 %v8211_v41  ;;  %v9439_v27 = vld [vmem:[%s10390_s11 + $0xe84] sm:$0xf]  ;;  %v8931_v30 = vor.u32 %v9539_v22, %v8928_v23  ;;  %v8656_v31 = vld [vmem:[%s10390_s11 + $0xf90] sm:$0xf0]  ;;  %v5705_v33 = vpop.f32.mrf.mxu0 }
 0x244   : > { %5950 = vmatpush.bf16.msrb.mxu3 %v8339_v44  ;;  %5912 = vmatmul.bf16.vlgmr.msrb.gmra.mxu0 %v10651_v62  ;;  %v9471_v29 = vld [vmem:[%s10390_s11 + $0xf84] sm:$0xf]  ;;  %v8784_v32 = vld [vmem:[%s10390_s11 + $0x1090] sm:$0xf0]  ;;  %v5706_v37 = vadd.f32 %v5705_v33, %v10986_v5  ;;  %v8531_v38 = vor.u32 %v9439_v27, %v8528_v28  ;;  %v5718_v39 = vpop.f32.mrf.mxu1 }
 0x245   : > { %5956 = vmatpush.bf16.msra.mxu0 %v8579_v45  ;;  %5925 = vmatmul.bf16.vlgmr.msrb.gmra.mxu1 %v10661_v3  ;;  %v9503_v34 = vld [vmem:[%s10390_s11 + $0x1084] sm:$0xf]  ;;  %v8912_v36 = vld [vmem:[%s10390_s11 + $0x1190] sm:$0xf0]  ;;  %v8659_v40 = vor.u32 %v9471_v29, %v8656_v31 }
 0x246   : > { %5969 = vmatpush.bf16.msra.mxu1 %v8707_v46  ;;  %5938 = vmatmul.bf16.vlgmr.msrb.gmra.mxu2 %v10726_v49  ;;  %v9535_v35 = vld [vmem:[%s10390_s11 + $0x1184] sm:$0xf]  ;;  %v8787_v41 = vor.u32 %v9503_v34, %v8784_v32  ;;  %v8512_v43 = vld [vmem:[%s10390_s11 + $0xe70] sm:$0xf0]  ;;  %v5719_v46 = vadd.f32 %v5718_v39, %v5706_v37 }
 0x247   : > { %5982 = vmatpush.bf16.msra.mxu2 %v8835_v47  ;;  %5951 = vmatmul.bf16.vlgmr.msrb.gmra.mxu3 %v10733_v60  ;;  %v9435_v42 = vld [vmem:[%s10390_s11 + $0xe64] sm:$0xf]  ;;  %v8915_v45 = vor.u32 %v9535_v35, %v8912_v36  ;;  %v8640_v47 = vld [vmem:[%s10390_s11 + $0xf70] sm:$0xf0] }
 0x248   : > { %5995 = vmatpush.bf16.msra.mxu3 %v8963_v2  ;;  %v9467_v44 = vld [vmem:[%s10390_s11 + $0xf64] sm:$0xf]  ;;  %v8768_v5 = vld [vmem:[%s10390_s11 + $0x1070] sm:$0xf0]  ;;  %v8515_v2 = vor.u32 %v9435_v42, %v8512_v43 }
 0x249   : > { %5957 = vmatpush.bf16.msra.mxu0 %v8563_v13  ;;  %v9499_v52 = vld [vmem:[%s10390_s11 + $0x1064] sm:$0xf]  ;;  %v8896_v61 = vld [vmem:[%s10390_s11 + $0x1170] sm:$0xf0]  ;;  %v8643_v4 = vor.u32 %v9467_v44, %v8640_v47 }
 0x24a   : > { %5970 = vmatpush.bf16.msra.mxu1 %v8691_v14  ;;  %v9531_v53 = vld [vmem:[%s10390_s11 + $0x1164] sm:$0xf]  ;;  %v8771_v51 = vor.u32 %v9499_v52, %v8768_v5  ;;  %v8496_v8 = vld [vmem:[%s10390_s11 + $0xe50] sm:$0xf0]  ;;  %v6790_v5 = vld [vmem:[%s10390_s11 + $0xe8] sm:$0xf] }
 0x24b   : > { %5983 = vmatpush.bf16.msra.mxu2 %v8819_v15  ;;  %v9431_v7 = vld [vmem:[%s10390_s11 + $0xe44] sm:$0xf]  ;;  %v8899_v13 = vor.u32 %v9531_v53, %v8896_v61  ;;  %v5731_v14 = vpop.f32.mrf.mxu2  ;;  %v8624_v15 = vld [vmem:[%s10390_s11 + $0xf50] sm:$0xf0]  ;;  %v5707_v21 = vpop.f32.mrf.mxu0  ;;  %v9006_v53 = vld [vmem:[%s10390_s11 + $0xf4] sm:$0xf0] }
 0x24c   : > { %5996 = vmatpush.bf16.msra.mxu3 %v8947_v19  ;;  %v9463_v11 = vld [vmem:[%s10390_s11 + $0xf44] sm:$0xf]  ;;  %v8752_v17 = vld [vmem:[%s10390_s11 + $0x1050] sm:$0xf0]  ;;  %v5732_v18 = vadd.f32 %v5731_v14, %v5719_v46  ;;  %v5744_v19 = vpop.f32.mrf.mxu3  ;;  %v8499_v22 = vor.u32 %v9431_v7, %v8496_v8  ;;  %v5720_v23 = vpop.f32.mrf.mxu1  ;;  %v6918_v61 = vld [vmem:[%s10390_s11 + $0x1e8] sm:$0xf] }
 0x24d   : > { %5958 = vmatpush.bf16.msra.mxu0 %v8547_v24  ;;  %v9495_v16 = vld [vmem:[%s10390_s11 + $0x1044] sm:$0xf]  ;;  %v8880_v20 = vld [vmem:[%s10390_s11 + $0x1150] sm:$0xf0]  ;;  %v7046_v7 = vld [vmem:[%s10390_s11 + $0x2e8] sm:$0xf] }
 0x24e   : > { %5971 = vmatpush.bf16.msra.mxu1 %v8675_v25  ;;  %v9527_v54 = vld [vmem:[%s10390_s11 + $0x1144] sm:$0xf]  ;;  %v11057_v24 = vadd.f32 %v5744_v19, %v5732_v18  ;;  %v8627_v25 = vor.u32 %v9463_v11, %v8624_v15  ;;  %v8480_v28 = vld [vmem:[%s10390_s11 + $0xe30] sm:$0xf0]  ;;  %v9070_v8 = vld [vmem:[%s10390_s11 + $0x2f4] sm:$0xf0] }
 0x24f   : > { %5984 = vmatpush.bf16.msra.mxu2 %v8803_v26  ;;  %v8755_v26 = vor.u32 %v9495_v16, %v8752_v17  ;;  %v9427_v27 = vld [vmem:[%s10390_s11 + $0xe24] sm:$0xf]  ;;  %v8608_v31 = vld [vmem:[%s10390_s11 + $0xf30] sm:$0xf0]  ;;  %v7174_v14 = vld [vmem:[%s10390_s11 + $0x3e8] sm:$0xf]  ;;  %v6791_v17 = vor.u32 %v9006_v53, %v6790_v5  ;;  %v7047_v19 = vor.u32 %v9070_v8, %v7046_v7 }
 0x250   : > { %5997 = vmatpush.bf16.msra.mxu3 %v8931_v30  ;;  %v9459_v29 = vld [vmem:[%s10390_s11 + $0xf24] sm:$0xf]  ;;  %v8883_v30 = vor.u32 %v9527_v54, %v8880_v20  ;;  %v8736_v32 = vld [vmem:[%s10390_s11 + $0x1030] sm:$0xf0]  ;;  %v8483_v36 = vor.u32 %v9427_v27, %v8480_v28  ;;  %v9102_v15 = vld [vmem:[%s10390_s11 + $0x3f4] sm:$0xf0] }
 0x251   : > { %5959 = vmatpush.bf16.msra.mxu0 %v8531_v38  ;;  %v9491_v34 = vld [vmem:[%s10390_s11 + $0x1024] sm:$0xf]  ;;  %v8864_v35 = vld [vmem:[%s10390_s11 + $0x1130] sm:$0xf0]  ;;  %v8611_v39 = vor.u32 %v9459_v29, %v8608_v31  ;;  %v6774_v54 = vld [vmem:[%s10390_s11 + $0xc8] sm:$0xf] }
 0x252   : > { %5972 = vmatpush.bf16.msra.mxu1 %v8659_v40  ;;  %v9523_v33 = vld [vmem:[%s10390_s11 + $0x1124] sm:$0xf]  ;;  %v8464_v38 = vld [vmem:[%s10390_s11 + $0xe10] sm:$0xf0]  ;;  %v8739_v40 = vor.u32 %v9491_v34, %v8736_v32  ;;  %v9002_v20 = vld [vmem:[%s10390_s11 + $0xd4] sm:$0xf0] }
 0x253   : > { %5985 = vmatpush.bf16.msra.mxu2 %v8787_v41  ;;  %v9423_v37 = vld [vmem:[%s10390_s11 + $0xe04] sm:$0xf]  ;;  %v8592_v42 = vld [vmem:[%s10390_s11 + $0xf10] sm:$0xf0]  ;;  %v8867_v44 = vor.u32 %v9523_v33, %v8864_v35  ;;  %v5733_v52 = vpop.f32.mrf.mxu2  ;;  %v6902_v21 = vld [vmem:[%s10390_s11 + $0x1c8] sm:$0xf]  ;;  %v6775_v29 = vor.u32 %v9002_v20, %v6774_v54 }
 0x254   : > { %5998 = vmatpush.bf16.msra.mxu3 %v8915_v45  ;;  %v9455_v41 = vld [vmem:[%s10390_s11 + $0xf04] sm:$0xf]  ;;  %v8720_v45 = vld [vmem:[%s10390_s11 + $0x1010] sm:$0xf0]  ;;  %v9034_v23 = vld [vmem:[%s10390_s11 + $0x1d4] sm:$0xf0] }
 0x255   : > { %5960 = vmatpush.bf16.msra.mxu0 %v8515_v2  ;;  %v9487_v43 = vld [vmem:[%s10390_s11 + $0x1004] sm:$0xf]  ;;  %v8848_v47 = vld [vmem:[%s10390_s11 + $0x1110] sm:$0xf0]  ;;  %v5746_v2 = vpop.f32.mrf.mxu3  ;;  %v8595_v11 = vor.u32 %v9455_v41, %v8592_v42  ;;  %v7158_v27 = vld [vmem:[%s10390_s11 + $0x3c8] sm:$0xf] }
 0x256   : > { %5973 = vmatpush.bf16.msra.mxu1 %v8643_v4  ;;  %v9519_v46 = vld [vmem:[%s10390_s11 + $0x1104] sm:$0xf]  ;;  %v8467_v4 = vor.u32 %v9423_v37, %v8464_v38  ;;  %v9098_v28 = vld [vmem:[%s10390_s11 + $0x3d4] sm:$0xf0]  ;;  %v6758_v34 = vld [vmem:[%s10390_s11 + $0xa8] sm:$0xf] }
 0x257   : > { %5986 = vmatpush.bf16.msra.mxu2 %v8771_v51  ;;  %v9038_v51 = vld [vmem:[%s10390_s11 + $0x1f4] sm:$0xf0]  ;;  %v8851_v16 = vor.u32 %v9519_v46, %v8848_v47  ;;  %v6886_v33 = vld [vmem:[%s10390_s11 + $0x1a8] sm:$0xf]  ;;  %v7159_v35 = vor.u32 %v9098_v28, %v7158_v27 }
 0x258   : > { %5999 = vmatpush.bf16.msra.mxu3 %v8899_v13  ;;  %v8723_v13 = vor.u32 %v9487_v43, %v8720_v45  ;;  %v6919_v18 = vor.u32 %v9038_v51, %v6918_v61  ;;  %v8998_v32 = vld [vmem:[%s10390_s11 + $0xb4] sm:$0xf0]  ;;  %v7014_v37 = vld [vmem:[%s10390_s11 + $0x2a8] sm:$0xf] }
 0x259   : > { %5961 = vmatpush.bf16.msra.mxu0 %v8499_v22  ;;  %v7175_v22 = vor.u32 %v9102_v15, %v7174_v14  ;;  %v9062_v38 = vld [vmem:[%s10390_s11 + $0x2b4] sm:$0xf0]  ;;  %v6759_v41 = vor.u32 %v8998_v32, %v6758_v34  ;;  %v6870_v46 = vld [vmem:[%s10390_s11 + $0x188] sm:$0xf] }
 0x25a   : > { %5974 = vmatpush.bf16.msra.mxu1 %v8627_v25  ;;  %v7030_v25 = vld [vmem:[%s10390_s11 + $0x2c8] sm:$0xf]  ;;  %v7015_v43 = vor.u32 %v9062_v38, %v7014_v37  ;;  %v8994_v45 = vld [vmem:[%s10390_s11 + $0x94] sm:$0xf0] }
 0x25b   : > { %5987 = vmatpush.bf16.msra.mxu2 %v8755_v26  ;;  %v9066_v26 = vld [vmem:[%s10390_s11 + $0x2d4] sm:$0xf0]  ;;  %v6998_v5 = vld [vmem:[%s10390_s11 + $0x288] sm:$0xf] }
 0x25c   : > { %6000 = vmatpush.bf16.msra.mxu3 %v8883_v30  ;;  %v6903_v30 = vor.u32 %v9034_v23, %v6902_v21  ;;  %v7031_v31 = vor.u32 %v9066_v26, %v7030_v25  ;;  %v9026_v52 = vld [vmem:[%s10390_s11 + $0x194] sm:$0xf0]  ;;  %v7126_v2 = vld [vmem:[%s10390_s11 + $0x388] sm:$0xf] }
 0x25d   : > { %5962 = vmatpush.bf16.msra.mxu0 %v8483_v36  ;;  %v9030_v36 = vld [vmem:[%s10390_s11 + $0x1b4] sm:$0xf0]  ;;  %v6726_v14 = vld [vmem:[%s10390_s11 + $0x68] sm:$0xf] }
 0x25e   : > { %5975 = vmatpush.bf16.msra.mxu1 %v8611_v39  ;;  %v7142_v39 = vld [vmem:[%s10390_s11 + $0x3a8] sm:$0xf]  ;;  %v6887_v42 = vor.u32 %v9030_v36, %v6886_v33  ;;  %v9058_v53 = vld [vmem:[%s10390_s11 + $0x294] sm:$0xf0] }
 0x25f   : > { %5988 = vmatpush.bf16.msra.mxu2 %v8739_v40  ;;  %v9094_v40 = vld [vmem:[%s10390_s11 + $0x3b4] sm:$0xf0]  ;;  %v7110_v20 = vld [vmem:[%s10390_s11 + $0x368] sm:$0xf] }
 0x260   : > { %6001 = vmatpush.bf16.msra.mxu3 %v8867_v44  ;;  %v6742_v44 = vld [vmem:[%s10390_s11 + $0x88] sm:$0xf]  ;;  %v7143_v47 = vor.u32 %v9094_v40, %v7142_v39  ;;  %v8990_v15 = vld [vmem:[%s10390_s11 + $0x74] sm:$0xf0] }
 0x261   : > { %5963 = vmatpush.bf16.msra.mxu0 %v8467_v4  ;;  %v5757_v61 = vpop.f32.mrf.mxu0  ;;  %v9090_v4 = vld [vmem:[%s10390_s11 + $0x394] sm:$0xf0]  ;;  %v6743_v7 = vor.u32 %v8994_v45, %v6742_v44  ;;  %v6710_v26 = vld [vmem:[%s10390_s11 + $0x48] sm:$0xf] }
 0x262   : > { %5976 = vmatpush.bf16.msra.mxu1 %v8595_v11  ;;  %v5758_v51 = vadd.f32 %v5757_v61, %v11057_v24  ;;  %v5770_v8 = vpop.f32.mrf.mxu1  ;;  %v6871_v11 = vor.u32 %v9026_v52, %v6870_v46  ;;  %v6982_v24 = vld [vmem:[%s10390_s11 + $0x268] sm:$0xf]  ;;  %v9054_v54 = vld [vmem:[%s10390_s11 + $0x274] sm:$0xf0] }
 0x263   : > { %5989 = vmatpush.bf16.msra.mxu2 %v8723_v13  ;;  %v6999_v13 = vor.u32 %v9058_v53, %v6998_v5  ;;  %v9086_v21 = vld [vmem:[%s10390_s11 + $0x374] sm:$0xf0]  ;;  %v6983_v25 = vor.u32 %v9054_v54, %v6982_v24  ;;  %v6838_v28 = vld [vmem:[%s10390_s11 + $0x148] sm:$0xf] }
 0x264   : > { %6002 = vmatpush.bf16.msra.mxu3 %v8851_v16  ;;  %5964 = vmatmul.bf16.vlgmr.msra.gmra.mxu0 %v10731_v57  ;;  %v6854_v16 = vld [vmem:[%s10390_s11 + $0x168] sm:$0xf]  ;;  %v8986_v27 = vld [vmem:[%s10390_s11 + $0x54] sm:$0xf0] }
 0x265   : > { %6008 = vmatpush.bf16.msrb.mxu0 %v6791_v17  ;;  %5977 = vmatmul.bf16.vlgmr.msra.gmra.mxu1 %v10737_v48  ;;  %v7127_v17 = vor.u32 %v9090_v4, %v7126_v2  ;;  %v9050_v34 = vld [vmem:[%s10390_s11 + $0x254] sm:$0xf0]  ;;  %v7094_v33 = vld [vmem:[%s10390_s11 + $0x348] sm:$0xf]  ;;  %v6711_v38 = vor.u32 %v8986_v27, %v6710_v26 }
 0x266   : > { %6021 = vmatpush.bf16.msrb.mxu1 %v6919_v18  ;;  %5990 = vmatmul.bf16.vlgmr.msra.gmra.mxu2 %v10802_v55  ;;  %v11115_v18 = vadd.f32 %v5770_v8, %v5758_v51  ;;  %v8982_v44 = vld [vmem:[%s10390_s11 + $0x34] sm:$0xf0]  ;;  %v6822_v45 = vld [vmem:[%s10390_s11 + $0x128] sm:$0xf] }
 0x267   : > { %6034 = vmatpush.bf16.msrb.mxu2 %v7047_v19  ;;  %6003 = vmatmul.bf16.vlgmr.msra.gmra.mxu3 %v10807_v50  ;;  %v9022_v19 = vld [vmem:[%s10390_s11 + $0x174] sm:$0xf0]  ;;  %v6950_v52 = vld [vmem:[%s10390_s11 + $0x228] sm:$0xf] }
 0x268   : > { %6047 = vmatpush.bf16.msrb.mxu3 %v7175_v22  ;;  %v6727_v22 = vor.u32 %v8990_v15, %v6726_v14  ;;  %v6855_v23 = vor.u32 %v9022_v19, %v6854_v16  ;;  %v9046_v5 = vld [vmem:[%s10390_s11 + $0x234] sm:$0xf0]  ;;  %v7078_v53 = vld [vmem:[%s10390_s11 + $0x328] sm:$0xf] }
 0x269   : > { %6009 = vmatpush.bf16.msrb.mxu0 %v6775_v29  ;;  %v7111_v29 = vor.u32 %v9086_v21, %v7110_v20  ;;  %v5783_v32 = vpop.f32.mrf.mxu2  ;;  %v5759_v37 = vpop.f32.mrf.mxu0  ;;  %v9078_v61 = vld [vmem:[%s10390_s11 + $0x334] sm:$0xf0]  ;;  %v6678_v4 = vld [vmem:[%s10390_s11 + $0x8] sm:$0xf]  ;;  %v6951_v8 = vor.u32 %v9046_v5, %v6950_v52 }
 0x26a   : > { %6022 = vmatpush.bf16.msrb.mxu1 %v6903_v30  ;;  %v9018_v30 = vld [vmem:[%s10390_s11 + $0x154] sm:$0xf0]  ;;  %v5796_v36 = vpop.f32.mrf.mxu3  ;;  %v5772_v40 = vpop.f32.mrf.mxu1  ;;  %v6934_v14 = vld [vmem:[%s10390_s11 + $0x208] sm:$0xf]  ;;  %v7079_v15 = vor.u32 %v9078_v61, %v7078_v53 }
 0x26b   : > { %6035 = vmatpush.bf16.msrb.mxu2 %v7031_v31  ;;  %v6966_v31 = vld [vmem:[%s10390_s11 + $0x248] sm:$0xf]  ;;  %v11130_v39 = vadd.f32 %v5796_v36, %v5783_v32  ;;  %v8978_v51 = vld [vmem:[%s10390_s11 + $0x14] sm:$0xf0] }
 0x26c   : > { %6048 = vmatpush.bf16.msrb.mxu3 %v7159_v35  ;;  %v9082_v35 = vld [vmem:[%s10390_s11 + $0x354] sm:$0xf0]  ;;  %v7302_v54 = vld [vmem:[%s10390_s11 + $0x4e8] sm:$0xf] }
 0x26d   : > { %6010 = vmatpush.bf16.msrb.mxu0 %v6759_v41  ;;  %v6839_v41 = vor.u32 %v9018_v30, %v6838_v28  ;;  %v7095_v46 = vor.u32 %v9082_v35, %v7094_v33  ;;  %v9042_v16 = vld [vmem:[%s10390_s11 + $0x214] sm:$0xf0]  ;;  %v7430_v21 = vld [vmem:[%s10390_s11 + $0x5e8] sm:$0xf] }
 0x26e   : > { %6023 = vmatpush.bf16.msrb.mxu1 %v6887_v42  ;;  %v6967_v42 = vor.u32 %v9050_v34, %v6966_v31  ;;  %v9074_v19 = vld [vmem:[%s10390_s11 + $0x314] sm:$0xf0]  ;;  %v7558_v26 = vld [vmem:[%s10390_s11 + $0x6e8] sm:$0xf] }
 0x26f   : > { %6036 = vmatpush.bf16.msrb.mxu2 %v7015_v43  ;;  %v6694_v43 = vld [vmem:[%s10390_s11 + $0x28] sm:$0xf]  ;;  %v9134_v20 = vld [vmem:[%s10390_s11 + $0x4f4] sm:$0xf0] }
 0x270   : > { %6049 = vmatpush.bf16.msrb.mxu3 %v7143_v47  ;;  %v9014_v47 = vld [vmem:[%s10390_s11 + $0x134] sm:$0xf0]  ;;  %v6695_v2 = vor.u32 %v8982_v44, %v6694_v43  ;;  %v7686_v30 = vld [vmem:[%s10390_s11 + $0x7e8] sm:$0xf]  ;;  %v7303_v32 = vor.u32 %v9134_v20, %v7302_v54 }
 0x271   : > { %6011 = vmatpush.bf16.msrb.mxu0 %v6743_v7  ;;  %v6823_v7 = vor.u32 %v9014_v47, %v6822_v45  ;;  %v5785_v24 = vpop.f32.mrf.mxu2  ;;  %v9198_v27 = vld [vmem:[%s10390_s11 + $0x6f4] sm:$0xf0]  ;;  %v7286_v36 = vld [vmem:[%s10390_s11 + $0x4c8] sm:$0xf] }
 0x272   : > { %6024 = vmatpush.bf16.msrb.mxu1 %v6871_v11  ;;  %v6806_v11 = vld [vmem:[%s10390_s11 + $0x108] sm:$0xf]  ;;  %v9230_v31 = vld [vmem:[%s10390_s11 + $0x7f4] sm:$0xf0]  ;;  %v7559_v35 = vor.u32 %v9198_v27, %v7558_v26 }
 0x273   : > { %6037 = vmatpush.bf16.msrb.mxu2 %v6999_v13  ;;  %v9010_v13 = vld [vmem:[%s10390_s11 + $0x114] sm:$0xf0]  ;;  %v7687_v40 = vor.u32 %v9230_v31, %v7686_v30  ;;  %v7670_v44 = vld [vmem:[%s10390_s11 + $0x7c8] sm:$0xf] }
 0x274   : > { %6050 = vmatpush.bf16.msrb.mxu3 %v7127_v17  ;;  %v7062_v17 = vld [vmem:[%s10390_s11 + $0x308] sm:$0xf]  ;;  %v6807_v28 = vor.u32 %v9010_v13, %v6806_v11  ;;  %v9130_v37 = vld [vmem:[%s10390_s11 + $0x4d4] sm:$0xf0] }
 0x275   : > { %6012 = vmatpush.bf16.msrb.mxu0 %v6727_v22  ;;  %v5798_v22 = vpop.f32.mrf.mxu3  ;;  %v7063_v34 = vor.u32 %v9074_v19, %v7062_v17  ;;  %v9194_v43 = vld [vmem:[%s10390_s11 + $0x6d4] sm:$0xf0]  ;;  %v7270_v5 = vld [vmem:[%s10390_s11 + $0x4a8] sm:$0xf] }
 0x276   : > { %6025 = vmatpush.bf16.msrb.mxu1 %v6855_v23  ;;  %v6679_v23 = vor.u32 %v8978_v51, %v6678_v4  ;;  %v9226_v45 = vld [vmem:[%s10390_s11 + $0x7d4] sm:$0xf0]  ;;  %v7398_v61 = vld [vmem:[%s10390_s11 + $0x5a8] sm:$0xf] }
 0x277   : > { %6038 = vmatpush.bf16.msrb.mxu2 %v6983_v25  ;;  %v9166_v25 = vld [vmem:[%s10390_s11 + $0x5f4] sm:$0xf0]  ;;  %v7526_v51 = vld [vmem:[%s10390_s11 + $0x6a8] sm:$0xf] }
 0x278   : > { %6051 = vmatpush.bf16.msrb.mxu3 %v7111_v29  ;;  %v6935_v29 = vor.u32 %v9042_v16, %v6934_v14  ;;  %v7431_v33 = vor.u32 %v9166_v25, %v7430_v21  ;;  %v9126_v53 = vld [vmem:[%s10390_s11 + $0x4b4] sm:$0xf0]  ;;  %v7254_v16 = vld [vmem:[%s10390_s11 + $0x488] sm:$0xf] }
 0x279   : > { %6013 = vmatpush.bf16.msrb.mxu0 %v6711_v38  ;;  %v7414_v38 = vld [vmem:[%s10390_s11 + $0x5c8] sm:$0xf]  ;;  %v9158_v4 = vld [vmem:[%s10390_s11 + $0x5b4] sm:$0xf0]  ;;  %v7271_v13 = vor.u32 %v9126_v53, %v7270_v5 }
 0x27a   : > { %6026 = vmatpush.bf16.msrb.mxu1 %v6839_v41  ;;  %v9162_v41 = vld [vmem:[%s10390_s11 + $0x5d4] sm:$0xf0]  ;;  %v7399_v14 = vor.u32 %v9158_v4, %v7398_v61  ;;  %v7382_v19 = vld [vmem:[%s10390_s11 + $0x588] sm:$0xf] }
 0x27b   : > { %6039 = vmatpush.bf16.msrb.mxu2 %v6967_v42  ;;  %v7542_v42 = vld [vmem:[%s10390_s11 + $0x6c8] sm:$0xf]  ;;  %v7415_v47 = vor.u32 %v9162_v41, %v7414_v38  ;;  %v9222_v11 = vld [vmem:[%s10390_s11 + $0x7b4] sm:$0xf0] }
 0x27c   : > { %6052 = vmatpush.bf16.msrb.mxu3 %v7095_v46  ;;  %v7287_v46 = vor.u32 %v9130_v37, %v7286_v36  ;;  %v7543_v52 = vor.u32 %v9194_v43, %v7542_v42  ;;  %v9122_v17 = vld [vmem:[%s10390_s11 + $0x494] sm:$0xf0]  ;;  %v7510_v20 = vld [vmem:[%s10390_s11 + $0x688] sm:$0xf] }
 0x27d   : > { %6014 = vmatpush.bf16.msrb.mxu0 %v6695_v2  ;;  %v7671_v2 = vor.u32 %v9226_v45, %v7670_v44  ;;  %v9154_v54 = vld [vmem:[%s10390_s11 + $0x594] sm:$0xf0]  ;;  %v7638_v22 = vld [vmem:[%s10390_s11 + $0x788] sm:$0xf]  ;;  %v7255_v25 = vor.u32 %v9122_v17, %v7254_v16 }
 0x27e   : > { %6027 = vmatpush.bf16.msrb.mxu1 %v6823_v7  ;;  %v9190_v7 = vld [vmem:[%s10390_s11 + $0x6b4] sm:$0xf0]  ;;  %v7383_v27 = vor.u32 %v9154_v54, %v7382_v19  ;;  %v7366_v31 = vld [vmem:[%s10390_s11 + $0x568] sm:$0xf] }
 0x27f   : > { %6040 = vmatpush.bf16.msrb.mxu2 %v6951_v8  ;;  %v7654_v8 = vld [vmem:[%s10390_s11 + $0x7a8] sm:$0xf]  ;;  %v9186_v21 = vld [vmem:[%s10390_s11 + $0x694] sm:$0xf0] }
 0x280   : > { %6053 = vmatpush.bf16.msrb.mxu3 %v7079_v15  ;;  %v7527_v15 = vor.u32 %v9190_v7, %v7526_v51  ;;  %v7655_v24 = vor.u32 %v9222_v11, %v7654_v8  ;;  %v9118_v30 = vld [vmem:[%s10390_s11 + $0x474] sm:$0xf0]  ;;  %v7494_v36 = vld [vmem:[%s10390_s11 + $0x668] sm:$0xf] }
 0x281   : > { %6015 = vmatpush.bf16.msrb.mxu0 %v6679_v23  ;;  %v9218_v23 = vld [vmem:[%s10390_s11 + $0x794] sm:$0xf0]  ;;  %v5809_v26 = vpop.f32.mrf.mxu0  ;;  %v7622_v38 = vld [vmem:[%s10390_s11 + $0x768] sm:$0xf] }
 0x282   : > { %6028 = vmatpush.bf16.msrb.mxu1 %v6807_v28  ;;  %v7511_v28 = vor.u32 %v9186_v21, %v7510_v20  ;;  %v9182_v37 = vld [vmem:[%s10390_s11 + $0x674] sm:$0xf0]  ;;  %v7222_v44 = vld [vmem:[%s10390_s11 + $0x448] sm:$0xf] }
 0x283   : > { %6041 = vmatpush.bf16.msrb.mxu2 %v6935_v29  ;;  %v7238_v29 = vld [vmem:[%s10390_s11 + $0x468] sm:$0xf]  ;;  %v7495_v43 = vor.u32 %v9182_v37, %v7494_v36  ;;  %v9114_v45 = vld [vmem:[%s10390_s11 + $0x454] sm:$0xf0] }
 0x284   : > { %6054 = vmatpush.bf16.msrb.mxu3 %v7063_v34  ;;  %6016 = vmatmul.bf16.vlgmr.msrb.gmra.mxu0 %v10502_v59  ;;  %v5810_v34 = vadd.f32 %v5809_v26, %v11130_v39  ;;  %v7239_v42 = vor.u32 %v9118_v30, %v7238_v29  ;;  %v9146_v5 = vld [vmem:[%s10390_s11 + $0x554] sm:$0xf0]  ;;  %v7478_v53 = vld [vmem:[%s10390_s11 + $0x648] sm:$0xf]  ;;  %v7223_v8 = vor.u32 %v9114_v45, %v7222_v44 }
 0x285   : > { %6060 = vmatpush.bf16.msra.mxu0 %v7303_v32  ;;  %6029 = vmatmul.bf16.vlgmr.msrb.gmra.mxu1 %v10508_v1  ;;  %v5822_v32 = vpop.f32.mrf.mxu1  ;;  %v9178_v61 = vld [vmem:[%s10390_s11 + $0x654] sm:$0xf0]  ;;  %v7606_v51 = vld [vmem:[%s10390_s11 + $0x748] sm:$0xf] }
 0x286   : > { %6073 = vmatpush.bf16.msra.mxu1 %v7431_v33  ;;  %6042 = vmatmul.bf16.vlgmr.msrb.gmra.mxu2 %v10500_v58  ;;  %v7639_v33 = vor.u32 %v9218_v23, %v7638_v22  ;;  %v5823_v41 = vadd.f32 %v5822_v32, %v5810_v34  ;;  %v9210_v7 = vld [vmem:[%s10390_s11 + $0x754] sm:$0xf0]  ;;  %v7206_v16 = vld [vmem:[%s10390_s11 + $0x428] sm:$0xf] }
 0x287   : > { %6086 = vmatpush.bf16.msra.mxu2 %v7559_v35  ;;  %6055 = vmatmul.bf16.vlgmr.msrb.gmra.mxu3 %v10506_v0  ;;  %v9150_v35 = vld [vmem:[%s10390_s11 + $0x574] sm:$0xf0]  ;;  %v7334_v19 = vld [vmem:[%s10390_s11 + $0x528] sm:$0xf]  ;;  %v7607_v54 = vor.u32 %v9210_v7, %v7606_v51 }
 0x288   : > { %6099 = vmatpush.bf16.msra.mxu3 %v7687_v40  ;;  %v9214_v40 = vld [vmem:[%s10390_s11 + $0x774] sm:$0xf0]  ;;  %v7367_v39 = vor.u32 %v9150_v35, %v7366_v31  ;;  %v7462_v21 = vld [vmem:[%s10390_s11 + $0x628] sm:$0xf] }
 0x289   : > { %6061 = vmatpush.bf16.msra.mxu0 %v7287_v46  ;;  %v7350_v46 = vld [vmem:[%s10390_s11 + $0x548] sm:$0xf]  ;;  %v9110_v17 = vld [vmem:[%s10390_s11 + $0x434] sm:$0xf0] }
 0x28a   : > { %6074 = vmatpush.bf16.msra.mxu1 %v7415_v47  ;;  %v5835_v47 = vpop.f32.mrf.mxu2  ;;  %v5848_v4 = vpop.f32.mrf.mxu3  ;;  %v9142_v20 = vld [vmem:[%s10390_s11 + $0x534] sm:$0xf0]  ;;  %v7590_v23 = vld [vmem:[%s10390_s11 + $0x728] sm:$0xf]  ;;  %v7207_v26 = vor.u32 %v9110_v17, %v7206_v16 }
 0x28b   : > { %6087 = vmatpush.bf16.msra.mxu2 %v7543_v52  ;;  %v7623_v52 = vor.u32 %v9214_v40, %v7622_v38  ;;  %v9174_v22 = vld [vmem:[%s10390_s11 + $0x634] sm:$0xf0]  ;;  %v7335_v29 = vor.u32 %v9142_v20, %v7334_v19  ;;  %v7318_v31 = vld [vmem:[%s10390_s11 + $0x508] sm:$0xf] }
 0x28c   : > { %6100 = vmatpush.bf16.msra.mxu3 %v7671_v2  ;;  %v5836_v2 = vadd.f32 %v5835_v47, %v5823_v41  ;;  %v7463_v30 = vor.u32 %v9174_v22, %v7462_v21  ;;  %v9138_v34 = vld [vmem:[%s10390_s11 + $0x514] sm:$0xf0]  ;;  %v7446_v32 = vld [vmem:[%s10390_s11 + $0x608] sm:$0xf] }
 0x28d   : > { %6062 = vmatpush.bf16.msra.mxu0 %v7271_v13  ;;  %v5811_v13 = vpop.f32.mrf.mxu0  ;;  %v9170_v36 = vld [vmem:[%s10390_s11 + $0x614] sm:$0xf0]  ;;  %v7574_v37 = vld [vmem:[%s10390_s11 + $0x708] sm:$0xf]  ;;  %v7319_v47 = vor.u32 %v9138_v34, %v7318_v31 }
 0x28e   : > { %6075 = vmatpush.bf16.msra.mxu1 %v7399_v14  ;;  %v11201_v11 = vadd.f32 %v5848_v4, %v5836_v2  ;;  %v7351_v14 = vor.u32 %v9146_v5, %v7350_v46  ;;  %v9202_v38 = vld [vmem:[%s10390_s11 + $0x714] sm:$0xf0]  ;;  %v7814_v41 = vld [vmem:[%s10390_s11 + $0x8e8] sm:$0xf] }
 0x28f   : > { %6088 = vmatpush.bf16.msra.mxu2 %v7527_v15  ;;  %v7479_v15 = vor.u32 %v9178_v61, %v7478_v53  ;;  %v9294_v44 = vld [vmem:[%s10390_s11 + $0x9f4] sm:$0xf0]  ;;  %v8070_v45 = vld [vmem:[%s10390_s11 + $0xae8] sm:$0xf]  ;;  %v7575_v61 = vor.u32 %v9202_v38, %v7574_v37 }
 0x290   : > { %6101 = vmatpush.bf16.msra.mxu3 %v7655_v24  ;;  %v5824_v24 = vpop.f32.mrf.mxu1  ;;  %v9326_v46 = vld [vmem:[%s10390_s11 + $0xaf4] sm:$0xf0]  ;;  %v8198_v5 = vld [vmem:[%s10390_s11 + $0xbe8] sm:$0xf] }
 0x291   : > { %6063 = vmatpush.bf16.msra.mxu0 %v7255_v25  ;;  %v9206_v25 = vld [vmem:[%s10390_s11 + $0x734] sm:$0xf0]  ;;  %v8071_v51 = vor.u32 %v9326_v46, %v8070_v45  ;;  %v7798_v7 = vld [vmem:[%s10390_s11 + $0x8c8] sm:$0xf] }
 0x292   : > { %6076 = vmatpush.bf16.msra.mxu1 %v7383_v27  ;;  %v7190_v27 = vld [vmem:[%s10390_s11 + $0x408] sm:$0xf]  ;;  %v7591_v35 = vor.u32 %v9206_v25, %v7590_v23  ;;  %v5850_v40 = vpop.f32.mrf.mxu3  ;;  %v9358_v53 = vld [vmem:[%s10390_s11 + $0xbf4] sm:$0xf0] }
 0x293   : > { %6089 = vmatpush.bf16.msra.mxu2 %v7511_v28  ;;  %v9106_v28 = vld [vmem:[%s10390_s11 + $0x414] sm:$0xf0]  ;;  %v7926_v13 = vld [vmem:[%s10390_s11 + $0x9c8] sm:$0xf] }
 0x294   : > { %6102 = vmatpush.bf16.msra.mxu3 %v7639_v33  ;;  %v5837_v33 = vpop.f32.mrf.mxu2  ;;  %v8054_v16 = vld [vmem:[%s10390_s11 + $0xac8] sm:$0xf]  ;;  %v9322_v17 = vld [vmem:[%s10390_s11 + $0xad4] sm:$0xf0] }
 0x295   : > { %6064 = vmatpush.bf16.msra.mxu0 %v7239_v42  ;;  %v9262_v42 = vld [vmem:[%s10390_s11 + $0x8f4] sm:$0xf0]  ;;  %v8182_v19 = vld [vmem:[%s10390_s11 + $0xbc8] sm:$0xf]  ;;  %v8055_v21 = vor.u32 %v9322_v17, %v8054_v16 }
 0x296   : > { %6077 = vmatpush.bf16.msra.mxu1 %v7367_v39  ;;  %v7942_v39 = vld [vmem:[%s10390_s11 + $0x9e8] sm:$0xf]  ;;  %v7815_v2 = vor.u32 %v9262_v42, %v7814_v41  ;;  %v9354_v24 = vld [vmem:[%s10390_s11 + $0xbd4] sm:$0xf0] }
 0x297   : > { %6090 = vmatpush.bf16.msra.mxu2 %v7495_v43  ;;  %v7191_v43 = vor.u32 %v9106_v28, %v7190_v27  ;;  %v7943_v4 = vor.u32 %v9294_v44, %v7942_v39  ;;  %v7782_v22 = vld [vmem:[%s10390_s11 + $0x8a8] sm:$0xf]  ;;  %v9254_v23 = vld [vmem:[%s10390_s11 + $0x8b4] sm:$0xf0] }
 0x298   : > { %6103 = vmatpush.bf16.msra.mxu3 %v7623_v52  ;;  %v7447_v52 = vor.u32 %v9170_v36, %v7446_v32  ;;  %v7910_v25 = vld [vmem:[%s10390_s11 + $0x9a8] sm:$0xf]  ;;  %v9286_v27 = vld [vmem:[%s10390_s11 + $0x9b4] sm:$0xf0]  ;;  %v7783_v34 = vor.u32 %v9254_v23, %v7782_v22 }
 0x299   : > { %6065 = vmatpush.bf16.msra.mxu0 %v7223_v8  ;;  %v9258_v8 = vld [vmem:[%s10390_s11 + $0x8d4] sm:$0xf0]  ;;  %v8038_v28 = vld [vmem:[%s10390_s11 + $0xaa8] sm:$0xf]  ;;  %v7911_v32 = vor.u32 %v9286_v27, %v7910_v25 }
 0x29a   : > { %6078 = vmatpush.bf16.msra.mxu1 %v7351_v14  ;;  %v8199_v14 = vor.u32 %v9358_v53, %v8198_v5  ;;  %v9350_v31 = vld [vmem:[%s10390_s11 + $0xbb4] sm:$0xf0]  ;;  %v7894_v37 = vld [vmem:[%s10390_s11 + $0x988] sm:$0xf] }
 0x29b   : > { %6091 = vmatpush.bf16.msra.mxu2 %v7479_v15  ;;  %v9290_v15 = vld [vmem:[%s10390_s11 + $0x9d4] sm:$0xf0]  ;;  %v8022_v41 = vld [vmem:[%s10390_s11 + $0xa88] sm:$0xf] }
 0x29c   : > { %6104 = vmatpush.bf16.msra.mxu3 %v7607_v54  ;;  %v7799_v54 = vor.u32 %v9258_v8, %v7798_v7  ;;  %v7927_v20 = vor.u32 %v9290_v15, %v7926_v13  ;;  %v9250_v36 = vld [vmem:[%s10390_s11 + $0x894] sm:$0xf0]  ;;  %v7750_v53 = vld [vmem:[%s10390_s11 + $0x868] sm:$0xf] }
 0x29d   : > { %6066 = vmatpush.bf16.msra.mxu0 %v7207_v26  ;;  %v8183_v26 = vor.u32 %v9354_v24, %v8182_v19  ;;  %v9282_v40 = vld [vmem:[%s10390_s11 + $0x994] sm:$0xf0]  ;;  %v8006_v8 = vld [vmem:[%s10390_s11 + $0xa68] sm:$0xf] }
 0x29e   : > { %6079 = vmatpush.bf16.msra.mxu1 %v7335_v29  ;;  %v9318_v29 = vld [vmem:[%s10390_s11 + $0xab4] sm:$0xf0]  ;;  %v8134_v13 = vld [vmem:[%s10390_s11 + $0xb68] sm:$0xf] }
 0x29f   : > { %6092 = vmatpush.bf16.msra.mxu2 %v7463_v30  ;;  %v8166_v30 = vld [vmem:[%s10390_s11 + $0xba8] sm:$0xf]  ;;  %v8039_v33 = vor.u32 %v9318_v29, %v8038_v28  ;;  %v9314_v42 = vld [vmem:[%s10390_s11 + $0xa94] sm:$0xf0] }
 0x2a0   : > { %6105 = vmatpush.bf16.msra.mxu3 %v7591_v35  ;;  %v7766_v35 = vld [vmem:[%s10390_s11 + $0x888] sm:$0xf]  ;;  %v8167_v38 = vor.u32 %v9350_v31, %v8166_v30  ;;  %v9346_v44 = vld [vmem:[%s10390_s11 + $0xb94] sm:$0xf0]  ;;  %v8023_v5 = vor.u32 %v9314_v42, %v8022_v41 }
 0x2a1   : > { %6067 = vmatpush.bf16.msra.mxu0 %v7191_v43  ;;  %v5861_v39 = vpop.f32.mrf.mxu0  ;;  %v8150_v43 = vld [vmem:[%s10390_s11 + $0xb88] sm:$0xf]  ;;  %v7767_v46 = vor.u32 %v9250_v36, %v7766_v35  ;;  %v9278_v7 = vld [vmem:[%s10390_s11 + $0x974] sm:$0xf0] }
 0x2a2   : > { %6080 = vmatpush.bf16.msra.mxu1 %v7319_v47  ;;  %v5862_v45 = vadd.f32 %v5861_v39, %v11201_v11  ;;  %v5874_v47 = vpop.f32.mrf.mxu1  ;;  %v9310_v11 = vld [vmem:[%s10390_s11 + $0xa74] sm:$0xf0]  ;;  %v7734_v19 = vld [vmem:[%s10390_s11 + $0x848] sm:$0xf] }
 0x2a3   : > { %6093 = vmatpush.bf16.msra.mxu2 %v7447_v52  ;;  %v7895_v52 = vor.u32 %v9282_v40, %v7894_v37  ;;  %v8007_v17 = vor.u32 %v9310_v11, %v8006_v8  ;;  %v9242_v24 = vld [vmem:[%s10390_s11 + $0x854] sm:$0xf0]  ;;  %v7990_v23 = vld [vmem:[%s10390_s11 + $0xa48] sm:$0xf] }
 0x2a4   : > { %6106 = vmatpush.bf16.msra.mxu3 %v7575_v61  ;;  %6068 = vmatmul.bf16.vlgmr.msra.gmra.mxu0 %v10562_v9  ;;  %v9246_v61 = vld [vmem:[%s10390_s11 + $0x874] sm:$0xf0]  ;;  %v8118_v28 = vld [vmem:[%s10390_s11 + $0xb48] sm:$0xf]  ;;  %v7735_v31 = vor.u32 %v9242_v24, %v7734_v19 }
 0x2a5   : > { %6112 = vmatpush.bf16.msrb.mxu0 %v7815_v2  ;;  %6081 = vmatmul.bf16.vlgmr.msra.gmra.mxu1 %v10566_v12  ;;  %v7878_v2 = vld [vmem:[%s10390_s11 + $0x968] sm:$0xf]  ;;  %v7751_v15 = vor.u32 %v9246_v61, %v7750_v53  ;;  %v9274_v22 = vld [vmem:[%s10390_s11 + $0x954] sm:$0xf0] }
 0x2a6   : > { %6125 = vmatpush.bf16.msrb.mxu1 %v7943_v4  ;;  %6094 = vmatmul.bf16.vlgmr.msra.gmra.mxu2 %v10558_v6  ;;  %v8151_v4 = vor.u32 %v9346_v44, %v8150_v43  ;;  %v7879_v16 = vor.u32 %v9278_v7, %v7878_v2  ;;  %v9306_v25 = vld [vmem:[%s10390_s11 + $0xa54] sm:$0xf0]  ;;  %v7718_v36 = vld [vmem:[%s10390_s11 + $0x828] sm:$0xf] }
 0x2a7   : > { %6138 = vmatpush.bf16.msrb.mxu2 %v8071_v51  ;;  %6107 = vmatmul.bf16.vlgmr.msra.gmra.mxu3 %v10564_v10  ;;  %v5875_v51 = vadd.f32 %v5874_v47, %v5862_v45  ;;  %v9338_v29 = vld [vmem:[%s10390_s11 + $0xb54] sm:$0xf0]  ;;  %v7991_v35 = vor.u32 %v9306_v25, %v7990_v23  ;;  %v7974_v42 = vld [vmem:[%s10390_s11 + $0xa28] sm:$0xf] }
 0x2a8   : > { %6151 = vmatpush.bf16.msrb.mxu3 %v8199_v14  ;;  %v9342_v14 = vld [vmem:[%s10390_s11 + $0xb74] sm:$0xf0]  ;;  %v8119_v40 = vor.u32 %v9338_v29, %v8118_v28  ;;  %v8102_v43 = vld [vmem:[%s10390_s11 + $0xb28] sm:$0xf] }
 0x2a9   : > { %6113 = vmatpush.bf16.msrb.mxu0 %v7799_v54  ;;  %v7862_v54 = vld [vmem:[%s10390_s11 + $0x948] sm:$0xf]  ;;  %v5863_v30 = vpop.f32.mrf.mxu0  ;;  %v9238_v37 = vld [vmem:[%s10390_s11 + $0x834] sm:$0xf0] }
 0x2aa   : > { %6126 = vmatpush.bf16.msrb.mxu1 %v7927_v20  ;;  %v8135_v20 = vor.u32 %v9342_v14, %v8134_v13  ;;  %v5900_v27 = vpop.f32.mrf.mxu3  ;;  %v9270_v41 = vld [vmem:[%s10390_s11 + $0x934] sm:$0xf0]  ;;  %v7719_v45 = vor.u32 %v9238_v37, %v7718_v36  ;;  %v7830_v53 = vld [vmem:[%s10390_s11 + $0x908] sm:$0xf] }
 0x2ab   : > { %6139 = vmatpush.bf16.msrb.mxu2 %v8055_v21  ;;  %v5887_v21 = vpop.f32.mrf.mxu2  ;;  %v9302_v39 = vld [vmem:[%s10390_s11 + $0xa34] sm:$0xf0]  ;;  %v7958_v2 = vld [vmem:[%s10390_s11 + $0xa08] sm:$0xf] }
 0x2ac   : > { %6152 = vmatpush.bf16.msrb.mxu3 %v8183_v26  ;;  %v5888_v26 = vadd.f32 %v5887_v21, %v5875_v51  ;;  %v9334_v44 = vld [vmem:[%s10390_s11 + $0xb34] sm:$0xf0]  ;;  %v8086_v7 = vld [vmem:[%s10390_s11 + $0xb08] sm:$0xf] }
 0x2ad   : > { %6114 = vmatpush.bf16.msrb.mxu0 %v7783_v34  ;;  %v5876_v34 = vpop.f32.mrf.mxu1  ;;  %v9234_v47 = vld [vmem:[%s10390_s11 + $0x814] sm:$0xf0]  ;;  %v8326_v13 = vld [vmem:[%s10390_s11 + $0xce8] sm:$0xf] }
 0x2ae   : > { %6127 = vmatpush.bf16.msrb.mxu1 %v7911_v32  ;;  %v11272_v32 = vadd.f32 %v5900_v27, %v5888_v26  ;;  %v9266_v61 = vld [vmem:[%s10390_s11 + $0x914] sm:$0xf0]  ;;  %v8582_v24 = vld [vmem:[%s10390_s11 + $0xee8] sm:$0xf] }
 0x2af   : > { %6140 = vmatpush.bf16.msrb.mxu2 %v8039_v33  ;;  %v7863_v33 = vor.u32 %v9274_v22, %v7862_v54  ;;  %v9298_v51 = vld [vmem:[%s10390_s11 + $0xa14] sm:$0xf0]  ;;  %v8710_v22 = vld [vmem:[%s10390_s11 + $0xfe8] sm:$0xf] }
 0x2b0   : > { %6153 = vmatpush.bf16.msrb.mxu3 %v8167_v38  ;;  %v7846_v38 = vld [vmem:[%s10390_s11 + $0x928] sm:$0xf]  ;;  %v9330_v8 = vld [vmem:[%s10390_s11 + $0xb14] sm:$0xf0]  ;;  %v7959_v21 = vor.u32 %v9298_v51, %v7958_v2 }
 0x2b1   : > { %6115 = vmatpush.bf16.msrb.mxu0 %v7767_v46  ;;  %v7702_v46 = vld [vmem:[%s10390_s11 + $0x808] sm:$0xf]  ;;  %v9390_v14 = vld [vmem:[%s10390_s11 + $0xcf4] sm:$0xf0]  ;;  %v8087_v25 = vor.u32 %v9330_v8, %v8086_v7 }
 0x2b2   : > { %6128 = vmatpush.bf16.msrb.mxu1 %v7895_v52  ;;  %v7847_v52 = vor.u32 %v9270_v41, %v7846_v38  ;;  %v9422_v19 = vld [vmem:[%s10390_s11 + $0xdf4] sm:$0xf0]  ;;  %v8327_v26 = vor.u32 %v9390_v14, %v8326_v13  ;;  %v8310_v29 = vld [vmem:[%s10390_s11 + $0xcc8] sm:$0xf] }
 0x2b3   : > { %6141 = vmatpush.bf16.msrb.mxu2 %v8023_v5  ;;  %v7975_v5 = vor.u32 %v9302_v39, %v7974_v42  ;;  %v5889_v11 = vpop.f32.mrf.mxu2  ;;  %v9454_v54 = vld [vmem:[%s10390_s11 + $0xef4] sm:$0xf0]  ;;  %v8694_v37 = vld [vmem:[%s10390_s11 + $0xfc8] sm:$0xf] }
 0x2b4   : > { %6154 = vmatpush.bf16.msrb.mxu3 %v8151_v4  ;;  %v8103_v4 = vor.u32 %v9334_v44, %v8102_v43  ;;  %v9486_v23 = vld [vmem:[%s10390_s11 + $0xff4] sm:$0xf0]  ;;  %v8583_v28 = vor.u32 %v9454_v54, %v8582_v24  ;;  %v8294_v39 = vld [vmem:[%s10390_s11 + $0xca8] sm:$0xf] }
 0x2b5   : > { %6116 = vmatpush.bf16.msrb.mxu0 %v7751_v15  ;;  %v8454_v15 = vld [vmem:[%s10390_s11 + $0xde8] sm:$0xf]  ;;  %v9386_v30 = vld [vmem:[%s10390_s11 + $0xcd4] sm:$0xf0]  ;;  %v8711_v34 = vor.u32 %v9486_v23, %v8710_v22 }
 0x2b6   : > { %6129 = vmatpush.bf16.msrb.mxu1 %v7879_v16  ;;  %v5902_v16 = vpop.f32.mrf.mxu3  ;;  %v8455_v27 = vor.u32 %v9422_v19, %v8454_v15  ;;  %v9450_v36 = vld [vmem:[%s10390_s11 + $0xed4] sm:$0xf0]  ;;  %v8422_v44 = vld [vmem:[%s10390_s11 + $0xda8] sm:$0xf] }
 0x2b7   : > { %6142 = vmatpush.bf16.msrb.mxu2 %v8007_v17  ;;  %v7703_v17 = vor.u32 %v9234_v47, %v7702_v46  ;;  %v9482_v38 = vld [vmem:[%s10390_s11 + $0xfd4] sm:$0xf0]  ;;  %v8550_v47 = vld [vmem:[%s10390_s11 + $0xea8] sm:$0xf] }
 0x2b8   : > { %6155 = vmatpush.bf16.msrb.mxu3 %v8135_v20  ;;  %v7831_v20 = vor.u32 %v9266_v61, %v7830_v53  ;;  %v9382_v43 = vld [vmem:[%s10390_s11 + $0xcb4] sm:$0xf0]  ;;  %v8278_v51 = vld [vmem:[%s10390_s11 + $0xc88] sm:$0xf] }
 0x2b9   : > { %6117 = vmatpush.bf16.msrb.mxu0 %v7735_v31  ;;  %v8438_v31 = vld [vmem:[%s10390_s11 + $0xdc8] sm:$0xf]  ;;  %v9414_v46 = vld [vmem:[%s10390_s11 + $0xdb4] sm:$0xf0]  ;;  %v8295_v61 = vor.u32 %v9382_v43, %v8294_v39 }
 0x2ba   : > { %6130 = vmatpush.bf16.msrb.mxu1 %v7863_v33  ;;  %v9418_v33 = vld [vmem:[%s10390_s11 + $0xdd4] sm:$0xf0]  ;;  %v8423_v2 = vor.u32 %v9414_v46, %v8422_v44  ;;  %v8406_v8 = vld [vmem:[%s10390_s11 + $0xd88] sm:$0xf] }
 0x2bb   : > { %6143 = vmatpush.bf16.msrb.mxu2 %v7991_v35  ;;  %v8566_v35 = vld [vmem:[%s10390_s11 + $0xec8] sm:$0xf]  ;;  %v8439_v41 = vor.u32 %v9418_v33, %v8438_v31  ;;  %v9478_v53 = vld [vmem:[%s10390_s11 + $0xfb4] sm:$0xf0] }
 0x2bc   : > { %6156 = vmatpush.bf16.msrb.mxu3 %v8119_v40  ;;  %v8311_v40 = vor.u32 %v9386_v30, %v8310_v29  ;;  %v8567_v42 = vor.u32 %v9450_v36, %v8566_v35  ;;  %v9378_v7 = vld [vmem:[%s10390_s11 + $0xc94] sm:$0xf0]  ;;  %v8534_v14 = vld [vmem:[%s10390_s11 + $0xe88] sm:$0xf] }
 0x2bd   : > { %6118 = vmatpush.bf16.msrb.mxu0 %v7719_v45  ;;  %v8695_v45 = vor.u32 %v9482_v38, %v8694_v37  ;;  %v9410_v13 = vld [vmem:[%s10390_s11 + $0xd94] sm:$0xf0]  ;;  %v8279_v54 = vor.u32 %v9378_v7, %v8278_v51  ;;  %v8262_v23 = vld [vmem:[%s10390_s11 + $0xc68] sm:$0xf] }
 0x2be   : > { %6131 = vmatpush.bf16.msrb.mxu1 %v7847_v52  ;;  %v9446_v52 = vld [vmem:[%s10390_s11 + $0xeb4] sm:$0xf0]  ;;  %v8518_v30 = vld [vmem:[%s10390_s11 + $0xe68] sm:$0xf] }
 0x2bf   : > { %6144 = vmatpush.bf16.msrb.mxu2 %v7975_v5  ;;  %v8678_v5 = vld [vmem:[%s10390_s11 + $0xfa8] sm:$0xf]  ;;  %v9442_v15 = vld [vmem:[%s10390_s11 + $0xe94] sm:$0xf0] }
 0x2c0   : > { %6157 = vmatpush.bf16.msrb.mxu3 %v8103_v4  ;;  %v8551_v4 = vor.u32 %v9446_v52, %v8550_v47  ;;  %v8679_v11 = vor.u32 %v9478_v53, %v8678_v5  ;;  %v9474_v19 = vld [vmem:[%s10390_s11 + $0xf94] sm:$0xf0]  ;;  %v8535_v22 = vor.u32 %v9442_v15, %v8534_v14  ;;  %v8646_v31 = vld [vmem:[%s10390_s11 + $0xf68] sm:$0xf] }
 0x2c1   : > { %6119 = vmatpush.bf16.msrb.mxu0 %v7703_v17  ;;  %v5913_v16 = vpop.f32.mrf.mxu0  ;;  %v8662_v17 = vld [vmem:[%s10390_s11 + $0xf88] sm:$0xf]  ;;  %v9406_v29 = vld [vmem:[%s10390_s11 + $0xd74] sm:$0xf0] }
 0x2c2   : > { %6132 = vmatpush.bf16.msrb.mxu1 %v7831_v20  ;;  %v5914_v24 = vadd.f32 %v5913_v16, %v11272_v32  ;;  %v5926_v20 = vpop.f32.mrf.mxu1  ;;  %v9438_v32 = vld [vmem:[%s10390_s11 + $0xe74] sm:$0xf0]  ;;  %v8246_v37 = vld [vmem:[%s10390_s11 + $0xc48] sm:$0xf] }
 0x2c3   : > { %6145 = vmatpush.bf16.msrb.mxu2 %v7959_v21  ;;  %v8407_v21 = vor.u32 %v9410_v13, %v8406_v8  ;;  %v8519_v36 = vor.u32 %v9438_v32, %v8518_v30  ;;  %v9370_v38 = vld [vmem:[%s10390_s11 + $0xc54] sm:$0xf0]  ;;  %v8502_v43 = vld [vmem:[%s10390_s11 + $0xe48] sm:$0xf] }
 0x2c4   : > { %6158 = vmatpush.bf16.msrb.mxu3 %v8087_v25  ;;  %6120 = vmatmul.bf16.vlgmr.msrb.gmra.mxu0 %v10644_v56  ;;  %v9374_v25 = vld [vmem:[%s10390_s11 + $0xc74] sm:$0xf0]  ;;  %v8630_v47 = vld [vmem:[%s10390_s11 + $0xf48] sm:$0xf]  ;;  %v8247_v53 = vor.u32 %v9370_v38, %v8246_v37  ;;  %v9004_v38 = vld [vmem:[%s10390_s11 + $0xec] sm:$0xf] }
 0x2c5   : > { %6164 = vmatpush.bf16.msra.mxu0 %v8327_v26  ;;  %6133 = vmatmul.bf16.vlgmr.msrb.gmra.mxu1 %v10655_v63  ;;  %v8390_v26 = vld [vmem:[%s10390_s11 + $0xd68] sm:$0xf]  ;;  %v8263_v33 = vor.u32 %v9374_v25, %v8262_v23  ;;  %v9402_v39 = vld [vmem:[%s10390_s11 + $0xd54] sm:$0xf0] }
 0x2c6   : > { %6177 = vmatpush.bf16.msra.mxu1 %v8455_v27  ;;  %6146 = vmatmul.bf16.vlgmr.msrb.gmra.mxu2 %v10651_v62  ;;  %v8663_v27 = vor.u32 %v9474_v19, %v8662_v17  ;;  %v8391_v35 = vor.u32 %v9406_v29, %v8390_v26  ;;  %v9434_v44 = vld [vmem:[%s10390_s11 + $0xe54] sm:$0xf0]  ;;  %v8230_v7 = vld [vmem:[%s10390_s11 + $0xc28] sm:$0xf] }
 0x2c7   : > { %6190 = vmatpush.bf16.msra.mxu2 %v8583_v28  ;;  %6159 = vmatmul.bf16.vlgmr.msrb.gmra.mxu3 %v10661_v3  ;;  %v5927_v28 = vadd.f32 %v5926_v20, %v5914_v24  ;;  %v9466_v52 = vld [vmem:[%s10390_s11 + $0xf54] sm:$0xf0]  ;;  %v8503_v51 = vor.u32 %v9434_v44, %v8502_v43  ;;  %v8486_v15 = vld [vmem:[%s10390_s11 + $0xe28] sm:$0xf]  ;;  %v6920_v43 = vld [vmem:[%s10390_s11 + $0x1f8] sm:$0xf0] }
 0x2c8   : > { %6203 = vmatpush.bf16.msra.mxu3 %v8711_v34  ;;  %v9470_v34 = vld [vmem:[%s10390_s11 + $0xf74] sm:$0xf0]  ;;  %v8631_v13 = vor.u32 %v9466_v52, %v8630_v47  ;;  %v8614_v17 = vld [vmem:[%s10390_s11 + $0xf28] sm:$0xf] }
 0x2c9   : > { %6165 = vmatpush.bf16.msra.mxu0 %v8311_v40  ;;  %v8374_v40 = vld [vmem:[%s10390_s11 + $0xd48] sm:$0xf]  ;;  %v5915_v5 = vpop.f32.mrf.mxu0  ;;  %v9366_v8 = vld [vmem:[%s10390_s11 + $0xc34] sm:$0xf0] }
 0x2ca   : > { %6178 = vmatpush.bf16.msra.mxu1 %v8439_v41  ;;  %v8647_v41 = vor.u32 %v9470_v34, %v8646_v31  ;;  %v5952_v46 = vpop.f32.mrf.mxu3  ;;  %v9398_v14 = vld [vmem:[%s10390_s11 + $0xd34] sm:$0xf0]  ;;  %v8231_v24 = vor.u32 %v9366_v8, %v8230_v7  ;;  %v8342_v23 = vld [vmem:[%s10390_s11 + $0xd08] sm:$0xf]  ;;  %v6776_v7 = vld [vmem:[%s10390_s11 + $0xd8] sm:$0xf0] }
 0x2cb   : > { %6191 = vmatpush.bf16.msra.mxu2 %v8567_v42  ;;  %v5939_v42 = vpop.f32.mrf.mxu2  ;;  %v9430_v16 = vld [vmem:[%s10390_s11 + $0xe34] sm:$0xf0]  ;;  %v8470_v26 = vld [vmem:[%s10390_s11 + $0xe08] sm:$0xf]  ;;  %v9032_v8 = vld [vmem:[%s10390_s11 + $0x1cc] sm:$0xf] }
 0x2cc   : > { %6204 = vmatpush.bf16.msra.mxu3 %v8695_v45  ;;  %v5940_v45 = vadd.f32 %v5939_v42, %v5927_v28  ;;  %v9462_v19 = vld [vmem:[%s10390_s11 + $0xf34] sm:$0xf0]  ;;  %v8598_v29 = vld [vmem:[%s10390_s11 + $0xf08] sm:$0xf] }
 0x2cd   : > { %6166 = vmatpush.bf16.msra.mxu0 %v8295_v61  ;;  %v5928_v61 = vpop.f32.mrf.mxu1  ;;  %v9362_v20 = vld [vmem:[%s10390_s11 + $0xc14] sm:$0xf0]  ;;  %v8838_v31 = vld [vmem:[%s10390_s11 + $0x10e8] sm:$0xf] }
 0x2ce   : > { %6179 = vmatpush.bf16.msra.mxu1 %v8423_v2  ;;  %v11343_v2 = vadd.f32 %v5952_v46, %v5940_v45  ;;  %v9394_v25 = vld [vmem:[%s10390_s11 + $0xd14] sm:$0xf0]  ;;  %v8822_v52 = vld [vmem:[%s10390_s11 + $0x10c8] sm:$0xf] }
 0x2cf   : > { %6192 = vmatpush.bf16.msra.mxu2 %v8551_v4  ;;  %v8375_v4 = vor.u32 %v9402_v39, %v8374_v40  ;;  %v9426_v28 = vld [vmem:[%s10390_s11 + $0xe14] sm:$0xf0]  ;;  %v6792_v40 = vld [vmem:[%s10390_s11 + $0xf8] sm:$0xf0]  ;;  %v9036_v39 = vld [vmem:[%s10390_s11 + $0x1ec] sm:$0xf] }
 0x2d0   : > { %6205 = vmatpush.bf16.msra.mxu3 %v8679_v11  ;;  %v8358_v11 = vld [vmem:[%s10390_s11 + $0xd28] sm:$0xf]  ;;  %v9458_v30 = vld [vmem:[%s10390_s11 + $0xf14] sm:$0xf0]  ;;  %v8471_v42 = vor.u32 %v9426_v28, %v8470_v26  ;;  %v6795_v47 = vor.u32 %v9004_v38, %v6792_v40  ;;  %v6923_v61 = vor.u32 %v9036_v39, %v6920_v43 }
 0x2d1   : > { %6167 = vmatpush.bf16.msra.mxu0 %v8279_v54  ;;  %v8214_v54 = vld [vmem:[%s10390_s11 + $0xc08] sm:$0xf]  ;;  %v9518_v34 = vld [vmem:[%s10390_s11 + $0x10f4] sm:$0xf0]  ;;  %v8599_v44 = vor.u32 %v9458_v30, %v8598_v29 }
 0x2d2   : > { %6180 = vmatpush.bf16.msra.mxu1 %v8407_v21  ;;  %v8359_v21 = vor.u32 %v9398_v14, %v8358_v11  ;;  %v9550_v37 = vld [vmem:[%s10390_s11 + $0x11f4] sm:$0xf0]  ;;  %v8839_v45 = vor.u32 %v9518_v34, %v8838_v31  ;;  %v6904_v11 = vld [vmem:[%s10390_s11 + $0x1d8] sm:$0xf0]  ;;  %v8790_v28 = vld [vmem:[%s10390_s11 + $0x1088] sm:$0xf] }
 0x2d3   : > { %6193 = vmatpush.bf16.msra.mxu2 %v8535_v22  ;;  %v8487_v22 = vor.u32 %v9430_v16, %v8486_v15  ;;  %v5941_v32 = vpop.f32.mrf.mxu2  ;;  %v9514_v5 = vld [vmem:[%s10390_s11 + $0x10d4] sm:$0xf0]  ;;  %v8806_v16 = vld [vmem:[%s10390_s11 + $0x10a8] sm:$0xf]  ;;  %v8992_v34 = vld [vmem:[%s10390_s11 + $0x8c] sm:$0xf] }
 0x2d4   : > { %6206 = vmatpush.bf16.msra.mxu3 %v8663_v27  ;;  %v8615_v27 = vor.u32 %v9462_v19, %v8614_v17  ;;  %v9510_v17 = vld [vmem:[%s10390_s11 + $0x10b4] sm:$0xf0]  ;;  %v8934_v19 = vld [vmem:[%s10390_s11 + $0x11a8] sm:$0xf] }
 0x2d5   : > { %6168 = vmatpush.bf16.msra.mxu0 %v8263_v33  ;;  %v8966_v33 = vld [vmem:[%s10390_s11 + $0x11e8] sm:$0xf]  ;;  %v9506_v29 = vld [vmem:[%s10390_s11 + $0x1094] sm:$0xf0] }
 0x2d6   : > { %6181 = vmatpush.bf16.msra.mxu1 %v8391_v35  ;;  %v5954_v35 = vpop.f32.mrf.mxu3  ;;  %v8967_v46 = vor.u32 %v9550_v37, %v8966_v33  ;;  %v8918_v30 = vld [vmem:[%s10390_s11 + $0x1188] sm:$0xf]  ;;  %v9538_v31 = vld [vmem:[%s10390_s11 + $0x1194] sm:$0xf0]  ;;  %v6744_v33 = vld [vmem:[%s10390_s11 + $0x98] sm:$0xf0]  ;;  %v8791_v40 = vor.u32 %v9506_v29, %v8790_v28 }
 0x2d7   : > { %6194 = vmatpush.bf16.msra.mxu2 %v8519_v36  ;;  %v8215_v36 = vor.u32 %v9362_v20, %v8214_v54  ;;  %v9542_v54 = vld [vmem:[%s10390_s11 + $0x11b4] sm:$0xf0]  ;;  %v8996_v20 = vld [vmem:[%s10390_s11 + $0xac] sm:$0xf]  ;;  %v6872_v37 = vld [vmem:[%s10390_s11 + $0x198] sm:$0xf0]  ;;  %v6747_v39 = vor.u32 %v8992_v34, %v6744_v33 }
 0x2d8   : > { %6207 = vmatpush.bf16.msra.mxu3 %v8647_v41  ;;  %v8343_v41 = vor.u32 %v9394_v25, %v8342_v23  ;;  %v6888_v23 = vld [vmem:[%s10390_s11 + $0x1b8] sm:$0xf0]  ;;  %v8807_v25 = vor.u32 %v9510_v17, %v8806_v16  ;;  %v8935_v26 = vor.u32 %v9542_v54, %v8934_v19  ;;  %v8774_v43 = vld [vmem:[%s10390_s11 + $0x1068] sm:$0xf]  ;;  %v9530_v16 = vld [vmem:[%s10390_s11 + $0x1154] sm:$0xf0] }
 0x2d9   : > { %6169 = vmatpush.bf16.msra.mxu0 %v8247_v53  ;;  %v8950_v53 = vld [vmem:[%s10390_s11 + $0x11c8] sm:$0xf]  ;;  %v8984_v17 = vld [vmem:[%s10390_s11 + $0x4c] sm:$0xf]  ;;  %v6712_v19 = vld [vmem:[%s10390_s11 + $0x58] sm:$0xf0] }
 0x2da   : > { %6182 = vmatpush.bf16.msra.mxu1 %v8375_v4  ;;  %v9546_v4 = vld [vmem:[%s10390_s11 + $0x11d4] sm:$0xf0]  ;;  %v6715_v28 = vor.u32 %v8984_v17, %v6712_v19  ;;  %v8742_v29 = vld [vmem:[%s10390_s11 + $0x1028] sm:$0xf]  ;;  %v8980_v33 = vld [vmem:[%s10390_s11 + $0x2c] sm:$0xf] }
 0x2db   : > { %6195 = vmatpush.bf16.msra.mxu2 %v8503_v51  ;;  %v9000_v51 = vld [vmem:[%s10390_s11 + $0xcc] sm:$0xf]  ;;  %v8951_v14 = vor.u32 %v9546_v4, %v8950_v53  ;;  %v9526_v34 = vld [vmem:[%s10390_s11 + $0x1134] sm:$0xf0]  ;;  %v7432_v19 = vld [vmem:[%s10390_s11 + $0x5f8] sm:$0xf0] }
 0x2dc   : > { %6208 = vmatpush.bf16.msra.mxu3 %v8631_v13  ;;  %v8823_v13 = vor.u32 %v9514_v5, %v8822_v52  ;;  %v6779_v15 = vor.u32 %v9000_v51, %v6776_v7  ;;  %v9534_v52 = vld [vmem:[%s10390_s11 + $0x1174] sm:$0xf0]  ;;  %v8988_v5 = vld [vmem:[%s10390_s11 + $0x6c] sm:$0xf] }
 0x2dd   : > { %6170 = vmatpush.bf16.msra.mxu0 %v8231_v24  ;;  %v6907_v24 = vor.u32 %v9032_v8, %v6904_v11  ;;  %v9020_v53 = vld [vmem:[%s10390_s11 + $0x16c] sm:$0xf]  ;;  %v8758_v8 = vld [vmem:[%s10390_s11 + $0x1048] sm:$0xf]  ;;  %v9498_v11 = vld [vmem:[%s10390_s11 + $0x1054] sm:$0xf0] }
 0x2de   : > { %6183 = vmatpush.bf16.msra.mxu1 %v8359_v21  ;;  %v6760_v21 = vld [vmem:[%s10390_s11 + $0xb8] sm:$0xf0]  ;;  %v9164_v17 = vld [vmem:[%s10390_s11 + $0x5ec] sm:$0xf] }
 0x2df   : > { %6196 = vmatpush.bf16.msra.mxu2 %v8487_v22  ;;  %v9028_v22 = vld [vmem:[%s10390_s11 + $0x1ac] sm:$0xf] }
 0x2e0   : > { %6209 = vmatpush.bf16.msra.mxu3 %v8615_v27  ;;  %v6763_v27 = vor.u32 %v8996_v20, %v6760_v21  ;;  %v6891_v32 = vor.u32 %v9028_v22, %v6888_v23  ;;  %v9016_v20 = vld [vmem:[%s10390_s11 + $0x14c] sm:$0xf]  ;;  %v6840_v21 = vld [vmem:[%s10390_s11 + $0x158] sm:$0xf0]  ;;  %v8759_v23 = vor.u32 %v9498_v11, %v8758_v8 }
 0x2e1   : > { %6171 = vmatpush.bf16.msra.mxu0 %v8215_v36  ;;  %v5965_v35 = vpop.f32.mrf.mxu0  ;;  %v9024_v36 = vld [vmem:[%s10390_s11 + $0x18c] sm:$0xf]  ;;  %v7176_v11 = vld [vmem:[%s10390_s11 + $0x3f8] sm:$0xf0] }
 0x2e2   : > { %6184 = vmatpush.bf16.msra.mxu1 %v8343_v41  ;;  %v5966_v38 = vadd.f32 %v5965_v35, %v11343_v2  ;;  %v5978_v41 = vpop.f32.mrf.mxu1  ;;  %v6728_v2 = vld [vmem:[%s10390_s11 + $0x78] sm:$0xf0] }
 0x2e3   : > { %6197 = vmatpush.bf16.msra.mxu2 %v8471_v42  ;;  %v8919_v42 = vor.u32 %v9538_v31, %v8918_v30  ;;  %v6731_v7 = vor.u32 %v8988_v5, %v6728_v2  ;;  %v9494_v30 = vld [vmem:[%s10390_s11 + $0x1034] sm:$0xf0]  ;;  %v6843_v31 = vor.u32 %v9016_v20, %v6840_v21  ;;  %v6696_v35 = vld [vmem:[%s10390_s11 + $0x38] sm:$0xf0]  ;;  %v9008_v2 = vld [vmem:[%s10390_s11 + $0x10c] sm:$0xf] }
 0x2e4   : > { %6210 = vmatpush.bf16.msra.mxu3 %v8599_v44  ;;  %6172 = vmatmul.bf16.vlgmr.msra.gmra.mxu0 %v10726_v49  ;;  %v9502_v44 = vld [vmem:[%s10390_s11 + $0x1074] sm:$0xf0]  ;;  %v6680_v5 = vld [vmem:[%s10390_s11 + $0x18] sm:$0xf0] }
 0x2e5   : > { %6216 = vmatpush.bf16.msrb.mxu0 %v8839_v45  ;;  %6185 = vmatmul.bf16.vlgmr.msra.gmra.mxu1 %v10733_v60  ;;  %v8902_v45 = vld [vmem:[%s10390_s11 + $0x1168] sm:$0xf]  ;;  %v8775_v4 = vor.u32 %v9502_v44, %v8774_v43  ;;  %v6699_v44 = vor.u32 %v8980_v33, %v6696_v35  ;;  %v9060_v35 = vld [vmem:[%s10390_s11 + $0x2ac] sm:$0xf] }
 0x2e6   : > { %6229 = vmatpush.bf16.msrb.mxu1 %v8967_v46  ;;  %6198 = vmatmul.bf16.vlgmr.msra.gmra.mxu2 %v10731_v57  ;;  %v6875_v46 = vor.u32 %v9024_v36, %v6872_v37  ;;  %v8903_v51 = vor.u32 %v9534_v52, %v8902_v45  ;;  %v9012_v37 = vld [vmem:[%s10390_s11 + $0x12c] sm:$0xf]  ;;  %v8854_v45 = vld [vmem:[%s10390_s11 + $0x1108] sm:$0xf] }
 0x2e7   : > { %6242 = vmatpush.bf16.msrb.mxu2 %v6795_v47  ;;  %6211 = vmatmul.bf16.vlgmr.msra.gmra.mxu3 %v10737_v48  ;;  %v5979_v47 = vadd.f32 %v5978_v41, %v5966_v38  ;;  %v6824_v38 = vld [vmem:[%s10390_s11 + $0x138] sm:$0xf0]  ;;  %v8726_v41 = vld [vmem:[%s10390_s11 + $0x1008] sm:$0xf] }
 0x2e8   : > { %6255 = vmatpush.bf16.msrb.mxu3 %v6923_v61  ;;  %v6856_v61 = vld [vmem:[%s10390_s11 + $0x178] sm:$0xf0]  ;;  %v6827_v52 = vor.u32 %v9012_v37, %v6824_v38  ;;  %v9092_v37 = vld [vmem:[%s10390_s11 + $0x3ac] sm:$0xf] }
 0x2e9   : > { %6217 = vmatpush.bf16.msrb.mxu0 %v8823_v13  ;;  %v8886_v13 = vld [vmem:[%s10390_s11 + $0x1148] sm:$0xf]  ;;  %v5967_v22 = vpop.f32.mrf.mxu0 }
 0x2ea   : > { %6230 = vmatpush.bf16.msrb.mxu1 %v8951_v14  ;;  %v6859_v14 = vor.u32 %v9020_v53, %v6856_v61  ;;  %v6004_v54 = vpop.f32.mrf.mxu3  ;;  %v6808_v53 = vld [vmem:[%s10390_s11 + $0x118] sm:$0xf0]  ;;  %v9068_v61 = vld [vmem:[%s10390_s11 + $0x2ec] sm:$0xf] }
 0x2eb   : > { %6243 = vmatpush.bf16.msrb.mxu2 %v6779_v15  ;;  %v5991_v15 = vpop.f32.mrf.mxu2  ;;  %v9064_v22 = vld [vmem:[%s10390_s11 + $0x2cc] sm:$0xf] }
 0x2ec   : > { %6256 = vmatpush.bf16.msrb.mxu3 %v6907_v24  ;;  %v5992_v24 = vadd.f32 %v5991_v15, %v5979_v47  ;;  %v8976_v47 = vld [vmem:[%s10390_s11 + $0xc] sm:$0xf] }
 0x2ed   : > { %6218 = vmatpush.bf16.msrb.mxu0 %v8807_v25  ;;  %v5980_v25 = vpop.f32.mrf.mxu1 }
 0x2ee   : > { %6231 = vmatpush.bf16.msrb.mxu1 %v8935_v26  ;;  %v6005_v26 = vadd.f32 %v6004_v54, %v5992_v24  ;;  %v6811_v24 = vor.u32 %v9008_v2, %v6808_v53  ;;  %v9096_v25 = vld [vmem:[%s10390_s11 + $0x3cc] sm:$0xf] }
 0x2ef   : > { %6244 = vmatpush.bf16.msrb.mxu2 %v6763_v27  ;;  %v8887_v27 = vor.u32 %v9530_v16, %v8886_v13  ;;  %v9132_v13 = vld [vmem:[%s10390_s11 + $0x4ec] sm:$0xf]  ;;  %v6683_v16 = vor.u32 %v8976_v47, %v6680_v5  ;;  %v7000_v5 = vld [vmem:[%s10390_s11 + $0x298] sm:$0xf0] }
 0x2f0   : > { %6257 = vmatpush.bf16.msrb.mxu3 %v6891_v32  ;;  %v8870_v32 = vld [vmem:[%s10390_s11 + $0x1128] sm:$0xf]  ;;  %v6484_v36 = vrot.slane %v6005_v26, 6  ;;  %v7435_v26 = vor.u32 %v9164_v17, %v7432_v19  ;;  %v9088_v2 = vld [vmem:[%s10390_s11 + $0x38c] sm:$0xf] }
 0x2f1   : > { %6219 = vmatpush.bf16.msrb.mxu0 %v8791_v40  ;;  %v8743_v40 = vor.u32 %v9494_v30, %v8742_v29  ;;  %v8871_v43 = vor.u32 %v9526_v34, %v8870_v32  ;;  %v7288_v29 = vld [vmem:[%s10390_s11 + $0x4d8] sm:$0xf0]  ;;  %v9160_v30 = vld [vmem:[%s10390_s11 + $0x5cc] sm:$0xf] }
 0x2f2   : > { %6232 = vmatpush.bf16.msrb.mxu1 %v8919_v42  ;;  %v9490_v42 = vld [vmem:[%s10390_s11 + $0x1014] sm:$0xf0]  ;;  %v7416_v32 = vld [vmem:[%s10390_s11 + $0x5d8] sm:$0xf0] }
 0x2f3   : > { %6245 = vmatpush.bf16.msrb.mxu2 %v6747_v39  ;;  %v11426_v39 = vsel %vm6487_vm0, %v11115_v18, %v6484_v36  ;;  %v5993_v18 = vpop.f32.mrf.mxu2  ;;  %v8727_v8 = vor.u32 %v9490_v42, %v8726_v41  ;;  %v7016_v36 = vld [vmem:[%s10390_s11 + $0x2b8] sm:$0xf0]  ;;  %v7419_v38 = vor.u32 %v9160_v30, %v7416_v32  ;;  %v9124_v41 = vld [vmem:[%s10390_s11 + $0x4ac] sm:$0xf] }
 0x2f4   : > { %6258 = vmatpush.bf16.msrb.mxu3 %v6875_v46  ;;  %v9522_v46 = vld [vmem:[%s10390_s11 + $0x1114] sm:$0xf0]  ;;  %v7272_v42 = vld [vmem:[%s10390_s11 + $0x4b8] sm:$0xf0] }
 0x2f5   : > { %6220 = vmatpush.bf16.msrb.mxu0 %v8775_v4  ;;  %v7048_v4 = vld [vmem:[%s10390_s11 + $0x2f8] sm:$0xf0]  ;;  %v8855_v15 = vor.u32 %v9522_v46, %v8854_v45  ;;  %v7019_v45 = vor.u32 %v9060_v35, %v7016_v36  ;;  %v7275_v47 = vor.u32 %v9124_v41, %v7272_v42 }
 0x2f6   : > { %6233 = vmatpush.bf16.msrb.mxu1 %v8903_v51  ;;  %v9100_v51 = vld [vmem:[%s10390_s11 + $0x3ec] sm:$0xf]  ;;  %v7051_v54 = vor.u32 %v9068_v61, %v7048_v4  ;;  %v7128_v18 = vld [vmem:[%s10390_s11 + $0x398] sm:$0xf0] }
 0x2f7   : > { %6246 = vmatpush.bf16.msrb.mxu2 %v6731_v7  ;;  %v6006_v7 = vpop.f32.mrf.mxu3  ;;  %v7179_v20 = vor.u32 %v9100_v51, %v7176_v11  ;;  %v7256_v61 = vld [vmem:[%s10390_s11 + $0x498] sm:$0xf0]  ;;  %v9152_v4 = vld [vmem:[%s10390_s11 + $0x58c] sm:$0xf] }
 0x2f8   : > { %6259 = vmatpush.bf16.msrb.mxu3 %v6859_v14  ;;  %v7304_v14 = vld [vmem:[%s10390_s11 + $0x4f8] sm:$0xf0] }
 0x2f9   : > { %6221 = vmatpush.bf16.msrb.mxu0 %v8759_v23  ;;  %v7307_v21 = vor.u32 %v9132_v13, %v7304_v14  ;;  %v7032_v23 = vld [vmem:[%s10390_s11 + $0x2d8] sm:$0xf0]  ;;  %v9052_v13 = vld [vmem:[%s10390_s11 + $0x26c] sm:$0xf] }
 0x2fa   : > { %6234 = vmatpush.bf16.msrb.mxu1 %v8887_v27  ;;  %v7160_v27 = vld [vmem:[%s10390_s11 + $0x3d8] sm:$0xf0] }
 0x2fb   : > { %6247 = vmatpush.bf16.msrb.mxu2 %v6715_v28  ;;  %v9128_v28 = vld [vmem:[%s10390_s11 + $0x4cc] sm:$0xf]  ;;  %v7163_v34 = vor.u32 %v9096_v25, %v7160_v27  ;;  %v7384_v51 = vld [vmem:[%s10390_s11 + $0x598] sm:$0xf0] }
 0x2fc   : > { %6260 = vmatpush.bf16.msrb.mxu3 %v6843_v31  ;;  %v7035_v31 = vor.u32 %v9064_v22, %v7032_v23  ;;  %v7291_v33 = vor.u32 %v9128_v28, %v7288_v29  ;;  %v6984_v14 = vld [vmem:[%s10390_s11 + $0x278] sm:$0xf0]  ;;  %v7387_v17 = vor.u32 %v9152_v4, %v7384_v51  ;;  %v9048_v27 = vld [vmem:[%s10390_s11 + $0x24c] sm:$0xf] }
 0x2fd   : > { %6222 = vmatpush.bf16.msrb.mxu0 %v8743_v40  ;;  %v7144_v40 = vld [vmem:[%s10390_s11 + $0x3b8] sm:$0xf0]  ;;  %v6987_v23 = vor.u32 %v9052_v13, %v6984_v14  ;;  %v9080_v29 = vld [vmem:[%s10390_s11 + $0x34c] sm:$0xf] }
 0x2fe   : > { %6235 = vmatpush.bf16.msrb.mxu1 %v8871_v43  ;;  %v9156_v43 = vld [vmem:[%s10390_s11 + $0x5ac] sm:$0xf]  ;;  %v7147_v46 = vor.u32 %v9092_v37, %v7144_v40  ;;  %v7112_v19 = vld [vmem:[%s10390_s11 + $0x378] sm:$0xf0] }
 0x2ff   : > { %6248 = vmatpush.bf16.msrb.mxu2 %v6699_v44  ;;  %v7400_v44 = vld [vmem:[%s10390_s11 + $0x5b8] sm:$0xf0]  ;;  %v9144_v37 = vld [vmem:[%s10390_s11 + $0x54c] sm:$0xf] }
 0x300   : > { %6261 = vmatpush.bf16.msrb.mxu3 %v6827_v52  ;;  %v9056_v52 = vld [vmem:[%s10390_s11 + $0x28c] sm:$0xf]  ;;  %v7403_v53 = vor.u32 %v9156_v43, %v7400_v44  ;;  %v7368_v22 = vld [vmem:[%s10390_s11 + $0x578] sm:$0xf0] }
 0x301   : > { %6223 = vmatpush.bf16.msrb.mxu0 %v8727_v8  ;;  %v6017_v7 = vpop.f32.mrf.mxu0  ;;  %v7131_v8 = vor.u32 %v9088_v2, %v7128_v18  ;;  %v6968_v28 = vld [vmem:[%s10390_s11 + $0x258] sm:$0xf0]  ;;  %v9040_v51 = vld [vmem:[%s10390_s11 + $0x20c] sm:$0xf] }
 0x302   : > { %6236 = vmatpush.bf16.msrb.mxu1 %v8855_v15  ;;  %v9084_v15 = vld [vmem:[%s10390_s11 + $0x36c] sm:$0xf]  ;;  %v6971_v40 = vor.u32 %v9048_v27, %v6968_v28  ;;  %v7080_v2 = vld [vmem:[%s10390_s11 + $0x338] sm:$0xf0] }
 0x303   : > { %6249 = vmatpush.bf16.msrb.mxu2 %v6683_v16  ;;  %v6030_v16 = vpop.f32.mrf.mxu1  ;;  %v7115_v25 = vor.u32 %v9084_v15, %v7112_v19  ;;  %v7208_v18 = vld [vmem:[%s10390_s11 + $0x438] sm:$0xf0]  ;;  %v9104_v14 = vld [vmem:[%s10390_s11 + $0x40c] sm:$0xf] }
 0x304   : > { %6262 = vmatpush.bf16.msrb.mxu3 %v6811_v24  ;;  %6224 = vmatmul.bf16.vlgmr.msrb.gmra.mxu0 %v10802_v55  ;;  %v9116_v24 = vld [vmem:[%s10390_s11 + $0x46c] sm:$0xf]  ;;  %v7064_v13 = vld [vmem:[%s10390_s11 + $0x318] sm:$0xf0] }
 0x305   : > { %6268 = vmatpush.bf16.msra.mxu0 %v7051_v54  ;;  %6237 = vmatmul.bf16.vlgmr.msrb.gmra.mxu1 %v10807_v50  ;;  %v7240_v54 = vld [vmem:[%s10390_s11 + $0x478] sm:$0xf0]  ;;  %v9136_v19 = vld [vmem:[%s10390_s11 + $0x50c] sm:$0xf] }
 0x306   : > { %6281 = vmatpush.bf16.msra.mxu1 %v7179_v20  ;;  %6250 = vmatmul.bf16.vlgmr.msrb.gmra.mxu2 %v10502_v59  ;;  %v9120_v59 = vld [vmem:[%s10390_s11 + $0x48c] sm:$0xf]  ;;  %v6031_v20 = vadd.f32 %v6030_v16, %v6017_v7  ;;  %v7816_v27 = vld [vmem:[%s10390_s11 + $0x8f8] sm:$0xf0] }
 0x307   : > { %6294 = vmatpush.bf16.msra.mxu2 %v7307_v21  ;;  %6263 = vmatmul.bf16.vlgmr.msrb.gmra.mxu3 %v10508_v1  ;;  %v7003_v1 = vor.u32 %v9056_v52, %v7000_v5  ;;  %v7259_v11 = vor.u32 %v9120_v59, %v7256_v61  ;;  %v9148_v21 = vld [vmem:[%s10390_s11 + $0x56c] sm:$0xf]  ;;  %v7336_v61 = vld [vmem:[%s10390_s11 + $0x538] sm:$0xf0] }
 0x308   : > { %6307 = vmatpush.bf16.msra.mxu3 %v7435_v26  ;;  %v7243_v26 = vor.u32 %v9116_v24, %v7240_v54  ;;  %v7371_v32 = vor.u32 %v9148_v21, %v7368_v22  ;;  %v9140_v59 = vld [vmem:[%s10390_s11 + $0x52c] sm:$0xf]  ;;  %v7320_v24 = vld [vmem:[%s10390_s11 + $0x518] sm:$0xf0] }
 0x309   : > { %6269 = vmatpush.bf16.msra.mxu0 %v7035_v31  ;;  %v6043_v30 = vpop.f32.mrf.mxu2  ;;  %v7096_v31 = vld [vmem:[%s10390_s11 + $0x358] sm:$0xf0]  ;;  %v6019_v42 = vpop.f32.mrf.mxu0  ;;  %v7339_v16 = vor.u32 %v9140_v59, %v7336_v61  ;;  %v9228_v22 = vld [vmem:[%s10390_s11 + $0x7ec] sm:$0xf] }
 0x30a   : > { %6282 = vmatpush.bf16.msra.mxu1 %v7163_v34  ;;  %v9112_v34 = vld [vmem:[%s10390_s11 + $0x44c] sm:$0xf]  ;;  %v6044_v35 = vadd.f32 %v6043_v30, %v6031_v20  ;;  %v6056_v36 = vpop.f32.mrf.mxu3  ;;  %v7099_v43 = vor.u32 %v9080_v29, %v7096_v31  ;;  %v7560_v21 = vld [vmem:[%s10390_s11 + $0x6f8] sm:$0xf0]  ;;  %v7323_v31 = vor.u32 %v9136_v19, %v7320_v24 }
 0x30b   : > { %6295 = vmatpush.bf16.msra.mxu2 %v7291_v33  ;;  %v7224_v33 = vld [vmem:[%s10390_s11 + $0x458] sm:$0xf0]  ;;  %v6032_v52 = vpop.f32.mrf.mxu1  ;;  %v9196_v20 = vld [vmem:[%s10390_s11 + $0x6ec] sm:$0xf] }
 0x30c   : > { %6308 = vmatpush.bf16.msra.mxu3 %v7419_v38  ;;  %v7352_v38 = vld [vmem:[%s10390_s11 + $0x558] sm:$0xf0]  ;;  %v11486_v41 = vadd.f32 %v6056_v36, %v6044_v35  ;;  %v7227_v44 = vor.u32 %v9112_v34, %v7224_v33  ;;  %v9292_v30 = vld [vmem:[%s10390_s11 + $0x9ec] sm:$0xf]  ;;  %v7563_v34 = vor.u32 %v9196_v20, %v7560_v21 }
 0x30d   : > { %6270 = vmatpush.bf16.msra.mxu0 %v7019_v45  ;;  %v9044_v45 = vld [vmem:[%s10390_s11 + $0x22c] sm:$0xf]  ;;  %v7355_v5 = vor.u32 %v9144_v37, %v7352_v38  ;;  %v7544_v37 = vld [vmem:[%s10390_s11 + $0x6d8] sm:$0xf0] }
 0x30e   : > { %6283 = vmatpush.bf16.msra.mxu1 %v7147_v46  ;;  %v6952_v46 = vld [vmem:[%s10390_s11 + $0x238] sm:$0xf0]  ;;  %v9192_v36 = vld [vmem:[%s10390_s11 + $0x6cc] sm:$0xf] }
 0x30f   : > { %6296 = vmatpush.bf16.msra.mxu2 %v7275_v47  ;;  %v9076_v47 = vld [vmem:[%s10390_s11 + $0x32c] sm:$0xf]  ;;  %v6955_v4 = vor.u32 %v9044_v45, %v6952_v46  ;;  %v7672_v42 = vld [vmem:[%s10390_s11 + $0x7d8] sm:$0xf0] }
 0x310   : > { %6309 = vmatpush.bf16.msra.mxu3 %v7403_v53  ;;  %v9108_v53 = vld [vmem:[%s10390_s11 + $0x42c] sm:$0xf]  ;;  %v7083_v7 = vor.u32 %v9076_v47, %v7080_v2  ;;  %v7928_v46 = vld [vmem:[%s10390_s11 + $0x9d8] sm:$0xf0]  ;;  %v7547_v47 = vor.u32 %v9192_v36, %v7544_v37 }
 0x311   : > { %6271 = vmatpush.bf16.msra.mxu0 %v7003_v1  ;;  %v6936_v1 = vld [vmem:[%s10390_s11 + $0x218] sm:$0xf0]  ;;  %v6045_v15 = vpop.f32.mrf.mxu2  ;;  %v9224_v38 = vld [vmem:[%s10390_s11 + $0x7cc] sm:$0xf] }
 0x312   : > { %6284 = vmatpush.bf16.msra.mxu1 %v7131_v8  ;;  %v7211_v8 = vor.u32 %v9108_v53, %v7208_v18  ;;  %v6058_v54 = vpop.f32.mrf.mxu3  ;;  %v9288_v45 = vld [vmem:[%s10390_s11 + $0x9cc] sm:$0xf]  ;;  %v7675_v52 = vor.u32 %v9224_v38, %v7672_v42  ;;  %v7528_v53 = vld [vmem:[%s10390_s11 + $0x6b8] sm:$0xf0] }
 0x313   : > { %6297 = vmatpush.bf16.msra.mxu2 %v7259_v11  ;;  %v9072_v11 = vld [vmem:[%s10390_s11 + $0x30c] sm:$0xf]  ;;  %v7931_v59 = vor.u32 %v9288_v45, %v7928_v46  ;;  %v7656_v61 = vld [vmem:[%s10390_s11 + $0x7b8] sm:$0xf0] }
 0x314   : > { %6310 = vmatpush.bf16.msra.mxu3 %v7387_v17  ;;  %v7192_v17 = vld [vmem:[%s10390_s11 + $0x418] sm:$0xf0]  ;;  %v7067_v28 = vor.u32 %v9072_v11, %v7064_v13  ;;  %v9188_v2 = vld [vmem:[%s10390_s11 + $0x6ac] sm:$0xf] }
 0x315   : > { %6272 = vmatpush.bf16.msra.mxu0 %v6987_v23  ;;  %v6939_v23 = vor.u32 %v9040_v51, %v6936_v1  ;;  %v7195_v29 = vor.u32 %v9104_v14, %v7192_v17  ;;  %v9220_v18 = vld [vmem:[%s10390_s11 + $0x7ac] sm:$0xf]  ;;  %v7784_v51 = vld [vmem:[%s10390_s11 + $0x8b8] sm:$0xf0] }
 0x316   : > { %6285 = vmatpush.bf16.msra.mxu1 %v7115_v25  ;;  %v7688_v25 = vld [vmem:[%s10390_s11 + $0x7f8] sm:$0xf0]  ;;  %v9284_v1 = vld [vmem:[%s10390_s11 + $0x9ac] sm:$0xf] }
 0x317   : > { %6298 = vmatpush.bf16.msra.mxu2 %v7243_v26  ;;  %v9260_v26 = vld [vmem:[%s10390_s11 + $0x8ec] sm:$0xf]  ;;  %v7691_v33 = vor.u32 %v9228_v22, %v7688_v25  ;;  %v7512_v14 = vld [vmem:[%s10390_s11 + $0x698] sm:$0xf0] }
 0x318   : > { %6311 = vmatpush.bf16.msra.mxu3 %v7371_v32  ;;  %v7944_v32 = vld [vmem:[%s10390_s11 + $0x9f8] sm:$0xf0]  ;;  %v7819_v35 = vor.u32 %v9260_v26, %v7816_v27  ;;  %v9184_v13 = vld [vmem:[%s10390_s11 + $0x68c] sm:$0xf] }
 0x319   : > { %6273 = vmatpush.bf16.msra.mxu0 %v6971_v40  ;;  %v7947_v40 = vor.u32 %v9292_v30, %v7944_v32  ;;  %v7640_v15 = vld [vmem:[%s10390_s11 + $0x798] sm:$0xf0]  ;;  %v9280_v19 = vld [vmem:[%s10390_s11 + $0x98c] sm:$0xf] }
 0x31a   : > { %6286 = vmatpush.bf16.msra.mxu1 %v7099_v43  ;;  %v9256_v43 = vld [vmem:[%s10390_s11 + $0x8cc] sm:$0xf]  ;;  %v7768_v17 = vld [vmem:[%s10390_s11 + $0x898] sm:$0xf0] }
 0x31b   : > { %6299 = vmatpush.bf16.msra.mxu2 %v7227_v44  ;;  %v7800_v44 = vld [vmem:[%s10390_s11 + $0x8d8] sm:$0xf0]  ;;  %v9180_v22 = vld [vmem:[%s10390_s11 + $0x66c] sm:$0xf] }
 0x31c   : > { %6312 = vmatpush.bf16.msra.mxu3 %v7355_v5  ;;  %v7803_v5 = vor.u32 %v9256_v43, %v7800_v44  ;;  %v7896_v24 = vld [vmem:[%s10390_s11 + $0x998] sm:$0xf0]  ;;  %v9212_v25 = vld [vmem:[%s10390_s11 + $0x76c] sm:$0xf] }
 0x31d   : > { %6274 = vmatpush.bf16.msra.mxu0 %v6955_v4  ;;  %v9252_v4 = vld [vmem:[%s10390_s11 + $0x8ac] sm:$0xf]  ;;  %v7752_v32 = vld [vmem:[%s10390_s11 + $0x878] sm:$0xf0] }
 0x31e   : > { %6287 = vmatpush.bf16.msra.mxu1 %v7083_v7  ;;  %v7912_v7 = vld [vmem:[%s10390_s11 + $0x9b8] sm:$0xf0]  ;;  %v7787_v11 = vor.u32 %v9252_v4, %v7784_v51  ;;  %v9244_v30 = vld [vmem:[%s10390_s11 + $0x86c] sm:$0xf] }
 0x31f   : > { %6300 = vmatpush.bf16.msra.mxu2 %v7211_v8  ;;  %v7531_v8 = vor.u32 %v9188_v2, %v7528_v53  ;;  %v7755_v36 = vor.u32 %v9244_v30, %v7752_v32  ;;  %v9176_v37 = vld [vmem:[%s10390_s11 + $0x64c] sm:$0xf]  ;;  %v7480_v38 = vld [vmem:[%s10390_s11 + $0x658] sm:$0xf0] }
 0x320   : > { %6313 = vmatpush.bf16.msra.mxu3 %v7339_v16  ;;  %v9248_v16 = vld [vmem:[%s10390_s11 + $0x88c] sm:$0xf]  ;;  %v7608_v44 = vld [vmem:[%s10390_s11 + $0x758] sm:$0xf0]  ;;  %v7483_v53 = vor.u32 %v9176_v37, %v7480_v38 }
 0x321   : > { %6275 = vmatpush.bf16.msra.mxu0 %v6939_v23  ;;  %v6069_v54 = vpop.f32.mrf.mxu0  ;;  %v7771_v21 = vor.u32 %v9248_v16, %v7768_v17  ;;  %v7496_v23 = vld [vmem:[%s10390_s11 + $0x678] sm:$0xf0]  ;;  %v9240_v45 = vld [vmem:[%s10390_s11 + $0x84c] sm:$0xf] }
 0x322   : > { %6288 = vmatpush.bf16.msra.mxu1 %v7067_v28  ;;  %v6070_v26 = vadd.f32 %v6069_v54, %v11486_v41  ;;  %v6082_v27 = vpop.f32.mrf.mxu1  ;;  %v7899_v28 = vor.u32 %v9280_v19, %v7896_v24  ;;  %v7736_v46 = vld [vmem:[%s10390_s11 + $0x858] sm:$0xf0]  ;;  %v9172_v51 = vld [vmem:[%s10390_s11 + $0x62c] sm:$0xf] }
 0x323   : > { %6301 = vmatpush.bf16.msra.mxu2 %v7195_v29  ;;  %v7624_v29 = vld [vmem:[%s10390_s11 + $0x778] sm:$0xf0]  ;;  %v7739_v4 = vor.u32 %v9240_v45, %v7736_v46  ;;  %v9168_v16 = vld [vmem:[%s10390_s11 + $0x60c] sm:$0xf] }
 0x324   : > { %6314 = vmatpush.bf16.msra.mxu3 %v7323_v31  ;;  %6276 = vmatmul.bf16.vlgmr.msra.gmra.mxu0 %v10500_v58  ;;  %v9216_v58 = vld [vmem:[%s10390_s11 + $0x78c] sm:$0xf]  ;;  %v7627_v41 = vor.u32 %v9212_v25, %v7624_v29  ;;  %v7864_v2 = vld [vmem:[%s10390_s11 + $0x958] sm:$0xf0] }
 0x325   : > { %6320 = vmatpush.bf16.msrb.mxu0 %v7563_v34  ;;  %6289 = vmatmul.bf16.vlgmr.msra.gmra.mxu1 %v10506_v0  ;;  %v7515_v0 = vor.u32 %v9184_v13, %v7512_v14  ;;  %v7643_v20 = vor.u32 %v9216_v58, %v7640_v15  ;;  %v9276_v31 = vld [vmem:[%s10390_s11 + $0x96c] sm:$0xf]  ;;  %v7880_v34 = vld [vmem:[%s10390_s11 + $0x978] sm:$0xf0] }
 0x326   : > { %6333 = vmatpush.bf16.msrb.mxu1 %v7691_v33  ;;  %6302 = vmatmul.bf16.vlgmr.msra.gmra.mxu2 %v10562_v9  ;;  %v7659_v9 = vor.u32 %v9220_v18, %v7656_v61  ;;  %v6083_v33 = vadd.f32 %v6082_v27, %v6070_v26  ;;  %v7883_v43 = vor.u32 %v9276_v31, %v7880_v34  ;;  %v9236_v13 = vld [vmem:[%s10390_s11 + $0x82c] sm:$0xf]  ;;  %v7720_v14 = vld [vmem:[%s10390_s11 + $0x838] sm:$0xf0] }
 0x327   : > { %6346 = vmatpush.bf16.msrb.mxu2 %v7819_v35  ;;  %6315 = vmatmul.bf16.vlgmr.msra.gmra.mxu3 %v10566_v12  ;;  %v7915_v12 = vor.u32 %v9284_v1, %v7912_v7  ;;  %v7499_v35 = vor.u32 %v9180_v22, %v7496_v23  ;;  %v7464_v1 = vld [vmem:[%s10390_s11 + $0x638] sm:$0xf0]  ;;  %v9204_v7 = vld [vmem:[%s10390_s11 + $0x72c] sm:$0xf]  ;;  %v7723_v24 = vor.u32 %v9236_v13, %v7720_v14 }
 0x328   : > { %6359 = vmatpush.bf16.msrb.mxu3 %v7947_v40  ;;  %v9208_v40 = vld [vmem:[%s10390_s11 + $0x74c] sm:$0xf]  ;;  %v7467_v15 = vor.u32 %v9172_v51, %v7464_v1  ;;  %v7448_v17 = vld [vmem:[%s10390_s11 + $0x618] sm:$0xf0] }
 0x329   : > { %6321 = vmatpush.bf16.msrb.mxu0 %v7547_v47  ;;  %v6095_v42 = vpop.f32.mrf.mxu2  ;;  %v7611_v61 = vor.u32 %v9208_v40, %v7608_v44  ;;  %v9268_v58 = vld [vmem:[%s10390_s11 + $0x92c] sm:$0xf]  ;;  %v7576_v54 = vld [vmem:[%s10390_s11 + $0x718] sm:$0xf0]  ;;  %v7451_v32 = vor.u32 %v9168_v16, %v7448_v17 }
 0x32a   : > { %6334 = vmatpush.bf16.msrb.mxu1 %v7675_v52  ;;  %v6096_v47 = vadd.f32 %v6095_v42, %v6083_v33  ;;  %v6108_v52 = vpop.f32.mrf.mxu3  ;;  %v7704_v23 = vld [vmem:[%s10390_s11 + $0x818] sm:$0xf0]  ;;  %v9264_v25 = vld [vmem:[%s10390_s11 + $0x90c] sm:$0xf] }
 0x32b   : > { %6347 = vmatpush.bf16.msrb.mxu2 %v7803_v5  ;;  %v9272_v5 = vld [vmem:[%s10390_s11 + $0x94c] sm:$0xf]  ;;  %v7832_v26 = vld [vmem:[%s10390_s11 + $0x918] sm:$0xf0] }
 0x32c   : > { %6360 = vmatpush.bf16.msrb.mxu3 %v7931_v59  ;;  %v11557_v18 = vadd.f32 %v6108_v52, %v6096_v47  ;;  %v6071_v59 = vpop.f32.mrf.mxu0  ;;  %v8072_v29 = vld [vmem:[%s10390_s11 + $0xaf8] sm:$0xf0]  ;;  %v9356_v30 = vld [vmem:[%s10390_s11 + $0xbec] sm:$0xf]  ;;  %v7835_v38 = vor.u32 %v9264_v25, %v7832_v26 }
 0x32d   : > { %6322 = vmatpush.bf16.msrb.mxu0 %v7531_v8  ;;  %v6084_v8 = vpop.f32.mrf.mxu1  ;;  %v8200_v31 = vld [vmem:[%s10390_s11 + $0xbf8] sm:$0xf0]  ;;  %v9388_v34 = vld [vmem:[%s10390_s11 + $0xcec] sm:$0xf] }
 0x32e   : > { %6335 = vmatpush.bf16.msrb.mxu1 %v7659_v9  ;;  %v7867_v9 = vor.u32 %v9272_v5, %v7864_v2  ;;  %v8328_v33 = vld [vmem:[%s10390_s11 + $0xcf8] sm:$0xf0]  ;;  %v8203_v42 = vor.u32 %v9356_v30, %v8200_v31  ;;  %v9320_v44 = vld [vmem:[%s10390_s11 + $0xacc] sm:$0xf] }
 0x32f   : > { %6348 = vmatpush.bf16.msrb.mxu2 %v7787_v11  ;;  %v7592_v11 = vld [vmem:[%s10390_s11 + $0x738] sm:$0xf0]  ;;  %v9352_v46 = vld [vmem:[%s10390_s11 + $0xbcc] sm:$0xf] }
 0x330   : > { %6361 = vmatpush.bf16.msrb.mxu3 %v7915_v12  ;;  %v7848_v12 = vld [vmem:[%s10390_s11 + $0x938] sm:$0xf0]  ;;  %v7595_v19 = vor.u32 %v9204_v7, %v7592_v11  ;;  %v9384_v5 = vld [vmem:[%s10390_s11 + $0xccc] sm:$0xf] }
 0x331   : > { %6323 = vmatpush.bf16.msrb.mxu0 %v7515_v0  ;;  %v9200_v0 = vld [vmem:[%s10390_s11 + $0x70c] sm:$0xf]  ;;  %v7851_v22 = vor.u32 %v9268_v58, %v7848_v12  ;;  %v8456_v37 = vld [vmem:[%s10390_s11 + $0xdf8] sm:$0xf0] }
 0x332   : > { %6336 = vmatpush.bf16.msrb.mxu1 %v7643_v20  ;;  %v9232_v20 = vld [vmem:[%s10390_s11 + $0x80c] sm:$0xf]  ;;  %v6110_v27 = vpop.f32.mrf.mxu3  ;;  %v8056_v45 = vld [vmem:[%s10390_s11 + $0xad8] sm:$0xf0] }
 0x333   : > { %6349 = vmatpush.bf16.msrb.mxu2 %v7771_v21  ;;  %v6097_v21 = vpop.f32.mrf.mxu2  ;;  %v8184_v52 = vld [vmem:[%s10390_s11 + $0xbd8] sm:$0xf0]  ;;  %v9316_v1 = vld [vmem:[%s10390_s11 + $0xaac] sm:$0xf] }
 0x334   : > { %6362 = vmatpush.bf16.msrb.mxu3 %v7899_v28  ;;  %v9324_v28 = vld [vmem:[%s10390_s11 + $0xaec] sm:$0xf]  ;;  %v8312_v2 = vld [vmem:[%s10390_s11 + $0xcd8] sm:$0xf0] }
 0x335   : > { %6324 = vmatpush.bf16.msrb.mxu0 %v7499_v35  ;;  %v7579_v35 = vor.u32 %v9200_v0, %v7576_v54  ;;  %v8075_v40 = vor.u32 %v9324_v28, %v8072_v29  ;;  %v8440_v59 = vld [vmem:[%s10390_s11 + $0xdd8] sm:$0xf0]  ;;  %v8315_v51 = vor.u32 %v9384_v5, %v8312_v2  ;;  %v9348_v8 = vld [vmem:[%s10390_s11 + $0xbac] sm:$0xf] }
 0x336   : > { %6337 = vmatpush.bf16.msrb.mxu1 %v7627_v41  ;;  %v7707_v41 = vor.u32 %v9232_v20, %v7704_v23  ;;  %v8040_v7 = vld [vmem:[%s10390_s11 + $0xab8] sm:$0xf0]  ;;  %v9380_v13 = vld [vmem:[%s10390_s11 + $0xcac] sm:$0xf] }
 0x337   : > { %6350 = vmatpush.bf16.msrb.mxu2 %v7755_v36  ;;  %v9420_v36 = vld [vmem:[%s10390_s11 + $0xdec] sm:$0xf]  ;;  %v8168_v11 = vld [vmem:[%s10390_s11 + $0xbb8] sm:$0xf0] }
 0x338   : > { %6363 = vmatpush.bf16.msrb.mxu3 %v7883_v43  ;;  %v8331_v43 = vor.u32 %v9388_v34, %v8328_v33  ;;  %v8459_v47 = vor.u32 %v9420_v36, %v8456_v37  ;;  %v8296_v14 = vld [vmem:[%s10390_s11 + $0xcb8] sm:$0xf0]  ;;  %v9412_v58 = vld [vmem:[%s10390_s11 + $0xdac] sm:$0xf] }
 0x339   : > { %6325 = vmatpush.bf16.msrb.mxu0 %v7483_v53  ;;  %v9416_v53 = vld [vmem:[%s10390_s11 + $0xdcc] sm:$0xf]  ;;  %v8424_v12 = vld [vmem:[%s10390_s11 + $0xdb8] sm:$0xf0]  ;;  %v8299_v16 = vor.u32 %v9380_v13, %v8296_v14 }
 0x33a   : > { %6338 = vmatpush.bf16.msrb.mxu1 %v7611_v61  ;;  %v8059_v61 = vor.u32 %v9320_v44, %v8056_v45  ;;  %v9312_v17 = vld [vmem:[%s10390_s11 + $0xa8c] sm:$0xf]  ;;  %v8280_v54 = vld [vmem:[%s10390_s11 + $0xc98] sm:$0xf0] }
 0x33b   : > { %6351 = vmatpush.bf16.msrb.mxu2 %v7739_v4  ;;  %v8187_v4 = vor.u32 %v9352_v46, %v8184_v52  ;;  %v9376_v0 = vld [vmem:[%s10390_s11 + $0xc8c] sm:$0xf]  ;;  %v8408_v21 = vld [vmem:[%s10390_s11 + $0xd98] sm:$0xf0] }
 0x33c   : > { %6364 = vmatpush.bf16.msrb.mxu3 %v7867_v9  ;;  %v8443_v9 = vor.u32 %v9416_v53, %v8440_v59  ;;  %v9408_v20 = vld [vmem:[%s10390_s11 + $0xd8c] sm:$0xf]  ;;  %v8283_v27 = vor.u32 %v9376_v0, %v8280_v54  ;;  %v8008_v29 = vld [vmem:[%s10390_s11 + $0xa78] sm:$0xf0] }
 0x33d   : > { %6326 = vmatpush.bf16.msrb.mxu0 %v7467_v15  ;;  %v8171_v15 = vor.u32 %v9348_v8, %v8168_v11  ;;  %v9308_v28 = vld [vmem:[%s10390_s11 + $0xa6c] sm:$0xf]  ;;  %v8136_v34 = vld [vmem:[%s10390_s11 + $0xb78] sm:$0xf0] }
 0x33e   : > { %6339 = vmatpush.bf16.msrb.mxu1 %v7595_v19  ;;  %v8024_v19 = vld [vmem:[%s10390_s11 + $0xa98] sm:$0xf0]  ;;  %v9340_v30 = vld [vmem:[%s10390_s11 + $0xb6c] sm:$0xf]  ;;  %v8011_v36 = vor.u32 %v9308_v28, %v8008_v29 }
 0x33f   : > { %6352 = vmatpush.bf16.msrb.mxu2 %v7723_v24  ;;  %v8152_v24 = vld [vmem:[%s10390_s11 + $0xb98] sm:$0xf0]  ;;  %v8027_v23 = vor.u32 %v9312_v17, %v8024_v19  ;;  %v9372_v33 = vld [vmem:[%s10390_s11 + $0xc6c] sm:$0xf]  ;;  %v8139_v37 = vor.u32 %v9340_v30, %v8136_v34 }
 0x340   : > { %6365 = vmatpush.bf16.msrb.mxu3 %v7851_v22  ;;  %v8120_v46 = vld [vmem:[%s10390_s11 + $0xb58] sm:$0xf0]  ;;  %v9400_v53 = vld [vmem:[%s10390_s11 + $0xd4c] sm:$0xf] }
 0x341   : > { %6327 = vmatpush.bf16.msrb.mxu0 %v7451_v32  ;;  %v8411_v32 = vor.u32 %v9408_v20, %v8408_v21  ;;  %v8248_v52 = vld [vmem:[%s10390_s11 + $0xc58] sm:$0xf0]  ;;  %v9332_v13 = vld [vmem:[%s10390_s11 + $0xb2c] sm:$0xf] }
 0x342   : > { %6340 = vmatpush.bf16.msrb.mxu1 %v7579_v35  ;;  %v6134_v25 = vpop.f32.mrf.mxu1  ;;  %v9404_v35 = vld [vmem:[%s10390_s11 + $0xd6c] sm:$0xf]  ;;  %v8376_v59 = vld [vmem:[%s10390_s11 + $0xd58] sm:$0xf0] }
 0x343   : > { %6353 = vmatpush.bf16.msrb.mxu2 %v7707_v41  ;;  %v8392_v41 = vld [vmem:[%s10390_s11 + $0xd78] sm:$0xf0]  ;;  %v8379_v14 = vor.u32 %v9400_v53, %v8376_v59  ;;  %v9296_v19 = vld [vmem:[%s10390_s11 + $0xa0c] sm:$0xf] }
 0x344   : > { %6366 = vmatpush.bf16.msrb.mxu3 %v7835_v38  ;;  %6328 = vmatmul.bf16.vlgmr.msrb.gmra.mxu0 %v10558_v6  ;;  %v8043_v6 = vor.u32 %v9316_v1, %v8040_v7  ;;  %v8395_v44 = vor.u32 %v9404_v35, %v8392_v41  ;;  %v7976_v11 = vld [vmem:[%s10390_s11 + $0xa38] sm:$0xf0]  ;;  %v9328_v0 = vld [vmem:[%s10390_s11 + $0xb0c] sm:$0xf] }
 0x345   : > { %6372 = vmatpush.bf16.msra.mxu0 %v8075_v40  ;;  %6341 = vmatmul.bf16.vlgmr.msrb.gmra.mxu1 %v10564_v10  ;;  %v8427_v10 = vor.u32 %v9412_v58, %v8424_v12  ;;  %v9304_v40 = vld [vmem:[%s10390_s11 + $0xa4c] sm:$0xf]  ;;  %v8104_v58 = vld [vmem:[%s10390_s11 + $0xb38] sm:$0xf0] }
 0x346   : > { %6385 = vmatpush.bf16.msra.mxu1 %v8203_v42  ;;  %6354 = vmatmul.bf16.vlgmr.msrb.gmra.mxu2 %v10644_v56  ;;  %v9344_v56 = vld [vmem:[%s10390_s11 + $0xb8c] sm:$0xf]  ;;  %v7992_v42 = vld [vmem:[%s10390_s11 + $0xa58] sm:$0xf0] }
 0x347   : > { %6398 = vmatpush.bf16.msra.mxu2 %v8331_v43  ;;  %6367 = vmatmul.bf16.vlgmr.msrb.gmra.mxu3 %v10655_v63  ;;  %v6121_v63 = vpop.f32.mrf.mxu0  ;;  %v8155_v26 = vor.u32 %v9344_v56, %v8152_v24  ;;  %v9336_v43 = vld [vmem:[%s10390_s11 + $0xb4c] sm:$0xf]  ;;  %v7960_v56 = vld [vmem:[%s10390_s11 + $0xa18] sm:$0xf0] }
 0x348   : > { %6411 = vmatpush.bf16.msra.mxu3 %v8459_v47  ;;  %v6122_v22 = vadd.f32 %v6121_v63, %v11557_v18  ;;  %v8264_v18 = vld [vmem:[%s10390_s11 + $0xc78] sm:$0xf0]  ;;  %v9368_v47 = vld [vmem:[%s10390_s11 + $0xc4c] sm:$0xf]  ;;  %v8123_v7 = vor.u32 %v9336_v43, %v8120_v46  ;;  %v7963_v30 = vor.u32 %v9296_v19, %v7960_v56 }
 0x349   : > { %6373 = vmatpush.bf16.msra.mxu0 %v8059_v61  ;;  %v8267_v38 = vor.u32 %v9372_v33, %v8264_v18  ;;  %v6147_v45 = vpop.f32.mrf.mxu2  ;;  %v8251_v8 = vor.u32 %v9368_v47, %v8248_v52  ;;  %v9364_v12 = vld [vmem:[%s10390_s11 + $0xc2c] sm:$0xf]  ;;  %v8088_v54 = vld [vmem:[%s10390_s11 + $0xb18] sm:$0xf0] }
 0x34a   : > { %6386 = vmatpush.bf16.msra.mxu1 %v8187_v4  ;;  %v6135_v31 = vadd.f32 %v6134_v25, %v6122_v22  ;;  %v6160_v2 = vpop.f32.mrf.mxu3  ;;  %v7995_v4 = vor.u32 %v9304_v40, %v7992_v42  ;;  %v9360_v63 = vld [vmem:[%s10390_s11 + $0xc0c] sm:$0xf]  ;;  %v8216_v21 = vld [vmem:[%s10390_s11 + $0xc18] sm:$0xf0]  ;;  %v8091_v33 = vor.u32 %v9328_v0, %v8088_v54 }
 0x34b   : > { %6399 = vmatpush.bf16.msra.mxu2 %v8315_v51  ;;  %v6136_v51 = vpop.f32.mrf.mxu1  ;;  %v9392_v22 = vld [vmem:[%s10390_s11 + $0xd0c] sm:$0xf]  ;;  %v8840_v34 = vld [vmem:[%s10390_s11 + $0x10f8] sm:$0xf0]  ;;  %v8219_v18 = vor.u32 %v9360_v63, %v8216_v21 }
 0x34c   : > { %6412 = vmatpush.bf16.msra.mxu3 %v8443_v9  ;;  %v6148_v5 = vadd.f32 %v6147_v45, %v6135_v31  ;;  %v9300_v9 = vld [vmem:[%s10390_s11 + $0xa2c] sm:$0xf]  ;;  %v8968_v41 = vld [vmem:[%s10390_s11 + $0x11f8] sm:$0xf0] }
 0x34d   : > { %6374 = vmatpush.bf16.msra.mxu0 %v8043_v6  ;;  %v8232_v6 = vld [vmem:[%s10390_s11 + $0xc38] sm:$0xf0]  ;;  %v7979_v17 = vor.u32 %v9300_v9, %v7976_v11  ;;  %v9484_v28 = vld [vmem:[%s10390_s11 + $0xfec] sm:$0xf] }
 0x34e   : > { %6387 = vmatpush.bf16.msra.mxu1 %v8171_v15  ;;  %v11628_v1 = vadd.f32 %v6160_v2, %v6148_v5  ;;  %v9396_v15 = vld [vmem:[%s10390_s11 + $0xd2c] sm:$0xf]  ;;  %v8235_v24 = vor.u32 %v9364_v12, %v8232_v6  ;;  %v8568_v43 = vld [vmem:[%s10390_s11 + $0xed8] sm:$0xf0] }
 0x34f   : > { %6400 = vmatpush.bf16.msra.mxu2 %v8299_v16  ;;  %v6123_v61 = vpop.f32.mrf.mxu0  ;;  %v8360_v16 = vld [vmem:[%s10390_s11 + $0xd38] sm:$0xf0]  ;;  %v9516_v31 = vld [vmem:[%s10390_s11 + $0x10ec] sm:$0xf] }
 0x350   : > { %6413 = vmatpush.bf16.msra.mxu3 %v8427_v10  ;;  %v8107_v10 = vor.u32 %v9332_v13, %v8104_v58  ;;  %v8363_v20 = vor.u32 %v9396_v15, %v8360_v16  ;;  %v9548_v35 = vld [vmem:[%s10390_s11 + $0x11ec] sm:$0xf]  ;;  %v8843_v40 = vor.u32 %v9516_v31, %v8840_v34  ;;  %v8696_v46 = vld [vmem:[%s10390_s11 + $0xfd8] sm:$0xf0] }
 0x351   : > { %6375 = vmatpush.bf16.msra.mxu0 %v8027_v23  ;;  %v8344_v23 = vld [vmem:[%s10390_s11 + $0xd18] sm:$0xf0]  ;;  %v6149_v25 = vpop.f32.mrf.mxu2  ;;  %v9448_v42 = vld [vmem:[%s10390_s11 + $0xecc] sm:$0xf]  ;;  %v8971_v45 = vor.u32 %v9548_v35, %v8968_v41 }
 0x352   : > { %6388 = vmatpush.bf16.msra.mxu1 %v8155_v26  ;;  %v9452_v26 = vld [vmem:[%s10390_s11 + $0xeec] sm:$0xf]  ;;  %v6162_v29 = vpop.f32.mrf.mxu3  ;;  %v8824_v52 = vld [vmem:[%s10390_s11 + $0x10d8] sm:$0xf0]  ;;  %v8571_v53 = vor.u32 %v9448_v42, %v8568_v43 }
 0x353   : > { %6401 = vmatpush.bf16.msra.mxu2 %v8283_v27  ;;  %v8584_v27 = vld [vmem:[%s10390_s11 + $0xef8] sm:$0xf0]  ;;  %v9512_v47 = vld [vmem:[%s10390_s11 + $0x10cc] sm:$0xf] }
 0x354   : > { %6414 = vmatpush.bf16.msra.mxu3 %v8411_v32  ;;  %v8712_v32 = vld [vmem:[%s10390_s11 + $0xff8] sm:$0xf0]  ;;  %v9544_v5 = vld [vmem:[%s10390_s11 + $0x11cc] sm:$0xf]  ;;  %v8827_v61 = vor.u32 %v9512_v47, %v8824_v52 }
 0x355   : > { %6376 = vmatpush.bf16.msra.mxu0 %v8011_v36  ;;  %v8347_v36 = vor.u32 %v9392_v22, %v8344_v23  ;;  %v8952_v2 = vld [vmem:[%s10390_s11 + $0x11d8] sm:$0xf0]  ;;  %v9508_v11 = vld [vmem:[%s10390_s11 + $0x10ac] sm:$0xf] }
 0x356   : > { %6389 = vmatpush.bf16.msra.mxu1 %v8139_v37  ;;  %v8587_v37 = vor.u32 %v9452_v26, %v8584_v27  ;;  %v8552_v51 = vld [vmem:[%s10390_s11 + $0xeb8] sm:$0xf0]  ;;  %v9440_v15 = vld [vmem:[%s10390_s11 + $0xe8c] sm:$0xf] }
 0x357   : > { %6402 = vmatpush.bf16.msra.mxu2 %v8267_v38  ;;  %v8715_v38 = vor.u32 %v9484_v28, %v8712_v32  ;;  %v8680_v9 = vld [vmem:[%s10390_s11 + $0xfb8] sm:$0xf0]  ;;  %v9504_v19 = vld [vmem:[%s10390_s11 + $0x108c] sm:$0xf] }
 0x358   : > { %6415 = vmatpush.bf16.msra.mxu3 %v8395_v44  ;;  %v9480_v44 = vld [vmem:[%s10390_s11 + $0xfcc] sm:$0xf]  ;;  %v8808_v13 = vld [vmem:[%s10390_s11 + $0x10b8] sm:$0xf0] }
 0x359   : > { %6377 = vmatpush.bf16.msra.mxu0 %v7995_v4  ;;  %v8699_v59 = vor.u32 %v9480_v44, %v8696_v46  ;;  %v9444_v4 = vld [vmem:[%s10390_s11 + $0xeac] sm:$0xf]  ;;  %v8936_v58 = vld [vmem:[%s10390_s11 + $0x11b8] sm:$0xf0]  ;;  %v8811_v6 = vor.u32 %v9508_v11, %v8808_v13 }
 0x35a   : > { %6390 = vmatpush.bf16.msra.mxu1 %v8123_v7  ;;  %v9476_v7 = vld [vmem:[%s10390_s11 + $0xfac] sm:$0xf]  ;;  %v8536_v16 = vld [vmem:[%s10390_s11 + $0xe98] sm:$0xf0] }
 0x35b   : > { %6403 = vmatpush.bf16.msra.mxu2 %v8251_v8  ;;  %v8955_v8 = vor.u32 %v9544_v5, %v8952_v2  ;;  %v8683_v12 = vor.u32 %v9476_v7, %v8680_v9  ;;  %v8792_v56 = vld [vmem:[%s10390_s11 + $0x1098] sm:$0xf0]  ;;  %v8539_v54 = vor.u32 %v9440_v15, %v8536_v16  ;;  %v9436_v22 = vld [vmem:[%s10390_s11 + $0xe6c] sm:$0xf] }
 0x35c   : > { %6416 = vmatpush.bf16.msra.mxu3 %v8379_v14  ;;  %v9540_v14 = vld [vmem:[%s10390_s11 + $0x11ac] sm:$0xf]  ;;  %v8795_v21 = vor.u32 %v9504_v19, %v8792_v56  ;;  %v8520_v23 = vld [vmem:[%s10390_s11 + $0xe78] sm:$0xf0] }
 0x35d   : > { %6378 = vmatpush.bf16.msra.mxu0 %v7979_v17  ;;  %v8664_v17 = vld [vmem:[%s10390_s11 + $0xf98] sm:$0xf0]  ;;  %v9468_v25 = vld [vmem:[%s10390_s11 + $0xf6c] sm:$0xf]  ;;  %v8523_v31 = vor.u32 %v9436_v22, %v8520_v23 }
 0x35e   : > { %6391 = vmatpush.bf16.msra.mxu1 %v8107_v10  ;;  %v9536_v10 = vld [vmem:[%s10390_s11 + $0x118c] sm:$0xf]  ;;  %v8648_v28 = vld [vmem:[%s10390_s11 + $0xf78] sm:$0xf0] }
 0x35f   : > { %6404 = vmatpush.bf16.msra.mxu2 %v8235_v24  ;;  %v8920_v24 = vld [vmem:[%s10390_s11 + $0x1198] sm:$0xf0]  ;;  %v9500_v29 = vld [vmem:[%s10390_s11 + $0x106c] sm:$0xf]  ;;  %v8651_v34 = vor.u32 %v9468_v25, %v8648_v28 }
 0x360   : > { %6417 = vmatpush.bf16.msra.mxu3 %v8363_v20  ;;  %v8923_v26 = vor.u32 %v9536_v10, %v8920_v24  ;;  %v8904_v32 = vld [vmem:[%s10390_s11 + $0x1178] sm:$0xf0]  ;;  %v9464_v41 = vld [vmem:[%s10390_s11 + $0xf4c] sm:$0xf] }
 0x361   : > { %6379 = vmatpush.bf16.msra.mxu0 %v7963_v30  ;;  %v9532_v30 = vld [vmem:[%s10390_s11 + $0x116c] sm:$0xf]  ;;  %v8504_v35 = vld [vmem:[%s10390_s11 + $0xe58] sm:$0xf0] }
 0x362   : > { %6392 = vmatpush.bf16.msra.mxu1 %v8091_v33  ;;  %v6186_v63 = vpop.f32.mrf.mxu1  ;;  %v8760_v42 = vld [vmem:[%s10390_s11 + $0x1058] sm:$0xf0]  ;;  %v9492_v9 = vld [vmem:[%s10390_s11 + $0x102c] sm:$0xf] }
 0x363   : > { %6405 = vmatpush.bf16.msra.mxu2 %v8219_v18  ;;  %v9432_v18 = vld [vmem:[%s10390_s11 + $0xe4c] sm:$0xf]  ;;  %v8888_v46 = vld [vmem:[%s10390_s11 + $0x1158] sm:$0xf0] }
 0x364   : > { %6418 = vmatpush.bf16.msra.mxu3 %v8347_v36  ;;  %6380 = vmatmul.bf16.vlgmr.msra.gmra.mxu0 %v10651_v62  ;;  %v8555_v62 = vor.u32 %v9444_v4, %v8552_v51  ;;  %v8907_v36 = vor.u32 %v9532_v30, %v8904_v32  ;;  %v8507_v52 = vor.u32 %v9432_v18, %v8504_v35  ;;  %v8488_v4 = vld [vmem:[%s10390_s11 + $0xe38] sm:$0xf0]  ;;  %v9460_v51 = vld [vmem:[%s10390_s11 + $0xf2c] sm:$0xf] }
 0x365   : > { %6424 = vmatpush.bf16.msrb.mxu0 %v8587_v37  ;;  %6393 = vmatmul.bf16.vlgmr.msra.gmra.mxu1 %v10661_v3  ;;  %v8939_v3 = vor.u32 %v9540_v14, %v8936_v58  ;;  %v8744_v11 = vld [vmem:[%s10390_s11 + $0x1038] sm:$0xf0]  ;;  %v9524_v13 = vld [vmem:[%s10390_s11 + $0x112c] sm:$0xf] }
 0x366   : > { %6437 = vmatpush.bf16.msrb.mxu1 %v8715_v38  ;;  %6406 = vmatmul.bf16.vlgmr.msra.gmra.mxu2 %v10726_v49  ;;  %v9472_v49 = vld [vmem:[%s10390_s11 + $0xf8c] sm:$0xf]  ;;  %v8632_v38 = vld [vmem:[%s10390_s11 + $0xf58] sm:$0xf0] }
 0x367   : > { %6450 = vmatpush.bf16.msrb.mxu2 %v8843_v40  ;;  %6419 = vmatmul.bf16.vlgmr.msra.gmra.mxu3 %v10733_v60  ;;  %v6173_v60 = vpop.f32.mrf.mxu0  ;;  %v8667_v20 = vor.u32 %v9472_v49, %v8664_v17  ;;  %v9496_v40 = vld [vmem:[%s10390_s11 + $0x104c] sm:$0xf]  ;;  %v8872_v14 = vld [vmem:[%s10390_s11 + $0x1138] sm:$0xf0] }
 0x368   : > { %6463 = vmatpush.bf16.msrb.mxu3 %v8971_v45  ;;  %v6174_v0 = vadd.f32 %v6173_v60, %v11628_v1  ;;  %v8776_v1 = vld [vmem:[%s10390_s11 + $0x1078] sm:$0xf0]  ;;  %v9528_v45 = vld [vmem:[%s10390_s11 + $0x114c] sm:$0xf]  ;;  %v8875_v49 = vor.u32 %v9524_v13, %v8872_v14 }
 0x369   : > { %6425 = vmatpush.bf16.msrb.mxu0 %v8571_v53  ;;  %v8779_v33 = vor.u32 %v9500_v29, %v8776_v1  ;;  %v6199_v37 = vpop.f32.mrf.mxu2  ;;  %v8635_v53 = vor.u32 %v9464_v41, %v8632_v38  ;;  %v8891_v7 = vor.u32 %v9528_v45, %v8888_v46  ;;  %v8472_v15 = vld [vmem:[%s10390_s11 + $0xe18] sm:$0xf0]  ;;  %v9456_v16 = vld [vmem:[%s10390_s11 + $0xf0c] sm:$0xf] }
 0x36a   : > { %6438 = vmatpush.bf16.msrb.mxu1 %v8699_v59  ;;  %v6187_v27 = vadd.f32 %v6186_v63, %v6174_v0  ;;  %v6212_v44 = vpop.f32.mrf.mxu3  ;;  %v6188_v5 = vpop.f32.mrf.mxu1  ;;  %v8763_v59 = vor.u32 %v9496_v40, %v8760_v42  ;;  %v9488_v17 = vld [vmem:[%s10390_s11 + $0x100c] sm:$0xf]  ;;  %v8728_v19 = vld [vmem:[%s10390_s11 + $0x1018] sm:$0xf0] }
 0x36b   : > { %6451 = vmatpush.bf16.msrb.mxu2 %v8827_v61  ;;  %v9428_v61 = vld [vmem:[%s10390_s11 + $0xe2c] sm:$0xf]  ;;  %v8856_v10 = vld [vmem:[%s10390_s11 + $0x1118] sm:$0xf0]  ;;  %v8731_v63 = vor.u32 %v9488_v17, %v8728_v19 }
 0x36c   : > { %6464 = vmatpush.bf16.msrb.mxu3 %v8955_v8  ;;  %v6200_v43 = vadd.f32 %v6199_v37, %v6187_v27  ;;  %v8616_v8 = vld [vmem:[%s10390_s11 + $0xf38] sm:$0xf0]  ;;  %v8491_v58 = vor.u32 %v9428_v61, %v8488_v4  ;;  %v9520_v60 = vld [vmem:[%s10390_s11 + $0x110c] sm:$0xf] }
 0x36d   : > { %6426 = vmatpush.bf16.msrb.mxu0 %v8555_v62  ;;  %v8619_v62 = vor.u32 %v9460_v51, %v8616_v8 }
 0x36e   : > { %6439 = vmatpush.bf16.msrb.mxu1 %v8683_v12  ;;  %v6213_v2 = vadd.f32 %v6212_v44, %v6200_v43  ;;  %v8747_v12 = vor.u32 %v9492_v9, %v8744_v11 }
 0x36f   : > { %6452 = vmatpush.bf16.msrb.mxu2 %v8811_v6  ;;  %v6175_v47 = vpop.f32.mrf.mxu0  ;;  %v9424_v6 = vld [vmem:[%s10390_s11 + $0xe0c] sm:$0xf] }
 0x370   : > { %6465 = vmatpush.bf16.msrb.mxu3 %v8939_v3  ;;  %v8600_v3 = vld [vmem:[%s10390_s11 + $0xf18] sm:$0xf0]  ;;  %v8475_v0 = vor.u32 %v9424_v6, %v8472_v15 }
 0x371   : > { %6427 = vmatpush.bf16.msrb.mxu0 %v8539_v54  ;;  %v6201_v56 = vpop.f32.mrf.mxu2  ;;  %v8603_v54 = vor.u32 %v9456_v16, %v8600_v3 }
 0x372   : > { %6440 = vmatpush.bf16.msrb.mxu1 %v8667_v20  ;;  %v6214_v24 = vpop.f32.mrf.mxu3  ;;  %v8859_v20 = vor.u32 %v9520_v60, %v8856_v10 }
 0x373   : > { %6453 = vmatpush.bf16.msrb.mxu2 %v8795_v21 }
 0x374   : > { %6466 = vmatpush.bf16.msrb.mxu3 %v8923_v26 }
 0x375   : > { %6428 = vmatpush.bf16.msrb.mxu0 %v8523_v31 }
 0x376   : > { %6441 = vmatpush.bf16.msrb.mxu1 %v8651_v34 }
 0x377   : > { %6454 = vmatpush.bf16.msrb.mxu2 %v8779_v33 }
 0x378   : > { %6467 = vmatpush.bf16.msrb.mxu3 %v8907_v36 }
 0x379   : > { %6429 = vmatpush.bf16.msrb.mxu0 %v8507_v52 }
 0x37a   : > { %6442 = vmatpush.bf16.msrb.mxu1 %v8635_v53 }
 0x37b   : > { %6455 = vmatpush.bf16.msrb.mxu2 %v8763_v59 }
 0x37c   : > { %6468 = vmatpush.bf16.msrb.mxu3 %v8891_v7 }
 0x37d   : > { %6430 = vmatpush.bf16.msrb.mxu0 %v8491_v58 }
 0x37e   : > { %6443 = vmatpush.bf16.msrb.mxu1 %v8619_v62  ;;  %v6520_v62 = vld [vmem:[%s2006_s4] sm:$0xf] }
 0x37f   : > { %6456 = vmatpush.bf16.msrb.mxu2 %v8747_v12  ;;  %v6523_v16 = vperm.slane %v6520_v62, 1  ;;  %v6524_v3 = vperm.slane %v6520_v62, 2  ;;  %v6525_v17 = vperm.slane %v6520_v62, 3  ;;  %v6522_v19 = vperm.slane %v6520_v62, 0 }
 0x380   : > { %6469 = vmatpush.bf16.msrb.mxu3 %v8875_v49 }
 0x381   : > { %6431 = vmatpush.bf16.msrb.mxu0 %v8475_v0  ;;  %v6225_v21 = vpop.f32.mrf.mxu0  ;;  %v6526_v56 = vrot.slane %v6523_v16, 6  ;;  %v6527_v10 = vrot.slane %v6524_v3, 4  ;;  %v6528_v24 = vrot.slane %v6525_v17, 2 }
 0x382   : > { %6444 = vmatpush.bf16.msrb.mxu1 %v8603_v54  ;;  %v6226_v22 = vadd.f32 %v6225_v21, %v6213_v2  ;;  %v6238_v23 = vpop.f32.mrf.mxu1 }
 0x383   : > { %6457 = vmatpush.bf16.msrb.mxu2 %v8731_v63 }
 0x384   : > { %6470 = vmatpush.bf16.msrb.mxu3 %v8859_v20  ;;  %6432 = vmatmul.bf16.vlgmr.msrb.gmra.mxu0 %v10731_v57  ;;  %v11719_v25 = vadd.f32 %v6238_v23, %v6226_v22  ;;  %v6530_v22 = vsel %vm6487_vm0, %v6522_v19, %v6526_v56 }
 0x385   : > { %6445 = vmatmul.bf16.vlgmr.msrb.gmra.mxu1 %v10737_v48 }
 0x386   : > { %6458 = vmatmul.bf16.vlgmr.msrb.gmra.mxu2 %v10802_v55 }
 0x387   : > { %6471 = vmatmul.bf16.vlgmr.msrb.gmra.mxu3 %v10807_v50 }
 0x389   : > { %v6251_v26 = vpop.f32.mrf.mxu2  ;;  %v6227_v28 = vpop.f32.mrf.mxu0 }
 0x38a   : > { %v6264_v27 = vpop.f32.mrf.mxu3  ;;  %v6240_v1 = vpop.f32.mrf.mxu1 }
 0x38b   : > { %v6265_v29 = vadd.f32 %v6264_v27, %v6251_v26  ;;  %v6532_v26 = vsel %vm6489_vm1, %v6527_v10, %v6528_v24  ;;  %v6485_v27 = vrot.slane %v11719_v25, 4 }
 0x391   : > { %v6253_v30 = vpop.f32.mrf.mxu2 }
 0x392   : > { %v6266_v32 = vpop.f32.mrf.mxu3 }
 0x3a1   : > { %v6277_v31 = vpop.f32.mrf.mxu0 }
 0x3a2   : > { %v6278_v57 = vadd.f32 %v6277_v31, %v6265_v29  ;;  %v6290_v34 = vpop.f32.mrf.mxu1  ;;  %v6534_v29 = vsel %vm6491_vm2, %v6530_v22, %v6532_v26 }
 0x3a4   : > { %v6291_v48 = vadd.f32 %v6290_v34, %v6278_v57 }
 0x3a9   : > { %v6303_v33 = vpop.f32.mrf.mxu2  ;;  %v6279_v35 = vpop.f32.mrf.mxu0 }
 0x3aa   : > { %v6304_v55 = vadd.f32 %v6303_v33, %v6291_v48  ;;  %v6316_v18 = vpop.f32.mrf.mxu3  ;;  %v6292_v41 = vpop.f32.mrf.mxu1 }
 0x3ac   : > { %v6317_v50 = vadd.f32 %v6316_v18, %v6304_v55 }
 0x3b1   : > { %v6305_v36 = vpop.f32.mrf.mxu2 }
 0x3b2   : > { %v6318_v37 = vpop.f32.mrf.mxu3 }
 0x3c1   : > { %v6329_v38 = vpop.f32.mrf.mxu0 }
 0x3c2   : > { %v6342_v40 = vpop.f32.mrf.mxu1  ;;  %v6330_v2 = vadd.f32 %v6329_v38, %v6317_v50 }
 0x3c4   : > { %v6343_v51 = vadd.f32 %v6342_v40, %v6330_v2 }
 0x3c9   : > { %v6355_v42 = vpop.f32.mrf.mxu2  ;;  %v6331_v44 = vpop.f32.mrf.mxu0 }
 0x3ca   : > { %v6368_v43 = vpop.f32.mrf.mxu3  ;;  %v6344_v45 = vpop.f32.mrf.mxu1  ;;  %v6356_v7 = vadd.f32 %v6355_v42, %v6343_v51 }
 0x3cc   : > { %v6369_v11 = vadd.f32 %v6368_v43, %v6356_v7 }
 0x3d1   : > { %v6357_v46 = vpop.f32.mrf.mxu2 }
 0x3d2   : > { %v6370_v47 = vpop.f32.mrf.mxu3 }
 0x3e1   : > { %v6381_v52 = vpop.f32.mrf.mxu0 }
 0x3e2   : > { %v6394_v5 = vpop.f32.mrf.mxu1  ;;  %v6382_v13 = vadd.f32 %v6381_v52, %v6369_v11 }
 0x3e4   : > { %v6395_v14 = vadd.f32 %v6394_v5, %v6382_v13 }
 0x3e9   : > { %v6407_v53 = vpop.f32.mrf.mxu2  ;;  %v6383_v61 = vpop.f32.mrf.mxu0 }
 0x3ea   : > { %v6420_v59 = vpop.f32.mrf.mxu3  ;;  %v6396_v4 = vpop.f32.mrf.mxu1  ;;  %v6408_v58 = vadd.f32 %v6407_v53, %v6395_v14 }
 0x3ec   : > { %v6421_v12 = vadd.f32 %v6420_v59, %v6408_v58 }
 0x3f1   : > { %v6409_v8 = vpop.f32.mrf.mxu2 }
 0x3f2   : > { %v6422_v9 = vpop.f32.mrf.mxu3 }
 0x401   : > { %v6433_v6 = vpop.f32.mrf.mxu0 }
 0x402   : > { %v6446_v15 = vpop.f32.mrf.mxu1  ;;  %v6434_v49 = vadd.f32 %v6433_v6, %v6421_v12 }
 0x404   : > { %v6447_v60 = vadd.f32 %v6446_v15, %v6434_v49 }
 0x409   : > { %v6459_v0 = vpop.f32.mrf.mxu2  ;;  %v6435_v20 = vpop.f32.mrf.mxu0 }
 0x40a   : > { %v6460_v54 = vadd.f32 %v6459_v0, %v6447_v60  ;;  %v6472_v63 = vpop.f32.mrf.mxu3  ;;  %v6448_v21 = vpop.f32.mrf.mxu1 }
 0x40c   : > { %v6473_v23 = vadd.f32 %v6472_v63, %v6460_v54 }
 0x40e   : > { %v6486_v28 = vrot.slane %v6473_v23, 2 }
 0x410   : > { %v6490_v1 = vsel %vm6489_vm1, %v6485_v27, %v6486_v28 }
 0x411   : > { %v6492_v30 = vsel %vm6491_vm2, %v11426_v39, %v6490_v1  ;;  %v6461_v32 = vpop.f32.mrf.mxu2 }
 0x412   : > { %v6536_v31 = vadd.f32 %v6534_v29, %v6492_v30  ;;  %v6474_v57 = vpop.f32.mrf.mxu3 }
 0x414   : > { %v6537_v34 = vmax.f32 %v6536_v31, 0.0 }
 0x416   : > { %6538 = vst [vmem:[%s2012_s7] sm:$0xff] %v6537_v34 }
 0x417 PF: > { %s13_s16 = sadd.s32 1, %s9679_s16   ;;  %s11759_s12 = smov %s9667_s13 }
 0x418   : > { %p10_p12 = scmp.ge.s32.totalorder %s13_s16, 4   ;;  %s11760_s13 = smov %s9752_s20 }
 0x419   : > { %s11761_s14 = smov %s9675_s15  ;;  %s11762_s15 = smov %s11764_s17 }
 0x41a   :  { %12 = sbr.rel (!%p10_p12) target bundleno = 3 (0x3), region = 136 }

</bundles_post_ra>
